<compile_context>
chip_gen: v6e
topology: v6e:2x2x1
jax: 0.10.0
libtpu: 0.0.40
codegen_flags: <defaults>
</compile_context>

<pallas_src>
import jax
import jax.numpy as jnp
from jax.experimental import pallas as pl
from jax.experimental.pallas import tpu as pltpu

IN_DIM = 64        # word/node embedding dim fed to the first GAT layer
N_BODY = 40        # number of body-graph nodes
N_HEAD = 6         # number of head-graph nodes
NUM_SUB = 12       # number of positive / negative ego-subgraphs
EMBED = 96         # pooled representation dim (3 * 32)
NUM_HEADS = 2      # multi-head attention heads (96 / 2 = 48 per head)
HEAD_DIM = EMBED // NUM_HEADS


# ----------------------------- fused Pallas kernel -----------------------------

def _fused_forward_kernel(
        body_ref, head_ref, ab_ref, ah_ref, pmask_ref, nmask_ref,
        wc1_ref, wc2_ref, wc3_ref, wh1_ref, wh2_ref,
        wq_ref, bq_ref, wk_ref, bk_ref, wv_ref, bv_ref, wo_ref, bo_ref,
        w1_ref, b1_ref, w2_ref, b2_ref, w3_ref, b3_ref,
        o_ref):
    f32 = jnp.float32

    # --- GAT stacks (normalized-adjacency message passing, tanh fused) ---
    # TODO(synk): torch_geometric-style GAT attention coefficients are not defined in the
    # reference source; approximated as A_hat @ (X W) with tanh, matching the previous version.
    def gat(x, a, w):
        xw = jnp.dot(x, w, preferred_element_type=f32)
        return jnp.tanh(jnp.dot(a, xw, preferred_element_type=f32))

    a_body = ab_ref[...]
    a_head = ah_ref[...]
    b = gat(body_ref[...], a_body, wc1_ref[...])
    b = gat(b, a_body, wc2_ref[...])
    b = gat(b, a_body, wc3_ref[...])              # (N_BODY, 32)
    h = gat(head_ref[...], a_head, wh1_ref[...])
    h = gat(h, a_head, wh2_ref[...])              # (N_HEAD, 32)

    # --- masked [max, min, mean] pooling, all subgraphs at once ---
    BIG = jnp.float32(3.0e38)

    def masked_pool(x, mask):
        # x: (N, D), mask: (G, N)  ->  (G, 3D)
        sel = mask[:, :, None] > 0.0                                   # (G, N, 1)
        xb = x[None, :, :]                                             # (1, N, D)
        mx = jnp.max(jnp.where(sel, xb, -BIG), axis=1)                 # (G, D)
        mn = jnp.min(jnp.where(sel, xb, BIG), axis=1)                  # (G, D)
        cnt = jnp.maximum(jnp.sum(mask, axis=1, keepdims=True), 1.0)   # guard (never hit: self loops)
        mean = jnp.dot(mask, x, preferred_element_type=f32) / cnt      # (G, D) via MXU
        return jnp.concatenate([mx, mn, mean], axis=1)                 # (G, 3D)

    def full_pool(x):
        mx = jnp.max(x, axis=0, keepdims=True)
        mn = jnp.min(x, axis=0, keepdims=True)
        mean = jnp.mean(x, axis=0, keepdims=True)
        return jnp.concatenate([mx, mn, mean], axis=1)                 # (1, 3D)

    pos_pooled = masked_pool(b, pmask_ref[...])                        # (12, 96)
    neg_pooled = masked_pool(b, nmask_ref[...])                        # (12, 96)
    head_pooled = full_pool(h)                                         # (1, 96)
    global_body = full_pool(b)                                         # (1, 96)

    # --- multi-head attention, both branches fused; Q projection / weights shared ---
    qp = jnp.dot(head_pooled, wq_ref[...], preferred_element_type=f32) + bq_ref[...]   # (1, 96)
    lane = jax.lax.broadcasted_iota(jnp.int32, (1, EMBED), 1)
    head0 = lane < HEAD_DIM                                            # lanes of head 0
    scale = 1.0 / (HEAD_DIM ** 0.5)

    def mha_branch(kv, indicator):
        kp = jnp.dot(kv, wk_ref[...], preferred_element_type=f32) + bk_ref[...]        # (S, 96)
        vp = jnp.dot(kv, wv_ref[...], preferred_element_type=f32) + bv_ref[...]        # (S, 96)
        prod = qp * kp                                                                  # (S, 96)
        s0 = jnp.sum(jnp.where(head0, prod, 0.0), axis=1, keepdims=True) * scale        # (S, 1)
        s1 = jnp.sum(jnp.where(head0, 0.0, prod), axis=1, keepdims=True) * scale        # (S, 1)
        w0 = jax.nn.sigmoid(s0)
        w1 = jax.nn.sigmoid(s1)
        if indicator != 0:
            w0 = 1.0 - w0                       # torch.sub(1, attention_weights)
            w1 = 1.0 - w1
        w0 = jax.nn.softmax(w0, axis=0)         # softmax over the 12 key positions
        w1 = jax.nn.softmax(w1, axis=0)
        # TODO(synk): nn.Dropout(0.2) on attention weights is identity here (eval-mode forward).
        w_lanes = jnp.where(head0, w0, w1)                              # (S, 96)
        att = jnp.sum(w_lanes * vp, axis=0, keepdims=True)              # (1, 96) = per-head concat
        return jnp.dot(att, wo_ref[...], preferred_element_type=f32) + bo_ref[...]

    pos_rep = mha_branch(pos_pooled, 0)                                 # (1, 96)
    neg_rep = mha_branch(neg_pooled, 1)                                 # (1, 96)

    # --- Similarity (method == 'sim'): block-row accumulation instead of 1152-lane concat ---
    head = head_pooled
    body = global_body
    # Note: the reference really uses abs(a + b) (torch.abs(torch.add(...))) — kept as-is.
    pieces = (
        head, pos_rep, neg_rep, body,
        head * pos_rep, jnp.abs(head + pos_rep),
        head * body, jnp.abs(head + body),
        head * neg_rep, jnp.abs(head + neg_rep),
        pos_rep * neg_rep, jnp.abs(pos_rep + neg_rep),
    )
    acc = b1_ref[...]                                                   # (1, 512) f32
    for i, piece in enumerate(pieces):
        acc = acc + jnp.dot(piece.astype(w1_ref.dtype), w1_ref[i],
                            preferred_element_type=f32)
    h1 = jax.nn.sigmoid(acc)
    h2 = jax.nn.sigmoid(jnp.dot(h1, w2_ref[...], preferred_element_type=f32) + b2_ref[...])
    o_ref[...] = jnp.dot(h2, w3_ref[...], preferred_element_type=f32) + b3_ref[...]


def fused_forward(params, body_feat, head_feat, a_body, a_head, pos_mask, neg_mask):
    mha = params["mha"]
    sim = params["sim"]
    # bf16 slabs for the only non-trivial weight (1152x512 = 2.25 MiB f32 -> 1.13 MiB bf16);
    # laid out as (12, 96, 512) so the kernel accumulates block-rows instead of concatenating.
    w1_slabs = sim["w1"].astype(jnp.bfloat16).reshape(NUM_SUB, EMBED, 512)

    args = (
        body_feat.astype(jnp.float32), head_feat.astype(jnp.float32),
        a_body, a_head, pos_mask, neg_mask,
        params["conv1"], params["conv2"], params["conv3"],
        params["hconv1"], params["hconv2"],
        mha["wq"], mha["bq"].reshape(1, EMBED),
        mha["wk"], mha["bk"].reshape(1, EMBED),
        mha["wv"], mha["bv"].reshape(1, EMBED),
        mha["wo"], mha["bo"].reshape(1, EMBED),
        w1_slabs, sim["b1"].reshape(1, -1),
        sim["w2"], sim["b2"].reshape(1, -1),
        sim["w3"], sim["b3"].reshape(1, -1),
    )
    vmem_spec = pl.BlockSpec(memory_space=pltpu.MemorySpace.VMEM)
    return pl.pallas_call(
        _fused_forward_kernel,
        in_specs=[vmem_spec] * len(args),
        out_specs=vmem_spec,
        out_shape=jax.ShapeDtypeStruct((1, 2), jnp.float32),
    )(*args)


# ----------------------------- plain-JAX glue -----------------------------

def build_adjacency(edges, n):
    """Undirected adjacency with self loops: row-normalized version + radius-1 reach mask."""
    a = jnp.zeros((n, n), jnp.float32)
    a = a.at[edges[:, 0], edges[:, 1]].set(1.0)
    a = a.at[edges[:, 1], edges[:, 0]].set(1.0)
    a = jnp.minimum(a + jnp.eye(n, dtype=jnp.float32), 1.0)
    deg = jnp.sum(a, axis=1, keepdims=True)
    return a / deg, a


def forward(params, body_feat, head_feat, b_edges, h_edges):
    a_body, reach_body = build_adjacency(b_edges, N_BODY)
    a_head, _ = build_adjacency(h_edges, N_HEAD)

    # --- DocLSTM: head/body similarity + top-k positive / negative node selection ---
    sim = head_feat @ body_feat.T                                  # (N_HEAD, N_BODY), tiny
    _, top_inds = jax.lax.top_k(sim, 3)                            # largest
    pos_idx = jnp.transpose(top_inds).reshape(-1)[:NUM_SUB]
    _, bot_inds = jax.lax.top_k(-sim, 3)                           # smallest
    neg_idx = jnp.transpose(bot_inds).reshape(-1)[:NUM_SUB]
    # TODO(synk): dict.fromkeys dedup + random.sample backfill of indices is data-dependent
    # host logic; the first NUM_SUB entries of the transposed/flattened top-k are used instead.

    # radius-1 ego-graph membership masks (rows of the self-loop reach matrix)
    pos_mask = jnp.take(reach_body, pos_idx, axis=0)               # (12, N_BODY)
    neg_mask = jnp.take(reach_body, neg_idx, axis=0)               # (12, N_BODY)

    return fused_forward(params, body_feat, head_feat, a_body, a_head, pos_mask, neg_mask)


# ----------------------------- parameter init -----------------------------

def _init_linear(key, fan_in, fan_out):
    k1, k2 = jax.random.split(key)
    bound = 1.0 / (fan_in ** 0.5)
    w = jax.random.uniform(k1, (fan_in, fan_out), jnp.float32, -bound, bound)
    b = jax.random.uniform(k2, (fan_out,), jnp.float32, -bound, bound)
    return w, b


def init_params(key):
    keys = jax.random.split(key, 16)
    p = {}
    p["conv1"], _ = _init_linear(keys[0], IN_DIM, 128)
    p["conv2"], _ = _init_linear(keys[1], 128, 64)
    p["conv3"], _ = _init_linear(keys[2], 64, 32)
    p["hconv1"], _ = _init_linear(keys[3], IN_DIM, 128)
    p["hconv2"], _ = _init_linear(keys[4], 128, 32)

    mha = {}
    mha["wq"], mha["bq"] = _init_linear(keys[5], EMBED, EMBED)
    mha["wk"], mha["bk"] = _init_linear(keys[6], EMBED, EMBED)
    mha["wv"], mha["bv"] = _init_linear(keys[7], EMBED, EMBED)
    mha["wo"], mha["bo"] = _init_linear(keys[8], EMBED, EMBED)
    p["mha"] = mha

    sim = {}
    sim["w1"], sim["b1"] = _init_linear(keys[9], 1152, 512)
    sim["w2"], sim["b2"] = _init_linear(keys[10], 512, 128)
    sim["w3"], sim["b3"] = _init_linear(keys[11], 128, 2)
    p["sim"] = sim
    return p


# ----------------------------- main -----------------------------

if __name__ == "__main__":
    key = jax.random.PRNGKey(0)
    k_bf, k_hf, k_be, k_he, k_p = jax.random.split(key, 5)

    body_feat = jax.random.normal(k_bf, (N_BODY, IN_DIM), jnp.float32)
    head_feat = jax.random.normal(k_hf, (N_HEAD, IN_DIM), jnp.float32)
    b_edges = jax.random.randint(k_be, (80, 2), 0, N_BODY, dtype=jnp.int32)
    h_edges = jax.random.randint(k_he, (12, 2), 0, N_HEAD, dtype=jnp.int32)

    params = init_params(k_p)

    fwd = jax.jit(forward)
    out = fwd(params, body_feat, head_feat, b_edges, h_edges)
    jax.block_until_ready(out)
    assert out.shape == (1, 2)
    assert bool(jnp.all(jnp.isfinite(out)))
    print("KERNEL_OK")
</pallas_src>

<mosaic_0001>
module attributes {stable_mosaic.version = 11 : i64} {
  func.func @_fused_forward_kernel(%arg0: memref<40x64xf32, #tpu.memory_space<vmem>>, %arg1: memref<6x64xf32, #tpu.memory_space<vmem>>, %arg2: memref<40x40xf32, #tpu.memory_space<vmem>>, %arg3: memref<6x6xf32, #tpu.memory_space<vmem>>, %arg4: memref<12x40xf32, #tpu.memory_space<vmem>>, %arg5: memref<12x40xf32, #tpu.memory_space<vmem>>, %arg6: memref<64x128xf32, #tpu.memory_space<vmem>>, %arg7: memref<128x64xf32, #tpu.memory_space<vmem>>, %arg8: memref<64x32xf32, #tpu.memory_space<vmem>>, %arg9: memref<64x128xf32, #tpu.memory_space<vmem>>, %arg10: memref<128x32xf32, #tpu.memory_space<vmem>>, %arg11: memref<96x96xf32, #tpu.memory_space<vmem>>, %arg12: memref<1x96xf32, #tpu.memory_space<vmem>>, %arg13: memref<96x96xf32, #tpu.memory_space<vmem>>, %arg14: memref<1x96xf32, #tpu.memory_space<vmem>>, %arg15: memref<96x96xf32, #tpu.memory_space<vmem>>, %arg16: memref<1x96xf32, #tpu.memory_space<vmem>>, %arg17: memref<96x96xf32, #tpu.memory_space<vmem>>, %arg18: memref<1x96xf32, #tpu.memory_space<vmem>>, %arg19: memref<12x96x512xbf16, #tpu.memory_space<vmem>>, %arg20: memref<1x512xf32, #tpu.memory_space<vmem>>, %arg21: memref<512x128xf32, #tpu.memory_space<vmem>>, %arg22: memref<1x128xf32, #tpu.memory_space<vmem>>, %arg23: memref<128x2xf32, #tpu.memory_space<vmem>>, %arg24: memref<1x2xf32, #tpu.memory_space<vmem>>, %arg25: memref<1x2xf32, #tpu.memory_space<vmem>>) attributes {dimension_semantics = [], scalar_prefetch = 0 : i64, scratch_operands = 0 : i64, tpu.core_type = #tpu.core_type<tc>} {
    %c0 = arith.constant 0 : index
    %c0_0 = arith.constant 0 : index
    %0 = vector.load %arg2[%c0, %c0_0] : memref<40x40xf32, #tpu.memory_space<vmem>>, vector<40x40xf32>
    %c0_1 = arith.constant 0 : index
    %c0_2 = arith.constant 0 : index
    %1 = vector.load %arg3[%c0_1, %c0_2] : memref<6x6xf32, #tpu.memory_space<vmem>>, vector<6x6xf32>
    %c0_3 = arith.constant 0 : index
    %c0_4 = arith.constant 0 : index
    %2 = vector.load %arg0[%c0_3, %c0_4] : memref<40x64xf32, #tpu.memory_space<vmem>>, vector<40x64xf32>
    %c0_5 = arith.constant 0 : index
    %c0_6 = arith.constant 0 : index
    %3 = vector.load %arg6[%c0_5, %c0_6] : memref<64x128xf32, #tpu.memory_space<vmem>>, vector<64x128xf32>
    %cst = arith.constant dense<0.000000e+00> : vector<40x128xf32>
    %4 = tpu.matmul %2, %3, %cst {dimension_numbers = #tpu.dot_dimension_numbers<[1], [0], [0], [1], [0, 0, 1, 1], [], []>} : vector<40x64xf32>, vector<64x128xf32>, vector<40x128xf32> -> vector<40x128xf32>
    %cst_7 = arith.constant dense<0.000000e+00> : vector<40x128xf32>
    %5 = tpu.matmul %0, %4, %cst_7 {dimension_numbers = #tpu.dot_dimension_numbers<[1], [0], [0], [1], [0, 0, 1, 1], [], []>} : vector<40x40xf32>, vector<40x128xf32>, vector<40x128xf32> -> vector<40x128xf32>
    %6 = math.tanh %5 : vector<40x128xf32>
    %c0_8 = arith.constant 0 : index
    %c0_9 = arith.constant 0 : index
    %7 = vector.load %arg7[%c0_8, %c0_9] : memref<128x64xf32, #tpu.memory_space<vmem>>, vector<128x64xf32>
    %cst_10 = arith.constant dense<0.000000e+00> : vector<40x64xf32>
    %8 = tpu.matmul %6, %7, %cst_10 {dimension_numbers = #tpu.dot_dimension_numbers<[1], [0], [0], [1], [0, 0, 1, 1], [], []>} : vector<40x128xf32>, vector<128x64xf32>, vector<40x64xf32> -> vector<40x64xf32>
    %cst_11 = arith.constant dense<0.000000e+00> : vector<40x64xf32>
    %9 = tpu.matmul %0, %8, %cst_11 {dimension_numbers = #tpu.dot_dimension_numbers<[1], [0], [0], [1], [0, 0, 1, 1], [], []>} : vector<40x40xf32>, vector<40x64xf32>, vector<40x64xf32> -> vector<40x64xf32>
    %10 = math.tanh %9 : vector<40x64xf32>
    %c0_12 = arith.constant 0 : index
    %c0_13 = arith.constant 0 : index
    %11 = vector.load %arg8[%c0_12, %c0_13] : memref<64x32xf32, #tpu.memory_space<vmem>>, vector<64x32xf32>
    %cst_14 = arith.constant dense<0.000000e+00> : vector<40x32xf32>
    %12 = tpu.matmul %10, %11, %cst_14 {dimension_numbers = #tpu.dot_dimension_numbers<[1], [0], [0], [1], [0, 0, 1, 1], [], []>} : vector<40x64xf32>, vector<64x32xf32>, vector<40x32xf32> -> vector<40x32xf32>
    %cst_15 = arith.constant dense<0.000000e+00> : vector<40x32xf32>
    %13 = tpu.matmul %0, %12, %cst_15 {dimension_numbers = #tpu.dot_dimension_numbers<[1], [0], [0], [1], [0, 0, 1, 1], [], []>} : vector<40x40xf32>, vector<40x32xf32>, vector<40x32xf32> -> vector<40x32xf32>
    %14 = math.tanh %13 : vector<40x32xf32>
    %c0_16 = arith.constant 0 : index
    %c0_17 = arith.constant 0 : index
    %15 = vector.load %arg1[%c0_16, %c0_17] : memref<6x64xf32, #tpu.memory_space<vmem>>, vector<6x64xf32>
    %c0_18 = arith.constant 0 : index
    %c0_19 = arith.constant 0 : index
    %16 = vector.load %arg9[%c0_18, %c0_19] : memref<64x128xf32, #tpu.memory_space<vmem>>, vector<64x128xf32>
    %cst_20 = arith.constant dense<0.000000e+00> : vector<6x128xf32>
    %17 = tpu.matmul %15, %16, %cst_20 {dimension_numbers = #tpu.dot_dimension_numbers<[1], [0], [0], [1], [0, 0, 1, 1], [], []>} : vector<6x64xf32>, vector<64x128xf32>, vector<6x128xf32> -> vector<6x128xf32>
    %cst_21 = arith.constant dense<0.000000e+00> : vector<6x128xf32>
    %18 = tpu.matmul %1, %17, %cst_21 {dimension_numbers = #tpu.dot_dimension_numbers<[1], [0], [0], [1], [0, 0, 1, 1], [], []>} : vector<6x6xf32>, vector<6x128xf32>, vector<6x128xf32> -> vector<6x128xf32>
    %19 = math.tanh %18 : vector<6x128xf32>
    %c0_22 = arith.constant 0 : index
    %c0_23 = arith.constant 0 : index
    %20 = vector.load %arg10[%c0_22, %c0_23] : memref<128x32xf32, #tpu.memory_space<vmem>>, vector<128x32xf32>
    %cst_24 = arith.constant dense<0.000000e+00> : vector<6x32xf32>
    %21 = tpu.matmul %19, %20, %cst_24 {dimension_numbers = #tpu.dot_dimension_numbers<[1], [0], [0], [1], [0, 0, 1, 1], [], []>} : vector<6x128xf32>, vector<128x32xf32>, vector<6x32xf32> -> vector<6x32xf32>
    %cst_25 = arith.constant dense<0.000000e+00> : vector<6x32xf32>
    %22 = tpu.matmul %1, %21, %cst_25 {dimension_numbers = #tpu.dot_dimension_numbers<[1], [0], [0], [1], [0, 0, 1, 1], [], []>} : vector<6x6xf32>, vector<6x32xf32>, vector<6x32xf32> -> vector<6x32xf32>
    %23 = math.tanh %22 : vector<6x32xf32>
    %c0_26 = arith.constant 0 : index
    %c0_27 = arith.constant 0 : index
    %24 = vector.load %arg4[%c0_26, %c0_27] : memref<12x40xf32, #tpu.memory_space<vmem>>, vector<12x40xf32>
    %25 = vector.shape_cast %24 : vector<12x40xf32> to vector<12x40x1xf32>
    %cst_28 = arith.constant 0.000000e+00 : f32
    %26 = vector.broadcast %cst_28 : f32 to vector<12x40x1xf32>
    %27 = arith.cmpf ogt, %25, %26 : vector<12x40x1xf32>
    %28 = vector.shape_cast %14 : vector<40x32xf32> to vector<1x40x32xf32>
    %cst_29 = arith.constant 0.000000e+00 : f32
    %cst_30 = arith.constant 3.000000e+38 : f32
    %29 = arith.subf %cst_29, %cst_30 : f32
    %30 = vector.shape_cast %27 : vector<12x40x1xi1> to vector<12x40x1xi1>
    %31 = vector.broadcast %30 : vector<12x40x1xi1> to vector<12x40x32xi1>
    %32 = vector.shape_cast %28 : vector<1x40x32xf32> to vector<1x40x32xf32>
    %33 = vector.broadcast %32 : vector<1x40x32xf32> to vector<12x40x32xf32>
    %34 = vector.broadcast %29 : f32 to vector<12x40x32xf32>
    %35 = arith.select %31, %33, %34 : vector<12x40x32xi1>, vector<12x40x32xf32>
    %cst_31 = arith.constant dense<0xFF800000> : vector<12x32xf32>
    %36 = vector.multi_reduction <maximumf>, %35, %cst_31 [1] : vector<12x40x32xf32> to vector<12x32xf32>
    %cst_32 = arith.constant 3.000000e+38 : f32
    %37 = vector.shape_cast %27 : vector<12x40x1xi1> to vector<12x40x1xi1>
    %38 = vector.broadcast %37 : vector<12x40x1xi1> to vector<12x40x32xi1>
    %39 = vector.shape_cast %28 : vector<1x40x32xf32> to vector<1x40x32xf32>
    %40 = vector.broadcast %39 : vector<1x40x32xf32> to vector<12x40x32xf32>
    %41 = vector.broadcast %cst_32 : f32 to vector<12x40x32xf32>
    %42 = arith.select %38, %40, %41 : vector<12x40x32xi1>, vector<12x40x32xf32>
    %cst_33 = arith.constant dense<0x7F800000> : vector<12x32xf32>
    %43 = vector.multi_reduction <minimumf>, %42, %cst_33 [1] : vector<12x40x32xf32> to vector<12x32xf32>
    %cst_34 = arith.constant dense<0.000000e+00> : vector<12xf32>
    %44 = vector.multi_reduction <add>, %24, %cst_34 [1] : vector<12x40xf32> to vector<12xf32>
    %45 = vector.shape_cast %44 : vector<12xf32> to vector<12x1xf32>
    %cst_35 = arith.constant 1.000000e+00 : f32
    %46 = vector.broadcast %cst_35 : f32 to vector<12x1xf32>
    %47 = arith.maximumf %45, %46 : vector<12x1xf32>
    %cst_36 = arith.constant dense<0.000000e+00> : vector<12x32xf32>
    %48 = tpu.matmul %24, %14, %cst_36 {dimension_numbers = #tpu.dot_dimension_numbers<[1], [0], [0], [1], [0, 0, 1, 1], [], []>} : vector<12x40xf32>, vector<40x32xf32>, vector<12x32xf32> -> vector<12x32xf32>
    %49 = vector.broadcast %47 : vector<12x1xf32> to vector<12x32xf32>
    %50 = arith.divf %48, %49 : vector<12x32xf32>
    %51 = tpu.concatenate %36, %43, %50 in 1 : vector<12x32xf32>, vector<12x32xf32>, vector<12x32xf32> -> vector<12x96xf32>
    %c0_37 = arith.constant 0 : index
    %c0_38 = arith.constant 0 : index
    %52 = vector.load %arg5[%c0_37, %c0_38] : memref<12x40xf32, #tpu.memory_space<vmem>>, vector<12x40xf32>
    %53 = vector.shape_cast %52 : vector<12x40xf32> to vector<12x40x1xf32>
    %cst_39 = arith.constant 0.000000e+00 : f32
    %54 = vector.broadcast %cst_39 : f32 to vector<12x40x1xf32>
    %55 = arith.cmpf ogt, %53, %54 : vector<12x40x1xf32>
    %56 = vector.shape_cast %14 : vector<40x32xf32> to vector<1x40x32xf32>
    %cst_40 = arith.constant 0.000000e+00 : f32
    %cst_41 = arith.constant 3.000000e+38 : f32
    %57 = arith.subf %cst_40, %cst_41 : f32
    %58 = vector.shape_cast %55 : vector<12x40x1xi1> to vector<12x40x1xi1>
    %59 = vector.broadcast %58 : vector<12x40x1xi1> to vector<12x40x32xi1>
    %60 = vector.shape_cast %56 : vector<1x40x32xf32> to vector<1x40x32xf32>
    %61 = vector.broadcast %60 : vector<1x40x32xf32> to vector<12x40x32xf32>
    %62 = vector.broadcast %57 : f32 to vector<12x40x32xf32>
    %63 = arith.select %59, %61, %62 : vector<12x40x32xi1>, vector<12x40x32xf32>
    %cst_42 = arith.constant dense<0xFF800000> : vector<12x32xf32>
    %64 = vector.multi_reduction <maximumf>, %63, %cst_42 [1] : vector<12x40x32xf32> to vector<12x32xf32>
    %cst_43 = arith.constant 3.000000e+38 : f32
    %65 = vector.shape_cast %55 : vector<12x40x1xi1> to vector<12x40x1xi1>
    %66 = vector.broadcast %65 : vector<12x40x1xi1> to vector<12x40x32xi1>
    %67 = vector.shape_cast %56 : vector<1x40x32xf32> to vector<1x40x32xf32>
    %68 = vector.broadcast %67 : vector<1x40x32xf32> to vector<12x40x32xf32>
    %69 = vector.broadcast %cst_43 : f32 to vector<12x40x32xf32>
    %70 = arith.select %66, %68, %69 : vector<12x40x32xi1>, vector<12x40x32xf32>
    %cst_44 = arith.constant dense<0x7F800000> : vector<12x32xf32>
    %71 = vector.multi_reduction <minimumf>, %70, %cst_44 [1] : vector<12x40x32xf32> to vector<12x32xf32>
    %cst_45 = arith.constant dense<0.000000e+00> : vector<12xf32>
    %72 = vector.multi_reduction <add>, %52, %cst_45 [1] : vector<12x40xf32> to vector<12xf32>
    %73 = vector.shape_cast %72 : vector<12xf32> to vector<12x1xf32>
    %cst_46 = arith.constant 1.000000e+00 : f32
    %74 = vector.broadcast %cst_46 : f32 to vector<12x1xf32>
    %75 = arith.maximumf %73, %74 : vector<12x1xf32>
    %cst_47 = arith.constant dense<0.000000e+00> : vector<12x32xf32>
    %76 = tpu.matmul %52, %14, %cst_47 {dimension_numbers = #tpu.dot_dimension_numbers<[1], [0], [0], [1], [0, 0, 1, 1], [], []>} : vector<12x40xf32>, vector<40x32xf32>, vector<12x32xf32> -> vector<12x32xf32>
    %77 = vector.broadcast %75 : vector<12x1xf32> to vector<12x32xf32>
    %78 = arith.divf %76, %77 : vector<12x32xf32>
    %79 = tpu.concatenate %64, %71, %78 in 1 : vector<12x32xf32>, vector<12x32xf32>, vector<12x32xf32> -> vector<12x96xf32>
    %cst_48 = arith.constant dense<0xFF800000> : vector<32xf32>
    %80 = vector.multi_reduction <maximumf>, %23, %cst_48 [0] : vector<6x32xf32> to vector<32xf32>
    %81 = vector.shape_cast %80 : vector<32xf32> to vector<1x32xf32>
    %cst_49 = arith.constant dense<0x7F800000> : vector<32xf32>
    %82 = vector.multi_reduction <minimumf>, %23, %cst_49 [0] : vector<6x32xf32> to vector<32xf32>
    %83 = vector.shape_cast %82 : vector<32xf32> to vector<1x32xf32>
    %cst_50 = arith.constant dense<0.000000e+00> : vector<32xf32>
    %84 = vector.multi_reduction <add>, %23, %cst_50 [0] : vector<6x32xf32> to vector<32xf32>
    %85 = vector.shape_cast %84 : vector<32xf32> to vector<1x32xf32>
    %cst_51 = arith.constant 6.000000e+00 : f32
    %86 = vector.broadcast %cst_51 : f32 to vector<1x32xf32>
    %87 = arith.divf %85, %86 : vector<1x32xf32>
    %88 = tpu.concatenate %81, %83, %87 in 1 : vector<1x32xf32>, vector<1x32xf32>, vector<1x32xf32> -> vector<1x96xf32>
    %cst_52 = arith.constant dense<0xFF800000> : vector<32xf32>
    %89 = vector.multi_reduction <maximumf>, %14, %cst_52 [0] : vector<40x32xf32> to vector<32xf32>
    %90 = vector.shape_cast %89 : vector<32xf32> to vector<1x32xf32>
    %cst_53 = arith.constant dense<0x7F800000> : vector<32xf32>
    %91 = vector.multi_reduction <minimumf>, %14, %cst_53 [0] : vector<40x32xf32> to vector<32xf32>
    %92 = vector.shape_cast %91 : vector<32xf32> to vector<1x32xf32>
    %cst_54 = arith.constant dense<0.000000e+00> : vector<32xf32>
    %93 = vector.multi_reduction <add>, %14, %cst_54 [0] : vector<40x32xf32> to vector<32xf32>
    %94 = vector.shape_cast %93 : vector<32xf32> to vector<1x32xf32>
    %cst_55 = arith.constant 4.000000e+01 : f32
    %95 = vector.broadcast %cst_55 : f32 to vector<1x32xf32>
    %96 = arith.divf %94, %95 : vector<1x32xf32>
    %97 = tpu.concatenate %90, %92, %96 in 1 : vector<1x32xf32>, vector<1x32xf32>, vector<1x32xf32> -> vector<1x96xf32>
    %c0_56 = arith.constant 0 : index
    %c0_57 = arith.constant 0 : index
    %98 = vector.load %arg11[%c0_56, %c0_57] : memref<96x96xf32, #tpu.memory_space<vmem>>, vector<96x96xf32>
    %cst_58 = arith.constant dense<0.000000e+00> : vector<1x96xf32>
    %99 = tpu.matmul %88, %98, %cst_58 {dimension_numbers = #tpu.dot_dimension_numbers<[1], [0], [0], [1], [0, 0, 1, 1], [], []>} : vector<1x96xf32>, vector<96x96xf32>, vector<1x96xf32> -> vector<1x96xf32>
    %c0_59 = arith.constant 0 : index
    %c0_60 = arith.constant 0 : index
    %100 = vector.load %arg12[%c0_59, %c0_60] : memref<1x96xf32, #tpu.memory_space<vmem>>, vector<1x96xf32>
    %101 = arith.addf %99, %100 : vector<1x96xf32>
    %102 = tpu.iota {dimensions = array<i32: 1>} : vector<1x96xi32>
    %c48_i32 = arith.constant 48 : i32
    %103 = vector.broadcast %c48_i32 : i32 to vector<1x96xi32>
    %104 = arith.cmpi slt, %102, %103 : vector<1x96xi32>
    %c0_61 = arith.constant 0 : index
    %c0_62 = arith.constant 0 : index
    %105 = vector.load %arg13[%c0_61, %c0_62] : memref<96x96xf32, #tpu.memory_space<vmem>>, vector<96x96xf32>
    %cst_63 = arith.constant dense<0.000000e+00> : vector<12x96xf32>
    %106 = tpu.matmul %51, %105, %cst_63 {dimension_numbers = #tpu.dot_dimension_numbers<[1], [0], [0], [1], [0, 0, 1, 1], [], []>} : vector<12x96xf32>, vector<96x96xf32>, vector<12x96xf32> -> vector<12x96xf32>
    %c0_64 = arith.constant 0 : index
    %c0_65 = arith.constant 0 : index
    %107 = vector.load %arg14[%c0_64, %c0_65] : memref<1x96xf32, #tpu.memory_space<vmem>>, vector<1x96xf32>
    %108 = vector.broadcast %107 : vector<1x96xf32> to vector<12x96xf32>
    %109 = arith.addf %106, %108 : vector<12x96xf32>
    %c0_66 = arith.constant 0 : index
    %c0_67 = arith.constant 0 : index
    %110 = vector.load %arg15[%c0_66, %c0_67] : memref<96x96xf32, #tpu.memory_space<vmem>>, vector<96x96xf32>
    %cst_68 = arith.constant dense<0.000000e+00> : vector<12x96xf32>
    %111 = tpu.matmul %51, %110, %cst_68 {dimension_numbers = #tpu.dot_dimension_numbers<[1], [0], [0], [1], [0, 0, 1, 1], [], []>} : vector<12x96xf32>, vector<96x96xf32>, vector<12x96xf32> -> vector<12x96xf32>
    %c0_69 = arith.constant 0 : index
    %c0_70 = arith.constant 0 : index
    %112 = vector.load %arg16[%c0_69, %c0_70] : memref<1x96xf32, #tpu.memory_space<vmem>>, vector<1x96xf32>
    %113 = vector.broadcast %112 : vector<1x96xf32> to vector<12x96xf32>
    %114 = arith.addf %111, %113 : vector<12x96xf32>
    %115 = vector.broadcast %101 : vector<1x96xf32> to vector<12x96xf32>
    %116 = arith.mulf %115, %109 : vector<12x96xf32>
    %cst_71 = arith.constant 0.000000e+00 : f32
    %117 = vector.shape_cast %104 : vector<1x96xi1> to vector<1x96xi1>
    %118 = vector.broadcast %117 : vector<1x96xi1> to vector<12x96xi1>
    %119 = vector.broadcast %cst_71 : f32 to vector<12x96xf32>
    %120 = arith.select %118, %116, %119 : vector<12x96xi1>, vector<12x96xf32>
    %cst_72 = arith.constant dense<0.000000e+00> : vector<12xf32>
    %121 = vector.multi_reduction <add>, %120, %cst_72 [1] : vector<12x96xf32> to vector<12xf32>
    %122 = vector.shape_cast %121 : vector<12xf32> to vector<12x1xf32>
    %cst_73 = arith.constant 0.144337565 : f32
    %123 = vector.broadcast %cst_73 : f32 to vector<12x1xf32>
    %124 = arith.mulf %122, %123 : vector<12x1xf32>
    %cst_74 = arith.constant 0.000000e+00 : f32
    %125 = vector.shape_cast %104 : vector<1x96xi1> to vector<1x96xi1>
    %126 = vector.broadcast %125 : vector<1x96xi1> to vector<12x96xi1>
    %127 = vector.broadcast %cst_74 : f32 to vector<12x96xf32>
    %128 = arith.select %126, %127, %116 : vector<12x96xi1>, vector<12x96xf32>
    %cst_75 = arith.constant dense<0.000000e+00> : vector<12xf32>
    %129 = vector.multi_reduction <add>, %128, %cst_75 [1] : vector<12x96xf32> to vector<12xf32>
    %130 = vector.shape_cast %129 : vector<12xf32> to vector<12x1xf32>
    %cst_76 = arith.constant 0.144337565 : f32
    %131 = vector.broadcast %cst_76 : f32 to vector<12x1xf32>
    %132 = arith.mulf %130, %131 : vector<12x1xf32>
    %133 = arith.negf %124 : vector<12x1xf32>
    %134 = math.exp %133 : vector<12x1xf32>
    %cst_77 = arith.constant 1.000000e+00 : f32
    %135 = vector.broadcast %cst_77 : f32 to vector<12x1xf32>
    %136 = arith.addf %135, %134 : vector<12x1xf32>
    %137 = arith.divf %135, %136 : vector<12x1xf32>
    %138 = arith.negf %132 : vector<12x1xf32>
    %139 = math.exp %138 : vector<12x1xf32>
    %cst_78 = arith.constant 1.000000e+00 : f32
    %140 = vector.broadcast %cst_78 : f32 to vector<12x1xf32>
    %141 = arith.addf %140, %139 : vector<12x1xf32>
    %142 = arith.divf %140, %141 : vector<12x1xf32>
    %cst_79 = arith.constant dense<0xFF800000> : vector<1xf32>
    %143 = vector.multi_reduction <maximumf>, %137, %cst_79 [0] : vector<12x1xf32> to vector<1xf32>
    %cst_80 = arith.constant 0xFF800000 : f32
    %144 = vector.broadcast %cst_80 : f32 to vector<1xf32>
    %145 = arith.maximumf %144, %143 : vector<1xf32>
    %146 = vector.shape_cast %145 : vector<1xf32> to vector<1x1xf32>
    %147 = vector.broadcast %146 : vector<1x1xf32> to vector<12x1xf32>
    %148 = arith.subf %137, %147 : vector<12x1xf32>
    %149 = math.exp %148 : vector<12x1xf32>
    %cst_81 = arith.constant dense<0.000000e+00> : vector<1xf32>
    %150 = vector.multi_reduction <add>, %149, %cst_81 [0] : vector<12x1xf32> to vector<1xf32>
    %151 = vector.shape_cast %150 : vector<1xf32> to vector<1x1xf32>
    %152 = vector.broadcast %151 : vector<1x1xf32> to vector<12x1xf32>
    %153 = arith.divf %149, %152 : vector<12x1xf32>
    %cst_82 = arith.constant dense<0xFF800000> : vector<1xf32>
    %154 = vector.multi_reduction <maximumf>, %142, %cst_82 [0] : vector<12x1xf32> to vector<1xf32>
    %cst_83 = arith.constant 0xFF800000 : f32
    %155 = vector.broadcast %cst_83 : f32 to vector<1xf32>
    %156 = arith.maximumf %155, %154 : vector<1xf32>
    %157 = vector.shape_cast %156 : vector<1xf32> to vector<1x1xf32>
    %158 = vector.broadcast %157 : vector<1x1xf32> to vector<12x1xf32>
    %159 = arith.subf %142, %158 : vector<12x1xf32>
    %160 = math.exp %159 : vector<12x1xf32>
    %cst_84 = arith.constant dense<0.000000e+00> : vector<1xf32>
    %161 = vector.multi_reduction <add>, %160, %cst_84 [0] : vector<12x1xf32> to vector<1xf32>
    %162 = vector.shape_cast %161 : vector<1xf32> to vector<1x1xf32>
    %163 = vector.broadcast %162 : vector<1x1xf32> to vector<12x1xf32>
    %164 = arith.divf %160, %163 : vector<12x1xf32>
    %165 = vector.shape_cast %104 : vector<1x96xi1> to vector<1x96xi1>
    %166 = vector.broadcast %165 : vector<1x96xi1> to vector<12x96xi1>
    %167 = vector.shape_cast %153 : vector<12x1xf32> to vector<12x1xf32>
    %168 = vector.broadcast %167 : vector<12x1xf32> to vector<12x96xf32>
    %169 = vector.shape_cast %164 : vector<12x1xf32> to vector<12x1xf32>
    %170 = vector.broadcast %169 : vector<12x1xf32> to vector<12x96xf32>
    %171 = arith.select %166, %168, %170 : vector<12x96xi1>, vector<12x96xf32>
    %172 = arith.mulf %171, %114 : vector<12x96xf32>
    %cst_85 = arith.constant dense<0.000000e+00> : vector<96xf32>
    %173 = vector.multi_reduction <add>, %172, %cst_85 [0] : vector<12x96xf32> to vector<96xf32>
    %174 = vector.shape_cast %173 : vector<96xf32> to vector<1x96xf32>
    %c0_86 = arith.constant 0 : index
    %c0_87 = arith.constant 0 : index
    %175 = vector.load %arg17[%c0_86, %c0_87] : memref<96x96xf32, #tpu.memory_space<vmem>>, vector<96x96xf32>
    %cst_88 = arith.constant dense<0.000000e+00> : vector<1x96xf32>
    %176 = tpu.matmul %174, %175, %cst_88 {dimension_numbers = #tpu.dot_dimension_numbers<[1], [0], [0], [1], [0, 0, 1, 1], [], []>} : vector<1x96xf32>, vector<96x96xf32>, vector<1x96xf32> -> vector<1x96xf32>
    %c0_89 = arith.constant 0 : index
    %c0_90 = arith.constant 0 : index
    %177 = vector.load %arg18[%c0_89, %c0_90] : memref<1x96xf32, #tpu.memory_space<vmem>>, vector<1x96xf32>
    %178 = arith.addf %176, %177 : vector<1x96xf32>
    %c0_91 = arith.constant 0 : index
    %c0_92 = arith.constant 0 : index
    %179 = vector.load %arg13[%c0_91, %c0_92] : memref<96x96xf32, #tpu.memory_space<vmem>>, vector<96x96xf32>
    %cst_93 = arith.constant dense<0.000000e+00> : vector<12x96xf32>
    %180 = tpu.matmul %79, %179, %cst_93 {dimension_numbers = #tpu.dot_dimension_numbers<[1], [0], [0], [1], [0, 0, 1, 1], [], []>} : vector<12x96xf32>, vector<96x96xf32>, vector<12x96xf32> -> vector<12x96xf32>
    %c0_94 = arith.constant 0 : index
    %c0_95 = arith.constant 0 : index
    %181 = vector.load %arg14[%c0_94, %c0_95] : memref<1x96xf32, #tpu.memory_space<vmem>>, vector<1x96xf32>
    %182 = vector.broadcast %181 : vector<1x96xf32> to vector<12x96xf32>
    %183 = arith.addf %180, %182 : vector<12x96xf32>
    %c0_96 = arith.constant 0 : index
    %c0_97 = arith.constant 0 : index
    %184 = vector.load %arg15[%c0_96, %c0_97] : memref<96x96xf32, #tpu.memory_space<vmem>>, vector<96x96xf32>
    %cst_98 = arith.constant dense<0.000000e+00> : vector<12x96xf32>
    %185 = tpu.matmul %79, %184, %cst_98 {dimension_numbers = #tpu.dot_dimension_numbers<[1], [0], [0], [1], [0, 0, 1, 1], [], []>} : vector<12x96xf32>, vector<96x96xf32>, vector<12x96xf32> -> vector<12x96xf32>
    %c0_99 = arith.constant 0 : index
    %c0_100 = arith.constant 0 : index
    %186 = vector.load %arg16[%c0_99, %c0_100] : memref<1x96xf32, #tpu.memory_space<vmem>>, vector<1x96xf32>
    %187 = vector.broadcast %186 : vector<1x96xf32> to vector<12x96xf32>
    %188 = arith.addf %185, %187 : vector<12x96xf32>
    %189 = vector.broadcast %101 : vector<1x96xf32> to vector<12x96xf32>
    %190 = arith.mulf %189, %183 : vector<12x96xf32>
    %cst_101 = arith.constant 0.000000e+00 : f32
    %191 = vector.shape_cast %104 : vector<1x96xi1> to vector<1x96xi1>
    %192 = vector.broadcast %191 : vector<1x96xi1> to vector<12x96xi1>
    %193 = vector.broadcast %cst_101 : f32 to vector<12x96xf32>
    %194 = arith.select %192, %190, %193 : vector<12x96xi1>, vector<12x96xf32>
    %cst_102 = arith.constant dense<0.000000e+00> : vector<12xf32>
    %195 = vector.multi_reduction <add>, %194, %cst_102 [1] : vector<12x96xf32> to vector<12xf32>
    %196 = vector.shape_cast %195 : vector<12xf32> to vector<12x1xf32>
    %cst_103 = arith.constant 0.144337565 : f32
    %197 = vector.broadcast %cst_103 : f32 to vector<12x1xf32>
    %198 = arith.mulf %196, %197 : vector<12x1xf32>
    %cst_104 = arith.constant 0.000000e+00 : f32
    %199 = vector.shape_cast %104 : vector<1x96xi1> to vector<1x96xi1>
    %200 = vector.broadcast %199 : vector<1x96xi1> to vector<12x96xi1>
    %201 = vector.broadcast %cst_104 : f32 to vector<12x96xf32>
    %202 = arith.select %200, %201, %190 : vector<12x96xi1>, vector<12x96xf32>
    %cst_105 = arith.constant dense<0.000000e+00> : vector<12xf32>
    %203 = vector.multi_reduction <add>, %202, %cst_105 [1] : vector<12x96xf32> to vector<12xf32>
    %204 = vector.shape_cast %203 : vector<12xf32> to vector<12x1xf32>
    %cst_106 = arith.constant 0.144337565 : f32
    %205 = vector.broadcast %cst_106 : f32 to vector<12x1xf32>
    %206 = arith.mulf %204, %205 : vector<12x1xf32>
    %207 = arith.negf %198 : vector<12x1xf32>
    %208 = math.exp %207 : vector<12x1xf32>
    %cst_107 = arith.constant 1.000000e+00 : f32
    %209 = vector.broadcast %cst_107 : f32 to vector<12x1xf32>
    %210 = arith.addf %209, %208 : vector<12x1xf32>
    %211 = arith.divf %209, %210 : vector<12x1xf32>
    %212 = arith.negf %206 : vector<12x1xf32>
    %213 = math.exp %212 : vector<12x1xf32>
    %cst_108 = arith.constant 1.000000e+00 : f32
    %214 = vector.broadcast %cst_108 : f32 to vector<12x1xf32>
    %215 = arith.addf %214, %213 : vector<12x1xf32>
    %216 = arith.divf %214, %215 : vector<12x1xf32>
    %cst_109 = arith.constant 1.000000e+00 : f32
    %217 = vector.broadcast %cst_109 : f32 to vector<12x1xf32>
    %218 = arith.subf %217, %211 : vector<12x1xf32>
    %cst_110 = arith.constant 1.000000e+00 : f32
    %219 = vector.broadcast %cst_110 : f32 to vector<12x1xf32>
    %220 = arith.subf %219, %216 : vector<12x1xf32>
    %cst_111 = arith.constant dense<0xFF800000> : vector<1xf32>
    %221 = vector.multi_reduction <maximumf>, %218, %cst_111 [0] : vector<12x1xf32> to vector<1xf32>
    %cst_112 = arith.constant 0xFF800000 : f32
    %222 = vector.broadcast %cst_112 : f32 to vector<1xf32>
    %223 = arith.maximumf %222, %221 : vector<1xf32>
    %224 = vector.shape_cast %223 : vector<1xf32> to vector<1x1xf32>
    %225 = vector.broadcast %224 : vector<1x1xf32> to vector<12x1xf32>
    %226 = arith.subf %218, %225 : vector<12x1xf32>
    %227 = math.exp %226 : vector<12x1xf32>
    %cst_113 = arith.constant dense<0.000000e+00> : vector<1xf32>
    %228 = vector.multi_reduction <add>, %227, %cst_113 [0] : vector<12x1xf32> to vector<1xf32>
    %229 = vector.shape_cast %228 : vector<1xf32> to vector<1x1xf32>
    %230 = vector.broadcast %229 : vector<1x1xf32> to vector<12x1xf32>
    %231 = arith.divf %227, %230 : vector<12x1xf32>
    %cst_114 = arith.constant dense<0xFF800000> : vector<1xf32>
    %232 = vector.multi_reduction <maximumf>, %220, %cst_114 [0] : vector<12x1xf32> to vector<1xf32>
    %cst_115 = arith.constant 0xFF800000 : f32
    %233 = vector.broadcast %cst_115 : f32 to vector<1xf32>
    %234 = arith.maximumf %233, %232 : vector<1xf32>
    %235 = vector.shape_cast %234 : vector<1xf32> to vector<1x1xf32>
    %236 = vector.broadcast %235 : vector<1x1xf32> to vector<12x1xf32>
    %237 = arith.subf %220, %236 : vector<12x1xf32>
    %238 = math.exp %237 : vector<12x1xf32>
    %cst_116 = arith.constant dense<0.000000e+00> : vector<1xf32>
    %239 = vector.multi_reduction <add>, %238, %cst_116 [0] : vector<12x1xf32> to vector<1xf32>
    %240 = vector.shape_cast %239 : vector<1xf32> to vector<1x1xf32>
    %241 = vector.broadcast %240 : vector<1x1xf32> to vector<12x1xf32>
    %242 = arith.divf %238, %241 : vector<12x1xf32>
    %243 = vector.shape_cast %104 : vector<1x96xi1> to vector<1x96xi1>
    %244 = vector.broadcast %243 : vector<1x96xi1> to vector<12x96xi1>
    %245 = vector.shape_cast %231 : vector<12x1xf32> to vector<12x1xf32>
    %246 = vector.broadcast %245 : vector<12x1xf32> to vector<12x96xf32>
    %247 = vector.shape_cast %242 : vector<12x1xf32> to vector<12x1xf32>
    %248 = vector.broadcast %247 : vector<12x1xf32> to vector<12x96xf32>
    %249 = arith.select %244, %246, %248 : vector<12x96xi1>, vector<12x96xf32>
    %250 = arith.mulf %249, %188 : vector<12x96xf32>
    %cst_117 = arith.constant dense<0.000000e+00> : vector<96xf32>
    %251 = vector.multi_reduction <add>, %250, %cst_117 [0] : vector<12x96xf32> to vector<96xf32>
    %252 = vector.shape_cast %251 : vector<96xf32> to vector<1x96xf32>
    %c0_118 = arith.constant 0 : index
    %c0_119 = arith.constant 0 : index
    %253 = vector.load %arg17[%c0_118, %c0_119] : memref<96x96xf32, #tpu.memory_space<vmem>>, vector<96x96xf32>
    %cst_120 = arith.constant dense<0.000000e+00> : vector<1x96xf32>
    %254 = tpu.matmul %252, %253, %cst_120 {dimension_numbers = #tpu.dot_dimension_numbers<[1], [0], [0], [1], [0, 0, 1, 1], [], []>} : vector<1x96xf32>, vector<96x96xf32>, vector<1x96xf32> -> vector<1x96xf32>
    %c0_121 = arith.constant 0 : index
    %c0_122 = arith.constant 0 : index
    %255 = vector.load %arg18[%c0_121, %c0_122] : memref<1x96xf32, #tpu.memory_space<vmem>>, vector<1x96xf32>
    %256 = arith.addf %254, %255 : vector<1x96xf32>
    %257 = arith.mulf %88, %178 : vector<1x96xf32>
    %258 = arith.addf %88, %178 : vector<1x96xf32>
    %259 = math.absf %258 : vector<1x96xf32>
    %260 = arith.mulf %88, %97 : vector<1x96xf32>
    %261 = arith.addf %88, %97 : vector<1x96xf32>
    %262 = math.absf %261 : vector<1x96xf32>
    %263 = arith.mulf %88, %256 : vector<1x96xf32>
    %264 = arith.addf %88, %256 : vector<1x96xf32>
    %265 = math.absf %264 : vector<1x96xf32>
    %266 = arith.mulf %178, %256 : vector<1x96xf32>
    %267 = arith.addf %178, %256 : vector<1x96xf32>
    %268 = math.absf %267 : vector<1x96xf32>
    %c0_123 = arith.constant 0 : index
    %c0_124 = arith.constant 0 : index
    %269 = vector.load %arg20[%c0_123, %c0_124] : memref<1x512xf32, #tpu.memory_space<vmem>>, vector<1x512xf32>
    %270 = arith.truncf %88 : vector<1x96xf32> to vector<1x96xbf16>
    %c0_125 = arith.constant 0 : index
    %c0_126 = arith.constant 0 : index
    %c0_127 = arith.constant 0 : index
    %271 = vector.load %arg19[%c0_125, %c0_126, %c0_127] : memref<12x96x512xbf16, #tpu.memory_space<vmem>>, vector<1x96x512xbf16>
    %272 = vector.shape_cast %271 : vector<1x96x512xbf16> to vector<96x512xbf16>
    %cst_128 = arith.constant dense<0.000000e+00> : vector<1x512xf32>
    %273 = tpu.matmul %270, %272, %cst_128 {dimension_numbers = #tpu.dot_dimension_numbers<[1], [0], [0], [1], [0, 0, 1, 1], [], []>} : vector<1x96xbf16>, vector<96x512xbf16>, vector<1x512xf32> -> vector<1x512xf32>
    %274 = arith.addf %269, %273 : vector<1x512xf32>
    %275 = arith.truncf %178 : vector<1x96xf32> to vector<1x96xbf16>
    %c1 = arith.constant 1 : index
    %c0_129 = arith.constant 0 : index
    %c0_130 = arith.constant 0 : index
    %276 = vector.load %arg19[%c1, %c0_129, %c0_130] : memref<12x96x512xbf16, #tpu.memory_space<vmem>>, vector<1x96x512xbf16>
    %277 = vector.shape_cast %276 : vector<1x96x512xbf16> to vector<96x512xbf16>
    %cst_131 = arith.constant dense<0.000000e+00> : vector<1x512xf32>
    %278 = tpu.matmul %275, %277, %cst_131 {dimension_numbers = #tpu.dot_dimension_numbers<[1], [0], [0], [1], [0, 0, 1, 1], [], []>} : vector<1x96xbf16>, vector<96x512xbf16>, vector<1x512xf32> -> vector<1x512xf32>
    %279 = arith.addf %274, %278 : vector<1x512xf32>
    %280 = arith.truncf %256 : vector<1x96xf32> to vector<1x96xbf16>
    %c2 = arith.constant 2 : index
    %c0_132 = arith.constant 0 : index
    %c0_133 = arith.constant 0 : index
    %281 = vector.load %arg19[%c2, %c0_132, %c0_133] : memref<12x96x512xbf16, #tpu.memory_space<vmem>>, vector<1x96x512xbf16>
    %282 = vector.shape_cast %281 : vector<1x96x512xbf16> to vector<96x512xbf16>
    %cst_134 = arith.constant dense<0.000000e+00> : vector<1x512xf32>
    %283 = tpu.matmul %280, %282, %cst_134 {dimension_numbers = #tpu.dot_dimension_numbers<[1], [0], [0], [1], [0, 0, 1, 1], [], []>} : vector<1x96xbf16>, vector<96x512xbf16>, vector<1x512xf32> -> vector<1x512xf32>
    %284 = arith.addf %279, %283 : vector<1x512xf32>
    %285 = arith.truncf %97 : vector<1x96xf32> to vector<1x96xbf16>
    %c3 = arith.constant 3 : index
    %c0_135 = arith.constant 0 : index
    %c0_136 = arith.constant 0 : index
    %286 = vector.load %arg19[%c3, %c0_135, %c0_136] : memref<12x96x512xbf16, #tpu.memory_space<vmem>>, vector<1x96x512xbf16>
    %287 = vector.shape_cast %286 : vector<1x96x512xbf16> to vector<96x512xbf16>
    %cst_137 = arith.constant dense<0.000000e+00> : vector<1x512xf32>
    %288 = tpu.matmul %285, %287, %cst_137 {dimension_numbers = #tpu.dot_dimension_numbers<[1], [0], [0], [1], [0, 0, 1, 1], [], []>} : vector<1x96xbf16>, vector<96x512xbf16>, vector<1x512xf32> -> vector<1x512xf32>
    %289 = arith.addf %284, %288 : vector<1x512xf32>
    %290 = arith.truncf %257 : vector<1x96xf32> to vector<1x96xbf16>
    %c4 = arith.constant 4 : index
    %c0_138 = arith.constant 0 : index
    %c0_139 = arith.constant 0 : index
    %291 = vector.load %arg19[%c4, %c0_138, %c0_139] : memref<12x96x512xbf16, #tpu.memory_space<vmem>>, vector<1x96x512xbf16>
    %292 = vector.shape_cast %291 : vector<1x96x512xbf16> to vector<96x512xbf16>
    %cst_140 = arith.constant dense<0.000000e+00> : vector<1x512xf32>
    %293 = tpu.matmul %290, %292, %cst_140 {dimension_numbers = #tpu.dot_dimension_numbers<[1], [0], [0], [1], [0, 0, 1, 1], [], []>} : vector<1x96xbf16>, vector<96x512xbf16>, vector<1x512xf32> -> vector<1x512xf32>
    %294 = arith.addf %289, %293 : vector<1x512xf32>
    %295 = arith.truncf %259 : vector<1x96xf32> to vector<1x96xbf16>
    %c5 = arith.constant 5 : index
    %c0_141 = arith.constant 0 : index
    %c0_142 = arith.constant 0 : index
    %296 = vector.load %arg19[%c5, %c0_141, %c0_142] : memref<12x96x512xbf16, #tpu.memory_space<vmem>>, vector<1x96x512xbf16>
    %297 = vector.shape_cast %296 : vector<1x96x512xbf16> to vector<96x512xbf16>
    %cst_143 = arith.constant dense<0.000000e+00> : vector<1x512xf32>
    %298 = tpu.matmul %295, %297, %cst_143 {dimension_numbers = #tpu.dot_dimension_numbers<[1], [0], [0], [1], [0, 0, 1, 1], [], []>} : vector<1x96xbf16>, vector<96x512xbf16>, vector<1x512xf32> -> vector<1x512xf32>
    %299 = arith.addf %294, %298 : vector<1x512xf32>
    %300 = arith.truncf %260 : vector<1x96xf32> to vector<1x96xbf16>
    %c6 = arith.constant 6 : index
    %c0_144 = arith.constant 0 : index
    %c0_145 = arith.constant 0 : index
    %301 = vector.load %arg19[%c6, %c0_144, %c0_145] : memref<12x96x512xbf16, #tpu.memory_space<vmem>>, vector<1x96x512xbf16>
    %302 = vector.shape_cast %301 : vector<1x96x512xbf16> to vector<96x512xbf16>
    %cst_146 = arith.constant dense<0.000000e+00> : vector<1x512xf32>
    %303 = tpu.matmul %300, %302, %cst_146 {dimension_numbers = #tpu.dot_dimension_numbers<[1], [0], [0], [1], [0, 0, 1, 1], [], []>} : vector<1x96xbf16>, vector<96x512xbf16>, vector<1x512xf32> -> vector<1x512xf32>
    %304 = arith.addf %299, %303 : vector<1x512xf32>
    %305 = arith.truncf %262 : vector<1x96xf32> to vector<1x96xbf16>
    %c7 = arith.constant 7 : index
    %c0_147 = arith.constant 0 : index
    %c0_148 = arith.constant 0 : index
    %306 = vector.load %arg19[%c7, %c0_147, %c0_148] : memref<12x96x512xbf16, #tpu.memory_space<vmem>>, vector<1x96x512xbf16>
    %307 = vector.shape_cast %306 : vector<1x96x512xbf16> to vector<96x512xbf16>
    %cst_149 = arith.constant dense<0.000000e+00> : vector<1x512xf32>
    %308 = tpu.matmul %305, %307, %cst_149 {dimension_numbers = #tpu.dot_dimension_numbers<[1], [0], [0], [1], [0, 0, 1, 1], [], []>} : vector<1x96xbf16>, vector<96x512xbf16>, vector<1x512xf32> -> vector<1x512xf32>
    %309 = arith.addf %304, %308 : vector<1x512xf32>
    %310 = arith.truncf %263 : vector<1x96xf32> to vector<1x96xbf16>
    %c8 = arith.constant 8 : index
    %c0_150 = arith.constant 0 : index
    %c0_151 = arith.constant 0 : index
    %311 = vector.load %arg19[%c8, %c0_150, %c0_151] : memref<12x96x512xbf16, #tpu.memory_space<vmem>>, vector<1x96x512xbf16>
    %312 = vector.shape_cast %311 : vector<1x96x512xbf16> to vector<96x512xbf16>
    %cst_152 = arith.constant dense<0.000000e+00> : vector<1x512xf32>
    %313 = tpu.matmul %310, %312, %cst_152 {dimension_numbers = #tpu.dot_dimension_numbers<[1], [0], [0], [1], [0, 0, 1, 1], [], []>} : vector<1x96xbf16>, vector<96x512xbf16>, vector<1x512xf32> -> vector<1x512xf32>
    %314 = arith.addf %309, %313 : vector<1x512xf32>
    %315 = arith.truncf %265 : vector<1x96xf32> to vector<1x96xbf16>
    %c9 = arith.constant 9 : index
    %c0_153 = arith.constant 0 : index
    %c0_154 = arith.constant 0 : index
    %316 = vector.load %arg19[%c9, %c0_153, %c0_154] : memref<12x96x512xbf16, #tpu.memory_space<vmem>>, vector<1x96x512xbf16>
    %317 = vector.shape_cast %316 : vector<1x96x512xbf16> to vector<96x512xbf16>
    %cst_155 = arith.constant dense<0.000000e+00> : vector<1x512xf32>
    %318 = tpu.matmul %315, %317, %cst_155 {dimension_numbers = #tpu.dot_dimension_numbers<[1], [0], [0], [1], [0, 0, 1, 1], [], []>} : vector<1x96xbf16>, vector<96x512xbf16>, vector<1x512xf32> -> vector<1x512xf32>
    %319 = arith.addf %314, %318 : vector<1x512xf32>
    %320 = arith.truncf %266 : vector<1x96xf32> to vector<1x96xbf16>
    %c10 = arith.constant 10 : index
    %c0_156 = arith.constant 0 : index
    %c0_157 = arith.constant 0 : index
    %321 = vector.load %arg19[%c10, %c0_156, %c0_157] : memref<12x96x512xbf16, #tpu.memory_space<vmem>>, vector<1x96x512xbf16>
    %322 = vector.shape_cast %321 : vector<1x96x512xbf16> to vector<96x512xbf16>
    %cst_158 = arith.constant dense<0.000000e+00> : vector<1x512xf32>
    %323 = tpu.matmul %320, %322, %cst_158 {dimension_numbers = #tpu.dot_dimension_numbers<[1], [0], [0], [1], [0, 0, 1, 1], [], []>} : vector<1x96xbf16>, vector<96x512xbf16>, vector<1x512xf32> -> vector<1x512xf32>
    %324 = arith.addf %319, %323 : vector<1x512xf32>
    %325 = arith.truncf %268 : vector<1x96xf32> to vector<1x96xbf16>
    %c11 = arith.constant 11 : index
    %c0_159 = arith.constant 0 : index
    %c0_160 = arith.constant 0 : index
    %326 = vector.load %arg19[%c11, %c0_159, %c0_160] : memref<12x96x512xbf16, #tpu.memory_space<vmem>>, vector<1x96x512xbf16>
    %327 = vector.shape_cast %326 : vector<1x96x512xbf16> to vector<96x512xbf16>
    %cst_161 = arith.constant dense<0.000000e+00> : vector<1x512xf32>
    %328 = tpu.matmul %325, %327, %cst_161 {dimension_numbers = #tpu.dot_dimension_numbers<[1], [0], [0], [1], [0, 0, 1, 1], [], []>} : vector<1x96xbf16>, vector<96x512xbf16>, vector<1x512xf32> -> vector<1x512xf32>
    %329 = arith.addf %324, %328 : vector<1x512xf32>
    %330 = arith.negf %329 : vector<1x512xf32>
    %331 = math.exp %330 : vector<1x512xf32>
    %cst_162 = arith.constant 1.000000e+00 : f32
    %332 = vector.broadcast %cst_162 : f32 to vector<1x512xf32>
    %333 = arith.addf %332, %331 : vector<1x512xf32>
    %334 = arith.divf %332, %333 : vector<1x512xf32>
    %c0_163 = arith.constant 0 : index
    %c0_164 = arith.constant 0 : index
    %335 = vector.load %arg21[%c0_163, %c0_164] : memref<512x128xf32, #tpu.memory_space<vmem>>, vector<512x128xf32>
    %cst_165 = arith.constant dense<0.000000e+00> : vector<1x128xf32>
    %336 = tpu.matmul %334, %335, %cst_165 {dimension_numbers = #tpu.dot_dimension_numbers<[1], [0], [0], [1], [0, 0, 1, 1], [], []>} : vector<1x512xf32>, vector<512x128xf32>, vector<1x128xf32> -> vector<1x128xf32>
    %c0_166 = arith.constant 0 : index
    %c0_167 = arith.constant 0 : index
    %337 = vector.load %arg22[%c0_166, %c0_167] : memref<1x128xf32, #tpu.memory_space<vmem>>, vector<1x128xf32>
    %338 = arith.addf %336, %337 : vector<1x128xf32>
    %339 = arith.negf %338 : vector<1x128xf32>
    %340 = math.exp %339 : vector<1x128xf32>
    %cst_168 = arith.constant 1.000000e+00 : f32
    %341 = vector.broadcast %cst_168 : f32 to vector<1x128xf32>
    %342 = arith.addf %341, %340 : vector<1x128xf32>
    %343 = arith.divf %341, %342 : vector<1x128xf32>
    %c0_169 = arith.constant 0 : index
    %c0_170 = arith.constant 0 : index
    %344 = vector.load %arg23[%c0_169, %c0_170] : memref<128x2xf32, #tpu.memory_space<vmem>>, vector<128x2xf32>
    %cst_171 = arith.constant dense<0.000000e+00> : vector<1x2xf32>
    %345 = tpu.matmul %343, %344, %cst_171 {dimension_numbers = #tpu.dot_dimension_numbers<[1], [0], [0], [1], [0, 0, 1, 1], [], []>} : vector<1x128xf32>, vector<128x2xf32>, vector<1x2xf32> -> vector<1x2xf32>
    %c0_172 = arith.constant 0 : index
    %c0_173 = arith.constant 0 : index
    %346 = vector.load %arg24[%c0_172, %c0_173] : memref<1x2xf32, #tpu.memory_space<vmem>>, vector<1x2xf32>
    %347 = arith.addf %345, %346 : vector<1x2xf32>
    %c0_174 = arith.constant 0 : index
    %c0_175 = arith.constant 0 : index
    %348 = vector.load %arg25[%c0_174, %c0_175] : memref<1x2xf32, #tpu.memory_space<vmem>>, vector<1x2xf32>
    tpu.vector_store %arg25[%c0_174, %c0_175], %347 {strides = array<i32>} : memref<1x2xf32, #tpu.memory_space<vmem>>, vector<1x2xf32>,
    return
  }
}

</mosaic_0001>

<bundles_post_ra>
// kernel: forward.1
= control target key start
LH: loop header
LB: loop body
LE: loop exit
PB: predicated region body
PF: predicated region fallthrough
CT: control target
= control target key end

     0   :  { %s14083_s0 = inlined_call_operand.vmem [shape: f32[40,64], index: 0, kind: input, shape index: {}]   ;;  %s14084_s1 = inlined_call_operand.vmem [shape: f32[6,64], index: 1, kind: input, shape index: {}]   ;;  %s14085_s2 = inlined_call_operand.vmem [shape: f32[40,40], index: 2, kind: input, shape index: {}]   ;;  %s14086_s3 = inlined_call_operand.vmem [shape: f32[6,6], index: 3, kind: input, shape index: {}]   ;;  %s14087_s4 = inlined_call_operand.vmem [shape: f32[12,40], index: 4, kind: input, shape index: {}]   ;;  %s14088_s5 = inlined_call_operand.vmem [shape: f32[12,40], index: 5, kind: input, shape index: {}]   ;;  %s14089_s6 = inlined_call_operand.vmem [shape: f32[64,128], index: 6, kind: input, shape index: {}]   ;;  %s14090_s7 = inlined_call_operand.vmem [shape: f32[128,64], index: 7, kind: input, shape index: {}]   ;;  %s14091_s8 = inlined_call_operand.vmem [shape: f32[64,32], index: 8, kind: input, shape index: {}]   ;;  %s14092_s9 = inlined_call_operand.vmem [shape: f32[64,128], index: 9, kind: input, shape index: {}]   ;;  %s14093_s10 = inlined_call_operand.vmem [shape: f32[128,32], index: 10, kind: input, shape index: {}]   ;;  %s14094_s11 = inlined_call_operand.vmem [shape: f32[96,96], index: 11, kind: input, shape index: {}]   ;;  %s14095_s12 = inlined_call_operand.vmem [shape: f32[1,96], index: 12, kind: input, shape index: {}]   ;;  %s14096_s13 = inlined_call_operand.vmem [shape: f32[96,96], index: 13, kind: input, shape index: {}]   ;;  %s14097_s14 = inlined_call_operand.vmem [shape: f32[1,96], index: 14, kind: input, shape index: {}]   ;;  %s14098_s15 = inlined_call_operand.vmem [shape: f32[96,96], index: 15, kind: input, shape index: {}]   ;;  %s14099_s16 = inlined_call_operand.vmem [shape: f32[1,96], index: 16, kind: input, shape index: {}]   ;;  %s14100_s17 = inlined_call_operand.vmem [shape: f32[96,96], index: 17, kind: input, shape index: {}]   ;;  %s14101_s18 = inlined_call_operand.vmem [shape: f32[1,96], index: 18, kind: input, shape index: {}]   ;;  %s14102_s19 = inlined_call_operand.vmem [shape: bf16[12,96,512], index: 19, kind: input, shape index: {}]   ;;  %s14103_s20 = inlined_call_operand.vmem [shape: f32[1,512], index: 20, kind: input, shape index: {}]   ;;  %s14104_s21 = inlined_call_operand.vmem [shape: f32[512,128], index: 21, kind: input, shape index: {}]   ;;  %s14105_s22 = inlined_call_operand.vmem [shape: f32[1,128], index: 22, kind: input, shape index: {}]   ;;  %s14106_s23 = inlined_call_operand.vmem [shape: f32[128,2], index: 23, kind: input, shape index: {}]   ;;  %s14107_s24 = inlined_call_operand.vmem [shape: f32[1,2], index: 24, kind: input, shape index: {}]   ;;  %s14108_s25 = inlined_call_operand.hbm [shape: f32[1,2], index: 25, kind: output, shape index: {}]  }
   0x1   :  { %14154 = sst [smem:[#allocation19_spill]] %s14083_s0 }
   0x2   :  { %14155 = sst [smem:[#allocation20_spill]] %s14084_s1 }
   0x3   :  { %14156 = sst [smem:[#allocation21_spill]] %s14085_s2 }
   0x4   :  { %14157 = sst [smem:[#allocation22_spill]] %s14086_s3 }
   0x5   :  { %14158 = sst [smem:[#allocation23_spill]] %s14087_s4 }
   0x6   :  { %14159 = sst [smem:[#allocation24_spill]] %s14088_s5 }
   0x7   :  { %14160 = sst [smem:[#allocation25_spill]] %s14089_s6 }
   0x8   :  { %14161 = sst [smem:[#allocation26_spill]] %s14090_s7 }
   0x9   :  { %14162 = sst [smem:[#allocation27_spill]] %s14091_s8 }
   0xa   :  { %14163 = sst [smem:[#allocation28_spill]] %s14092_s9 }
   0xb   :  { %s14164_s6 = sld [smem:[#allocation25_spill]]  ;;  %v14130_v1 = vmov 0.0   ;;  %vm14122_vm0 = vmmov 0   ;;  %vm14119_vm1 = vcmask 523264  }
   0xc   :  { %8588 = vmatprep.subr.mxu0 %v14130_v1  ;;  %8604 = vmatprep.mubr.msk.f32.mxu0 %vm14122_vm0, %v14130_v1  ;;  %s14165_s3 = sld [smem:[#allocation19_spill]] }
   0xd   :  { %8619 = vmatprep.subr.mxu1 %v14130_v1  ;;  %8629 = vmatprep.mubr.msk.f32.mxu1 %vm14122_vm0, %v14130_v1 }
  0x11   :  { %v100_v0 = vld [vmem:[%s14164_s6 + $0x38] sm:$0xff]  ;;  %v99_v2 = vld [vmem:[%s14164_s6 + $0x30] sm:$0xff]  ;;  %v98_v3 = vld [vmem:[%s14164_s6 + $0x28] sm:$0xff] }
  0x12   :  { %8589 = vmatpush3.msra.mxu0 %v100_v0  ;;  %v97_v4 = vld [vmem:[%s14164_s6 + $0x20] sm:$0xff]  ;;  %v96_v5 = vld [vmem:[%s14164_s6 + $0x18] sm:$0xff]  ;;  %v95_v6 = vld [vmem:[%s14164_s6 + $0x10] sm:$0xff] }
  0x13   :  { %8590 = vmatprep.subr.mxu0 %v14130_v1  ;;  %v94_v7 = vld [vmem:[%s14164_s6 + $0x8] sm:$0xff]  ;;  %v93_v8 = vld [vmem:[%s14164_s6] sm:$0xff]  ;;  %v90_v11 = vld [vmem:[%s14165_s3 + $0x10] sm:$0xff] }
  0x14   :  { %8591 = vmatpush3.msra.mxu0 %v99_v2  ;;  %v88_v9 = vld [vmem:[%s14165_s3] sm:$0xff]  ;;  %v89_v10 = vld [vmem:[%s14165_s3 + $0x8] sm:$0xff]  ;;  %v91_v12 = vld [vmem:[%s14165_s3 + $0x18] sm:$0xff] }
  0x15   :  { %8592 = vmatprep.subr.mxu0 %v14130_v1  ;;  %v92_v13 = vld [vmem:[%s14165_s3 + $0x20] sm:$0xff] }
  0x16   :  { %8593 = vmatpush3.msra.mxu0 %v98_v3 }
  0x17   :  { %8594 = vmatprep.subr.mxu0 %v14130_v1 }
  0x18   :  { %8595 = vmatpush3.msra.mxu0 %v97_v4 }
  0x19   :  { %8596 = vmatprep.subr.mxu0 %v14130_v1 }
  0x1a   :  { %8597 = vmatpush3.msra.mxu0 %v96_v5 }
  0x1b   :  { %8598 = vmatprep.subr.mxu0 %v14130_v1 }
  0x1c   :  { %8599 = vmatpush3.msra.mxu0 %v95_v6 }
  0x1d   :  { %8600 = vmatprep.subr.mxu0 %v14130_v1 }
  0x1e   :  { %8601 = vmatpush3.msra.mxu0 %v94_v7 }
  0x1f   :  { %8602 = vmatprep.subr.mxu0 %v14130_v1 }
  0x20   :  { %8603 = vmatpush3.msra.mxu0 %v93_v8 }
  0x21   :  { %8605 = vmatmul.mubr.msk.f32.vlgmr.msra.gmra.mxu0 %vm14119_vm1, %v88_v9  ;;  %8691 = vmatprep.subr.mxu0 %v14130_v1 }
  0x22   :  { %8607 = vmatprep.mubr.msk.f32.mxu0 %vm14122_vm0, %v14130_v1 }
  0x25   :  { %8608 = vmatmul.mubr.msk.f32.gmra.mxu0 %vm14119_vm1, %v89_v10 }
  0x26   :  { %8610 = vmatprep.mubr.msk.f32.mxu0 %vm14122_vm0, %v14130_v1 }
  0x29   :  { %8611 = vmatmul.mubr.msk.f32.gmra.mxu0 %vm14119_vm1, %v90_v11 }
  0x2a   :  { %8613 = vmatprep.mubr.msk.f32.mxu0 %vm14122_vm0, %v14130_v1 }
  0x2d   :  { %8614 = vmatmul.mubr.msk.f32.gmra.mxu0 %vm14119_vm1, %v91_v12 }
  0x2e   :  { %8616 = vmatprep.mubr.msk.f32.mxu0 %vm14122_vm0, %v14130_v1 }
  0x31   :  { %8617 = vmatmul.mubr.msk.f32.gmra.mxu0 %vm14119_vm1, %v92_v13 }
  0x32   :  { %8701 = vmatprep.mubr.msk.f32.mxu0 %vm14122_vm0, %v14130_v1 }
  0x33   :  { %30 = vsyncpa [#allocation3], 0  ;;  %s14166_s29 = sld [smem:[#allocation21_spill]]  ;;  %vm14124_vm2 = vcmask 326656   ;;  %vm14118_vm3 = vcmask 322560   ;;  %vm14121_vm4 = vcmask 1045504  }
  0x34   :  { %s14167_s7 = sld [smem:[#allocation26_spill]]  ;;  %vm14120_vm5 = vcmask 48128   ;;  %vm1566_vm6 = vcmask 261120   ;;  %s9673_s3 = smov [#allocation2]  }
  0x35   :  { %s14168_s2 = sld [smem:[#allocation27_spill]] }
  0x36   :  { %s14169_s26 = sld [smem:[#allocation28_spill]] }
  0x37   :  { %s14170_s6 = sld [smem:[#allocation20_spill]] }
  0x38   :  { %s14173_s27 = sld [smem:[#allocation23_spill]] }
  0x39   :  { %v9878_v24 = vld [vmem:[%s14166_s29] sm:$0xff]  ;;  %v9895_v27 = vld [vmem:[%s14166_s29 + $0x8] sm:$0xff]  ;;  %v9912_v30 = vld [vmem:[%s14166_s29 + $0x10] sm:$0xff]  ;;  %s14177_s0 = sld [smem:[#allocation22_spill]] }
  0x3a   :  { %v333_v25 = vld [vmem:[%s14167_s7 + $0x78] sm:$0xff]  ;;  %v332_v26 = vld [vmem:[%s14167_s7 + $0x70] sm:$0xff]  ;;  %v331_v28 = vld [vmem:[%s14167_s7 + $0x68] sm:$0xff]  ;;  %s14180_s1 = sld [smem:[#allocation24_spill]] }
  0x3b   :  { %v330_v29 = vld [vmem:[%s14167_s7 + $0x60] sm:$0xff]  ;;  %v329_v31 = vld [vmem:[%s14167_s7 + $0x58] sm:$0xff]  ;;  %v328_v32 = vld [vmem:[%s14167_s7 + $0x50] sm:$0xff] }
  0x3c   :  { %v9929_v33 = vld [vmem:[%s14166_s29 + $0x18] sm:$0xff]  ;;  %v327_v34 = vld [vmem:[%s14167_s7 + $0x48] sm:$0xff]  ;;  %v326_v35 = vld [vmem:[%s14167_s7 + $0x40] sm:$0xff] }
  0x3d   :  { %v9946_v36 = vld [vmem:[%s14166_s29 + $0x20] sm:$0xff]  ;;  %v325_v37 = vld [vmem:[%s14167_s7 + $0x38] sm:$0xff]  ;;  %v324_v38 = vld [vmem:[%s14167_s7 + $0x30] sm:$0xff] }
  0x3e   :  { %v323_v39 = vld [vmem:[%s14167_s7 + $0x28] sm:$0xff]  ;;  %v322_v40 = vld [vmem:[%s14167_s7 + $0x20] sm:$0xff]  ;;  %v321_v41 = vld [vmem:[%s14167_s7 + $0x18] sm:$0xff] }
  0x3f   :  { %v320_v42 = vld [vmem:[%s14167_s7 + $0x10] sm:$0xff]  ;;  %v319_v43 = vld [vmem:[%s14167_s7 + $0x8] sm:$0xff]  ;;  %v318_v44 = vld [vmem:[%s14167_s7] sm:$0xff] }
  0x40   :  { %v526_v7 = vld [vmem:[%s14168_s2 + $0x38] sm:$0xff]  ;;  %v525_v8 = vld [vmem:[%s14168_s2 + $0x30] sm:$0xff]  ;;  %v524_v9 = vld [vmem:[%s14168_s2 + $0x28] sm:$0xff] }
  0x41   :  { %v523_v10 = vld [vmem:[%s14168_s2 + $0x20] sm:$0xff]  ;;  %v522_v11 = vld [vmem:[%s14168_s2 + $0x18] sm:$0xff]  ;;  %v521_v12 = vld [vmem:[%s14168_s2 + $0x10] sm:$0xff] }
  0x42   :  { %v520_v13 = vld [vmem:[%s14168_s2 + $0x8] sm:$0xff] }
  0xe1   :  { %v183_v14 = vpop.f32.mrf.mxu0 }
  0xe3   :  { %v8606_v15 = vpop.f32.mrf.mxu0 }
  0xe5   :  { %v188_v16 = vpop.f32.mrf.mxu0 }
  0xe7   :  { %v8609_v17 = vpop.f32.mrf.mxu0 }
  0xe9   :  { %v193_v18 = vpop.f32.mrf.mxu0 }
  0xeb   :  { %v8612_v19 = vpop.f32.mrf.mxu0 }
  0xed   :  { %v198_v20 = vpop.f32.mrf.mxu0 }
  0xef   :  { %v8615_v21 = vpop.f32.mrf.mxu0 }
  0xf1   :  { %v203_v22 = vpop.f32.mrf.mxu0 }
  0xf2   :  { %8620 = vmatpush3.msra.mxu1 %v203_v22  ;;  %v735_v22 = vld [vmem:[%s14169_s26 + $0x38] sm:$0xff] }
  0xf3   :  { %v8618_v23 = vpop.f32.mrf.mxu0  ;;  %8621 = vmatprep.subr.mxu1 %v14130_v1 }
  0xf4   :  { %8622 = vmatpush3.msra.mxu1 %v198_v20 }
  0xf5   :  { %8623 = vmatprep.subr.mxu1 %v14130_v1 }
  0xf6   :  { %8624 = vmatpush3.msra.mxu1 %v193_v18 }
  0xf7   :  { %8625 = vmatprep.subr.mxu1 %v14130_v1 }
  0xf8   :  { %8626 = vmatpush3.msra.mxu1 %v188_v16 }
  0xf9   :  { %8627 = vmatprep.subr.mxu1 %v14130_v1 }
  0xfa   :  { %8628 = vmatpush3.msra.mxu1 %v183_v14  ;;  %v519_v14 = vld [vmem:[%s14168_s2] sm:$0xff] }
  0xfb   :  { %8630 = vmatmul.mubr.msk.f32.vlgmr.msra.gmra.mxu1 %vm14124_vm2, %v9878_v24  ;;  %8644 = vmatprep.subr.mxu1 %v14130_v1 }
  0xfc   :  { %8632 = vmatprep.mubr.msk.f32.mxu1 %vm14122_vm0, %v14130_v1  ;;  %8645 = vmatpush3.msra.mxu1 %v333_v25 }
  0xfd   :  { %8646 = vmatprep.subr.mxu1 %v14130_v1 }
  0xfe   :  { %8647 = vmatpush3.msra.mxu1 %v332_v26  ;;  %v734_v26 = vld [vmem:[%s14169_s26 + $0x30] sm:$0xff] }
  0xff   :  { %8633 = vmatmul.mubr.msk.f32.gmra.mxu1 %vm14124_vm2, %v9895_v27  ;;  %8648 = vmatprep.subr.mxu1 %v14130_v1 }
 0x100   :  { %8635 = vmatprep.mubr.msk.f32.mxu1 %vm14122_vm0, %v14130_v1  ;;  %8649 = vmatpush3.msra.mxu1 %v331_v28 }
 0x101   :  { %8650 = vmatprep.subr.mxu1 %v14130_v1 }
 0x102   :  { %8651 = vmatpush3.msra.mxu1 %v330_v29  ;;  %v733_v29 = vld [vmem:[%s14169_s26 + $0x28] sm:$0xff] }
 0x103   :  { %8636 = vmatmul.mubr.msk.f32.gmra.mxu1 %vm14124_vm2, %v9912_v30  ;;  %8652 = vmatprep.subr.mxu1 %v14130_v1 }
 0x104   :  { %8638 = vmatprep.mubr.msk.f32.mxu1 %vm14122_vm0, %v14130_v1  ;;  %8653 = vmatpush3.msra.mxu1 %v329_v31 }
 0x105   :  { %8654 = vmatprep.subr.mxu1 %v14130_v1 }
 0x106   :  { %8655 = vmatpush3.msra.mxu1 %v328_v32 }
 0x107   :  { %8639 = vmatmul.mubr.msk.f32.gmra.mxu1 %vm14124_vm2, %v9929_v33  ;;  %8656 = vmatprep.subr.mxu1 %v14130_v1 }
 0x108   :  { %8641 = vmatprep.mubr.msk.f32.mxu1 %vm14122_vm0, %v14130_v1  ;;  %8657 = vmatpush3.msra.mxu1 %v327_v34  ;;  %v732_v34 = vld [vmem:[%s14169_s26 + $0x20] sm:$0xff] }
 0x109   :  { %8658 = vmatprep.subr.mxu1 %v14130_v1 }
 0x10a   :  { %8659 = vmatpush3.msra.mxu1 %v326_v35  ;;  %v731_v35 = vld [vmem:[%s14169_s26 + $0x18] sm:$0xff] }
 0x10b   :  { %8642 = vmatmul.mubr.msk.f32.gmra.mxu1 %vm14124_vm2, %v9946_v36  ;;  %8660 = vmatprep.subr.mxu1 %v14130_v1 }
 0x10c   :  { %8676 = vmatprep.mubr.msk.f32.mxu1 %vm14122_vm0, %v14130_v1  ;;  %8661 = vmatpush3.msra.mxu1 %v325_v37 }
 0x10d   :  { %8662 = vmatprep.subr.mxu1 %v14130_v1 }
 0x10e   :  { %8663 = vmatpush3.msra.mxu1 %v324_v38  ;;  %v730_v38 = vld [vmem:[%s14169_s26 + $0x10] sm:$0xff] }
 0x10f   :  { %8664 = vmatprep.subr.mxu1 %v14130_v1 }
 0x110   :  { %8665 = vmatpush3.msra.mxu1 %v323_v39  ;;  %v729_v39 = vld [vmem:[%s14169_s26 + $0x8] sm:$0xff] }
 0x111   :  { %8666 = vmatprep.subr.mxu1 %v14130_v1 }
 0x112   :  { %8667 = vmatpush3.msra.mxu1 %v322_v40 }
 0x113   :  { %8668 = vmatprep.subr.mxu1 %v14130_v1 }
 0x114   :  { %8669 = vmatpush3.msra.mxu1 %v321_v41  ;;  %v728_v41 = vld [vmem:[%s14169_s26] sm:$0xff]  ;;  %s9670_s26 = smov 64  }
 0x115   :  { %8670 = vmatprep.subr.mxu1 %v14130_v1 }
 0x116   :  { %8671 = vmatpush3.msra.mxu1 %v320_v42 }
 0x117   :  { %8672 = vmatprep.subr.mxu1 %v14130_v1 }
 0x118   :  { %8673 = vmatpush3.msra.mxu1 %v319_v43  ;;  %v727_v43 = vld [vmem:[%s14170_s6] sm:$0x3f]  ;;  %s9669_s6 = smov 32  }
 0x119   :  { %8674 = vmatprep.subr.mxu1 %v14130_v1 }
 0x11a   :  { %8675 = vmatpush3.msra.mxu1 %v318_v44  ;;  %v14125_v44 = vlaneseq }
 0x11b   :  { %8747 = vmatprep.subr.mxu1 %v14130_v1 }
 0x1bb   :  { %v289_v45 = vpop.f32.mrf.mxu1 }
 0x1bc   :  { %9525 = vtanh.f32 %v289_v45  ;;  %v10107_v45 = vshrl.u32 %v14125_v44, 7 }
 0x1bd   :  { %v8631_v46 = vpop.f32.mrf.mxu1 }
 0x1be   :  { %14171 = vst [vmem:[#allocation5_spill] sm:$0xff] %v10107_v45  ;;  %v10110_v46 = vsub.s32 1, %v10107_v45 }
 0x1bf   :  { %v294_v47 = vpop.f32.mrf.mxu1 }
 0x1c0   :  { %9527 = vtanh.f32 %v294_v47  ;;  %14172 = vst [vmem:[#allocation6_spill] sm:$0xff] %v10110_v46  ;;  %v10115_v47 = vld [vmem:[%s14173_s27] sm:$0xff] }
 0x1c1   :  { %v8634_v48 = vpop.f32.mrf.mxu1 }
 0x1c2   :  { %v1076_v48 = vrot.slane %v10115_v47, %v10110_v46 }
 0x1c3   :  { %v299_v49 = vpop.f32.mrf.mxu1 }
 0x1c4   :  { %9529 = vtanh.f32 %v299_v49  ;;  %1078 = vbcast.lane.b32.xlu1 %v1076_v48, 256  ;;  %v10120_v49 = vsub.s32 0, %v10107_v45 }
 0x1c5   :  { %v8637_v50 = vpop.f32.mrf.mxu1 }
 0x1c6   :  { %14174 = vst [vmem:[#allocation7_spill] sm:$0xff] %v10120_v49  ;;  %v1053_v50 = vrot.slane %v10115_v47, %v10120_v49 }
 0x1c7   :  { %v304_v51 = vpop.f32.mrf.mxu1 }
 0x1c8   :  { %9531 = vtanh.f32 %v304_v51  ;;  %1082 = vbcast.lane.b32.xlu1 %v1076_v48, 264  ;;  %1055 = vbcast.lane.b32.xlu0 %v1053_v50, 256  ;;  %v10125_v51 = vsub.s32 2, %v10107_v45 }
 0x1c9   :  { %v9526_v52 = vpop.eup %9525  ;;  %v8640_v53 = vpop.f32.mrf.mxu1 }
 0x1ca   :  { %8677 = vmatmul.mubr.f32.vlgmr.msra.gmra.mxu1 %v9526_v52  ;;  %14175 = vst [vmem:[#allocation8_spill] sm:$0xff] %v10125_v51  ;;  %v1099_v52 = vrot.slane %v10115_v47, %v10125_v51  ;;  %v10130_v53 = vsub.s32 3, %v10107_v45 }
 0x1cb   :  { %v309_v54 = vpop.f32.mrf.mxu1  ;;  %8679 = vmatprep.mubr.msk.f32.mxu1 %vm14122_vm0, %v14130_v1 }
 0x1cc   :  { %9533 = vtanh.f32 %v309_v54  ;;  %1105 = vbcast.lane.b32.xlu1 %v1099_v52, 264  ;;  %1059 = vbcast.lane.b32.xlu0 %v1053_v50, 264  ;;  %14176 = vst [vmem:[#allocation9_spill] sm:$0xff] %v10130_v53  ;;  %v1122_v54 = vrot.slane %v10115_v47, %v10130_v53 }
 0x1cd   :  { %v9528_v55 = vpop.eup %9527  ;;  %v8643_v56 = vpop.f32.mrf.mxu1 }
 0x1ce   :  { %8680 = vmatmul.mubr.f32.gmra.mxu1 %v9528_v55  ;;  %v1987_v55 = vsel %vm14124_vm2, %v10115_v47, 0.0  ;;  %v10139_v56 = vld [vmem:[%s14173_s27 + $0x8] sm:$0xf] }
 0x1cf   :  { %8682 = vmatprep.mubr.msk.f32.mxu1 %vm14122_vm0, %v14130_v1 }
 0x1d0   :  { %1063 = vbcast.lane.b32.xlu1 %v1053_v50, 272  ;;  %1101 = vbcast.lane.b32.xlu0 %v1099_v52, 256 }
 0x1d1   :  { %v9530_v57 = vpop.eup %9529 }
 0x1d2   :  { %8683 = vmatmul.mubr.f32.gmra.mxu1 %v9530_v57  ;;  %v1991_v57 = vsel %vm14118_vm3, %v10139_v56, 0.0 }
 0x1d3   :  { %8685 = vmatprep.mubr.msk.f32.mxu1 %vm14122_vm0, %v14130_v1 }
 0x1d4   :  { %1086 = vbcast.lane.b32.xlu1 %v1076_v48, 272 }
 0x1d5   :  { %v9532_v58 = vpop.eup %9531 }
 0x1d6   :  { %8686 = vmatmul.mubr.f32.gmra.mxu1 %v9532_v58  ;;  %v14129_v58 = vsub.s32 4, %v10107_v45 }
 0x1d7   :  { %8688 = vmatprep.mubr.msk.f32.mxu1 %vm14122_vm0, %v14130_v1 }
 0x1d8   :  { %1124 = vbcast.lane.b32.xlu1 %v1122_v54, 256 }
 0x1d9   :  { %v9534_v59 = vpop.eup %9533 }
 0x1da   :  { %8689 = vmatmul.mubr.f32.gmra.mxu1 %v9534_v59  ;;  %v1145_v59 = vrot.slane %v10115_v47, %v14129_v58 }
 0x1db   :  { %8757 = vmatprep.mubr.msk.f32.mxu1 %vm14122_vm0, %v14130_v1 }
 0x1dc   :  { %1128 = vbcast.lane.b32.xlu1 %v1122_v54, 264 }
 0x1ef   :  { %1988 = vadd.xlane.f32.xlu0 %v1987_v55 }
 0x200   :  { %1992 = vadd.xlane.f32.xlu1 %v1991_v57 }
 0x205   :  { %1109 = vbcast.lane.b32.xlu0 %v1099_v52, 272 }
 0x209   :  { %1151 = vbcast.lane.b32.xlu0 %v1145_v59, 264 }
 0x20d   :  { %1067 = vbcast.lane.b32.xlu0 %v1053_v50, 280 }
 0x211   :  { %1090 = vbcast.lane.b32.xlu0 %v1076_v48, 280  ;;  %1147 = vbcast.lane.b32.xlu1 %v1145_v59, 256 }
 0x215   :  { %1132 = vbcast.lane.b32.xlu0 %v1122_v54, 272 }
 0x28a   :  { %v400_v60 = vpop.f32.mrf.mxu1 }
 0x28c   :  { %v8678_v61 = vpop.f32.mrf.mxu1 }
 0x28e   :  { %v405_v62 = vpop.f32.mrf.mxu1 }
 0x290   :  { %v8681_v63 = vpop.f32.mrf.mxu1 }
 0x292   :  { %v410_v0 = vpop.f32.mrf.mxu1 }
 0x294   :  { %v8684_v2 = vpop.f32.mrf.mxu1 }
 0x295   :  { %v10166_v2 = vrot.slane %v10139_v56, %v10110_v46 }
 0x296   :  { %v415_v3 = vpop.f32.mrf.mxu1 }
 0x298   :  { %v8687_v4 = vpop.f32.mrf.mxu1 }
 0x29a   :  { %v420_v5 = vpop.f32.mrf.mxu1 }
 0x29b   :  { %8692 = vmatpush3.msra.mxu0 %v420_v5  ;;  %v10180_v5 = vrot.slane %v10139_v56, %v10125_v51 }
 0x29c   :  { %v8690_v6 = vpop.f32.mrf.mxu1  ;;  %8693 = vmatprep.subr.mxu0 %v14130_v1 }
 0x29d   :  { %8694 = vmatpush3.msra.mxu0 %v415_v3  ;;  %v14126_v3 = vsub.s32 7, %v10107_v45  ;;  %v10188_v6 = vrot.slane %v10139_v56, %v10130_v53 }
 0x29e   :  { %8695 = vmatprep.subr.mxu0 %v14130_v1 }
 0x29f   :  { %8696 = vmatpush3.msra.mxu0 %v410_v0  ;;  %v10160_v0 = vrot.slane %v10139_v56, %v10120_v49  ;;  %v10175_v4 = vrot.slane %v10115_v47, %v14126_v3 }
 0x2a0   :  { %8697 = vmatprep.subr.mxu0 %v14130_v1 }
 0x2a1   :  { %8698 = vmatpush3.msra.mxu0 %v405_v62  ;;  %v14127_v62 = vsub.s32 6, %v10107_v45 }
 0x2a2   :  { %8699 = vmatprep.subr.mxu0 %v14130_v1 }
 0x2a3   :  { %8700 = vmatpush3.msra.mxu0 %v400_v60  ;;  %v14128_v60 = vsub.s32 5, %v10107_v45  ;;  %v10155_v63 = vrot.slane %v10115_v47, %v14127_v62 }
 0x2a4   :  { %8702 = vmatmul.mubr.msk.f32.vlgmr.msra.gmra.mxu0 %vm14124_vm2, %v9878_v24  ;;  %8716 = vmatprep.subr.mxu0 %v14130_v1 }
 0x2a5   :  { %8704 = vmatprep.mubr.msk.f32.mxu0 %vm14122_vm0, %v14130_v1  ;;  %8717 = vmatpush3.msra.mxu0 %v526_v7  ;;  %v1168_v61 = vrot.slane %v10115_v47, %v14128_v60 }
 0x2a6   :  { %8718 = vmatprep.subr.mxu0 %v14130_v1 }
 0x2a7   :  { %8719 = vmatpush3.msra.mxu0 %v525_v8  ;;  %1174 = vbcast.lane.b32.xlu1 %v1168_v61, 264 }
 0x2a8   :  { %8705 = vmatmul.mubr.msk.f32.gmra.mxu0 %vm14124_vm2, %v9895_v27  ;;  %8720 = vmatprep.subr.mxu0 %v14130_v1 }
 0x2a9   :  { %8707 = vmatprep.mubr.msk.f32.mxu0 %vm14122_vm0, %v14130_v1  ;;  %8721 = vmatpush3.msra.mxu0 %v524_v9 }
 0x2aa   :  { %8722 = vmatprep.subr.mxu0 %v14130_v1  ;;  %1170 = vbcast.lane.b32.xlu0 %v1168_v61, 256 }
 0x2ab   :  { %8723 = vmatpush3.msra.mxu0 %v523_v10  ;;  %1155 = vbcast.lane.b32.xlu1 %v1145_v59, 272 }
 0x2ac   :  { %8708 = vmatmul.mubr.msk.f32.gmra.mxu0 %vm14124_vm2, %v9912_v30  ;;  %8724 = vmatprep.subr.mxu0 %v14130_v1 }
 0x2ad   :  { %8710 = vmatprep.mubr.msk.f32.mxu0 %vm14122_vm0, %v14130_v1  ;;  %8725 = vmatpush3.msra.mxu0 %v522_v11 }
 0x2ae   :  { %8726 = vmatprep.subr.mxu0 %v14130_v1  ;;  %1113 = vbcast.lane.b32.xlu0 %v1099_v52, 280 }
 0x2af   :  { %8727 = vmatpush3.msra.mxu0 %v521_v12  ;;  %1197 = vbcast.lane.b32.xlu1 %v10155_v63, 264 }
 0x2b0   :  { %8711 = vmatmul.mubr.msk.f32.gmra.mxu0 %vm14124_vm2, %v9929_v33  ;;  %8728 = vmatprep.subr.mxu0 %v14130_v1 }
 0x2b1   :  { %8713 = vmatprep.mubr.msk.f32.mxu0 %vm14122_vm0, %v14130_v1  ;;  %8729 = vmatpush3.msra.mxu0 %v520_v13 }
 0x2b2   :  { %8730 = vmatprep.subr.mxu0 %v14130_v1  ;;  %1193 = vbcast.lane.b32.xlu0 %v10155_v63, 256 }
 0x2b3   :  { %8731 = vmatpush3.msra.mxu0 %v519_v14  ;;  %1243 = vbcast.lane.b32.xlu1 %v10160_v0, 264 }
 0x2b4   :  { %8714 = vmatmul.mubr.msk.f32.gmra.mxu0 %vm14124_vm2, %v9946_v36  ;;  %8772 = vmatprep.subr.mxu0 %v14130_v1 }
 0x2b5   :  { %8732 = vmatprep.mubr.msk.f32.mxu0 %vm14122_vm0, %v14130_v1 }
 0x2b6   :  { %1239 = vbcast.lane.b32.xlu0 %v10160_v0, 256 }
 0x2b7   :  { %1266 = vbcast.lane.b32.xlu1 %v10166_v2, 264 }
 0x2ba   :  { %1262 = vbcast.lane.b32.xlu0 %v10166_v2, 256 }
 0x2bb   :  { %1094 = vbcast.lane.b32.xlu1 %v1076_v48, 288 }
 0x2be   :  { %1071 = vbcast.lane.b32.xlu0 %v1053_v50, 288 }
 0x2bf   :  { %1178 = vbcast.lane.b32.xlu1 %v1168_v61, 272 }
 0x2c2   :  { %1136 = vbcast.lane.b32.xlu0 %v1122_v54, 280 }
 0x2c3   :  { %1220 = vbcast.lane.b32.xlu1 %v10175_v4, 264 }
 0x2c6   :  { %1216 = vbcast.lane.b32.xlu0 %v10175_v4, 256 }
 0x2c7   :  { %1289 = vbcast.lane.b32.xlu1 %v10180_v5, 264 }
 0x2ca   :  { %1285 = vbcast.lane.b32.xlu0 %v10180_v5, 256 }
 0x2cb   :  { %1159 = vbcast.lane.b32.xlu1 %v1145_v59, 280 }
 0x2ce   :  { %1117 = vbcast.lane.b32.xlu0 %v1099_v52, 288 }
 0x2cf   :  { %1247 = vbcast.lane.b32.xlu1 %v10160_v0, 272 }
 0x2d2   :  { %1201 = vbcast.lane.b32.xlu0 %v10155_v63, 272 }
 0x2d3   :  { %1308 = vbcast.lane.b32.xlu1 %v10188_v6, 256 }
 0x2d6   :  { %1270 = vbcast.lane.b32.xlu0 %v10166_v2, 272 }
 0x2d7   :  { %1140 = vbcast.lane.b32.xlu1 %v1122_v54, 288 }
 0x2da   :  { %1312 = vbcast.lane.b32.xlu0 %v10188_v6, 264 }
 0x2db   :  { %1224 = vbcast.lane.b32.xlu1 %v10175_v4, 272 }
 0x2de   :  { %1182 = vbcast.lane.b32.xlu0 %v1168_v61, 280 }
 0x2df   :  { %1163 = vbcast.lane.b32.xlu1 %v1145_v59, 288 }
 0x2e2   :  { %1293 = vbcast.lane.b32.xlu0 %v10180_v5, 272 }
 0x2e3   :  { %1251 = vbcast.lane.b32.xlu1 %v10160_v0, 280 }
 0x2e6   :  { %1205 = vbcast.lane.b32.xlu0 %v10155_v63, 280 }
 0x2e7   :  { %1316 = vbcast.lane.b32.xlu1 %v10188_v6, 272 }
 0x2ea   :  { %1274 = vbcast.lane.b32.xlu0 %v10166_v2, 280 }
 0x2eb   :  { %1228 = vbcast.lane.b32.xlu1 %v10175_v4, 280 }
 0x2ee   :  { %1186 = vbcast.lane.b32.xlu0 %v1168_v61, 288 }
 0x2ef   :  { %1209 = vbcast.lane.b32.xlu1 %v10155_v63, 288 }
 0x2f2   :  { %1297 = vbcast.lane.b32.xlu0 %v10180_v5, 280 }
 0x2f3   :  { %1278 = vbcast.lane.b32.xlu1 %v10166_v2, 288 }
 0x2f6   :  { %1255 = vbcast.lane.b32.xlu0 %v10160_v0, 288 }
 0x2f7   :  { %1232 = vbcast.lane.b32.xlu1 %v10175_v4, 288 }
 0x2fa   :  { %1320 = vbcast.lane.b32.xlu0 %v10188_v6, 280 }
 0x2fb   :  { %1324 = vbcast.lane.b32.xlu1 %v10188_v6, 288 }
 0x2fe   :  { %1301 = vbcast.lane.b32.xlu0 %v10180_v5, 288 }
 0x364   :  { %v490_v15 = vpop.f32.mrf.mxu0 }
 0x365   :  { %9535 = vtanh.f32 %v490_v15 }
 0x366   :  { %v8703_v16 = vpop.f32.mrf.mxu0 }
 0x368   :  { %v495_v17 = vpop.f32.mrf.mxu0 }
 0x369   :  { %9537 = vtanh.f32 %v495_v17  ;;  %v87_v17 = vld [vmem:[%s14177_s0] sm:$0x3f] }
 0x36a   :  { %v8706_v18 = vpop.f32.mrf.mxu0 }
 0x36c   :  { %v500_v19 = vpop.f32.mrf.mxu0 }
 0x36d   :  { %9539 = vtanh.f32 %v500_v19 }
 0x36e   :  { %v8709_v20 = vpop.f32.mrf.mxu0 }
 0x36f   :  { %v903_v20 = vld [vmem:[%s14093_s10 + $0x78] sm:$0xff] }
 0x370   :  { %v505_v21 = vpop.f32.mrf.mxu0 }
 0x371   :  { %9541 = vtanh.f32 %v505_v21  ;;  %v902_v21 = vld [vmem:[%s14093_s10 + $0x70] sm:$0xff] }
 0x372   :  { %v9536_v23 = vpop.eup %9535  ;;  %v8712_v25 = vpop.f32.mrf.mxu0 }
 0x373   :  { %8733 = vmatmul.mubr.msk.f32.vlgmr.msra.gmra.mxu0 %vm14119_vm1, %v9536_v23  ;;  %v896_v23 = vld [vmem:[%s14093_s10 + $0x40] sm:$0xff]  ;;  %v894_v25 = vld [vmem:[%s14093_s10 + $0x30] sm:$0xff] }
 0x374   :  { %v510_v28 = vpop.f32.mrf.mxu0  ;;  %8735 = vmatprep.mubr.msk.f32.mxu0 %vm14122_vm0, %v14130_v1  ;;  %8773 = vmatpush3.msra.mxu0 %v735_v22  ;;  %v898_v22 = vld [vmem:[%s14093_s10 + $0x50] sm:$0xff] }
 0x375   :  { %9543 = vtanh.f32 %v510_v28  ;;  %8774 = vmatprep.subr.mxu0 %v14130_v1  ;;  %v892_v28 = vld [vmem:[%s14093_s10 + $0x20] sm:$0xff] }
 0x376   :  { %v9538_v31 = vpop.eup %9537  ;;  %8775 = vmatpush3.msra.mxu0 %v734_v26  ;;  %v8715_v32 = vpop.f32.mrf.mxu0  ;;  %v893_v26 = vld [vmem:[%s14093_s10 + $0x28] sm:$0xff] }
 0x377   :  { %8736 = vmatmul.mubr.msk.f32.gmra.mxu0 %vm14119_vm1, %v9538_v31  ;;  %8776 = vmatprep.subr.mxu0 %v14130_v1  ;;  %v890_v31 = vld [vmem:[%s14093_s10 + $0x10] sm:$0xff]  ;;  %v889_v32 = vld [vmem:[%s14093_s10 + $0x8] sm:$0xff] }
 0x378   :  { %8738 = vmatprep.mubr.msk.f32.mxu0 %vm14122_vm0, %v14130_v1  ;;  %8777 = vmatpush3.msra.mxu0 %v733_v29  ;;  %v891_v29 = vld [vmem:[%s14093_s10 + $0x18] sm:$0xff] }
 0x379   :  { %8778 = vmatprep.subr.mxu0 %v14130_v1 }
 0x37a   :  { %v9540_v37 = vpop.eup %9539  ;;  %8779 = vmatpush3.msra.mxu0 %v732_v34  ;;  %v888_v34 = vld [vmem:[%s14093_s10] sm:$0xff] }
 0x37b   :  { %8739 = vmatmul.mubr.msk.f32.gmra.mxu0 %vm14119_vm1, %v9540_v37  ;;  %8780 = vmatprep.subr.mxu0 %v14130_v1  ;;  %v10307_v37 = vpop.permute.xlu1 %1078 }
 0x37c   :  { %8741 = vmatprep.mubr.msk.f32.mxu0 %vm14122_vm0, %v14130_v1  ;;  %8781 = vmatpush3.msra.mxu0 %v731_v35  ;;  %v10305_v35 = vpop.permute.xlu0 %1055  ;;  %vm1331_vm8 = vcmp.gt.f32.partialorder %v10307_v37, 0.0 }
 0x37d   :  { %8782 = vmatprep.subr.mxu0 %v14130_v1  ;;  %vm1326_vm7 = vcmp.gt.f32.partialorder %v10305_v35, 0.0 }
 0x37e   :  { %v9542_v40 = vpop.eup %9541  ;;  %8783 = vmatpush3.msra.mxu0 %v730_v38 }
 0x37f   :  { %8742 = vmatmul.mubr.msk.f32.gmra.mxu0 %vm14119_vm1, %v9542_v40  ;;  %8784 = vmatprep.subr.mxu0 %v14130_v1 }
 0x380   :  { %8744 = vmatprep.mubr.msk.f32.mxu0 %vm14122_vm0, %v14130_v1  ;;  %8785 = vmatpush3.msra.mxu0 %v729_v39  ;;  %v10309_v38 = vpop.permute.xlu0 %1059  ;;  %v10311_v39 = vpop.permute.xlu1 %1082 }
 0x381   :  { %8786 = vmatprep.subr.mxu0 %v14130_v1  ;;  %vm1327_vm14 = vcmp.gt.f32.partialorder %v10309_v38, 0.0  ;;  %vm1332_vm15 = vcmp.gt.f32.partialorder %v10311_v39, 0.0 }
 0x382   :  { %v9544_v42 = vpop.eup %9543  ;;  %8787 = vmatpush3.msra.mxu0 %v728_v41 }
 0x383   :  { %8745 = vmatmul.mubr.msk.f32.gmra.mxu0 %vm14119_vm1, %v9544_v42  ;;  %8791 = vmatprep.subr.mxu0 %v14130_v1 }
 0x384   :  { %8788 = vmatprep.mubr.msk.f32.mxu0 %vm14122_vm0, %v14130_v1  ;;  %v10313_v40 = vpop.permute.xlu0 %1101  ;;  %v10315_v41 = vpop.permute.xlu1 %1105 }
 0x385   :  { %vm1336_vm9 = vcmp.gt.f32.partialorder %v10313_v40, 0.0  ;;  %vm1337_vm3 = vcmp.gt.f32.partialorder %v10315_v41, 0.0 }
 0x387   :  { %8789 = vmatmul.mubr.msk.f32.vlgmr.msra.gmra.mxu0 %vm14119_vm1, %v727_v43 }
 0x388   :  { %8793 = vmatprep.mubr.msk.f32.mxu0 %vm14122_vm0, %v14130_v1  ;;  %v10317_v42 = vpop.xlane.xlu0 %1988  ;;  %v10319_v43 = vpop.permute.xlu1 %1063 }
 0x389   :  { %14178 = vst [vmem:[#allocation10_spill] sm:$0xff] %v10317_v42 }
 0x38c   :  { %v10321_v48 = vpop.permute.xlu0 %1109  ;;  %v10323_v50 = vpop.permute.xlu1 %1086 }
 0x390   :  { %v10325_v52 = vpop.permute.xlu0 %1151  ;;  %v10327_v54 = vpop.permute.xlu1 %1124 }
 0x391   :  { %vm1341_vm10 = vcmp.gt.f32.partialorder %v10327_v54, 0.0 }
 0x394   :  { %v10329_v55 = vpop.permute.xlu0 %1067  ;;  %v10331_v57 = vpop.permute.xlu1 %1128 }
 0x398   :  { %v10333_v59 = vpop.permute.xlu0 %1090  ;;  %v10335_v61 = vpop.xlane.xlu1 %1992 }
 0x399   :  { %14179 = vst [vmem:[#allocation11_spill] sm:$0xff] %v10335_v61 }
 0x39c   :  { %v10337_v63 = vpop.permute.xlu0 %1132  ;;  %v10339_v0 = vpop.permute.xlu1 %1147 }
 0x39d   :  { %vm1346_vm11 = vcmp.gt.f32.partialorder %v10339_v0, 0.0 }
 0x3a0   :  { %v10341_v2 = vpop.permute.xlu0 %1170  ;;  %v10343_v4 = vpop.permute.xlu1 %1174 }
 0x3a1   :  { %vm1351_vm12 = vcmp.gt.f32.partialorder %v10341_v2, 0.0 }
 0x3a4   :  { %v10345_v5 = vpop.permute.xlu0 %1113  ;;  %v10347_v6 = vpop.permute.xlu1 %1155 }
 0x433   :  { %v608_v7 = vpop.f32.mrf.mxu0 }
 0x435   :  { %v8734_v8 = vpop.f32.mrf.mxu0 }
 0x436   :  { %v10349_v8 = vpop.permute.xlu0 %1193 }
 0x437   :  { %v613_v9 = vpop.f32.mrf.mxu0  ;;  %vm1356_vm13 = vcmp.gt.f32.partialorder %v10349_v8, 0.0 }
 0x439   :  { %v8737_v10 = vpop.f32.mrf.mxu0 }
 0x43b   :  { %v618_v11 = vpop.f32.mrf.mxu0 }
 0x43d   :  { %v8740_v12 = vpop.f32.mrf.mxu0 }
 0x43e   :  { %v10357_v12 = vpop.permute.xlu1 %1197 }
 0x43f   :  { %v623_v13 = vpop.f32.mrf.mxu0 }
 0x441   :  { %v8743_v14 = vpop.f32.mrf.mxu0 }
 0x442   :  { %v10361_v14 = vpop.permute.xlu0 %1239 }
 0x443   :  { %v628_v15 = vpop.f32.mrf.mxu0  ;;  %vm1366_vm1 = vcmp.gt.f32.partialorder %v10361_v14, 0.0 }
 0x444   :  { %8748 = vmatpush3.msra.mxu1 %v628_v15 }
 0x445   :  { %v8746_v16 = vpop.f32.mrf.mxu0  ;;  %8749 = vmatprep.subr.mxu1 %v14130_v1 }
 0x446   :  { %8750 = vmatpush3.msra.mxu1 %v623_v13 }
 0x447   :  { %8751 = vmatprep.subr.mxu1 %v14130_v1  ;;  %v805_v18 = vpop.f32.mrf.mxu0 }
 0x448   :  { %8752 = vmatpush3.msra.mxu1 %v618_v11  ;;  %8792 = vmatpush3.msk.msra.mxu0 %vm14121_vm4, %v805_v18  ;;  %v10368_v18 = vpop.permute.xlu1 %1243  ;;  %vm1342_vm4 = vcmp.gt.f32.partialorder %v10331_v57, 0.0 }
 0x449   :  { %8753 = vmatprep.subr.mxu1 %v14130_v1  ;;  %8794 = vmatmul.mubr.msk.f32.vlgmr.msra.gmra.mxu0 %vm14120_vm5, %v87_v17  ;;  %v8790_v19 = vpop.f32.mrf.mxu0  ;;  %vm1347_vm5 = vcmp.gt.f32.partialorder %v10325_v52, 0.0 }
 0x44a   :  { %8754 = vmatpush3.msra.mxu1 %v613_v9  ;;  %8831 = vmatprep.subr.mxu0 %v14130_v1  ;;  %v2152_v9 = vld [vmem:[%s14180_s1] sm:$0xff] }
 0x44b   :  { %8755 = vmatprep.subr.mxu1 %v14130_v1  ;;  %8833 = vmatprep.mubr.msk.f32.mxu0 %vm14122_vm0, %v14130_v1  ;;  %v10355_v11 = vrot.slane %v2152_v9, %v10120_v49  ;;  %v10364_v16 = vrot.slane %v2152_v9, %v10110_v46 }
 0x44c   :  { %8756 = vmatpush3.msra.mxu1 %v608_v7 }
 0x44d   :  { %8758 = vmatmul.mubr.msk.f32.vlgmr.msra.gmra.mxu1 %vm14124_vm2, %v9878_v24  ;;  %8796 = vmatprep.subr.mxu1 %v14130_v1  ;;  %v901_v24 = vld [vmem:[%s14093_s10 + $0x68] sm:$0xff]  ;;  %14181 = vst [vmem:[#allocation12_spill] sm:$0xff] %v10355_v11  ;;  %14182 = vst [vmem:[#allocation13_spill] sm:$0xff] %v10364_v16 }
 0x44e   :  { %8760 = vmatprep.mubr.msk.f32.mxu1 %vm14122_vm0, %v14130_v1  ;;  %8797 = vmatpush3.msra.mxu1 %v903_v20  ;;  %v10370_v20 = vpop.permute.xlu0 %1262 }
 0x44f   :  { %8798 = vmatprep.subr.mxu1 %v14130_v1  ;;  %2163 = vbcast.lane.b32.xlu1 %v10355_v11, 264 }
 0x450   :  { %8799 = vmatpush3.msra.mxu1 %v902_v21  ;;  %2159 = vbcast.lane.b32.xlu0 %v10355_v11, 256 }
 0x451   :  { %8761 = vmatmul.mubr.msk.f32.gmra.mxu1 %vm14124_vm2, %v9895_v27  ;;  %8800 = vmatprep.subr.mxu1 %v14130_v1  ;;  %v900_v27 = vld [vmem:[%s14093_s10 + $0x60] sm:$0xff] }
 0x452   :  { %8763 = vmatprep.mubr.msk.f32.mxu1 %vm14122_vm0, %v14130_v1  ;;  %8801 = vmatpush3.msra.mxu1 %v901_v24 }
 0x453   :  { %8802 = vmatprep.subr.mxu1 %v14130_v1  ;;  %2186 = vbcast.lane.b32.xlu1 %v10364_v16, 264 }
 0x454   :  { %8803 = vmatpush3.msra.mxu1 %v900_v27  ;;  %2182 = vbcast.lane.b32.xlu0 %v10364_v16, 256 }
 0x455   :  { %8764 = vmatmul.mubr.msk.f32.gmra.mxu1 %vm14124_vm2, %v9912_v30  ;;  %v899_v30 = vld [vmem:[%s14093_s10 + $0x58] sm:$0xff]  ;;  %8804 = vmatprep.subr.mxu1 %v14130_v1 }
 0x456   :  { %8766 = vmatprep.mubr.msk.f32.mxu1 %vm14122_vm0, %v14130_v1  ;;  %8805 = vmatpush3.msra.mxu1 %v899_v30  ;;  %v10372_v30 = vpop.permute.xlu1 %1266 }
 0x457   :  { %8806 = vmatprep.subr.mxu1 %v14130_v1 }
 0x458   :  { %8807 = vmatpush3.msra.mxu1 %v898_v22 }
 0x459   :  { %8767 = vmatmul.mubr.msk.f32.gmra.mxu1 %vm14124_vm2, %v9929_v33  ;;  %v897_v33 = vld [vmem:[%s14093_s10 + $0x48] sm:$0xff]  ;;  %8808 = vmatprep.subr.mxu1 %v14130_v1 }
 0x45a   :  { %8769 = vmatprep.mubr.msk.f32.mxu1 %vm14122_vm0, %v14130_v1  ;;  %8809 = vmatpush3.msra.mxu1 %v897_v33  ;;  %v10376_v33 = vpop.permute.xlu0 %1071 }
 0x45b   :  { %8810 = vmatprep.subr.mxu1 %v14130_v1 }
 0x45c   :  { %8811 = vmatpush3.msra.mxu1 %v896_v23 }
 0x45d   :  { %8770 = vmatmul.mubr.msk.f32.gmra.mxu1 %vm14124_vm2, %v9946_v36  ;;  %8812 = vmatprep.subr.mxu1 %v14130_v1  ;;  %v895_v36 = vld [vmem:[%s14093_s10 + $0x38] sm:$0xff]  ;;  %s7644_s10 = sshll.u32 %s9673_s3, 4  ;;  %s7645_s10 = int_to_ptr.vmem [resolvable:$true] %s7644_s10 }
 0x45e   :  { %8828 = vmatprep.mubr.msk.f32.mxu1 %vm14122_vm0, %v14130_v1  ;;  %8813 = vmatpush3.msra.mxu1 %v895_v36  ;;  %vm1367_vm0 = vcmp.gt.f32.partialorder %v10368_v18, 0.0  ;;  %s9649_s2 = scalar_lea.vmem %s7645_s10, 32  ;;  %p9650_p1 = scmp.lt.s32.totalorder %s7645_s10, %s7645_s10 }
 0x45f   :  { %8814 = vmatprep.subr.mxu1 %v14130_v1 }
 0x460   :  { %8815 = vmatpush3.msra.mxu1 %v894_v25 }
 0x461   :  { %8816 = vmatprep.subr.mxu1 %v14130_v1 }
 0x462   :  { %8817 = vmatpush3.msra.mxu1 %v893_v26 }
 0x463   :  { %8818 = vmatprep.subr.mxu1 %v14130_v1 }
 0x464   :  { %8819 = vmatpush3.msra.mxu1 %v892_v28  ;;  %v10397_v28 = vpop.permute.xlu1 %1094 }
 0x465   :  { %8820 = vmatprep.subr.mxu1 %v14130_v1 }
 0x466   :  { %8821 = vmatpush3.msra.mxu1 %v891_v29 }
 0x467   :  { %8822 = vmatprep.subr.mxu1 %v14130_v1 }
 0x468   :  { %8823 = vmatpush3.msra.mxu1 %v890_v31 }
 0x469   :  { %8824 = vmatprep.subr.mxu1 %v14130_v1 }
 0x46a   :  { %8825 = vmatpush3.msra.mxu1 %v889_v32 }
 0x46b   :  { %8826 = vmatprep.subr.mxu1 %v14130_v1 }
 0x46c   :  { %8827 = vmatpush3.msra.mxu1 %v888_v34 }
 0x509   :  { %v883_v7 = vpop.f32.mrf.mxu0 }
 0x50a   :  { %9545 = vtanh.f32 %v883_v7 }
 0x50b   :  { %v8795_v10 = vpop.f32.mrf.mxu0 }
 0x50d   :  { %v698_v13 = vpop.f32.mrf.mxu1 }
 0x50e   :  { %9547 = vtanh.f32 %v698_v13 }
 0x50f   :  { %v8759_v15 = vpop.f32.mrf.mxu1 }
 0x511   :  { %v703_v17 = vpop.f32.mrf.mxu1 }
 0x512   :  { %9549 = vtanh.f32 %v703_v17 }
 0x513   :  { %v8762_v19 = vpop.f32.mrf.mxu1 }
 0x514   :  { %v10431_v19 = vpop.permute.xlu0 %1136 }
 0x515   :  { %v708_v21 = vpop.f32.mrf.mxu1 }
 0x517   :  { %v9546_v24 = vpop.eup %9545  ;;  %v8765_v27 = vpop.f32.mrf.mxu1 }
 0x518   :  { %8829 = vmatmul.mubr.f32.vlgmr.msra.gmra.mxu1 %v9546_v24 }
 0x519   :  { %v713_v22 = vpop.f32.mrf.mxu1  ;;  %8846 = vmatprep.mubr.msk.f32.mxu1 %vm14124_vm2, %v10115_v47  ;;  %vm1357_vm2 = vcmp.gt.f32.partialorder %v10357_v12, 0.0 }
 0x51a   :  { %9551 = vtanh.f32 %v713_v22 }
 0x51b   :  { %v8768_v23 = vpop.f32.mrf.mxu1  ;;  %v10382_v36 = vpop.eup %9547 }
 0x51c   :  { %v1506_v25 = vsel %vm1326_vm7, %v10382_v36, -3e+38  ;;  %v1511_v26 = vsel %vm1331_vm8, %v10382_v36, -3e+38  ;;  %v1516_v29 = vsel %vm1336_vm9, %v10382_v36, -3e+38  ;;  %v10466_v23 = vpop.permute.xlu1 %1178 }
 0x51d   :  { %v718_v47 = vpop.f32.mrf.mxu1  ;;  %v1521_v31 = vsel %vm1341_vm10, %v10382_v36, -3e+38  ;;  %v1526_v32 = vsel %vm1346_vm11, %v10382_v36, -3e+38  ;;  %v1531_v7 = vsel %vm1351_vm12, %v10382_v36, -3e+38 }
 0x51e   :  { %9553 = vtanh.f32 %v718_v47  ;;  %v1536_v9 = vsel %vm1356_vm13, %v10382_v36, -3e+38  ;;  %v1747_v10 = vsel %vm1326_vm7, %v10382_v36, 3e+38  ;;  %v1752_v13 = vsel %vm1331_vm8, %v10382_v36, 3e+38 }
 0x51f   :  { %v8771_v34 = vpop.f32.mrf.mxu1  ;;  %9555 = vtanh.f32 %v708_v21  ;;  %v1757_v15 = vsel %vm1336_vm9, %v10382_v36, 3e+38  ;;  %v1762_v17 = vsel %vm1341_vm10, %v10382_v36, 3e+38  ;;  %v1767_v35 = vsel %vm1346_vm11, %v10382_v36, 3e+38 }
 0x520   :  { %v1772_v21 = vsel %vm1351_vm12, %v10382_v36, 3e+38  ;;  %v1777_v37 = vsel %vm1356_vm13, %v10382_v36, 3e+38  ;;  %v10443_v40 = vsel %vm1566_vm6, %v1506_v25, -inf  ;;  %v10446_v54 = vsel %vm1566_vm6, %v1511_v26, -inf  ;;  %v10536_v46 = vpop.permute.xlu1 %1220 }
 0x521   :  { %v10449_v24 = vsel %vm1566_vm6, %v1516_v29, -inf  ;;  %v10452_v0 = vsel %vm1566_vm6, %v1521_v31, -inf  ;;  %v10455_v27 = vsel %vm1566_vm6, %v1526_v32, -inf  ;;  %v10458_v2 = vsel %vm1566_vm6, %v1531_v7, -inf  ;;  %v10480_v31 = vpop.eup %9549 }
 0x522   :  { %v10461_v8 = vsel %vm1566_vm6, %v1536_v9, -inf  ;;  %v10464_v22 = vsel %vm1566_vm6, %v1747_v10, inf  ;;  %v10469_v47 = vsel %vm1566_vm6, %v1752_v13, inf  ;;  %v10472_v25 = vsel %vm1566_vm6, %v1757_v15, inf }
 0x523   :  { %v10475_v26 = vsel %vm1566_vm6, %v1762_v17, inf  ;;  %v10478_v29 = vsel %vm1566_vm6, %v1767_v35, inf  ;;  %v10483_v32 = vsel %vm1566_vm6, %v1772_v21, inf  ;;  %v10486_v34 = vsel %vm1566_vm6, %v1777_v37, inf  ;;  %v10503_v17 = vpop.permute.xlu0 %1216 }
 0x524   :  { %v1546_v7 = vsel %vm1366_vm1, %v10382_v36, -3e+38  ;;  %v1787_v9 = vsel %vm1366_vm1, %v10382_v36, 3e+38  ;;  %v1507_v10 = vsel %vm1327_vm14, %v10480_v31, -3e+38 }
 0x525   :  { %v1512_v13 = vsel %vm1332_vm15, %v10480_v31, -3e+38  ;;  %v1517_v15 = vsel %vm1337_vm3, %v10480_v31, -3e+38  ;;  %v1522_v35 = vsel %vm1342_vm4, %v10480_v31, -3e+38 }
 0x526   :  { %v1527_v14 = vsel %vm1347_vm5, %v10480_v31, -3e+38  ;;  %vm14183_vm1 = vcmp.gt.f32.partialorder %v10343_v4, 0.0  ;;  %vm1371_vm7 = vcmp.gt.f32.partialorder %v10370_v20, 0.0  ;;  %v1537_v37 = vsel %vm1357_vm2, %v10480_v31, -3e+38 }
 0x527   :  { %v1532_v21 = vsel %vm14183_vm1, %v10480_v31, -3e+38  ;;  %v1547_v44 = vsel %vm1367_vm0, %v10480_v31, -3e+38  ;;  %v1748_v3 = vsel %vm1327_vm14, %v10480_v31, 3e+38  ;;  %v10525_v62 = vpop.eup %9551 }
 0x528   :  { %vm1372_vm8 = vcmp.gt.f32.partialorder %v10372_v30, 0.0  ;;  %v1753_v60 = vsel %vm1332_vm15, %v10480_v31, 3e+38  ;;  %v1758_v58 = vsel %vm1337_vm3, %v10480_v31, 3e+38  ;;  %vm1328_vm9 = vcmp.gt.f32.partialorder %v10319_v43, 0.0 }
 0x529   :  { %v1763_v1 = vsel %vm1342_vm4, %v10480_v31, 3e+38  ;;  %vm1333_vm10 = vcmp.gt.f32.partialorder %v10323_v50, 0.0  ;;  %v1768_v39 = vsel %vm1347_vm5, %v10480_v31, 3e+38  ;;  %v10546_v49 = vsel %vm1566_vm6, %v1507_v10, -inf  ;;  %vm14186_vm5 = vmmov %vm14183_vm1 }
 0x52a   :  { %v10549_v41 = vsel %vm1566_vm6, %v1512_v13, -inf  ;;  %v10552_v57 = vsel %vm1566_vm6, %v1517_v15, -inf  ;;  %vm1338_vm3 = vcmp.gt.f32.partialorder %v10321_v48, 0.0  ;;  %vm1343_vm4 = vcmp.gt.f32.partialorder %v10337_v63, 0.0 }
 0x52b   :  { %v10538_v38 = vpop.eup %9553  ;;  %vm1348_vm11 = vcmp.gt.f32.partialorder %v10347_v6, 0.0  ;;  %v10558_v45 = vsel %vm1566_vm6, %v1522_v35, -inf  ;;  %v10561_v52 = vsel %vm1566_vm6, %v1527_v14, -inf  ;;  %v10564_v10 = vsel %vm1566_vm6, %v1532_v21, -inf }
 0x52c   :  { %v10567_v13 = vsel %vm1566_vm6, %v1537_v37, -inf  ;;  %8836 = vmatprep.subr.mxu1 %v10538_v38  ;;  %v10570_v15 = vpop.eup %9555  ;;  %v10573_v53 = vsel %vm1566_vm6, %v1546_v7, -inf  ;;  %v1773_v35 = vsel %vm14186_vm5, %v10480_v31, 3e+38  ;;  %v1778_v14 = vsel %vm1357_vm2, %v10480_v31, 3e+38  ;;  %v10584_v37 = vpop.permute.xlu0 %1285 }
 0x52d   :  { %14184 = vst [vmem:[#allocation14_spill] sm:$0xff] %v10567_v13  ;;  %14185 = vst [vmem:[#allocation15_spill] sm:$0xff] %v10573_v53  ;;  %v10582_v21 = vsel %vm1566_vm6, %v1547_v44, -inf  ;;  %8837 = vmatpush3.msra.mxu1 %v10538_v38  ;;  %v1788_v7 = vsel %vm1367_vm0, %v10480_v31, 3e+38  ;;  %v10607_v4 = vsel %vm1566_vm6, %v1787_v9, inf  ;;  %v10617_v44 = vpop.permute.xlu1 %1289  ;;  %v14194_v48 = vmax.f32 %v10446_v54, %v10549_v41 }
 0x52e   :  { %14187 = vst [vmem:[#allocation16_spill] sm:$0xff] %v10582_v21  ;;  %8838 = vmatprep.subr.mxu1 %v10525_v62  ;;  %v10610_v12 = vsel %vm1566_vm6, %v1748_v3, inf  ;;  %v10613_v51 = vsel %vm1566_vm6, %v1753_v60, inf  ;;  %v10621_v16 = vsel %vm1566_vm6, %v1758_v58, inf  ;;  %v10624_v18 = vsel %vm1566_vm6, %v1763_v1, inf }
 0x52f   :  { %8839 = vmatpush3.msra.mxu1 %v10525_v62  ;;  %v10627_v9 = vsel %vm1566_vm6, %v1768_v39, inf  ;;  %v10630_v3 = vsel %vm1566_vm6, %v1773_v35, inf  ;;  %v10634_v60 = vsel %vm1566_vm6, %v1778_v14, inf  ;;  %v10637_v11 = vsel %vm1566_vm6, %v1788_v7, inf }
 0x530   :  { %8840 = vmatprep.subr.mxu1 %v10570_v15  ;;  %v1551_v58 = vsel %vm1371_vm7, %v10382_v36, -3e+38  ;;  %v1552_v1 = vsel %vm1372_vm8, %v10480_v31, -3e+38  ;;  %vm1329_vm0 = vcmp.gt.f32.partialorder %v10329_v55, 0.0  ;;  %vm1334_vm2 = vcmp.gt.f32.partialorder %v10333_v59, 0.0  ;;  %v10659_v42 = vpop.permute.xlu0 %1117 }
 0x531   :  { %8841 = vmatpush3.msra.mxu1 %v10570_v15  ;;  %v1809_v39 = vmin.f32 %v10464_v22, %v10610_v12  ;;  %v10651_v35 = vsel %vm1566_vm6, %v1551_v58, -inf  ;;  %v1792_v14 = vsel %vm1371_vm7, %v10382_v36, 3e+38  ;;  %v10657_v7 = vsel %vm1566_vm6, %v1552_v1, -inf  ;;  %v10697_v21 = vpop.permute.xlu1 %1159 }
 0x532   :  { %8842 = vmatprep.subr.mxu1 %v10480_v31  ;;  %14188 = vst [vmem:[#allocation17_spill] sm:$0xff] %v10651_v35  ;;  %14189 = vst [vmem:[#allocation18_spill] sm:$0xff] %v10657_v7  ;;  %vm1339_vm12 = vcmp.gt.f32.partialorder %v10345_v5, 0.0  ;;  %v1793_v22 = vsel %vm1372_vm8, %v10480_v31, 3e+38  ;;  %v1824_v58 = vmin.f32 %v10469_v47, %v10613_v51  ;;  %vm1344_vm13 = vcmp.gt.f32.partialorder %v10431_v19, 0.0 }
 0x533   :  { %8843 = vmatpush3.msra.mxu1 %v10480_v31  ;;  %v1508_v20 = vsel %vm1328_vm9, %v10570_v15, -3e+38  ;;  %v1513_v12 = vsel %vm1333_vm10, %v10570_v15, -3e+38  ;;  %v1518_v1 = vsel %vm1338_vm3, %v10570_v15, -3e+38  ;;  %v1839_v7 = vmin.f32 %v10472_v25, %v10621_v16 }
 0x534   :  { %8844 = vmatprep.subr.mxu1 %v10382_v36  ;;  %v1523_v30 = vsel %vm1343_vm4, %v10570_v15, -3e+38  ;;  %v1528_v61 = vsel %vm1348_vm11, %v10570_v15, -3e+38  ;;  %v1854_v51 = vmin.f32 %v10475_v26, %v10624_v18  ;;  %v1869_v47 = vmin.f32 %v10478_v29, %v10627_v9 }
 0x535   :  { %8845 = vmatpush3.msra.mxu1 %v10382_v36  ;;  %v10695_v35 = vsel %vm1566_vm6, %v1792_v14, inf  ;;  %vm14190_vm14 = vcmask 326656   ;;  %v14191_v53 = vmov 0.0   ;;  %v10703_v13 = vsel %vm1566_vm6, %v1793_v22, inf }
 0x536   :  { %8847 = vmatmul.mubr.msk.f32.vlgmr.msra.gmra.mxu1 %vm14190_vm14, %v10139_v56  ;;  %8862 = vmatprep.subr.mxu1 %v14191_v53  ;;  %v1749_v16 = vsel %vm1328_vm9, %v10570_v15, 3e+38  ;;  %v1570_v25 = vsel %vm1566_vm6, %v1508_v20, -inf  ;;  %v1585_v26 = vsel %vm1566_vm6, %v1513_v12, -inf  ;;  %vm14192_vm15 = vmmov 0   ;;  %v10730_v20 = vpop.permute.xlu0 %1201 }
 0x537   :  { %8886 = vmatprep.mubr.msk.f32.mxu1 %vm14192_vm15, %v14191_v53  ;;  %v1754_v56 = vsel %vm1333_vm10, %v10570_v15, 3e+38  ;;  %v1600_v29 = vsel %vm1566_vm6, %v1518_v1, -inf  ;;  %v1615_v18 = vsel %vm1566_vm6, %v1523_v30, -inf  ;;  %v1630_v9 = vsel %vm1566_vm6, %v1528_v61, -inf }
 0x538   :  { %vm1353_vm1 = vcmp.gt.f32.partialorder %v10466_v23, 0.0  ;;  %v1759_v14 = vsel %vm1338_vm3, %v10570_v15, 3e+38  ;;  %v1764_v50 = vsel %vm1343_vm4, %v10570_v15, 3e+38  ;;  %vm1330_vm7 = vcmp.gt.f32.partialorder %v10376_v33, 0.0 }
 0x539   :  { %v1769_v22 = vsel %vm1348_vm11, %v10570_v15, 3e+38  ;;  %v14193_v61 = vmax.f32 %v10443_v40, %v10546_v49  ;;  %v10741_v1 = vmax.f32 %v14194_v48, %v1585_v26  ;;  %v14195_v63 = vmax.f32 %v10449_v24, %v10552_v57  ;;  %v14203_v48 = vld [vmem:[#allocation16_spill] sm:$0xff] }
 0x53a   :  { %v14196_v6 = vmax.f32 %v10452_v0, %v10558_v45  ;;  %vm1335_vm8 = vcmp.gt.f32.partialorder %v10397_v28, 0.0  ;;  %v1810_v40 = vsel %vm1566_vm6, %v1749_v16, inf  ;;  %v1825_v54 = vsel %vm1566_vm6, %v1754_v56, inf }
 0x53b   :  { %v10736_v12 = vmax.f32 %v14193_v61, %v1570_v25  ;;  %v10746_v30 = vmax.f32 %v14195_v63, %v1600_v29  ;;  %v14197_v41 = vmax.f32 %v10455_v27, %v10561_v52  ;;  %v1509_v0 = vsel %vm1329_vm0, %v10525_v62, -3e+38  ;;  %v10774_v25 = vpop.permute.xlu1 %1247 }
 0x53c   :  { %v10751_v43 = vmax.f32 %v14196_v6, %v1615_v18  ;;  %v1514_v16 = vsel %vm1334_vm2, %v10525_v62, -3e+38  ;;  %vm1361_vm9 = vcmp.gt.f32.partialorder %v10503_v17, 0.0  ;;  %v1840_v27 = vsel %vm1566_vm6, %v1759_v14, inf }
 0x53d   :  { %v10761_v24 = vmax.f32 %v14197_v41, %v1630_v9  ;;  %v1855_v52 = vsel %vm1566_vm6, %v1764_v50, inf  ;;  %v1870_v26 = vsel %vm1566_vm6, %v1769_v22, inf  ;;  %v1519_v56 = vsel %vm1339_vm12, %v10525_v62, -3e+38  ;;  %v10797_v22 = vpop.permute.xlu0 %1270 }
 0x53e   :  { %v1811_v29 = vmin.f32 %v1809_v39, %v1810_v40  ;;  %v1826_v18 = vmin.f32 %v1824_v58, %v1825_v54  ;;  %v1750_v9 = vsel %vm1329_vm0, %v10525_v62, 3e+38  ;;  %v1524_v61 = vsel %vm1344_vm13, %v10525_v62, -3e+38 }
 0x53f   :  { %vm1362_vm10 = vcmp.gt.f32.partialorder %v10536_v46, 0.0  ;;  %v1755_v14 = vsel %vm1334_vm2, %v10525_v62, 3e+38  ;;  %v10793_v50 = vsel %vm1566_vm6, %v1524_v61, -inf  ;;  %v1572_v39 = vsel %vm1566_vm6, %v1509_v0, -inf }
 0x540   :  { %v1587_v58 = vsel %vm1566_vm6, %v1514_v16, -inf  ;;  %v10799_v55 = vmin.f32 %v1839_v7, %v1840_v27  ;;  %v1765_v63 = vsel %vm1344_vm13, %v10525_v62, 3e+38  ;;  %v10807_v59 = vsel %vm1566_vm6, %v1519_v56, -inf }
 0x541   :  { %v10809_v6 = vmin.f32 %v1854_v51, %v1855_v52  ;;  %v10811_v40 = vmin.f32 %v1869_v47, %v1870_v26  ;;  %v1812_v54 = vsel %vm1566_vm6, %v1750_v9, inf  ;;  %v1533_v7 = vsel %vm1353_vm1, %v10570_v15, -3e+38  ;;  %v10822_v51 = vpop.permute.xlu1 %1308  ;;  %v10857_v9 = vpop.permute.xlu0 %1312 }
 0x542   :  { %vm1376_vm3 = vcmp.gt.f32.partialorder %v10584_v37, 0.0  ;;  %v1827_v41 = vsel %vm1566_vm6, %v1755_v14, inf  ;;  %v1645_v19 = vsel %vm1566_vm6, %v1533_v7, -inf  ;;  %v1573_v0 = vmax.f32 %v10736_v12, %v1572_v39 }
 0x543   :  { %v1588_v16 = vmax.f32 %v10741_v1, %v1587_v58  ;;  %v1760_v47 = vsel %vm1339_vm12, %v10525_v62, 3e+38  ;;  %v10828_v27 = vsel %vm1566_vm6, %v1765_v63, inf  ;;  %v14198_v52 = vmax.f32 %v10458_v2, %v10564_v10 }
 0x544   :  { %v1603_v56 = vmax.f32 %v10746_v30, %v10807_v59  ;;  %vm1377_vm4 = vcmp.gt.f32.partialorder %v10617_v44, 0.0  ;;  %v1774_v12 = vsel %vm1353_vm1, %v10570_v15, 3e+38  ;;  %v1813_v1 = vmin.f32 %v1811_v29, %v1812_v54 }
 0x545   :  { %v10833_v26 = vmax.f32 %v14198_v52, %v1645_v19  ;;  %v1510_v5 = vsel %vm1330_vm7, %v10538_v38, -3e+38  ;;  %v1515_v2 = vsel %vm1335_vm8, %v10538_v38, -3e+38  ;;  %vm1340_vm11 = vcmp.gt.f32.partialorder %v10659_v42, 0.0  ;;  %v10877_v19 = vpop.permute.xlu1 %1140 }
 0x546   :  { %v1828_v10 = vmin.f32 %v1826_v18, %v1827_v41  ;;  %v1751_v30 = vsel %vm1330_vm7, %v10538_v38, 3e+38  ;;  %v1756_v23 = vsel %vm1335_vm8, %v10538_v38, 3e+38  ;;  %v1541_v29 = vsel %vm1361_vm9, %v10382_v36, -3e+38 }
 0x547   :  { %v10862_v14 = vsel %vm1566_vm6, %v1541_v29, -inf  ;;  %v1574_v18 = vsel %vm1566_vm6, %v1510_v5, -inf  ;;  %v1589_v33 = vsel %vm1566_vm6, %v1515_v2, -inf  ;;  %v1885_v39 = vsel %vm1566_vm6, %v1774_v12, inf }
 0x548   :  { %v1814_v28 = vsel %vm1566_vm6, %v1751_v30, inf  ;;  %v1829_v58 = vsel %vm1566_vm6, %v1756_v23, inf  ;;  %v1542_v63 = vsel %vm1362_vm10, %v10480_v31, -3e+38  ;;  %v1842_v59 = vsel %vm1566_vm6, %v1760_v47, inf }
 0x549   :  { %v10874_v54 = vsel %vm1566_vm6, %v1542_v63, -inf  ;;  %v1575_v7 = vmax.f32 %v1573_v0, %v1574_v18  ;;  %v1590_v41 = vmax.f32 %v1588_v16, %v1589_v33  ;;  %vm1349_vm5 = vcmp.gt.f32.partialorder %v10697_v21, 0.0  ;;  %v14200_v21 = vld [vmem:[#allocation14_spill] sm:$0xff] }
 0x54a   :  { %v1782_v52 = vsel %vm1361_vm9, %v10382_v36, 3e+38  ;;  %v1815_v5 = vmin.f32 %v1813_v1, %v1814_v28  ;;  %v1830_v2 = vmin.f32 %v1828_v10, %v1829_v58  ;;  %v14199_v47 = vmin.f32 %v10483_v32, %v10630_v3  ;;  %v10900_v32 = vpop.permute.xlu0 %1182 }
 0x54b   :  { %v1783_v0 = vsel %vm1362_vm10, %v10480_v31, 3e+38  ;;  %v1556_v16 = vsel %vm1376_vm3, %v10382_v36, -3e+38  ;;  %v1576_v17 = vrot.slane %v1575_v7, 4  ;;  %v1843_v23 = vmin.f32 %v10799_v55, %v1842_v59 }
 0x54c   :  { %v10887_v30 = vmin.f32 %v14199_v47, %v1885_v39  ;;  %v10897_v29 = vsel %vm1566_vm6, %v1556_v16, -inf  ;;  %v1591_v1 = vrot.slane %v1590_v41, 4  ;;  %v1816_v10 = vrot.slane %v1815_v5, 4  ;;  %v10923_v47 = vpop.permute.xlu1 %1224 }
 0x54d   :  { %vm1358_vm0 = vcmp.gt.f32.partialorder %v10730_v20, 0.0  ;;  %v10903_v3 = vsel %vm1566_vm6, %v1782_v52, inf  ;;  %v1831_v46 = vrot.slane %v1830_v2, 4  ;;  %v1557_v18 = vsel %vm1377_vm4, %v10480_v31, -3e+38 }
 0x54e   :  { %v1577_v33 = vmax.f32 %v1575_v7, %v1576_v17  ;;  %v10909_v55 = vsel %vm1566_vm6, %v1783_v0, inf  ;;  %v10912_v39 = vsel %vm1566_vm6, %v1557_v18, -inf  ;;  %v1592_v28 = vmax.f32 %v1590_v41, %v1591_v1 }
 0x54f   :  { %v1817_v58 = vmin.f32 %v1815_v5, %v1816_v10  ;;  %vm1368_vm2 = vcmp.gt.f32.partialorder %v10774_v25, 0.0  ;;  %v1797_v63 = vsel %vm1376_vm3, %v10382_v36, 3e+38  ;;  %v1832_v52 = vmin.f32 %v1830_v2, %v1831_v46 }
 0x550   :  { %v1520_v7 = vsel %vm1340_vm11, %v10538_v38, -3e+38  ;;  %v1761_v41 = vsel %vm1340_vm11, %v10538_v38, 3e+38  ;;  %v1578_v5 = vrot.slane %v1577_v33, 2  ;;  %v1593_v16 = vrot.slane %v1592_v28, 2 }
 0x551   :  { %v1604_v0 = vsel %vm1566_vm6, %v1520_v7, -inf  ;;  %v1798_v37 = vsel %vm1377_vm4, %v10480_v31, 3e+38  ;;  %v1844_v2 = vsel %vm1566_vm6, %v1761_v41, inf  ;;  %v1818_v1 = vrot.slane %v1817_v58, 2  ;;  %v10937_v7 = vpop.permute.xlu0 %1293 }
 0x552   :  { %v1605_v17 = vmax.f32 %v1603_v56, %v1604_v0  ;;  %vm1373_vm12 = vcmp.gt.f32.partialorder %v10797_v22, 0.0  ;;  %v1845_v10 = vmin.f32 %v1843_v23, %v1844_v2  ;;  %v1833_v46 = vrot.slane %v1832_v52, 2 }
 0x553   :  { %v1529_v18 = vsel %vm1349_vm5, %v10525_v62, -3e+38  ;;  %v1579_v42 = vmax.f32 %v1577_v33, %v1578_v5  ;;  %vm2093_vm13 = vcmask 1041409   ;;  %v1594_v0 = vmax.f32 %v1592_v28, %v1593_v16 }
 0x554   :  { %v1606_v59 = vrot.slane %v1605_v17, 4  ;;  %v10942_v56 = vsel %vm1566_vm6, %v1529_v18, -inf  ;;  %v10945_v41 = vsel %vm1566_vm6, %v1797_v63, inf  ;;  %v10948_v23 = vsel %vm1566_vm6, %v1798_v37, inf  ;;  %v10959_v63 = vpop.permute.xlu1 %1163 }
 0x555   :  { %v1846_v2 = vrot.slane %v1845_v10, 4  ;;  %vm1381_vm14 = vcmp.gt.f32.partialorder %v10822_v51, 0.0  ;;  %v1770_v44 = vsel %vm1349_vm5, %v10525_v62, 3e+38  ;;  %v1819_v18 = vmin.f32 %v1817_v58, %v1818_v1 }
 0x556   :  { %v1607_v5 = vmax.f32 %v1605_v17, %v1606_v59  ;;  %v1538_v28 = vsel %vm1358_vm0, %v10570_v15, -3e+38  ;;  %v1834_v37 = vmin.f32 %v1832_v52, %v1833_v46  ;;  %v1580_v61 = vrot.slane %v1579_v42, 1  ;;  %v14202_v52 = vld [vmem:[#allocation15_spill] sm:$0xff] }
 0x557   :  { %v1847_v16 = vmin.f32 %v1845_v10, %v1846_v2  ;;  %v1660_v12 = vsel %vm1566_vm6, %v1538_v28, -inf  ;;  %vm1382_vm1 = vcmp.gt.f32.partialorder %v10857_v9, 0.0  ;;  %vm1345_vm7 = vcmp.gt.f32.partialorder %v10877_v19, 0.0  ;;  %v10980_v28 = vpop.permute.xlu0 %1205 }
 0x558   :  { %v1608_v59 = vrot.slane %v1607_v5, 2  ;;  %v14201_v17 = vmax.f32 %v10461_v8, %v14200_v21  ;;  %v1779_v1 = vsel %vm1358_vm0, %v10570_v15, 3e+38  ;;  %v1595_v33 = vrot.slane %v1594_v0, 1  ;;  %v10995_v53 = vpop.permute.xlu1 %1251 }
 0x559   :  { %v1848_v10 = vrot.slane %v1847_v16, 2  ;;  %v10975_v46 = vsel %vm1566_vm6, %v1770_v44, inf  ;;  %v1548_v2 = vsel %vm1368_vm2, %v10570_v15, -3e+38  ;;  %v1789_v20 = vsel %vm1368_vm2, %v10570_v15, 3e+38 }
 0x55a   :  { %v10967_v58 = vmax.f32 %v14201_v17, %v1660_v12  ;;  %v1609_v8 = vmax.f32 %v1607_v5, %v1608_v59  ;;  %v1690_v12 = vsel %vm1566_vm6, %v1548_v2, -inf  ;;  %v1581_v21 = vmax.f32 %v1579_v42, %v1580_v61 }
 0x55b   :  { %vm1354_vm8 = vcmp.gt.f32.partialorder %v10900_v32, 0.0  ;;  %v1849_v17 = vmin.f32 %v1847_v16, %v1848_v10  ;;  %v1900_v44 = vsel %vm1566_vm6, %v1779_v1, inf  ;;  %v14204_v45 = vmax.f32 %v14202_v52, %v14203_v48 }
 0x55c   :  { %v1596_v49 = vmax.f32 %v1594_v0, %v1595_v33  ;;  %vm1363_vm9 = vcmp.gt.f32.partialorder %v10923_v47, 0.0  ;;  %v1610_v5 = vrot.slane %v1609_v8, 1  ;;  %v1820_v59 = vrot.slane %v1819_v18, 1  ;;  %v11033_v0 = vpop.permute.xlu0 %1274 }
 0x55d   :  { %v10991_v57 = vmax.f32 %v14204_v45, %v1690_v12  ;;  %v1835_v2 = vrot.slane %v1834_v37, 1  ;;  %v1930_v25 = vsel %vm1566_vm6, %v1789_v20, inf  ;;  %v1850_v61 = vrot.slane %v1849_v17, 1  ;;  %v14208_v12 = vld [vmem:[#allocation17_spill] sm:$0xff]  ;;  %v14209_v20 = vld [vmem:[#allocation18_spill] sm:$0xff] }
 0x55e   :  { %v10998_v42 = vsel %vm2093_vm13, %v1596_v49, %v1581_v21  ;;  %v1553_v48 = vsel %vm1373_vm12, %v10570_v15, -3e+38  ;;  %v1794_v45 = vsel %vm1373_vm12, %v10570_v15, 3e+38  ;;  %vm1378_vm10 = vcmp.gt.f32.partialorder %v10937_v7, 0.0 }
 0x55f   :  { %14205 = vst [vmem:[#allocation14_spill] sm:$0xff] %v10998_v42  ;;  %v1705_v33 = vsel %vm1566_vm6, %v1553_v48, -inf  ;;  %v1945_v16 = vsel %vm1566_vm6, %v1794_v45, inf  ;;  %v1561_v49 = vsel %vm1381_vm14, %v10382_v36, -3e+38  ;;  %vm1350_vm3 = vcmp.gt.f32.partialorder %v10959_v63, 0.0 }
 0x560   :  { %v14206_v1 = vmin.f32 %v10486_v34, %v10634_v60  ;;  %v14207_v52 = vmin.f32 %v10607_v4, %v10637_v11  ;;  %v14210_v21 = vmax.f32 %v14208_v12, %v14209_v20  ;;  %v11031_v45 = vsel %vm1566_vm6, %v1561_v49, -inf }
 0x561   :  { %v11035_v42 = vmax.f32 %v1609_v8, %v1610_v5  ;;  %v1821_v34 = vmin.f32 %v1819_v18, %v1820_v59  ;;  %v1836_v60 = vmin.f32 %v1834_v37, %v1835_v2  ;;  %v1562_v11 = vsel %vm1382_vm1, %v10480_v31, -3e+38 }
 0x562   :  { %v11018_v22 = vmin.f32 %v14206_v1, %v1900_v44  ;;  %v11023_v10 = vmin.f32 %v14207_v52, %v1930_v25  ;;  %v11028_v48 = vmax.f32 %v14210_v21, %v1705_v33  ;;  %v11040_v4 = vmin.f32 %v1849_v17, %v1850_v61  ;;  %v11063_v17 = vpop.permute.xlu1 %1316 }
 0x563   :  { %v14211_v44 = vmin.f32 %v10695_v35, %v10703_v13  ;;  %v11048_v33 = vsel %vm1566_vm6, %v1562_v11, -inf  ;;  %v1525_v8 = vsel %vm1345_vm7, %v10538_v38, -3e+38  ;;  %vm1359_vm4 = vcmp.gt.f32.partialorder %v10980_v28, 0.0 }
 0x564   :  { %v1802_v18 = vsel %vm1381_vm14, %v10382_v36, 3e+38  ;;  %v1734_v37 = vmax.f32 %v11031_v45, %v11048_v33  ;;  %v1619_v13 = vsel %vm1566_vm6, %v1525_v8, -inf  ;;  %v1766_v35 = vsel %vm1345_vm7, %v10538_v38, 3e+38 }
 0x565   :  { %v11045_v25 = vmin.f32 %v14211_v44, %v1945_v16  ;;  %v1803_v5 = vsel %vm1382_vm1, %v10480_v31, 3e+38  ;;  %v14212_v59 = vmax.f32 %v10751_v43, %v10793_v50  ;;  %v1859_v2 = vsel %vm1566_vm6, %v1766_v35, inf }
 0x566   :  { %v1534_v61 = vsel %vm1354_vm8, %v10525_v62, -3e+38  ;;  %vm1369_vm11 = vcmp.gt.f32.partialorder %v10995_v53, 0.0  ;;  %v14213_v19 = vmin.f32 %v10809_v6, %v10828_v27  ;;  %v1543_v43 = vsel %vm1363_vm9, %v10570_v15, -3e+38  ;;  %v11094_v27 = vpop.permute.xlu0 %1186  ;;  %v11127_v35 = vpop.permute.xlu1 %1228 }
 0x567   :  { %v1620_v51 = vmax.f32 %v14212_v59, %v1619_v13  ;;  %v11080_v49 = vsel %vm1566_vm6, %v1534_v61, -inf  ;;  %v11086_v50 = vsel %vm2093_vm13, %v1836_v60, %v1821_v34  ;;  %v1775_v52 = vsel %vm1354_vm8, %v10525_v62, 3e+38 }
 0x568   :  { %v1860_v16 = vmin.f32 %v14213_v19, %v1859_v2  ;;  %v1648_v1 = vmax.f32 %v10833_v26, %v11080_v49  ;;  %v1675_v6 = vsel %vm1566_vm6, %v1543_v43, -inf  ;;  %v14214_v20 = vmax.f32 %v10862_v14, %v10874_v54 }
 0x569   :  { %v1621_v9 = vrot.slane %v1620_v51, 4  ;;  %v1784_v34 = vsel %vm1363_vm9, %v10570_v15, 3e+38  ;;  %v1558_v60 = vsel %vm1378_vm10, %v10570_v15, -3e+38  ;;  %v11108_v32 = vsel %vm1566_vm6, %v1802_v18, inf }
 0x56a   :  { %v1861_v12 = vrot.slane %v1860_v16, 4  ;;  %v11099_v21 = vmax.f32 %v14214_v20, %v1675_v6  ;;  %v11111_v11 = vsel %vm1566_vm6, %v1803_v5, inf  ;;  %v1720_v8 = vsel %vm1566_vm6, %v1558_v60, -inf  ;;  %v11151_v6 = vpop.permute.xlu0 %1297 }
 0x56b   :  { %v1622_v44 = vmax.f32 %v1620_v51, %v1621_v9  ;;  %vm1374_vm5 = vcmp.gt.f32.partialorder %v11033_v0, 0.0  ;;  %vm1383_vm0 = vcmp.gt.f32.partialorder %v11063_v17, 0.0  ;;  %v11117_v54 = vsel %vm1566_vm6, %v1775_v52, inf }
 0x56c   :  { %v1862_v14 = vmin.f32 %v1860_v16, %v1861_v12  ;;  %v14215_v47 = vmax.f32 %v10897_v29, %v10912_v39  ;;  %v1799_v18 = vsel %vm1378_vm10, %v10570_v15, 3e+38  ;;  %v1915_v59 = vsel %vm1566_vm6, %v1784_v34, inf }
 0x56d   :  { %v1623_v5 = vrot.slane %v1622_v44, 2  ;;  %v1530_v51 = vsel %vm1350_vm3, %v10538_v38, -3e+38  ;;  %v1771_v2 = vsel %vm1350_vm3, %v10538_v38, 3e+38  ;;  %vm1355_vm2 = vcmp.gt.f32.partialorder %v11094_v27, 0.0 }
 0x56e   :  { %v11122_v13 = vmax.f32 %v14215_v47, %v1720_v8  ;;  %v1863_v29 = vrot.slane %v1862_v14, 2  ;;  %v1634_v39 = vsel %vm1566_vm6, %v1530_v51, -inf  ;;  %v1874_v7 = vsel %vm1566_vm6, %v1771_v2, inf }
 0x56f   :  { %v1539_v61 = vsel %vm1359_vm4, %v10525_v62, -3e+38  ;;  %v1624_v19 = vmax.f32 %v1622_v44, %v1623_v5  ;;  %v14216_v16 = vmax.f32 %v10761_v24, %v10942_v56  ;;  %v14217_v63 = vmin.f32 %v10811_v40, %v10975_v46 }
 0x570   :  { %v11149_v52 = vsel %vm1566_vm6, %v1539_v61, -inf  ;;  %v1864_v12 = vmin.f32 %v1862_v14, %v1863_v29  ;;  %v1780_v34 = vsel %vm1359_vm4, %v10525_v62, 3e+38  ;;  %v1549_v24 = vsel %vm1369_vm11, %v10525_v62, -3e+38 }
 0x571   :  { %v1635_v43 = vmax.f32 %v14216_v16, %v1634_v39  ;;  %v1875_v9 = vmin.f32 %v14217_v63, %v1874_v7  ;;  %v1663_v20 = vmax.f32 %v10967_v58, %v11149_v52  ;;  %v1960_v40 = vsel %vm1566_vm6, %v1799_v18, inf  ;;  %v1210_v18 = vpop.permute.xlu1 %1209 }
 0x572   :  { %v11163_v60 = vsel %vm1566_vm6, %v1780_v34, inf  ;;  %vm1364_vm12 = vcmp.gt.f32.partialorder %v11127_v35, 0.0  ;;  %v1974_v44 = vmin.f32 %v11108_v32, %v11111_v11  ;;  %v1888_v28 = vmin.f32 %v10887_v30, %v11117_v54 }
 0x573   :  { %v1636_v56 = vrot.slane %v1635_v43, 4  ;;  %v1876_v46 = vrot.slane %v1875_v9, 4  ;;  %v14218_v8 = vmin.f32 %v10903_v3, %v10909_v55  ;;  %v11176_v47 = vsel %vm1566_vm6, %v1549_v24, -inf }
 0x574   :  { %v1625_v5 = vrot.slane %v1624_v19, 1  ;;  %v1693_v29 = vmax.f32 %v10991_v57, %v11176_v47  ;;  %vm1379_vm14 = vcmp.gt.f32.partialorder %v11151_v6, 0.0  ;;  %v1865_v32 = vrot.slane %v1864_v12, 1 }
 0x575   :  { %v11173_v14 = vmin.f32 %v14218_v8, %v1915_v59  ;;  %v1637_v51 = vmax.f32 %v1635_v43, %v1636_v56  ;;  %v1877_v2 = vmin.f32 %v1875_v9, %v1876_v46  ;;  %v14219_v30 = vmin.f32 %v10945_v41, %v10948_v23  ;;  %v1256_v41 = vpop.permute.xlu0 %1255 }
 0x576   :  { %v1903_v3 = vmin.f32 %v11018_v22, %v11163_v60  ;;  %v1554_v55 = vsel %vm1374_vm5, %v10525_v62, -3e+38  ;;  %vm1360_vm1 = vcmp.gt.f32.partialorder %v1210_v18, 0.0  ;;  %v1790_v39 = vsel %vm1369_vm11, %v10525_v62, 3e+38 }
 0x577   :  { %v11184_v11 = vmin.f32 %v14219_v30, %v1960_v40  ;;  %v1638_v54 = vrot.slane %v1637_v51, 2  ;;  %v1878_v59 = vrot.slane %v1877_v2, 2  ;;  %v11195_v7 = vsel %vm1566_vm6, %v1554_v55, -inf }
 0x578   :  { %v1708_v23 = vmax.f32 %v11028_v48, %v11195_v7  ;;  %v1795_v22 = vsel %vm1374_vm5, %v10525_v62, 3e+38  ;;  %v1563_v61 = vsel %vm1383_vm0, %v10570_v15, -3e+38  ;;  %v1804_v53 = vsel %vm1383_vm0, %v10570_v15, 3e+38 }
 0x579   :  { %vm1370_vm7 = vcmp.gt.f32.partialorder %v1256_v41, 0.0  ;;  %v11208_v16 = vmax.f32 %v1624_v19, %v1625_v5  ;;  %v1639_v43 = vmax.f32 %v1637_v51, %v1638_v54  ;;  %v1879_v63 = vmin.f32 %v1877_v2, %v1878_v59  ;;  %v11223_v19 = vpop.permute.xlu1 %1278  ;;  %v11251_v55 = vpop.permute.xlu0 %1320 }
 0x57a   :  { %v1735_v9 = vsel %vm1566_vm6, %v1563_v61, -inf  ;;  %v1932_v34 = vsel %vm1566_vm6, %v1790_v39, inf  ;;  %v1535_v24 = vsel %vm1355_vm2, %v10538_v38, -3e+38  ;;  %v1776_v17 = vsel %vm1355_vm2, %v10538_v38, 3e+38 }
 0x57b   :  { %v11215_v0 = vmax.f32 %v1734_v37, %v1735_v9  ;;  %v1640_v40 = vrot.slane %v1639_v43, 1  ;;  %v11226_v56 = vsel %vm1566_vm6, %v1795_v22, inf  ;;  %v1975_v46 = vsel %vm1566_vm6, %v1804_v53, inf }
 0x57c   :  { %v1649_v45 = vsel %vm1566_vm6, %v1535_v24, -inf  ;;  %v1880_v33 = vrot.slane %v1879_v63, 1  ;;  %v1889_v60 = vsel %vm1566_vm6, %v1776_v17, inf  ;;  %v1544_v27 = vsel %vm1364_vm12, %v10525_v62, -3e+38 }
 0x57d   :  { %v1650_v37 = vmax.f32 %v1648_v1, %v1649_v45  ;;  %vm1375_vm8 = vcmp.gt.f32.partialorder %v11223_v19, 0.0  ;;  %v11238_v8 = vmin.f32 %v1864_v12, %v1865_v32  ;;  %v1933_v5 = vmin.f32 %v11023_v10, %v1932_v34 }
 0x57e   :  { %v1890_v51 = vmin.f32 %v1888_v28, %v1889_v60  ;;  %v11242_v2 = vsel %vm1566_vm6, %v1544_v27, -inf  ;;  %v1948_v26 = vmin.f32 %v11045_v25, %v11226_v56  ;;  %v1559_v30 = vsel %vm1379_vm14, %v10525_v62, -3e+38 }
 0x57f   :  { %v1651_v49 = vrot.slane %v1650_v37, 4  ;;  %v1678_v1 = vmax.f32 %v11099_v21, %v11242_v2  ;;  %v11253_v12 = vmin.f32 %v1974_v44, %v1975_v46  ;;  %v1785_v28 = vsel %vm1364_vm12, %v10525_v62, 3e+38  ;;  %v11269_v44 = vpop.permute.xlu1 %1232 }
 0x580   :  { %v1891_v10 = vrot.slane %v1890_v51, 4  ;;  %v11259_v32 = vsel %vm1566_vm6, %v1559_v30, -inf  ;;  %v11261_v54 = vmax.f32 %v1639_v43, %v1640_v40  ;;  %v11263_v59 = vmin.f32 %v1879_v63, %v1880_v33 }
 0x581   :  { %v1723_v39 = vmax.f32 %v11122_v13, %v11259_v32  ;;  %v1540_v22 = vsel %vm1360_vm1, %v10538_v38, -3e+38  ;;  %v1652_v61 = vmax.f32 %v1650_v37, %v1651_v49  ;;  %v1781_v9 = vsel %vm1360_vm1, %v10538_v38, 3e+38 }
 0x582   :  { %v1892_v53 = vmin.f32 %v1890_v51, %v1891_v10  ;;  %v1664_v35 = vsel %vm1566_vm6, %v1540_v22, -inf  ;;  %vm1384_vm9 = vcmp.gt.f32.partialorder %v11251_v55, 0.0  ;;  %v11276_v43 = vsel %vm1566_vm6, %v1785_v28, inf }
 0x583   :  { %v1665_v63 = vmax.f32 %v1663_v20, %v1664_v35  ;;  %v1904_v34 = vsel %vm1566_vm6, %v1781_v9, inf  ;;  %v1550_v24 = vsel %vm1370_vm7, %v10538_v38, -3e+38  ;;  %v1800_v17 = vsel %vm1379_vm14, %v10525_v62, 3e+38  ;;  %v1302_v20 = vpop.permute.xlu0 %1301  ;;  %v1325_v47 = vpop.permute.xlu1 %1324 }
 0x584   :  { %v1905_v18 = vmin.f32 %v1903_v3, %v1904_v34  ;;  %v1694_v40 = vsel %vm1566_vm6, %v1550_v24, -inf  ;;  %v1791_v46 = vsel %vm1370_vm7, %v10538_v38, 3e+38  ;;  %v1893_v45 = vrot.slane %v1892_v53, 2 }
 0x585   :  { %v1666_v33 = vrot.slane %v1665_v63, 4  ;;  %v1695_v58 = vmax.f32 %v1693_v29, %v1694_v40  ;;  %v1934_v52 = vsel %vm1566_vm6, %v1791_v46, inf  ;;  %v1653_v37 = vrot.slane %v1652_v61, 2 }
 0x586   :  { %v1906_v60 = vrot.slane %v1905_v18, 4  ;;  %v1935_v27 = vmin.f32 %v1933_v5, %v1934_v52  ;;  %v1555_v6 = vsel %vm1375_vm8, %v10538_v38, -3e+38  ;;  %vm1365_vm10 = vcmp.gt.f32.partialorder %v11269_v44, 0.0 }
 0x587   :  { %v1918_v3 = vmin.f32 %v11173_v14, %v11276_v43  ;;  %v1667_v41 = vmax.f32 %v1665_v63, %v1666_v33  ;;  %v1696_v51 = vrot.slane %v1695_v58, 4  ;;  %v1709_v57 = vsel %vm1566_vm6, %v1555_v6, -inf }
 0x588   :  { %v1962_v29 = vsel %vm1566_vm6, %v1800_v17, inf  ;;  %v1907_v49 = vmin.f32 %v1905_v18, %v1906_v60  ;;  %v1936_v30 = vrot.slane %v1935_v27, 4  ;;  %v1710_v5 = vmax.f32 %v1708_v23, %v1709_v57 }
 0x589   :  { %vm1380_vm3 = vcmp.gt.f32.partialorder %v1302_v20, 0.0  ;;  %v1894_v10 = vmin.f32 %v1892_v53, %v1893_v45  ;;  %v1668_v28 = vrot.slane %v1667_v41, 2  ;;  %v1697_v22 = vmax.f32 %v1695_v58, %v1696_v51 }
 0x58a   :  { %v1796_v14 = vsel %vm1375_vm8, %v10538_v38, 3e+38  ;;  %v11308_v35 = vmax.f32 %v1652_v61, %v1653_v37  ;;  %v1908_v9 = vrot.slane %v1907_v49, 2  ;;  %v1937_v43 = vmin.f32 %v1935_v27, %v1936_v30 }
 0x58b   :  { %v1711_v63 = vrot.slane %v1710_v5, 4  ;;  %vm1385_vm4 = vcmp.gt.f32.partialorder %v1325_v47, 0.0  ;;  %v11310_v34 = vmax.f32 %v1667_v41, %v1668_v28  ;;  %v1698_v24 = vrot.slane %v1697_v22, 2 }
 0x58c   :  { %v1949_v48 = vsel %vm1566_vm6, %v1796_v14, inf  ;;  %v1564_v7 = vsel %vm1384_vm9, %v10525_v62, -3e+38  ;;  %v11316_v23 = vmin.f32 %v1907_v49, %v1908_v9  ;;  %v1938_v53 = vrot.slane %v1937_v43, 2 }
 0x58d   :  { %v1712_v19 = vmax.f32 %v1710_v5, %v1711_v63  ;;  %v1950_v61 = vmin.f32 %v1948_v26, %v1949_v48  ;;  %v1895_v17 = vrot.slane %v1894_v10, 1  ;;  %v1699_v18 = vmax.f32 %v1697_v22, %v1698_v24 }
 0x58e   :  { %v1737_v40 = vsel %vm1566_vm6, %v1564_v7, -inf  ;;  %v1805_v46 = vsel %vm1384_vm9, %v10525_v62, 3e+38  ;;  %v1963_v45 = vmin.f32 %v11184_v11, %v1962_v29  ;;  %v1939_v33 = vmin.f32 %v1937_v43, %v1938_v53 }
 0x58f   :  { %v1713_v58 = vrot.slane %v1712_v19, 2  ;;  %v1951_v52 = vrot.slane %v1950_v61, 4  ;;  %v1655_v37 = vrot.slane %v11308_v35, 1  ;;  %v1670_v60 = vrot.slane %v11310_v34, 1 }
 0x590   :  { %v1738_v25 = vmax.f32 %v11215_v0, %v1737_v40  ;;  %v1977_v56 = vsel %vm1566_vm6, %v1805_v46, inf  ;;  %v1910_v26 = vrot.slane %v11316_v23, 1  ;;  %v1700_v27 = vrot.slane %v1699_v18, 1 }
 0x591   :  { %v1714_v6 = vmax.f32 %v1712_v19, %v1713_v58  ;;  %v1952_v41 = vmin.f32 %v1950_v61, %v1951_v52  ;;  %v11331_v55 = vmin.f32 %v1894_v10, %v1895_v17  ;;  %v1545_v11 = vsel %vm1365_vm10, %v10538_v38, -3e+38 }
 0x592   :  { %v1786_v51 = vsel %vm1365_vm10, %v10538_v38, 3e+38  ;;  %v1560_v0 = vsel %vm1380_vm3, %v10538_v38, -3e+38  ;;  %v1940_v57 = vrot.slane %v1939_v33, 1  ;;  %v1978_v49 = vmin.f32 %v11253_v12, %v1977_v56 }
 0x593   :  { %v1953_v29 = vrot.slane %v1952_v41, 2  ;;  %v1679_v30 = vsel %vm1566_vm6, %v1545_v11, -inf  ;;  %v1919_v10 = vsel %vm1566_vm6, %v1786_v51, inf  ;;  %v1724_v28 = vsel %vm1566_vm6, %v1560_v0, -inf }
 0x594   :  { %v1680_v5 = vmax.f32 %v1678_v1, %v1679_v30  ;;  %v1801_v44 = vsel %vm1380_vm3, %v10538_v38, 3e+38  ;;  %v1715_v22 = vrot.slane %v1714_v6, 1  ;;  %v1920_v9 = vmin.f32 %v1918_v3, %v1919_v10 }
 0x595   :  { %v1954_v14 = vmin.f32 %v1952_v41, %v1953_v29  ;;  %v1725_v12 = vmax.f32 %v1723_v39, %v1724_v28  ;;  %v1964_v63 = vsel %vm1566_vm6, %v1801_v44, inf  ;;  %v1565_v21 = vsel %vm1385_vm4, %v10538_v38, -3e+38  ;;  %v2164_v29 = vpop.permute.xlu1 %2163 }
 0x596   :  { %v1681_v43 = vrot.slane %v1680_v5, 4  ;;  %v1806_v2 = vsel %vm1385_vm4, %v10538_v38, 3e+38  ;;  %v1921_v24 = vrot.slane %v1920_v9, 4  ;;  %v1965_v48 = vmin.f32 %v1963_v45, %v1964_v63 }
 0x597   :  { %v1955_v1 = vrot.slane %v1954_v14, 1  ;;  %v1726_v20 = vrot.slane %v1725_v12, 4  ;;  %v1941_v7 = vmin.f32 %v1939_v33, %v1940_v57  ;;  %v1739_v3 = vsel %vm1566_vm6, %v1565_v21, -inf }
 0x598   :  { %v1682_v53 = vmax.f32 %v1680_v5, %v1681_v43  ;;  %v1979_v13 = vsel %vm1566_vm6, %v1806_v2, inf  ;;  %v1922_v39 = vmin.f32 %v1920_v9, %v1921_v24  ;;  %v1966_v61 = vrot.slane %v1965_v48, 4 }
 0x599   :  { %v1956_v32 = vmin.f32 %v1954_v14, %v1955_v1  ;;  %v1727_v19 = vmax.f32 %v1725_v12, %v1726_v20  ;;  %v11360_v17 = vmax.f32 %v1699_v18, %v1700_v27  ;;  %v1740_v46 = vmax.f32 %v1738_v25, %v1739_v3 }
 0x59a   :  { %v1683_v40 = vrot.slane %v1682_v53, 2  ;;  %v1980_v47 = vmin.f32 %v1978_v49, %v1979_v13  ;;  %v11362_v58 = vmax.f32 %v1714_v6, %v1715_v22  ;;  %v1923_v52 = vrot.slane %v1922_v39, 2  ;;  %v2160_v22 = vpop.permute.xlu0 %2159 }
 0x59b   :  { %v1728_v56 = vrot.slane %v1727_v19, 2  ;;  %v1967_v45 = vmin.f32 %v1965_v48, %v1966_v61  ;;  %v1741_v33 = vrot.slane %v1740_v46, 4  ;;  %vm2095_vm11 = vcmask 1042434  }
 0x59c   :  { %v1981_v41 = vrot.slane %v1980_v47, 4  ;;  %vm2097_vm5 = vcmask 1043459   ;;  %v1924_v11 = vmin.f32 %v1922_v39, %v1923_v52  ;;  %v2131_v57 = vsel %vm2093_vm13, %v1956_v32, %v1941_v7 }
 0x59d   :  { %v1729_v51 = vmax.f32 %v1727_v19, %v1728_v56  ;;  %v1968_v0 = vrot.slane %v1967_v45, 2  ;;  %v1684_v18 = vmax.f32 %v1682_v53, %v1683_v40  ;;  %v1742_v27 = vmax.f32 %v1740_v46, %v1741_v33 }
 0x59e   :  { %v1982_v30 = vmin.f32 %v1980_v47, %v1981_v41  ;;  %v1911_v25 = vmin.f32 %v11316_v23, %v1910_v26  ;;  %vm2099_vm0 = vcmask 1044484   ;;  %vm2101_vm2 = vcmask 1045509   ;;  %v11389_v13 = vpop.permute.xlu0 %2182 }
 0x59f   :  { %v1730_v6 = vrot.slane %v1729_v51, 1  ;;  %v1969_v49 = vmin.f32 %v1967_v45, %v1968_v0  ;;  %v1743_v5 = vrot.slane %v1742_v27, 2  ;;  %v1925_v28 = vrot.slane %v1924_v11, 1 }
 0x5a0   :  { %v1983_v10 = vrot.slane %v1982_v30, 2  ;;  %v2125_v44 = vsel %vm2095_vm11, %v11040_v4, %v11086_v50  ;;  %vm2103_vm12 = vcmask 1046534   ;;  %vm2105_vm14 = vcmask 1047559   ;;  %v11375_v4 = vpop.permute.xlu1 %2186 }
 0x5a1   :  { %v1970_v14 = vrot.slane %v1969_v49, 1  ;;  %v2126_v9 = vsel %vm2097_vm5, %v11238_v8, %v2125_v44  ;;  %v1744_v12 = vmax.f32 %v1742_v27, %v1743_v5  ;;  %vm2431_vm1 = vcmp.gt.f32.partialorder %v2164_v29, 0.0  ;;  %v14224_v5 = vld [vmem:[#allocation11_spill] sm:$0xff]  ;;  %v14226_v44 = vld [vmem:[#allocation10_spill] sm:$0xff] }
 0x5a2   :  { %v1984_v23 = vmin.f32 %v1982_v30, %v1983_v10  ;;  %v2127_v26 = vsel %vm2099_vm0, %v11263_v59, %v2126_v9  ;;  %v1731_v43 = vmax.f32 %v1729_v51, %v1730_v6  ;;  %v2611_v21 = vsel %vm2431_vm1, %v10480_v31, -3e+38  ;;  %v11469_v6 = vld [vmem:[%s14096_s13 + $0x58] sm:$0xff]  ;;  %v11499_v9 = vld [vmem:[%s14096_s13 + $0x40] sm:$0xff] }
 0x5a3   :  { %v1971_v63 = vmin.f32 %v1969_v49, %v1970_v14  ;;  %v2851_v2 = vsel %vm2431_vm1, %v10480_v31, 3e+38  ;;  %v1745_v50 = vrot.slane %v1744_v12, 1  ;;  %v1926_v24 = vmin.f32 %v1924_v11, %v1925_v28  ;;  %v11474_v49 = vld [vmem:[%s14180_s1 + $0x8] sm:$0xf]  ;;  %v11482_v28 = vld [vmem:[%s14096_s13 + $0x50] sm:$0xff] }
 0x5a4   :  { %v1985_v1 = vrot.slane %v1984_v23, 1  ;;  %v2128_v8 = vsel %vm2101_vm2, %v11331_v55, %v2127_v26  ;;  %v11381_v48 = vsel %vm1566_vm6, %v2611_v21, -inf  ;;  %v11384_v59 = vsel %vm1566_vm6, %v2851_v2, inf  ;;  %v11492_v14 = vld [vmem:[%s14096_s13 + $0x48] sm:$0xff]  ;;  %v11541_v21 = vld [vmem:[%s14096_s13 + $0x10] sm:$0xff] }
 0x5a5   :  { %v2132_v20 = vsel %vm2095_vm11, %v1971_v63, %v2131_v57  ;;  %vm2430_vm7 = vcmp.gt.f32.partialorder %v2160_v22, 0.0  ;;  %vm2436_vm8 = vcmp.gt.f32.partialorder %v11375_v4, 0.0  ;;  %v2129_v55 = vsel %vm2103_vm12, %v1911_v25, %v2128_v8  ;;  %v11520_v26 = vld [vmem:[%s14096_s13 + $0x28] sm:$0xff]  ;;  %v11534_v63 = vld [vmem:[%s14096_s13 + $0x18] sm:$0xff] }
 0x5a6   :  { %v1986_v7 = vmin.f32 %v1984_v23, %v1985_v1  ;;  %v2610_v53 = vsel %vm2430_vm7, %v10382_v36, -3e+38  ;;  %v2850_v3 = vsel %vm2430_vm7, %v10382_v36, 3e+38  ;;  %v2616_v19 = vsel %vm2436_vm8, %v10480_v31, -3e+38 }
 0x5a7   :  { %v11393_v32 = vsel %vm1566_vm6, %v2610_v53, -inf  ;;  %v11396_v39 = vsel %vm1566_vm6, %v2850_v3, inf  ;;  %v1685_v61 = vrot.slane %v1684_v18, 1  ;;  %v11408_v52 = vsel %vm1566_vm6, %v2616_v19, -inf  ;;  %v11513_v23 = vld [vmem:[%s14096_s13 + $0x30] sm:$0xff] }
 0x5a8   :  { %v2133_v40 = vsel %vm2097_vm5, %v1986_v7, %v2132_v20  ;;  %v2672_v46 = vmax.f32 %v11393_v32, %v11381_v48  ;;  %v2912_v47 = vmin.f32 %v11396_v39, %v11384_v59  ;;  %vm2435_vm9 = vcmp.gt.f32.partialorder %v11389_v13, 0.0  ;;  %v11555_v20 = vld [vmem:[%s14096_s13] sm:$0xff] }
 0x5a9   :  { %2136 = vrot.lane.b32.xlu0 %v2133_v40, %s9669_s6  ;;  %v1746_v56 = vmax.f32 %v1744_v12, %v1745_v50  ;;  %v2107_v45 = vsel %vm2093_vm13, %v11362_v58, %v11360_v17  ;;  %v1656_v33 = vmax.f32 %v11308_v35, %v1655_v37  ;;  %v2130_v41 = vsel %vm2105_vm14, %v1926_v24, %v2129_v55  ;;  %v14220_v58 = vld [vmem:[#allocation14_spill] sm:$0xff]  ;;  %v11506_v12 = vld [vmem:[%s14096_s13 + $0x38] sm:$0xff]  ;;  %v3532_v32 = vld [vmem:[%s14098_s15 + $0x20] sm:$0xff] }
 0x5aa   :  { %v2615_v11 = vsel %vm2435_vm9, %v10382_v36, -3e+38  ;;  %v2108_v51 = vsel %vm2095_vm11, %v1731_v43, %v2107_v45  ;;  %v1671_v0 = vmax.f32 %v11310_v34, %v1670_v60  ;;  %v2096_v35 = vsel %vm2095_vm11, %v11035_v42, %v14220_v58  ;;  %v11527_v43 = vld [vmem:[%s14096_s13 + $0x20] sm:$0xff]  ;;  %v11548_v50 = vld [vmem:[%s14096_s13 + $0x8] sm:$0xff]  ;;  %v3345_v58 = vld [vmem:[%s14094_s11 + $0x38] sm:$0xff] }
 0x5ab   :  { %v11426_v57 = vsel %vm1566_vm6, %v2615_v11, -inf  ;;  %v11429_v17 = vsel %vm2097_vm5, %v1746_v56, %v2108_v51  ;;  %v1686_v29 = vmax.f32 %v1684_v18, %v1685_v61  ;;  %v2098_v27 = vsel %vm2097_vm5, %v11208_v16, %v2096_v35  ;;  %v9631_v18 = vld [vmem:[%s14177_s0] sm:$0x3f]  ;;  %v3349_v11 = vld [vmem:[%s14094_s11 + $0x58] sm:$0xff]  ;;  %v3348_v51 = vld [vmem:[%s14094_s11 + $0x50] sm:$0xff] }
 0x5ac   :  { %v2687_v37 = vmax.f32 %v11426_v57, %v11408_v52  ;;  %v2100_v34 = vsel %vm2099_vm0, %v11261_v54, %v2098_v27  ;;  %vm14221_vm10 = vcmask 1045504   ;;  %vm14222_vm3 = vcmask 48128   ;;  %v11456_v54 = vld [vmem:[%s14180_s1] sm:$0xff]  ;;  %8863 = vmatpush3.msra.mxu1 %v3349_v11  ;;  %v3344_v35 = vld [vmem:[%s14094_s11 + $0x30] sm:$0xff] }
 0x5ad   :  { %2134 = vrot.lane.b32.xlu0 %v2130_v41, %s9669_s6  ;;  %v2102_v60 = vsel %vm2101_vm2, %v1656_v33, %v2100_v34  ;;  %vm14223_vm4 = vcmask 326656   ;;  %v1995_v10 = vmax.f32 %v14224_v5, 1.0  ;;  %v1994_v22 = vmax.f32 %v14226_v44, 1.0  ;;  %v3342_v27 = vld [vmem:[%s14094_s11 + $0x20] sm:$0xff] }
 0x5ae   :  { %v2104_v30 = vsel %vm2103_vm12, %v1671_v0, %v2102_v60  ;;  %vm14225_vm1 = vmmov %vm14223_vm4  ;;  %v14227_v3 = vmov 0.0   ;;  %vm3351_vm7 = vcmask 785408   ;;  %v3347_v0 = vld [vmem:[%s14094_s11 + $0x48] sm:$0xff]  ;;  %v3338_v44 = vld [vmem:[%s14094_s11] sm:$0xff] }
 0x5af   :  { %v11444_v25 = vsel %vm2105_vm14, %v1686_v29, %v2104_v30  ;;  %9557 = vrcp.f32 %v1995_v10  ;;  %8864 = vmatprep.subr.mxu1 %v14227_v3  ;;  %v3343_v29 = vld [vmem:[%s14094_s11 + $0x28] sm:$0xff]  ;;  %v3341_v30 = vld [vmem:[%s14094_s11 + $0x18] sm:$0xff] }
 0x5b0   :  { %9559 = vrcp.f32 %v1994_v22  ;;  %8865 = vmatpush3.msra.mxu1 %v3348_v51  ;;  %v14230_v51 = vld [vmem:[#allocation8_spill] sm:$0xff] }
 0x5b1   :  { %8866 = vmatprep.subr.mxu1 %v14227_v3 }
 0x5b2   :  { %8867 = vmatpush3.msra.mxu1 %v3347_v0  ;;  %v2203_v0 = vrot.slane %v11456_v54, %v14230_v51 }
 0x5b3   :  { %8868 = vmatprep.subr.mxu1 %v14227_v3 }
 0x5bc   :  { %v9558_v2 = vpop.eup %9557 }
 0x5bd   :  { %v9560_v1 = vpop.eup %9559 }
 0x5d8   :  { %v970_v42 = vpop.f32.mrf.mxu1 }
 0x5d9   :  { %8832 = vmatpush3.msk.msra.mxu0 %vm14221_vm10, %v970_v42  ;;  %vm14228_vm10 = vcmask 523264   ;;  %v3339_v42 = vld [vmem:[%s14094_s11 + $0x8] sm:$0xff] }
 0x5da   :  { %8834 = vmatmul.mubr.msk.f32.vlgmr.msra.gmra.mxu0 %vm14222_vm3, %v9631_v18  ;;  %8849 = vmatprep.subr.mxu0 %v10538_v38  ;;  %v8830_v16 = vpop.f32.mrf.mxu1  ;;  %vm14229_vm3 = vmmov %vm14228_vm10 }
 0x5db   :  { %8850 = vmatpush3.msra.mxu0 %v10538_v38  ;;  %8859 = vmatprep.mubr.msk.f32.mxu0 %vm14223_vm4, %v11456_v54  ;;  %vm3247_vm4 = vcmask 259072  }
 0x5dc   :  { %8851 = vmatprep.subr.mxu0 %v10525_v62 }
 0x5dd   :  { %8852 = vmatpush3.msra.mxu0 %v10525_v62 }
 0x5de   :  { %8853 = vmatprep.subr.mxu0 %v10570_v15 }
 0x5df   :  { %8854 = vmatpush3.msra.mxu0 %v10570_v15 }
 0x5e0   :  { %8855 = vmatprep.subr.mxu0 %v10480_v31 }
 0x5e1   :  { %8856 = vmatpush3.msra.mxu0 %v10480_v31 }
 0x5e2   :  { %8857 = vmatprep.subr.mxu0 %v10382_v36 }
 0x5e3   :  { %8858 = vmatpush3.msra.mxu0 %v10382_v36 }
 0x5e4   :  { %8889 = vmatprep.subr.mxu0 %v11469_v6  ;;  %8860 = vmatmul.mubr.msk.f32.vlgmr.msra.gmra.mxu0 %vm14225_vm1, %v11474_v49 }
 0x5e5   :  { %8890 = vmatpush3.msra.mxu0 %v11469_v6 }
 0x5e6   :  { %8891 = vmatprep.subr.mxu0 %v11482_v28 }
 0x5e7   :  { %8892 = vmatpush3.msra.mxu0 %v11482_v28 }
 0x5e8   :  { %8893 = vmatprep.subr.mxu0 %v11492_v14 }
 0x5e9   :  { %8894 = vmatpush3.msra.mxu0 %v11492_v14 }
 0x5ea   :  { %8895 = vmatprep.subr.mxu0 %v11499_v9 }
 0x5eb   :  { %8896 = vmatpush3.msra.mxu0 %v11499_v9 }
 0x5ec   :  { %8897 = vmatprep.subr.mxu0 %v11506_v12 }
 0x5ed   :  { %8898 = vmatpush3.msra.mxu0 %v11506_v12 }
 0x5ee   :  { %8899 = vmatprep.subr.mxu0 %v11513_v23 }
 0x5ef   :  { %8900 = vmatpush3.msra.mxu0 %v11513_v23 }
 0x5f0   :  { %8901 = vmatprep.subr.mxu0 %v11520_v26 }
 0x5f1   :  { %8902 = vmatpush3.msra.mxu0 %v11520_v26 }
 0x5f2   :  { %8903 = vmatprep.subr.mxu0 %v11527_v43 }
 0x5f3   :  { %8904 = vmatpush3.msra.mxu0 %v11527_v43 }
 0x5f4   :  { %8905 = vmatprep.subr.mxu0 %v11534_v63 }
 0x5f5   :  { %8906 = vmatpush3.msra.mxu0 %v11534_v63 }
 0x5f6   :  { %v8848_v24 = vpop.f32.mrf.mxu1  ;;  %8907 = vmatprep.subr.mxu0 %v11541_v21 }
 0x5f7   :  { %v2080_v8 = vmul.f32 %v9558_v2, %v8848_v24  ;;  %8908 = vmatpush3.msra.mxu0 %v11541_v21 }
 0x5f8   :  { %v2068_v7 = vpop.f32.mrf.mxu1  ;;  %8909 = vmatprep.subr.mxu0 %v11548_v50 }
 0x5f9   :  { %2144 = vrot.lane.b32.xlu1 %v2080_v8, %s9670_s26  ;;  %v2078_v53 = vmul.f32 %v9560_v1, %v2068_v7  ;;  %8910 = vmatpush3.msra.mxu0 %v11548_v50  ;;  %v11630_v1 = vld [vmem:[%s14098_s15 + $0x58] sm:$0xff] }
 0x5fa   :  { %8911 = vmatprep.subr.mxu0 %v11555_v20 }
 0x5fb   :  { %8912 = vmatpush3.msra.mxu0 %v11555_v20 }
 0x5fc   :  { %8943 = vmatprep.subr.mxu0 %v14227_v3 }
 0x5fd   :  { %2142 = vrot.lane.b32.xlu1 %v2078_v53, %s9670_s26 }
 0x61b   :  { %v2137_v55 = vpop.permute.xlu0 %2136 }
 0x61c   :  { %v2149_v45 = vsel %vm1566_vm6, %v11429_v17, %v2137_v55  ;;  %v3346_v17 = vld [vmem:[%s14094_s11 + $0x40] sm:$0xff] }
 0x61d   :  { %8869 = vmatpush3.msra.mxu1 %v3346_v17  ;;  %v14231_v17 = vld [vmem:[#allocation12_spill] sm:$0xff] }
 0x61e   :  { %8870 = vmatprep.subr.mxu1 %v14227_v3 }
 0x61f   :  { %v2135_v61 = vpop.permute.xlu0 %2134  ;;  %8871 = vmatpush3.msra.mxu1 %v3345_v58  ;;  %v14232_v58 = vld [vmem:[#allocation13_spill] sm:$0xff] }
 0x620   :  { %v2148_v40 = vsel %vm1566_vm6, %v11444_v25, %v2135_v61  ;;  %8872 = vmatprep.subr.mxu1 %v14227_v3  ;;  %v3340_v25 = vld [vmem:[%s14094_s11 + $0x10] sm:$0xff] }
 0x621   :  { %8873 = vmatpush3.msra.mxu1 %v3344_v35  ;;  %v14233_v35 = vld [vmem:[#allocation9_spill] sm:$0xff] }
 0x622   :  { %8874 = vmatprep.subr.mxu1 %v14227_v3 }
 0x623   :  { %8875 = vmatpush3.msra.mxu1 %v3343_v29  ;;  %v11641_v29 = vrot.slane %v11456_v54, %v14233_v35 }
 0x624   :  { %8876 = vmatprep.subr.mxu1 %v14227_v3 }
 0x625   :  { %8877 = vmatpush3.msra.mxu1 %v3342_v27  ;;  %v3090_v27 = vsel %vm14225_vm1, %v11456_v54, 0.0 }
 0x626   :  { %8878 = vmatprep.subr.mxu1 %v14227_v3 }
 0x627   :  { %8879 = vmatpush3.msra.mxu1 %v3341_v30 }
 0x628   :  { %8880 = vmatprep.subr.mxu1 %v14227_v3 }
 0x629   :  { %8881 = vmatpush3.msra.mxu1 %v3340_v25 }
 0x62a   :  { %8882 = vmatprep.subr.mxu1 %v14227_v3 }
 0x62b   :  { %8883 = vmatpush3.msra.mxu1 %v3339_v42 }
 0x62c   :  { %8884 = vmatprep.subr.mxu1 %v14227_v3 }
 0x62d   :  { %8885 = vmatpush3.msra.mxu1 %v3338_v44  ;;  %v14239_v44 = vld [vmem:[#allocation7_spill] sm:$0xff] }
 0x62e   :  { %8916 = vmatprep.subr.mxu1 %v11630_v1 }
 0x66b   :  { %v2145_v19 = vpop.permute.xlu1 %2144 }
 0x66c   :  { %v11572_v41 = vsel %vm14229_vm3, %v2149_v45, %v2145_v19 }
 0x66f   :  { %v2143_v56 = vpop.permute.xlu1 %2142 }
 0x670   :  { %v11569_v33 = vsel %vm14228_vm10, %v2148_v40, %v2143_v56  ;;  %vm14234_vm10 = vcmask 322560  }
 0x671   :  { %8913 = vmatprep.mubr.msk.f32.mxu0 %vm3351_vm7, %v11569_v33 }
 0x672   :  { %8914 = vmatmul.mubr.msk.f32.vlgmr.msra.gmra.mxu0 %vm3351_vm7, %v11572_v41 }
 0x673   :  { %8967 = vmatprep.mubr.msk.f32.mxu0 %vm14192_vm15, %v14227_v3 }
 0x69a   :  { %v1043_v34 = vpop.f32.mrf.mxu0 }
 0x69b   :  { %9561 = vtanh.f32 %v1043_v34  ;;  %v3093_v34 = vsel %vm14234_vm10, %v11474_v49, 0.0 }
 0x69c   :  { %v8835_v60 = vpop.f32.mrf.mxu0 }
 0x69d   :  { %v14235_v60 = vld [vmem:[#allocation5_spill] sm:$0xff] }
 0x69e   :  { %v14236_v30 = vsub.s32 4, %v14235_v60  ;;  %v14237_v42 = vsub.s32 5, %v14235_v60 }
 0x6a0   :  { %v11652_v25 = vrot.slane %v11456_v54, %v14236_v30 }
 0x6a8   :  { %v9562_v18 = vpop.eup %9561 }
 0x6a9   :  { %v3255_v16 = vsel %vm3247_vm4, %v9562_v18, inf  ;;  %v3262_v5 = vsel %vm3247_vm4, %v9562_v18, 0.0  ;;  %v3248_v10 = vsel %vm3247_vm4, %v9562_v18, -inf  ;;  %v11662_v18 = vrot.slane %v11456_v54, %v14237_v42 }
 0x6aa   :  { %v3256_v22 = vrot.slane %v3255_v16, 4  ;;  %v3263_v2 = vrot.slane %v3262_v5, 4 }
 0x6ac   :  { %v3257_v24 = vmin.f32 %v3255_v16, %v3256_v22  ;;  %v3264_v8 = vadd.f32 %v3263_v2, %v3262_v5  ;;  %v14238_v16 = vsub.s32 6, %v14235_v60  ;;  %v11676_v22 = vrot.slane %v11474_v49, %v14239_v44  ;;  %v14240_v2 = vld [vmem:[#allocation6_spill] sm:$0xff] }
 0x6ae   :  { %v3258_v7 = vrot.slane %v3257_v24, 2  ;;  %v3265_v53 = vrot.slane %v3264_v8, 2  ;;  %v11670_v5 = vrot.slane %v11456_v54, %v14238_v16 }
 0x6b0   :  { %v3259_v55 = vmin.f32 %v3257_v24, %v3258_v7  ;;  %v3266_v19 = vadd.f32 %v3265_v53, %v3264_v8  ;;  %v11682_v24 = vrot.slane %v11474_v49, %v14240_v2  ;;  %v3249_v8 = vrot.slane %v3248_v10, 4 }
 0x6b2   :  { %v3260_v61 = vrot.slane %v3259_v55, 1  ;;  %v3267_v40 = vrot.slane %v3266_v19, 1  ;;  %v3250_v7 = vmax.f32 %v3248_v10, %v3249_v8  ;;  %v11699_v10 = vrot.slane %v11474_v49, %v14230_v51 }
 0x6b4   :  { %v3261_v56 = vmin.f32 %v3259_v55, %v3260_v61  ;;  %v3268_v45 = vadd.f32 %v3267_v40, %v3266_v19  ;;  %v3251_v53 = vrot.slane %v3250_v7, 2  ;;  %v14241_v55 = vsub.s32 7, %v14235_v60 }
 0x6b6   :  { %3272 = vrot.lane.b32.xlu1 %v3261_v56, %s9669_s6  ;;  %v3270_v11 = vmul.f32 0.16666667, %v3268_v45  ;;  %v11693_v19 = vrot.slane %v11456_v54, %v14241_v55  ;;  %v3252_v61 = vmax.f32 %v3250_v7, %v3251_v53 }
 0x6b8   :  { %3276 = vrot.lane.b32.xlu0 %v3270_v11, %s9670_s26  ;;  %v3253_v40 = vrot.slane %v3252_v61, 1 }
 0x6ba   :  { %2209 = vbcast.lane.b32.xlu1 %v2203_v0, 264  ;;  %v3254_v56 = vmax.f32 %v3252_v61, %v3253_v40  ;;  %v3535_v40 = vld [vmem:[%s14098_s15 + $0x38] sm:$0xff] }
 0x6bc   :  { %2205 = vbcast.lane.b32.xlu0 %v2203_v0, 256 }
 0x6be   :  { %2167 = vbcast.lane.b32.xlu1 %v14231_v17, 272 }
 0x6c2   :  { %2190 = vbcast.lane.b32.xlu1 %v14232_v58, 272 }
 0x6c6   :  { %2228 = vbcast.lane.b32.xlu1 %v11641_v29, 256 }
 0x6ca   :  { %2232 = vbcast.lane.b32.xlu1 %v11641_v29, 264 }
 0x6db   :  { %3091 = vadd.xlane.f32.xlu0 %v3090_v27  ;;  %v11714_v27 = vrot.slane %v11474_v49, %v14233_v35 }
 0x6ee   :  { %3094 = vadd.xlane.f32.xlu1 %v3093_v34 }
 0x6f1   :  { %2213 = vbcast.lane.b32.xlu0 %v2203_v0, 272 }
 0x6f5   :  { %2255 = vbcast.lane.b32.xlu0 %v11652_v25, 264 }
 0x6f9   :  { %2171 = vbcast.lane.b32.xlu0 %v14231_v17, 280 }
 0x6fd   :  { %2194 = vbcast.lane.b32.xlu0 %v14232_v58, 280 }
 0x6ff   :  { %2251 = vbcast.lane.b32.xlu1 %v11652_v25, 256 }
 0x701   :  { %2236 = vbcast.lane.b32.xlu0 %v11641_v29, 272 }
 0x703   :  { %2278 = vbcast.lane.b32.xlu1 %v11662_v18, 264 }
 0x705   :  { %2274 = vbcast.lane.b32.xlu0 %v11662_v18, 256 }
 0x707   :  { %2259 = vbcast.lane.b32.xlu1 %v11652_v25, 272 }
 0x709   :  { %2217 = vbcast.lane.b32.xlu0 %v2203_v0, 280 }
 0x70b   :  { %2301 = vbcast.lane.b32.xlu1 %v11670_v5, 264 }
 0x70d   :  { %2297 = vbcast.lane.b32.xlu0 %v11670_v5, 256 }
 0x70f   :  { %2347 = vbcast.lane.b32.xlu1 %v11676_v22, 264 }
 0x711   :  { %2343 = vbcast.lane.b32.xlu0 %v11676_v22, 256 }
 0x713   :  { %2370 = vbcast.lane.b32.xlu1 %v11682_v24, 264 }
 0x715   :  { %2366 = vbcast.lane.b32.xlu0 %v11682_v24, 256 }
 0x717   :  { %2198 = vbcast.lane.b32.xlu1 %v14232_v58, 288  ;;  %v3538_v58 = vld [vmem:[%s14098_s15 + $0x50] sm:$0xff] }
 0x719   :  { %2175 = vbcast.lane.b32.xlu0 %v14231_v17, 288 }
 0x71b   :  { %2282 = vbcast.lane.b32.xlu1 %v11662_v18, 272 }
 0x71d   :  { %2240 = vbcast.lane.b32.xlu0 %v11641_v29, 280 }
 0x71f   :  { %2324 = vbcast.lane.b32.xlu1 %v11693_v19, 264 }
 0x721   :  { %2320 = vbcast.lane.b32.xlu0 %v11693_v19, 256 }
 0x723   :  { %2393 = vbcast.lane.b32.xlu1 %v11699_v10, 264 }
 0x725   :  { %2389 = vbcast.lane.b32.xlu0 %v11699_v10, 256 }
 0x727   :  { %2263 = vbcast.lane.b32.xlu1 %v11652_v25, 280 }
 0x728   :  { %v3273_v45 = vpop.permute.xlu1 %3272 }
 0x729   :  { %v3279_v54 = vsel %vm1566_vm6, %v3254_v56, %v3273_v45  ;;  %2221 = vbcast.lane.b32.xlu0 %v2203_v0, 288  ;;  %v3537_v0 = vld [vmem:[%s14098_s15 + $0x48] sm:$0xff] }
 0x72a   :  { %v3277_v11 = vpop.permute.xlu0 %3276 }
 0x72b   :  { %v11706_v17 = vsel %vm14229_vm3, %v3279_v54, %v3277_v11  ;;  %2351 = vbcast.lane.b32.xlu1 %v11676_v22, 272 }
 0x72c   :  { %8887 = vmatmul.mubr.msk.f32.vlgmr.msra.gmra.mxu1 %vm3351_vm7, %v11706_v17  ;;  %v2210_v34 = vpop.permute.xlu1 %2209 }
 0x72d   :  { %8917 = vmatpush3.msra.mxu1 %v11630_v1  ;;  %vm2441_vm4 = vcmp.gt.f32.partialorder %v2210_v34, 0.0  ;;  %8940 = vmatprep.mubr.msk.f32.mxu1 %vm3351_vm7, %v11569_v33  ;;  %v3536_v1 = vld [vmem:[%s14098_s15 + $0x40] sm:$0xff] }
 0x72e   :  { %v2621_v30 = vsel %vm2441_vm4, %v10480_v31, -3e+38  ;;  %v2861_v42 = vsel %vm2441_vm4, %v10480_v31, 3e+38  ;;  %8918 = vmatprep.subr.mxu1 %v3538_v58  ;;  %v2206_v49 = vpop.permute.xlu0 %2205  ;;  %2305 = vbcast.lane.b32.xlu0 %v11670_v5, 272 }
 0x72f   :  { %vm2440_vm1 = vcmp.gt.f32.partialorder %v2206_v49, 0.0  ;;  %8919 = vmatpush3.msra.mxu1 %v3538_v58  ;;  %2412 = vbcast.lane.b32.xlu1 %v11714_v27, 256  ;;  %v11732_v33 = vsel %vm1566_vm6, %v2621_v30, -inf  ;;  %v11737_v53 = vsel %vm1566_vm6, %v2861_v42, inf }
 0x730   :  { %v2620_v16 = vsel %vm2440_vm1, %v10382_v36, -3e+38  ;;  %v2860_v8 = vsel %vm2440_vm1, %v10382_v36, 3e+38  ;;  %8920 = vmatprep.subr.mxu1 %v3537_v0  ;;  %v2168_v7 = vpop.permute.xlu1 %2167 }
 0x731   :  { %v11740_v55 = vsel %vm1566_vm6, %v2620_v16, -inf  ;;  %v11743_v61 = vsel %vm1566_vm6, %v2860_v8, inf  ;;  %8921 = vmatpush3.msra.mxu1 %v3537_v0  ;;  %vm2432_vm10 = vcmp.gt.f32.partialorder %v2168_v7, 0.0  ;;  %v3534_v0 = vld [vmem:[%s14098_s15 + $0x30] sm:$0xff]  ;;  %v3529_v16 = vld [vmem:[%s14098_s15 + $0x8] sm:$0xff] }
 0x732   :  { %v2702_v56 = vmax.f32 %v11740_v55, %v11732_v33  ;;  %v2942_v45 = vmin.f32 %v11743_v61, %v11737_v53  ;;  %v2612_v54 = vsel %vm2432_vm10, %v10570_v15, -3e+38  ;;  %v2852_v11 = vsel %vm2432_vm10, %v10570_v15, 3e+38  ;;  %8922 = vmatprep.subr.mxu1 %v3536_v1  ;;  %2374 = vbcast.lane.b32.xlu0 %v11682_v24, 272 }
 0x733   :  { %v2673_v58 = vsel %vm1566_vm6, %v2612_v54, -inf  ;;  %v2913_v34 = vsel %vm1566_vm6, %v2852_v11, inf  ;;  %8923 = vmatpush3.msra.mxu1 %v3536_v1  ;;  %2244 = vbcast.lane.b32.xlu1 %v11641_v29, 288  ;;  %v3533_v29 = vld [vmem:[%s14098_s15 + $0x28] sm:$0xff]  ;;  %v3530_v1 = vld [vmem:[%s14098_s15 + $0x10] sm:$0xff] }
 0x734   :  { %v11764_v30 = vmax.f32 %v2672_v46, %v2673_v58  ;;  %v11769_v42 = vmin.f32 %v2912_v47, %v2913_v34  ;;  %8924 = vmatprep.subr.mxu1 %v3535_v40  ;;  %v11771_v49 = vpop.permute.xlu1 %2190  ;;  %v3531_v47 = vld [vmem:[%s14098_s15 + $0x18] sm:$0xff]  ;;  %v3528_v58 = vld [vmem:[%s14098_s15] sm:$0xff] }
 0x735   :  { %8925 = vmatpush3.msra.mxu1 %v3535_v40  ;;  %vm2437_vm3 = vcmp.gt.f32.partialorder %v11771_v49, 0.0 }
 0x736   :  { %v2617_v48 = vsel %vm2437_vm3, %v10570_v15, -3e+38  ;;  %8926 = vmatprep.subr.mxu1 %v3534_v0  ;;  %2416 = vbcast.lane.b32.xlu0 %v11714_v27, 264 }
 0x737   :  { %v2688_v59 = vsel %vm1566_vm6, %v2617_v48, -inf  ;;  %8927 = vmatpush3.msra.mxu1 %v3534_v0  ;;  %2328 = vbcast.lane.b32.xlu1 %v11693_v19, 272 }
 0x738   :  { %v11789_v39 = vmax.f32 %v2687_v37, %v2688_v59  ;;  %8928 = vmatprep.subr.mxu1 %v3533_v29  ;;  %v2229_v46 = vpop.permute.xlu1 %2228 }
 0x739   :  { %8929 = vmatpush3.msra.mxu1 %v3533_v29  ;;  %vm2445_vm4 = vcmp.gt.f32.partialorder %v2229_v46, 0.0 }
 0x73a   :  { %8930 = vmatprep.subr.mxu1 %v3532_v32  ;;  %2286 = vbcast.lane.b32.xlu0 %v11662_v18, 280  ;;  %v2625_v52 = vsel %vm2445_vm4, %v10382_v36, -3e+38  ;;  %v2865_v57 = vsel %vm2445_vm4, %v10382_v36, 3e+38 }
 0x73b   :  { %8931 = vmatpush3.msra.mxu1 %v3532_v32  ;;  %2267 = vbcast.lane.b32.xlu1 %v11652_v25, 288  ;;  %v11808_v25 = vsel %vm1566_vm6, %v2625_v52, -inf  ;;  %v11811_v40 = vsel %vm1566_vm6, %v2865_v57, inf }
 0x73c   :  { %8932 = vmatprep.subr.mxu1 %v3531_v47  ;;  %v2233_v37 = vpop.permute.xlu1 %2232 }
 0x73d   :  { %8933 = vmatpush3.msra.mxu1 %v3531_v47  ;;  %vm2446_vm1 = vcmp.gt.f32.partialorder %v2233_v37, 0.0 }
 0x73e   :  { %v2626_v8 = vsel %vm2446_vm1, %v10480_v31, -3e+38  ;;  %v2866_v7 = vsel %vm2446_vm1, %v10480_v31, 3e+38  ;;  %8934 = vmatprep.subr.mxu1 %v3530_v1  ;;  %2397 = vbcast.lane.b32.xlu0 %v11699_v10, 272 }
 0x73f   :  { %v11814_v54 = vsel %vm1566_vm6, %v2626_v8, -inf  ;;  %v11817_v11 = vsel %vm1566_vm6, %v2866_v7, inf  ;;  %8935 = vmatpush3.msra.mxu1 %v3530_v1  ;;  %2355 = vbcast.lane.b32.xlu1 %v11676_v22, 280 }
 0x740   :  { %v2717_v34 = vmax.f32 %v11808_v25, %v11814_v54  ;;  %v2957_v0 = vmin.f32 %v11811_v40, %v11817_v11  ;;  %8936 = vmatprep.subr.mxu1 %v3529_v16 }
 0x741   :  { %8937 = vmatpush3.msra.mxu1 %v3529_v16 }
 0x742   :  { %8938 = vmatprep.subr.mxu1 %v3528_v58  ;;  %2309 = vbcast.lane.b32.xlu0 %v11670_v5, 280 }
 0x743   :  { %8939 = vmatpush3.msra.mxu1 %v3528_v58  ;;  %2420 = vbcast.lane.b32.xlu1 %v11714_v27, 272 }
 0x744   :  { %8941 = vmatmul.mubr.msk.f32.vlgmr.msra.gmra.mxu1 %vm3351_vm7, %v11572_v41  ;;  %8970 = vmatprep.subr.mxu1 %v11469_v6 }
 0x745   :  { %8971 = vmatpush3.msra.mxu1 %v11469_v6 }
 0x746   :  { %2378 = vbcast.lane.b32.xlu0 %v11682_v24, 280  ;;  %8972 = vmatprep.subr.mxu1 %v11482_v28 }
 0x747   :  { %2332 = vbcast.lane.b32.xlu1 %v11693_v19, 280  ;;  %8973 = vmatpush3.msra.mxu1 %v11482_v28 }
 0x748   :  { %8974 = vmatprep.subr.mxu1 %v11492_v14 }
 0x749   :  { %8975 = vmatpush3.msra.mxu1 %v11492_v14 }
 0x74a   :  { %2290 = vbcast.lane.b32.xlu0 %v11662_v18, 288  ;;  %8976 = vmatprep.subr.mxu1 %v11499_v9 }
 0x74b   :  { %2313 = vbcast.lane.b32.xlu1 %v11670_v5, 288  ;;  %8977 = vmatpush3.msra.mxu1 %v11499_v9 }
 0x74c   :  { %8978 = vmatprep.subr.mxu1 %v11506_v12 }
 0x74d   :  { %8979 = vmatpush3.msra.mxu1 %v11506_v12 }
 0x74e   :  { %2401 = vbcast.lane.b32.xlu0 %v11699_v10, 280  ;;  %8980 = vmatprep.subr.mxu1 %v11513_v23 }
 0x74f   :  { %2382 = vbcast.lane.b32.xlu1 %v11682_v24, 288  ;;  %8981 = vmatpush3.msra.mxu1 %v11513_v23 }
 0x750   :  { %8982 = vmatprep.subr.mxu1 %v11520_v26 }
 0x751   :  { %8983 = vmatpush3.msra.mxu1 %v11520_v26 }
 0x752   :  { %2359 = vbcast.lane.b32.xlu0 %v11676_v22, 288  ;;  %8984 = vmatprep.subr.mxu1 %v11527_v43 }
 0x753   :  { %2336 = vbcast.lane.b32.xlu1 %v11693_v19, 288  ;;  %8985 = vmatpush3.msra.mxu1 %v11527_v43 }
 0x754   :  { %8986 = vmatprep.subr.mxu1 %v11534_v63 }
 0x755   :  { %8987 = vmatpush3.msra.mxu1 %v11534_v63 }
 0x756   :  { %2424 = vbcast.lane.b32.xlu0 %v11714_v27, 280  ;;  %8988 = vmatprep.subr.mxu1 %v11541_v21 }
 0x757   :  { %2428 = vbcast.lane.b32.xlu1 %v11714_v27, 288  ;;  %8989 = vmatpush3.msra.mxu1 %v11541_v21  ;;  %v2856_v21 = vsel %vm2436_vm8, %v10480_v31, 3e+38 }
 0x758   :  { %8990 = vmatprep.subr.mxu1 %v11548_v50  ;;  %v2926_v18 = vsel %vm1566_vm6, %v2856_v21, inf }
 0x759   :  { %8991 = vmatpush3.msra.mxu1 %v11548_v50  ;;  %v2855_v50 = vsel %vm2435_vm9, %v10382_v36, 3e+38 }
 0x75a   :  { %2405 = vbcast.lane.b32.xlu0 %v11699_v10, 288  ;;  %8992 = vmatprep.subr.mxu1 %v11555_v20  ;;  %v2925_v5 = vsel %vm1566_vm6, %v2855_v50, inf }
 0x75b   :  { %8993 = vmatpush3.msra.mxu1 %v11555_v20  ;;  %v2857_v20 = vsel %vm2437_vm3, %v10570_v15, 3e+38  ;;  %v2927_v10 = vmin.f32 %v2925_v5, %v2926_v18 }
 0x75c   :  { %9024 = vmatprep.subr.mxu1 %v14227_v3  ;;  %v2928_v4 = vsel %vm1566_vm6, %v2857_v20, inf }
 0x75d   :  { %v11907_v55 = vmin.f32 %v2927_v10, %v2928_v4 }
 0x764   :  { %v11867_v6 = vpop.xlane.xlu0 %3091 }
 0x768   :  { %v2214_v28 = vpop.permute.xlu0 %2213 }
 0x769   :  { %vm2442_vm10 = vcmp.gt.f32.partialorder %v2214_v28, 0.0 }
 0x76a   :  { %v2622_v14 = vsel %vm2442_vm10, %v10570_v15, -3e+38  ;;  %v2862_v9 = vsel %vm2442_vm10, %v10570_v15, 3e+38 }
 0x76b   :  { %v2703_v12 = vsel %vm1566_vm6, %v2622_v14, -inf  ;;  %v2943_v23 = vsel %vm1566_vm6, %v2862_v9, inf }
 0x76c   :  { %v11876_v26 = vmax.f32 %v2702_v56, %v2703_v12  ;;  %v11881_v43 = vmin.f32 %v2942_v45, %v2943_v23  ;;  %v2256_v63 = vpop.permute.xlu0 %2255 }
 0x76d   :  { %vm2451_vm9 = vcmp.gt.f32.partialorder %v2256_v63, 0.0 }
 0x76e   :  { %v2631_v46 = vsel %vm2451_vm9, %v10480_v31, -3e+38  ;;  %v2871_v47 = vsel %vm2451_vm9, %v10480_v31, 3e+38 }
 0x76f   :  { %v2731_v8 = vsel %vm1566_vm6, %v2631_v46, -inf  ;;  %v2971_v14 = vsel %vm1566_vm6, %v2871_v47, inf }
 0x770   :  { %v2172_v41 = vpop.permute.xlu0 %2171 }
 0x771   :  { %vm2433_vm4 = vcmp.gt.f32.partialorder %v2172_v41, 0.0 }
 0x772   :  { %v2613_v22 = vsel %vm2433_vm4, %v10525_v62, -3e+38  ;;  %v2853_v24 = vsel %vm2433_vm4, %v10525_v62, 3e+38 }
 0x773   :  { %v11898_v19 = vsel %vm1566_vm6, %v2613_v22, -inf  ;;  %v11901_v13 = vsel %vm1566_vm6, %v2853_v24, inf }
 0x774   :  { %v2676_v27 = vmax.f32 %v11764_v30, %v11898_v19  ;;  %v2916_v33 = vmin.f32 %v11769_v42, %v11901_v13  ;;  %v2195_v53 = vpop.permute.xlu0 %2194 }
 0x775   :  { %vm2438_vm8 = vcmp.gt.f32.partialorder %v2195_v53, 0.0 }
 0x776   :  { %v2618_v61 = vsel %vm2438_vm8, %v10525_v62, -3e+38  ;;  %v2858_v56 = vsel %vm2438_vm8, %v10525_v62, 3e+38 }
 0x777   :  { %v11912_v45 = vsel %vm1566_vm6, %v2618_v61, -inf  ;;  %v11915_v49 = vsel %vm1566_vm6, %v2858_v56, inf  ;;  %v11917_v29 = vpop.xlane.xlu1 %3094 }
 0x778   :  { %v2691_v48 = vmax.f32 %v11789_v39, %v11912_v45  ;;  %v2931_v59 = vmin.f32 %v11907_v55, %v11915_v49  ;;  %v2237_v32 = vpop.permute.xlu0 %2236 }
 0x779   :  { %vm2447_vm3 = vcmp.gt.f32.partialorder %v2237_v32, 0.0 }
 0x77a   :  { %v2627_v1 = vsel %vm2447_vm3, %v10570_v15, -3e+38  ;;  %v2867_v52 = vsel %vm2447_vm3, %v10570_v15, 3e+38 }
 0x77b   :  { %v2718_v57 = vsel %vm1566_vm6, %v2627_v1, -inf  ;;  %v2958_v37 = vsel %vm1566_vm6, %v2867_v52, inf  ;;  %v2252_v16 = vpop.permute.xlu1 %2251 }
 0x77c   :  { %v11933_v7 = vmax.f32 %v2717_v34, %v2718_v57  ;;  %v11938_v58 = vmin.f32 %v2957_v0, %v2958_v37  ;;  %vm2450_vm1 = vcmp.gt.f32.partialorder %v2252_v16, 0.0  ;;  %v2275_v28 = vpop.permute.xlu0 %2274 }
 0x77d   :  { %v2630_v9 = vsel %vm2450_vm1, %v10382_v36, -3e+38  ;;  %v2870_v12 = vsel %vm2450_vm1, %v10382_v36, 3e+38  ;;  %vm2455_vm10 = vcmp.gt.f32.partialorder %v2275_v28, 0.0 }
 0x77e   :  { %v2730_v23 = vsel %vm1566_vm6, %v2630_v9, -inf  ;;  %v2970_v25 = vsel %vm1566_vm6, %v2870_v12, inf  ;;  %v2635_v54 = vsel %vm2455_vm10, %v10382_v36, -3e+38  ;;  %v2875_v34 = vsel %vm2455_vm10, %v10382_v36, 3e+38 }
 0x77f   :  { %v2732_v40 = vmax.f32 %v2730_v23, %v2731_v8  ;;  %v2972_v11 = vmin.f32 %v2970_v25, %v2971_v14  ;;  %v2279_v0 = vpop.permute.xlu1 %2278  ;;  %v11948_v63 = vsel %vm1566_vm6, %v2635_v54, -inf  ;;  %v11951_v50 = vsel %vm1566_vm6, %v2875_v34, inf }
 0x780   :  { %vm2456_vm4 = vcmp.gt.f32.partialorder %v2279_v0, 0.0  ;;  %v2218_v21 = vpop.permute.xlu0 %2217 }
 0x781   :  { %v2636_v20 = vsel %vm2456_vm4, %v10480_v31, -3e+38  ;;  %v2876_v41 = vsel %vm2456_vm4, %v10480_v31, 3e+38  ;;  %vm2443_vm8 = vcmp.gt.f32.partialorder %v2218_v21, 0.0 }
 0x782   :  { %v11956_v18 = vsel %vm1566_vm6, %v2636_v20, -inf  ;;  %v11959_v5 = vsel %vm1566_vm6, %v2876_v41, inf  ;;  %v2623_v22 = vsel %vm2443_vm8, %v10525_v62, -3e+38  ;;  %v2863_v24 = vsel %vm2443_vm8, %v10525_v62, 3e+38 }
 0x783   :  { %v2747_v4 = vmax.f32 %v11948_v63, %v11956_v18  ;;  %v11968_v53 = vsel %vm1566_vm6, %v2623_v22, -inf  ;;  %v11971_v61 = vsel %vm1566_vm6, %v2863_v24, inf  ;;  %v2260_v56 = vpop.permute.xlu1 %2259 }
 0x784   :  { %v2706_v32 = vmax.f32 %v11876_v26, %v11968_v53  ;;  %vm2452_vm9 = vcmp.gt.f32.partialorder %v2260_v56, 0.0  ;;  %v11977_v47 = vpop.permute.xlu0 %2297 }
 0x785   :  { %v2632_v1 = vsel %vm2452_vm9, %v10570_v15, -3e+38  ;;  %v2872_v52 = vsel %vm2452_vm9, %v10570_v15, 3e+38  ;;  %vm2460_vm3 = vcmp.gt.f32.partialorder %v11977_v47, 0.0 }
 0x786   :  { %v2733_v57 = vsel %vm1566_vm6, %v2632_v1, -inf  ;;  %v2973_v37 = vsel %vm1566_vm6, %v2872_v52, inf  ;;  %v2640_v28 = vsel %vm2460_vm3, %v10382_v36, -3e+38  ;;  %v2880_v39 = vsel %vm2460_vm3, %v10382_v36, 3e+38 }
 0x787   :  { %v11984_v16 = vmax.f32 %v2732_v40, %v2733_v57  ;;  %v11986_v8 = vmin.f32 %v2972_v11, %v2973_v37  ;;  %v2302_v14 = vpop.permute.xlu1 %2301  ;;  %v11994_v23 = vsel %vm1566_vm6, %v2640_v28, -inf }
 0x788   :  { %vm2461_vm1 = vcmp.gt.f32.partialorder %v2302_v14, 0.0  ;;  %v2344_v9 = vpop.permute.xlu0 %2343 }
 0x789   :  { %v2641_v12 = vsel %vm2461_vm1, %v10480_v31, -3e+38  ;;  %vm2470_vm10 = vcmp.gt.f32.partialorder %v2344_v9, 0.0  ;;  %v3096_v9 = vmax.f32 %v11867_v6, 1.0  ;;  %v2881_v30 = vsel %vm2461_vm1, %v10480_v31, 3e+38 }
 0x78a   :  { %v11997_v25 = vsel %vm1566_vm6, %v2641_v12, -inf  ;;  %v2650_v34 = vsel %vm2470_vm10, %v10382_v36, -3e+38  ;;  %v2890_v40 = vsel %vm2470_vm10, %v10382_v36, 3e+38 }
 0x78b   :  { %v2348_v11 = vpop.permute.xlu1 %2347  ;;  %v12006_v41 = vsel %vm1566_vm6, %v2650_v34, -inf  ;;  %v12009_v22 = vsel %vm1566_vm6, %v2890_v40, inf  ;;  %9563 = vrcp.f32 %v3096_v9 }
 0x78c   :  { %vm2471_vm4 = vcmp.gt.f32.partialorder %v2348_v11, 0.0  ;;  %v2367_v0 = vpop.permute.xlu0 %2366 }
 0x78d   :  { %v2651_v21 = vsel %vm2471_vm4, %v10480_v31, -3e+38  ;;  %v2891_v20 = vsel %vm2471_vm4, %v10480_v31, 3e+38  ;;  %vm2475_vm8 = vcmp.gt.f32.partialorder %v2367_v0, 0.0 }
 0x78e   :  { %v12012_v24 = vsel %vm1566_vm6, %v2651_v21, -inf  ;;  %v12015_v56 = vsel %vm1566_vm6, %v2891_v20, inf  ;;  %v2655_v57 = vsel %vm2475_vm8, %v10382_v36, -3e+38 }
 0x78f   :  { %v2371_v37 = vpop.permute.xlu1 %2370  ;;  %v12027_v34 = vsel %vm1566_vm6, %v2655_v57, -inf }
 0x790   :  { %vm2476_vm9 = vcmp.gt.f32.partialorder %v2371_v37, 0.0  ;;  %v2176_v28 = vpop.permute.xlu0 %2175 }
 0x791   :  { %v2656_v12 = vsel %vm2476_vm9, %v10480_v31, -3e+38  ;;  %vm2434_vm10 = vcmp.gt.f32.partialorder %v2176_v28, 0.0 }
 0x792   :  { %v12030_v40 = vsel %vm1566_vm6, %v2656_v12, -inf  ;;  %v2614_v11 = vsel %vm2434_vm10, %v10538_v38, -3e+38  ;;  %v2854_v21 = vsel %vm2434_vm10, %v10538_v38, 3e+38 }
 0x793   :  { %v2677_v52 = vsel %vm1566_vm6, %v2614_v11, -inf  ;;  %v2917_v6 = vsel %vm1566_vm6, %v2854_v21, inf  ;;  %v2199_v1 = vpop.permute.xlu1 %2198 }
 0x794   :  { %v2678_v57 = vmax.f32 %v2676_v27, %v2677_v52  ;;  %v2918_v28 = vmin.f32 %v2916_v33, %v2917_v6  ;;  %vm2439_vm4 = vcmp.gt.f32.partialorder %v2199_v1, 0.0  ;;  %v2241_v12 = vpop.permute.xlu0 %2240  ;;  %v3097_v33 = vmax.f32 %v11917_v29, 1.0 }
 0x795   :  { %v2619_v54 = vsel %vm2439_vm4, %v10538_v38, -3e+38  ;;  %v2859_v20 = vsel %vm2439_vm4, %v10538_v38, 3e+38  ;;  %vm2448_vm10 = vcmp.gt.f32.partialorder %v2241_v12, 0.0 }
 0x796   :  { %v2679_v11 = vrot.slane %v2678_v57, 4  ;;  %v2919_v10 = vrot.slane %v2918_v28, 4  ;;  %v2692_v21 = vsel %vm1566_vm6, %v2619_v54, -inf  ;;  %v2932_v46 = vsel %vm1566_vm6, %v2859_v20, inf }
 0x797   :  { %v2693_v42 = vmax.f32 %v2691_v48, %v2692_v21  ;;  %v2933_v19 = vmin.f32 %v2931_v59, %v2932_v46  ;;  %v2628_v13 = vsel %vm2448_vm10, %v10525_v62, -3e+38  ;;  %v2283_v27 = vpop.permute.xlu1 %2282  ;;  %v12070_v48 = vsel %vm1566_vm6, %v2881_v30, inf }
 0x798   :  { %v2680_v54 = vmax.f32 %v2678_v57, %v2679_v11  ;;  %v2920_v1 = vmin.f32 %v2918_v28, %v2919_v10  ;;  %v12060_v52 = vsel %vm1566_vm6, %v2628_v13, -inf  ;;  %v12062_v14 = vpop.permute.xlu0 %2320  ;;  %vm2457_vm1 = vcmp.gt.f32.partialorder %v2283_v27, 0.0 }
 0x799   :  { %v2694_v45 = vrot.slane %v2693_v42, 4  ;;  %v2934_v55 = vrot.slane %v2933_v19, 4  ;;  %v2895_v10 = vsel %vm2475_vm8, %v10382_v36, 3e+38  ;;  %v2637_v47 = vsel %vm2457_vm1, %v10570_v15, -3e+38 }
 0x79a   :  { %v2681_v29 = vrot.slane %v2680_v54, 2  ;;  %v2921_v59 = vrot.slane %v2920_v1, 2  ;;  %v2748_v28 = vsel %vm1566_vm6, %v2637_v47, -inf  ;;  %vm2465_vm3 = vcmp.gt.f32.partialorder %v12062_v14, 0.0 }
 0x79b   :  { %v2695_v46 = vmax.f32 %v2693_v42, %v2694_v45  ;;  %v2935_v9 = vmin.f32 %v2933_v19, %v2934_v55  ;;  %v12076_v20 = vpop.permute.xlu1 %2324  ;;  %v2896_v21 = vsel %vm2476_vm9, %v10480_v31, 3e+38  ;;  %v12087_v42 = vmax.f32 %v2747_v4, %v2748_v28 }
 0x79c   :  { %v2682_v6 = vmax.f32 %v2680_v54, %v2681_v29  ;;  %v2922_v57 = vmin.f32 %v2920_v1, %v2921_v59  ;;  %v12080_v11 = vpop.permute.xlu0 %2389  ;;  %9565 = vrcp.f32 %v3097_v33  ;;  %v12090_v19 = vsel %vm1566_vm6, %v2880_v39, inf }
 0x79d   :  { %v2696_v0 = vrot.slane %v2695_v46, 2  ;;  %v2936_v30 = vrot.slane %v2935_v9, 2  ;;  %v2645_v37 = vsel %vm2465_vm3, %v10382_v36, -3e+38  ;;  %v12098_v63 = vsel %vm1566_vm6, %v2895_v10, inf }
 0x79e   :  { %v2683_v13 = vrot.slane %v2682_v6, 1  ;;  %v2923_v54 = vrot.slane %v2922_v57, 1  ;;  %v12101_v18 = vsel %vm1566_vm6, %v2896_v21, inf  ;;  %vm2466_vm8 = vcmp.gt.f32.partialorder %v12076_v20, 0.0 }
 0x79f   :  { %v2697_v45 = vmax.f32 %v2695_v46, %v2696_v0  ;;  %v2937_v55 = vmin.f32 %v2935_v9, %v2936_v30  ;;  %v2394_v29 = vpop.permute.xlu1 %2393  ;;  %vm2480_vm9 = vcmp.gt.f32.partialorder %v12080_v11, 0.0  ;;  %v2868_v59 = vsel %vm2448_vm10, %v10525_v62, 3e+38  ;;  %v12110_v9 = vpop.eup %9563 }
 0x7a0   :  { %v2222_v4 = vpop.permute.xlu0 %2221  ;;  %v2646_v46 = vsel %vm2466_vm8, %v10480_v31, -3e+38  ;;  %v2684_v10 = vmax.f32 %v2682_v6, %v2683_v13  ;;  %v2924_v47 = vmin.f32 %v2922_v57, %v2923_v54  ;;  %v12113_v28 = vsel %vm1566_vm6, %v2645_v37, -inf }
 0x7a1   :  { %v2698_v33 = vrot.slane %v2697_v45, 1  ;;  %v2938_v39 = vrot.slane %v2937_v55, 1  ;;  %v12116_v21 = vsel %vm1566_vm6, %v2646_v46, -inf  ;;  %v2660_v1 = vsel %vm2480_vm9, %v10382_v36, -3e+38 }
 0x7a2   :  { %v2877_v57 = vsel %vm2457_vm1, %v10570_v15, 3e+38  ;;  %vm2481_vm4 = vcmp.gt.f32.partialorder %v2394_v29, 0.0  ;;  %vm2444_vm10 = vcmp.gt.f32.partialorder %v2222_v4, 0.0  ;;  %v14243_v20 = vmin.f32 %v11951_v50, %v11959_v5 }
 0x7a3   :  { %v2699_v0 = vmax.f32 %v2697_v45, %v2698_v33  ;;  %v2939_v30 = vmin.f32 %v2937_v55, %v2938_v39  ;;  %v2264_v49 = vpop.permute.xlu1 %2263  ;;  %v12136_v55 = vsel %vm1566_vm6, %v2868_v59, inf  ;;  %v2661_v37 = vsel %vm2481_vm4, %v10480_v31, -3e+38 }
 0x7a4   :  { %v12127_v13 = vpop.permute.xlu0 %2305  ;;  %v12141_v33 = vsel %vm1566_vm6, %v2660_v1, -inf  ;;  %v12144_v27 = vsel %vm1566_vm6, %v2661_v37, -inf  ;;  %v2624_v4 = vsel %vm2444_vm10, %v10538_v38, -3e+38  ;;  %v2864_v39 = vsel %vm2444_vm10, %v10538_v38, 3e+38 }
 0x7a5   :  { %v12130_v54 = vsel %vm2093_vm13, %v2699_v0, %v2684_v10  ;;  %v12133_v45 = vsel %vm2093_vm13, %v2939_v30, %v2924_v47  ;;  %v2988_v46 = vsel %vm1566_vm6, %v2877_v57, inf  ;;  %v2707_v59 = vsel %vm1566_vm6, %v2624_v4, -inf }
 0x7a6   :  { %v2947_v47 = vsel %vm1566_vm6, %v2864_v39, inf  ;;  %v2708_v1 = vmax.f32 %v2706_v32, %v2707_v59  ;;  %v14242_v30 = vmin.f32 %v11881_v43, %v11971_v61  ;;  %vm2453_vm1 = vcmp.gt.f32.partialorder %v2264_v49, 0.0 }
 0x7a7   :  { %v2352_v0 = vpop.permute.xlu1 %2351  ;;  %vm2462_vm10 = vcmp.gt.f32.partialorder %v12127_v13, 0.0  ;;  %v2886_v4 = vsel %vm2466_vm8, %v10480_v31, 3e+38  ;;  %v2633_v26 = vsel %vm2453_vm1, %v10525_v62, -3e+38  ;;  %v14244_v50 = vmax.f32 %v11994_v23, %v11997_v25 }
 0x7a8   :  { %v2948_v37 = vmin.f32 %v14242_v30, %v2947_v47  ;;  %v12160_v57 = vpop.permute.xlu0 %2374  ;;  %v2642_v43 = vsel %vm2462_vm10, %v10570_v15, -3e+38  ;;  %v2901_v53 = vsel %vm2481_vm4, %v10480_v31, 3e+38  ;;  %v2709_v61 = vrot.slane %v2708_v1, 4 }
 0x7a9   :  { %v12175_v39 = vsel %vm1566_vm6, %v2633_v26, -inf  ;;  %v12177_v59 = vpop.eup %9565  ;;  %v12182_v47 = vmin.f32 %v14243_v20, %v2988_v46  ;;  %v2885_v30 = vsel %vm2465_vm3, %v10382_v36, 3e+38  ;;  %v2763_v6 = vsel %vm1566_vm6, %v2642_v43, -inf }
 0x7aa   :  { %v2949_v32 = vrot.slane %v2948_v37, 4  ;;  %v2900_v26 = vsel %vm2480_vm9, %v10382_v36, 3e+38  ;;  %v2710_v10 = vmax.f32 %v2708_v1, %v2709_v61  ;;  %v12198_v5 = vmax.f32 %v14244_v50, %v2763_v6 }
 0x7ab   :  { %v12190_v12 = vpop.permute.xlu1 %2412  ;;  %v12203_v46 = vsel %vm1566_vm6, %v2886_v4, inf  ;;  %v12206_v43 = vsel %vm1566_vm6, %v2901_v53, inf  ;;  %vm2472_vm3 = vcmp.gt.f32.partialorder %v2352_v0, 0.0  ;;  %vm2477_vm8 = vcmp.gt.f32.partialorder %v12160_v57, 0.0 }
 0x7ac   :  { %v2950_v51 = vmin.f32 %v2948_v37, %v2949_v32  ;;  %v12200_v14 = vpop.permute.xlu0 %2416  ;;  %v2711_v11 = vrot.slane %v2710_v10, 2  ;;  %v2652_v1 = vsel %vm2472_vm3, %v10570_v15, -3e+38  ;;  %vm2485_vm9 = vcmp.gt.f32.partialorder %v12190_v12, 0.0 }
 0x7ad   :  { %v12213_v23 = vsel %vm1566_vm6, %v2885_v30, inf  ;;  %v12216_v25 = vsel %vm1566_vm6, %v2900_v26, inf  ;;  %v2793_v6 = vsel %vm1566_vm6, %v2652_v1, -inf  ;;  %v2657_v37 = vsel %vm2477_vm8, %v10570_v15, -3e+38 }
 0x7ae   :  { %v2951_v20 = vrot.slane %v2950_v51, 2  ;;  %v2712_v53 = vmax.f32 %v2710_v10, %v2711_v11  ;;  %v2873_v32 = vsel %vm2453_vm1, %v10525_v62, 3e+38  ;;  %v14245_v50 = vmax.f32 %v12006_v41, %v12012_v24 }
 0x7af   :  { %v2245_v4 = vpop.permute.xlu1 %2244  ;;  %v3017_v26 = vmin.f32 %v12213_v23, %v12203_v46  ;;  %v2808_v35 = vsel %vm1566_vm6, %v2657_v37, -inf  ;;  %v2882_v41 = vsel %vm2462_vm10, %v10570_v15, 3e+38  ;;  %v14246_v24 = vmax.f32 %v12027_v34, %v12030_v40 }
 0x7b0   :  { %v2952_v61 = vmin.f32 %v2950_v51, %v2951_v20  ;;  %v12227_v30 = vmax.f32 %v14245_v50, %v2793_v6  ;;  %v12229_v29 = vpop.permute.xlu0 %2286  ;;  %v2665_v51 = vsel %vm2485_vm9, %v10382_v36, -3e+38  ;;  %v2713_v49 = vrot.slane %v2712_v53, 1 }
 0x7b1   :  { %v12245_v11 = vmax.f32 %v14246_v24, %v2808_v35  ;;  %v12248_v20 = vsel %vm1566_vm6, %v2873_v32, inf  ;;  %v12251_v6 = vsel %vm1566_vm6, %v2665_v51, -inf  ;;  %vm2486_vm4 = vcmp.gt.f32.partialorder %v12200_v14, 0.0 }
 0x7b2   :  { %v2953_v10 = vrot.slane %v2952_v61, 1  ;;  %vm2449_vm1 = vcmp.gt.f32.partialorder %v2245_v4, 0.0  ;;  %v2714_v50 = vmax.f32 %v2712_v53, %v2713_v49  ;;  %v2892_v13 = vsel %vm2472_vm3, %v10570_v15, 3e+38 }
 0x7b3   :  { %v2329_v37 = vpop.permute.xlu1 %2328  ;;  %v2666_v35 = vsel %vm2486_vm4, %v10480_v31, -3e+38  ;;  %v3003_v40 = vsel %vm1566_vm6, %v2882_v41, inf  ;;  %v2629_v51 = vsel %vm2449_vm1, %v10538_v38, -3e+38  ;;  %vm2458_vm10 = vcmp.gt.f32.partialorder %v12229_v29, 0.0 }
 0x7b4   :  { %v2954_v1 = vmin.f32 %v2952_v61, %v2953_v10  ;;  %v2398_v34 = vpop.permute.xlu0 %2397  ;;  %v12261_v32 = vsel %vm1566_vm6, %v2666_v35, -inf  ;;  %v2869_v4 = vsel %vm2449_vm1, %v10538_v38, 3e+38  ;;  %v12267_v53 = vsel %vm2095_vm11, %v2714_v50, %v12130_v54 }
 0x7b5   :  { %v2897_v61 = vsel %vm2477_vm8, %v10570_v15, 3e+38  ;;  %v2722_v10 = vsel %vm1566_vm6, %v2629_v51, -inf  ;;  %v2962_v41 = vsel %vm1566_vm6, %v2869_v4, inf  ;;  %vm2467_vm3 = vcmp.gt.f32.partialorder %v2329_v37, 0.0 }
 0x7b6   :  { %v12271_v0 = vsel %vm2095_vm11, %v2954_v1, %v12133_v45  ;;  %v2976_v24 = vmin.f32 %v11986_v8, %v12248_v20  ;;  %v14247_v45 = vmax.f32 %v11933_v7, %v12060_v52  ;;  %v14248_v57 = vmin.f32 %v11938_v58, %v12136_v55 }
 0x7b7   :  { %v2268_v54 = vpop.permute.xlu1 %2267  ;;  %v2638_v35 = vsel %vm2458_vm10, %v10525_v62, -3e+38  ;;  %v14249_v51 = vmin.f32 %v12090_v19, %v12070_v48  ;;  %v3033_v49 = vsel %vm1566_vm6, %v2892_v13, inf  ;;  %v2647_v7 = vsel %vm2467_vm3, %v10570_v15, -3e+38 }
 0x7b8   :  { %v2723_v1 = vmax.f32 %v14247_v45, %v2722_v10  ;;  %v2963_v50 = vmin.f32 %v14248_v57, %v2962_v41  ;;  %v12299_v8 = vsel %vm1566_vm6, %v2638_v35, -inf  ;;  %v2310_v52 = vpop.permute.xlu0 %2309  ;;  %v3048_v58 = vsel %vm1566_vm6, %v2897_v61, inf }
 0x7b9   :  { %v12295_v4 = vmin.f32 %v14249_v51, %v3003_v40  ;;  %v2751_v10 = vmax.f32 %v12087_v42, %v12299_v8  ;;  %v2905_v48 = vsel %vm2485_vm9, %v10382_v36, 3e+38  ;;  %v2778_v19 = vsel %vm1566_vm6, %v2647_v7, -inf }
 0x7ba   :  { %v2724_v55 = vrot.slane %v2723_v1, 4  ;;  %v2964_v20 = vrot.slane %v2963_v50, 4  ;;  %vm2482_vm8 = vcmp.gt.f32.partialorder %v2398_v34, 0.0  ;;  %vm2454_vm1 = vcmp.gt.f32.partialorder %v2268_v54, 0.0 }
 0x7bb   :  { %v2356_v13 = vpop.permute.xlu1 %2355  ;;  %v2906_v40 = vsel %vm2486_vm4, %v10480_v31, 3e+38  ;;  %v14250_v45 = vmax.f32 %v12113_v28, %v12116_v21  ;;  %v14251_v12 = vmin.f32 %v12009_v22, %v12015_v56  ;;  %v14252_v51 = vmin.f32 %v12098_v63, %v12101_v18 }
 0x7bc   :  { %v2725_v41 = vmax.f32 %v2723_v1, %v2724_v55  ;;  %v2965_v61 = vmin.f32 %v2963_v50, %v2964_v20  ;;  %v2662_v14 = vsel %vm2482_vm8, %v10570_v15, -3e+38  ;;  %v2634_v1 = vsel %vm2454_vm1, %v10538_v38, -3e+38  ;;  %v2379_v55 = vpop.permute.xlu0 %2378 }
 0x7bd   :  { %v12316_v57 = vmax.f32 %v14250_v45, %v2778_v19  ;;  %v12321_v35 = vmin.f32 %v14251_v12, %v3033_v49  ;;  %v12326_v7 = vmin.f32 %v14252_v51, %v3048_v58  ;;  %v12333_v28 = vsel %vm1566_vm6, %v2905_v48, inf }
 0x7be   :  { %v2726_v21 = vrot.slane %v2725_v41, 2  ;;  %v2966_v50 = vrot.slane %v2965_v61, 2  ;;  %v2823_v22 = vsel %vm1566_vm6, %v2662_v14, -inf  ;;  %v12337_v56 = vsel %vm1566_vm6, %v2906_v40, inf }
 0x7bf   :  { %v14253_v63 = vmax.f32 %v12141_v33, %v12144_v27  ;;  %v2737_v49 = vsel %vm1566_vm6, %v2634_v1, -inf  ;;  %v2874_v58 = vsel %vm2454_vm1, %v10538_v38, 3e+38  ;;  %v2878_v20 = vsel %vm2458_vm10, %v10525_v62, 3e+38  ;;  %v12356_v27 = vpop.permute.xlu1 %2420 }
 0x7c0   :  { %v2887_v48 = vsel %vm2467_vm3, %v10570_v15, 3e+38  ;;  %v14254_v19 = vmax.f32 %v11984_v16, %v12175_v39  ;;  %v2977_v33 = vsel %vm1566_vm6, %v2874_v58, inf  ;;  %v2902_v54 = vsel %vm2482_vm8, %v10570_v15, 3e+38 }
 0x7c1   :  { %v12342_v18 = vmax.f32 %v14253_v63, %v2823_v22  ;;  %v2978_v45 = vmin.f32 %v2976_v24, %v2977_v33  ;;  %vm2463_vm9 = vcmp.gt.f32.partialorder %v2310_v52, 0.0  ;;  %vm2473_vm4 = vcmp.gt.f32.partialorder %v2356_v13, 0.0  ;;  %v2291_v63 = vpop.permute.xlu0 %2290 }
 0x7c2   :  { %v2738_v40 = vmax.f32 %v14254_v19, %v2737_v49  ;;  %v2727_v12 = vmax.f32 %v2725_v41, %v2726_v21  ;;  %v2967_v29 = vmin.f32 %v2965_v61, %v2966_v50  ;;  %v2643_v37 = vsel %vm2463_vm9, %v10525_v62, -3e+38 }
 0x7c3   :  { %v3077_v16 = vmin.f32 %v12333_v28, %v12337_v56  ;;  %v2979_v39 = vrot.slane %v2978_v45, 4  ;;  %v12365_v14 = vsel %vm1566_vm6, %v2643_v37, -inf  ;;  %v2653_v34 = vsel %vm2473_vm4, %v10525_v62, -3e+38  ;;  %v12383_v19 = vpop.permute.xlu1 %2332 }
 0x7c4   :  { %v2739_v51 = vrot.slane %v2738_v40, 4  ;;  %v2990_v24 = vsel %vm1566_vm6, %v2878_v20, inf  ;;  %v3018_v1 = vsel %vm1566_vm6, %v2887_v48, inf  ;;  %v2766_v41 = vmax.f32 %v12198_v5, %v12365_v14 }
 0x7c5   :  { %vm2478_vm10 = vcmp.gt.f32.partialorder %v2379_v55, 0.0  ;;  %v3063_v61 = vsel %vm1566_vm6, %v2902_v54, inf  ;;  %v2883_v50 = vsel %vm2463_vm9, %v10525_v62, 3e+38  ;;  %v12377_v22 = vsel %vm1566_vm6, %v2653_v34, -inf }
 0x7c6   :  { %v2740_v21 = vmax.f32 %v2738_v40, %v2739_v51  ;;  %v2728_v49 = vrot.slane %v2727_v12, 1  ;;  %v2968_v58 = vrot.slane %v2967_v29, 1  ;;  %v2796_v20 = vmax.f32 %v12227_v30, %v12377_v22 }
 0x7c7   :  { %v2893_v48 = vsel %vm2473_vm4, %v10525_v62, 3e+38  ;;  %v2991_v33 = vmin.f32 %v12182_v47, %v2990_v24  ;;  %v12389_v52 = vmin.f32 %v3017_v26, %v3018_v1  ;;  %v2980_v40 = vmin.f32 %v2978_v45, %v2979_v39 }
 0x7c8   :  { %v2658_v54 = vsel %vm2478_vm10, %v10525_v62, -3e+38  ;;  %v14255_v51 = vmin.f32 %v12216_v25, %v12206_v43  ;;  %v3005_v13 = vsel %vm1566_vm6, %v2883_v50, inf  ;;  %vm2487_vm3 = vcmp.gt.f32.partialorder %v12356_v27, 0.0 }
 0x7c9   :  { %v12400_v34 = vsel %vm1566_vm6, %v2658_v54, -inf  ;;  %v2741_v47 = vrot.slane %v2740_v21, 2  ;;  %v12404_v46 = vsel %vm1566_vm6, %v2893_v48, inf  ;;  %v2667_v43 = vsel %vm2487_vm3, %v10570_v15, -3e+38  ;;  %v2402_v48 = vpop.permute.xlu0 %2401 }
 0x7ca   :  { %v12396_v37 = vmin.f32 %v14255_v51, %v3063_v61  ;;  %v2811_v23 = vmax.f32 %v12245_v11, %v12400_v34  ;;  %v12411_v25 = vmax.f32 %v2727_v12, %v2728_v49  ;;  %v12413_v26 = vmin.f32 %v2967_v29, %v2968_v58  ;;  %v2314_v58 = vpop.permute.xlu1 %2313 }
 0x7cb   :  { %v2838_v45 = vsel %vm1566_vm6, %v2667_v43, -inf  ;;  %vm2459_vm8 = vcmp.gt.f32.partialorder %v2291_v63, 0.0  ;;  %v2981_v39 = vrot.slane %v2980_v40, 2  ;;  %v2898_v24 = vsel %vm2478_vm10, %v10525_v62, 3e+38 }
 0x7cc   :  { %v14256_v1 = vmax.f32 %v12251_v6, %v12261_v32  ;;  %v2639_v50 = vsel %vm2459_vm8, %v10538_v38, -3e+38  ;;  %v3006_v12 = vmin.f32 %v12295_v4, %v3005_v13  ;;  %v3036_v29 = vmin.f32 %v12321_v35, %v12404_v46 }
 0x7cd   :  { %v2752_v49 = vsel %vm1566_vm6, %v2639_v50, -inf  ;;  %v2879_v63 = vsel %vm2459_vm8, %v10538_v38, 3e+38  ;;  %v12429_v55 = vmax.f32 %v2740_v21, %v2741_v47  ;;  %vm2468_vm1 = vcmp.gt.f32.partialorder %v12383_v19, 0.0 }
 0x7ce   :  { %v12421_v61 = vmax.f32 %v14256_v1, %v2838_v45  ;;  %v2753_v6 = vmax.f32 %v2751_v10, %v2752_v49  ;;  %v2992_v32 = vsel %vm1566_vm6, %v2879_v63, inf  ;;  %v12437_v4 = vsel %vm1566_vm6, %v2898_v24, inf  ;;  %v2360_v45 = vpop.permute.xlu0 %2359  ;;  %v2383_v50 = vpop.permute.xlu1 %2382 }
 0x7cf   :  { %v2993_v54 = vmin.f32 %v2991_v33, %v2992_v32  ;;  %v2648_v35 = vsel %vm2468_vm1, %v10525_v62, -3e+38  ;;  %vm2483_vm9 = vcmp.gt.f32.partialorder %v2402_v48, 0.0  ;;  %v12442_v51 = vmin.f32 %v2980_v40, %v2981_v39 }
 0x7d0   :  { %v2754_v21 = vrot.slane %v2753_v6, 4  ;;  %v12445_v13 = vsel %vm1566_vm6, %v2648_v35, -inf  ;;  %v2663_v42 = vsel %vm2483_vm9, %v10525_v62, -3e+38  ;;  %v2907_v8 = vsel %vm2487_vm3, %v10570_v15, 3e+38 }
 0x7d1   :  { %v2994_v10 = vrot.slane %v2993_v54, 4  ;;  %v12455_v47 = vsel %vm1566_vm6, %v2663_v42, -inf  ;;  %v3051_v40 = vmin.f32 %v12326_v7, %v12437_v4  ;;  %vm2464_vm4 = vcmp.gt.f32.partialorder %v2314_v58, 0.0 }
 0x7d2   :  { %v2755_v46 = vmax.f32 %v2753_v6, %v2754_v21  ;;  %v2743_v39 = vrot.slane %v12429_v55, 1  ;;  %v2644_v24 = vsel %vm2464_vm4, %v10538_v38, -3e+38  ;;  %v2884_v1 = vsel %vm2464_vm4, %v10538_v38, 3e+38 }
 0x7d3   :  { %v2995_v27 = vmin.f32 %v2993_v54, %v2994_v10  ;;  %v2983_v49 = vrot.slane %v12442_v51, 1  ;;  %v3078_v63 = vsel %vm1566_vm6, %v2907_v8, inf  ;;  %v2767_v7 = vsel %vm1566_vm6, %v2644_v24, -inf }
 0x7d4   :  { %v3007_v6 = vsel %vm1566_vm6, %v2884_v1, inf  ;;  %v2756_v32 = vrot.slane %v2755_v46, 2  ;;  %v2768_v58 = vmax.f32 %v2766_v41, %v2767_v7  ;;  %vm2474_vm10 = vcmp.gt.f32.partialorder %v2360_v45, 0.0 }
 0x7d5   :  { %v3008_v4 = vmin.f32 %v3006_v12, %v3007_v6  ;;  %v2996_v54 = vrot.slane %v2995_v27, 2  ;;  %v2654_v35 = vsel %vm2474_vm10, %v10538_v38, -3e+38  ;;  %v2894_v21 = vsel %vm2474_vm10, %v10538_v38, 3e+38  ;;  %v2425_v6 = vpop.permute.xlu0 %2424 }
 0x7d6   :  { %vm2479_vm3 = vcmp.gt.f32.partialorder %v2383_v50, 0.0  ;;  %v2888_v42 = vsel %vm2468_vm1, %v10525_v62, 3e+38  ;;  %v2769_v8 = vrot.slane %v2768_v58, 4  ;;  %v2797_v24 = vsel %vm1566_vm6, %v2654_v35, -inf }
 0x7d7   :  { %v3009_v10 = vrot.slane %v3008_v4, 4  ;;  %v2903_v5 = vsel %vm2483_vm9, %v10525_v62, 3e+38  ;;  %v2798_v14 = vmax.f32 %v2796_v20, %v2797_v24  ;;  %v3037_v41 = vsel %vm1566_vm6, %v2894_v21, inf }
 0x7d8   :  { %v2659_v12 = vsel %vm2479_vm3, %v10538_v38, -3e+38  ;;  %v2757_v45 = vmax.f32 %v2755_v46, %v2756_v32  ;;  %v2770_v1 = vmax.f32 %v2768_v58, %v2769_v8  ;;  %v3038_v7 = vmin.f32 %v3036_v29, %v3037_v41 }
 0x7d9   :  { %v3010_v19 = vmin.f32 %v3008_v4, %v3009_v10  ;;  %v2997_v43 = vmin.f32 %v2995_v27, %v2996_v54  ;;  %v2799_v33 = vrot.slane %v2798_v14, 4  ;;  %v2812_v35 = vsel %vm1566_vm6, %v2659_v12, -inf  ;;  %v2337_v10 = vpop.permute.xlu1 %2336  ;;  %v2406_v12 = vpop.permute.xlu0 %2405 }
 0x7da   :  { %v2899_v48 = vsel %vm2479_vm3, %v10538_v38, 3e+38  ;;  %v3020_v30 = vsel %vm1566_vm6, %v2888_v42, inf  ;;  %v2771_v22 = vrot.slane %v2770_v1, 2  ;;  %v3039_v21 = vrot.slane %v3038_v7, 4 }
 0x7db   :  { %v3011_v20 = vrot.slane %v3010_v19, 2  ;;  %v2800_v24 = vmax.f32 %v2798_v14, %v2799_v33  ;;  %v2813_v46 = vmax.f32 %v2811_v23, %v2812_v35  ;;  %v3052_v29 = vsel %vm1566_vm6, %v2899_v48, inf }
 0x7dc   :  { %vm2488_vm8 = vcmp.gt.f32.partialorder %v2425_v6, 0.0  ;;  %v2758_v27 = vrot.slane %v2757_v45, 1  ;;  %v3065_v32 = vsel %vm1566_vm6, %v2903_v5, inf  ;;  %v2772_v58 = vmax.f32 %v2770_v1, %v2771_v22 }
 0x7dd   :  { %v3053_v4 = vmin.f32 %v3051_v40, %v3052_v29  ;;  %v2998_v50 = vrot.slane %v2997_v43, 1  ;;  %v3012_v54 = vmin.f32 %v3010_v19, %v3011_v20  ;;  %v2814_v8 = vrot.slane %v2813_v46, 4  ;;  %v2429_v6 = vpop.permute.xlu1 %2428 }
 0x7de   :  { %v2668_v42 = vsel %vm2488_vm8, %v10525_v62, -3e+38  ;;  %v12497_v33 = vmax.f32 %v12429_v55, %v2743_v39  ;;  %v3079_v11 = vmin.f32 %v3077_v16, %v3078_v63  ;;  %v3040_v34 = vmin.f32 %v3038_v7, %v3039_v21 }
 0x7df   :  { %v3054_v23 = vrot.slane %v3053_v4, 4  ;;  %v2984_v5 = vmin.f32 %v12442_v51, %v2983_v49  ;;  %v3021_v40 = vmin.f32 %v12389_v52, %v3020_v30  ;;  %v2801_v14 = vrot.slane %v2800_v24, 2 }
 0x7e0   :  { %v2840_v41 = vsel %vm1566_vm6, %v2668_v42, -inf  ;;  %v3066_v1 = vmin.f32 %v12396_v37, %v3065_v32  ;;  %v2773_v19 = vrot.slane %v2772_v58, 1  ;;  %v2815_v35 = vmax.f32 %v2813_v46, %v2814_v8 }
 0x7e1   :  { %v2908_v55 = vsel %vm2488_vm8, %v10525_v62, 3e+38  ;;  %v12508_v39 = vmax.f32 %v2757_v45, %v2758_v27  ;;  %v2999_v28 = vmin.f32 %v2997_v43, %v2998_v50  ;;  %v3013_v56 = vrot.slane %v3012_v54, 1 }
 0x7e2   :  { %v2841_v16 = vmax.f32 %v12421_v61, %v2840_v41  ;;  %v3041_v51 = vrot.slane %v3040_v34, 2  ;;  %v3055_v49 = vmin.f32 %v3053_v4, %v3054_v23  ;;  %vm2469_vm1 = vcmp.gt.f32.partialorder %v2337_v10, 0.0 }
 0x7e3   :  { %vm2484_vm9 = vcmp.gt.f32.partialorder %v2406_v12, 0.0  ;;  %v12511_v52 = vmax.f32 %v2800_v24, %v2801_v14  ;;  %v3080_v63 = vsel %vm1566_vm6, %v2908_v55, inf  ;;  %v2649_v37 = vsel %vm2469_vm1, %v10538_v38, -3e+38 }
 0x7e4   :  { %v2889_v7 = vsel %vm2469_vm1, %v10538_v38, 3e+38  ;;  %v12516_v48 = vmax.f32 %v2772_v58, %v2773_v19  ;;  %v2816_v45 = vrot.slane %v2815_v35, 2  ;;  %v2782_v43 = vsel %vm1566_vm6, %v2649_v37, -inf }
 0x7e5   :  { %v3022_v61 = vsel %vm1566_vm6, %v2889_v7, inf  ;;  %v3014_v30 = vmin.f32 %v3012_v54, %v3013_v56  ;;  %v14257_v22 = vmax.f32 %v12316_v57, %v12445_v13  ;;  %v2664_v24 = vsel %vm2484_vm9, %v10538_v38, -3e+38 }
 0x7e6   :  { %v3023_v21 = vmin.f32 %v3021_v40, %v3022_v61  ;;  %v3056_v46 = vrot.slane %v3055_v49, 2  ;;  %v2827_v29 = vsel %vm1566_vm6, %v2664_v24, -inf  ;;  %v2904_v27 = vsel %vm2484_vm9, %v10538_v38, 3e+38 }
 0x7e7   :  { %v2783_v20 = vmax.f32 %v14257_v22, %v2782_v43  ;;  %vm2489_vm4 = vcmp.gt.f32.partialorder %v2429_v6, 0.0  ;;  %v3081_v32 = vmin.f32 %v3079_v11, %v3080_v63  ;;  %v14258_v50 = vmax.f32 %v12342_v18, %v12455_v47 }
 0x7e8   :  { %v3024_v4 = vrot.slane %v3023_v21, 4  ;;  %v2817_v57 = vmax.f32 %v2815_v35, %v2816_v45  ;;  %v3067_v13 = vsel %vm1566_vm6, %v2904_v27, inf  ;;  %v2669_v8 = vsel %vm2489_vm4, %v10538_v38, -3e+38 }
 0x7e9   :  { %v2784_v58 = vrot.slane %v2783_v20, 4  ;;  %v2828_v54 = vmax.f32 %v14258_v50, %v2827_v29  ;;  %v2909_v42 = vsel %vm2489_vm4, %v10538_v38, 3e+38  ;;  %v3068_v14 = vmin.f32 %v3066_v1, %v3067_v13 }
 0x7ea   :  { %v3025_v23 = vmin.f32 %v3023_v21, %v3024_v4  ;;  %v3057_v41 = vmin.f32 %v3055_v49, %v3056_v46  ;;  %v2842_v11 = vsel %vm1566_vm6, %v2669_v8, -inf  ;;  %v3082_v12 = vsel %vm1566_vm6, %v2909_v42, inf }
 0x7eb   :  { %v2785_v10 = vmax.f32 %v2783_v20, %v2784_v58  ;;  %v2829_v40 = vrot.slane %v2828_v54, 4  ;;  %v3221_v18 = vsel %vm2097_vm5, %v12413_v26, %v12271_v0  ;;  %v3069_v55 = vrot.slane %v3068_v14, 4 }
 0x7ec   :  { %v3026_v19 = vrot.slane %v3025_v23, 2  ;;  %v2843_v56 = vmax.f32 %v2841_v16, %v2842_v11  ;;  %v3083_v63 = vmin.f32 %v3081_v32, %v3082_v12  ;;  %v3222_v37 = vsel %vm2099_vm0, %v2984_v5, %v3221_v18  ;;  %v3421_v7 = vpop.f32.mrf.mxu1  ;;  %v8861_v5 = vpop.f32.mrf.mxu0 }
 0x7ed   :  { %v2786_v47 = vrot.slane %v2785_v10, 2  ;;  %v2830_v35 = vmax.f32 %v2828_v54, %v2829_v40  ;;  %v3197_v1 = vsel %vm2097_vm5, %v12411_v25, %v12267_v53  ;;  %v3042_v49 = vmin.f32 %v3040_v34, %v3041_v51 }
 0x7ee   :  { %v3027_v6 = vmin.f32 %v3025_v23, %v3026_v19  ;;  %v3070_v43 = vmin.f32 %v3068_v14, %v3069_v55  ;;  %v2818_v61 = vrot.slane %v2817_v57, 1  ;;  %v2844_v22 = vrot.slane %v2843_v56, 4  ;;  %v8888_v20 = vpop.f32.mrf.mxu1  ;;  %v3170_v23 = vpop.f32.mrf.mxu0 }
 0x7ef   :  { %v2831_v45 = vrot.slane %v2830_v35, 2  ;;  %v3084_v0 = vrot.slane %v3083_v63, 4  ;;  %v3223_v26 = vsel %vm2101_vm2, %v2999_v28, %v3222_v37  ;;  %v2787_v21 = vmax.f32 %v2785_v10, %v2786_v47 }
 0x7f0   :  { %v3028_v16 = vrot.slane %v3027_v6, 1  ;;  %v3071_v46 = vrot.slane %v3070_v43, 2  ;;  %v3058_v29 = vrot.slane %v3057_v41, 1  ;;  %v2845_v27 = vmax.f32 %v2843_v56, %v2844_v22  ;;  %v12573_v22 = vld [vmem:[%s14097_s14] ss:$0 sm:$0xff] }
 0x7f1   :  { %v2832_v24 = vmax.f32 %v2830_v35, %v2831_v45  ;;  %v3085_v32 = vmin.f32 %v3083_v63, %v3084_v0  ;;  %v3224_v53 = vsel %vm2103_vm12, %v3014_v30, %v3223_v26  ;;  %v3198_v58 = vsel %vm2099_vm0, %v12497_v33, %v3197_v1  ;;  %v3350_v45 = vld [vmem:[%s14095_s12] sm:$0x1] }
 0x7f2   :  { %v3072_v34 = vmin.f32 %v3070_v43, %v3071_v46  ;;  %v3029_v51 = vmin.f32 %v3027_v6, %v3028_v16  ;;  %v2803_v4 = vrot.slane %v12511_v52, 1  ;;  %v3043_v28 = vrot.slane %v3042_v49, 1 }
 0x7f3   :  { %v2833_v25 = vrot.slane %v2832_v24, 1  ;;  %v2846_v50 = vrot.slane %v2845_v27, 2  ;;  %v3086_v54 = vrot.slane %v3085_v32, 2  ;;  %v2788_v13 = vrot.slane %v2787_v21, 1 }
 0x7f4   :  { %v3073_v8 = vrot.slane %v3072_v34, 1  ;;  %v3225_v42 = vsel %vm2105_vm14, %v3029_v51, %v3224_v53  ;;  %v3199_v10 = vsel %vm2101_vm2, %v12508_v39, %v3198_v58  ;;  %v2819_v30 = vmax.f32 %v2817_v57, %v2818_v61  ;;  %v8915_v61 = vpop.f32.mrf.mxu0 }
 0x7f5   :  { %v3059_v40 = vmin.f32 %v3057_v41, %v3058_v29  ;;  %v2847_v14 = vmax.f32 %v2845_v27, %v2846_v50  ;;  %v3087_v11 = vmin.f32 %v3085_v32, %v3086_v54  ;;  %3229 = vrot.lane.b32.xlu0 %v3225_v42, %s9669_s6  ;;  %v2834_v33 = vmax.f32 %v2832_v24, %v2833_v25  ;;  %v3750_v42 = vld [vmem:[%s14100_s17 + $0x58] sm:$0xff] }
 0x7f6   :  { %v3074_v12 = vmin.f32 %v3072_v34, %v3073_v8  ;;  %v3180_v18 = vmul.f32 %v12110_v9, %v3170_v23  ;;  %v2804_v47 = vmax.f32 %v12511_v52, %v2803_v4  ;;  %v3044_v19 = vmin.f32 %v3042_v49, %v3043_v28  ;;  %8944 = vmatpush3.msra.mxu0 %v3750_v42  ;;  %v3748_v23 = vld [vmem:[%s14100_s17 + $0x48] sm:$0xff] }
 0x7f7   :  { %v2848_v35 = vrot.slane %v2847_v14, 1  ;;  %v3088_v55 = vrot.slane %v3087_v11, 1  ;;  %v3200_v56 = vsel %vm2103_vm12, %v12516_v48, %v3199_v10  ;;  %v2789_v39 = vmax.f32 %v2787_v21, %v2788_v13  ;;  %v3519_v21 = vpop.f32.mrf.mxu0  ;;  %v3749_v10 = vld [vmem:[%s14100_s17 + $0x50] sm:$0xff]  ;;  %8945 = vmatprep.subr.mxu0 %v14227_v3 }
 0x7f8   :  { %v3226_v41 = vsel %vm2093_vm13, %v3059_v40, %v3044_v19  ;;  %v3202_v63 = vsel %vm2093_vm13, %v2819_v30, %v2804_v47  ;;  %v3182_v48 = vmul.f32 %v12177_v59, %v8861_v5  ;;  %v3422_v43 = vadd.f32 %v3421_v7, %v3350_v45  ;;  %8946 = vmatpush3.msra.mxu0 %v3749_v10  ;;  %v3747_v30 = vld [vmem:[%s14100_s17 + $0x40] sm:$0xff]  ;;  %v3746_v40 = vld [vmem:[%s14100_s17 + $0x38] sm:$0xff]  ;;  %v3740_v47 = vld [vmem:[%s14100_s17 + $0x8] sm:$0xff] }
 0x7f9   :  { %3237 = vrot.lane.b32.xlu0 %v3180_v18, %s9670_s26  ;;  %v3089_v57 = vmin.f32 %v3087_v11, %v3088_v55  ;;  %v2849_v37 = vmax.f32 %v2847_v14, %v2848_v35  ;;  %v3227_v1 = vsel %vm2095_vm11, %v3074_v12, %v3226_v41  ;;  %v3201_v9 = vsel %vm2105_vm14, %v2789_v39, %v3200_v56  ;;  %v3745_v14 = vld [vmem:[%s14100_s17 + $0x30] sm:$0xff]  ;;  %v3744_v11 = vld [vmem:[%s14100_s17 + $0x28] sm:$0xff]  ;;  %v3742_v12 = vld [vmem:[%s14100_s17 + $0x18] sm:$0xff] }
 0x7fa   :  { %v3203_v52 = vsel %vm2095_vm11, %v2834_v33, %v3202_v63  ;;  %v12576_v0 = vrot.slane %v3422_v43, %v14239_v44  ;;  %v14259_v26 = vlaneseq  ;;  %v3525_v59 = vadd.f32 %v8915_v61, %v12573_v22  ;;  %8947 = vmatprep.subr.mxu0 %v14227_v3  ;;  %v3743_v33 = vld [vmem:[%s14100_s17 + $0x20] sm:$0xff]  ;;  %v3741_v18 = vld [vmem:[%s14100_s17 + $0x10] sm:$0xff]  ;;  %v12673_v35 = vld [vmem:[%s14098_s15 + $0x58] sm:$0xff] }
 0x7fb   :  { %v3228_v49 = vsel %vm2097_vm5, %v3089_v57, %v3227_v1  ;;  %v3204_v6 = vsel %vm2097_vm5, %v2849_v37, %v3203_v52  ;;  %v3520_v7 = vadd.f32 %v12573_v22, %v3519_v21  ;;  %vm3635_vm11 = vcmask 781312   ;;  %8948 = vmatpush3.msra.mxu0 %v3748_v23  ;;  %v3739_v19 = vld [vmem:[%s14100_s17] sm:$0xff] }
 0x7fc   :  { %3231 = vrot.lane.b32.xlu1 %v3228_v49, %s9669_s6  ;;  %v12579_v20 = vand.u32 127, %v14259_v26  ;;  %v3627_v16 = vmul.f32 %v12576_v0, %v3525_v59  ;;  %vm14260_vm5 = vcmask 523264   ;;  %8949 = vmatprep.subr.mxu0 %v14227_v3  ;;  %vm3675_vm2 = vcmask 1043456  }
 0x7fd   :  { %v3626_v46 = vmul.f32 %v12576_v0, %v3520_v7  ;;  %vm14261_vm0 = vmmov %vm14260_vm5  ;;  %8950 = vmatpush3.msra.mxu0 %v3747_v30 }
 0x7fe   :  { %vm3427_vm13 = vcmp.lt.s32.totalorder %v12579_v20, 48  ;;  %8951 = vmatprep.subr.mxu0 %v14227_v3  ;;  %v9177_v20 = vld [vmem:[%s14102_s19 + $0x1e0] ss:$16 sps:$4 sm:$0xff]  }
 0x7ff   :  { %v3631_v24 = vsel %vm3427_vm13, %v3627_v16, 0.0  ;;  %v3630_v29 = vsel %vm3427_vm13, %v3626_v46, 0.0  ;;  %v3641_v32 = vsel %vm3427_vm13, 0.0, %v3626_v46  ;;  %v3642_v25 = vsel %vm3427_vm13, 0.0, %v3627_v16  ;;  %8952 = vmatpush3.msra.mxu0 %v3746_v40 }
 0x800   :  { %3239 = vrot.lane.b32.xlu1 %v3182_v48, %s9670_s26  ;;  %v3636_v5 = vsel %vm3635_vm11, %v3631_v24, 0.0  ;;  %v3632_v27 = vsel %vm3351_vm7, %v3630_v29, 0.0  ;;  %v3643_v53 = vsel %vm3351_vm7, %v3641_v32, 0.0  ;;  %v3646_v34 = vsel %vm3635_vm11, %v3642_v25, 0.0  ;;  %8953 = vmatprep.subr.mxu0 %v14227_v3 }
 0x801   :  { %8954 = vmatpush3.msra.mxu0 %v3745_v14 }
 0x802   :  { %8955 = vmatprep.subr.mxu0 %v14227_v3 }
 0x803   :  { %8956 = vmatpush3.msra.mxu0 %v3744_v11 }
 0x804   :  { %8957 = vmatprep.subr.mxu0 %v14227_v3 }
 0x805   :  { %8958 = vmatpush3.msra.mxu0 %v3743_v33 }
 0x806   :  { %8959 = vmatprep.subr.mxu0 %v14227_v3 }
 0x807   :  { %8960 = vmatpush3.msra.mxu0 %v3742_v12 }
 0x808   :  { %8961 = vmatprep.subr.mxu0 %v14227_v3 }
 0x809   :  { %8962 = vmatpush3.msra.mxu0 %v3741_v18 }
 0x80a   :  { %8963 = vmatprep.subr.mxu0 %v14227_v3 }
 0x80b   :  { %8964 = vmatpush3.msra.mxu0 %v3740_v47 }
 0x80c   :  { %8965 = vmatprep.subr.mxu0 %v14227_v3 }
 0x80d   :  { %8966 = vmatpush3.msra.mxu0 %v3739_v19 }
 0x80e   :  { %8997 = vmatprep.subr.mxu0 %v12673_v35 }
 0x818   :  { %3637 = vadd.xlane.f32.xlu0 %v3636_v5 }
 0x81c   :  { %3633 = vadd.xlane.f32.xlu0 %v3632_v27 }
 0x820   :  { %3644 = vadd.xlane.f32.xlu0 %v3643_v53 }
 0x824   :  { %3647 = vadd.xlane.f32.xlu1 %v3646_v34 }
 0x867   :  { %v3230_v51 = vpop.permute.xlu0 %3229 }
 0x868   :  { %v3243_v58 = vsel %vm1566_vm6, %v3201_v9, %v3230_v51 }
 0x86b   :  { %v3238_v4 = vpop.permute.xlu0 %3237 }
 0x86c   :  { %v12600_v28 = vsel %vm14260_vm5, %v3243_v58, %v3238_v4 }
 0x86d   :  { %8994 = vmatprep.mubr.msk.f32.mxu1 %vm3351_vm7, %v12600_v28 }
 0x86e   :  { %v3232_v50 = vpop.permute.xlu1 %3231 }
 0x86f   :  { %v3244_v54 = vsel %vm1566_vm6, %v3204_v6, %v3232_v50 }
 0x872   :  { %v3240_v13 = vpop.permute.xlu1 %3239 }
 0x873   :  { %v12606_v8 = vsel %vm14261_vm0, %v3244_v54, %v3240_v13 }
 0x874   :  { %8995 = vmatmul.mubr.msk.f32.vlgmr.msra.gmra.mxu1 %vm3351_vm7, %v12606_v8 }
 0x875   :  { %9048 = vmatprep.mubr.msk.f32.mxu1 %vm14192_vm15, %v14227_v3  ;;  %9025 = vmatpush3.msra.mxu1 %v3750_v42 }
 0x876   :  { %9026 = vmatprep.subr.mxu1 %v14227_v3 }
 0x877   :  { %9027 = vmatpush3.msra.mxu1 %v3749_v10 }
 0x878   :  { %9028 = vmatprep.subr.mxu1 %v14227_v3 }
 0x879   :  { %9029 = vmatpush3.msra.mxu1 %v3748_v23 }
 0x87a   :  { %9030 = vmatprep.subr.mxu1 %v14227_v3 }
 0x87b   :  { %9031 = vmatpush3.msra.mxu1 %v3747_v30 }
 0x87c   :  { %9032 = vmatprep.subr.mxu1 %v14227_v3 }
 0x87d   :  { %9033 = vmatpush3.msra.mxu1 %v3746_v40 }
 0x87e   :  { %9034 = vmatprep.subr.mxu1 %v14227_v3 }
 0x87f   :  { %9035 = vmatpush3.msra.mxu1 %v3745_v14 }
 0x880   :  { %9036 = vmatprep.subr.mxu1 %v14227_v3 }
 0x881   :  { %9037 = vmatpush3.msra.mxu1 %v3744_v11 }
 0x882   :  { %9038 = vmatprep.subr.mxu1 %v14227_v3 }
 0x883   :  { %9039 = vmatpush3.msra.mxu1 %v3743_v33 }
 0x884   :  { %9040 = vmatprep.subr.mxu1 %v14227_v3 }
 0x885   :  { %9041 = vmatpush3.msra.mxu1 %v3742_v12 }
 0x886   :  { %9042 = vmatprep.subr.mxu1 %v14227_v3 }
 0x887   :  { %9043 = vmatpush3.msra.mxu1 %v3741_v18 }
 0x888   :  { %9044 = vmatprep.subr.mxu1 %v14227_v3 }
 0x889   :  { %9045 = vmatpush3.msra.mxu1 %v3740_v47 }
 0x88a   :  { %9046 = vmatprep.subr.mxu1 %v14227_v3 }
 0x88b   :  { %9047 = vmatpush3.msra.mxu1 %v3739_v19 }
 0x8a1   :  { %v3638_v55 = vpop.xlane.xlu0 %3637 }
 0x8a2   :  { %v7694_v56 = vmul.f32 -0.14433756, %v3638_v55 }
 0x8a4   :  { %v3655_v39 = vmul.f32 1.442695, %v7694_v56 }
 0x8a5   :  { %v3634_v57 = vpop.xlane.xlu0 %3633 }
 0x8a6   :  { %9567 = vpow2.f32 %v3655_v39  ;;  %v7693_v41 = vmul.f32 -0.14433756, %v3634_v57 }
 0x8a8   :  { %v3653_v63 = vmul.f32 1.442695, %v7693_v41 }
 0x8a9   :  { %v3645_v37 = vpop.xlane.xlu0 %3644 }
 0x8aa   :  { %9569 = vpow2.f32 %v3653_v63  ;;  %v7695_v1 = vmul.f32 -0.14433756, %v3645_v37 }
 0x8ac   :  { %v3665_v9 = vmul.f32 1.442695, %v7695_v1 }
 0x8ad   :  { %v3648_v52 = vpop.xlane.xlu1 %3647 }
 0x8ae   :  { %v7696_v49 = vmul.f32 -0.14433756, %v3648_v52  ;;  %9571 = vpow2.f32 %v3665_v9 }
 0x8b0   :  { %v3667_v6 = vmul.f32 1.442695, %v7696_v49 }
 0x8b2   :  { %9573 = vpow2.f32 %v3667_v6 }
 0x8b3   :  { %v9568_v48 = vpop.eup %9567 }
 0x8b4   :  { %v3658_v45 = vadd.f32 1.0, %v9568_v48 }
 0x8b6   :  { %9575 = vrcp.f32 %v3658_v45 }
 0x8b7   :  { %v9570_v43 = vpop.eup %9569 }
 0x8b8   :  { %v3657_v61 = vadd.f32 1.0, %v9570_v43 }
 0x8ba   :  { %9577 = vrcp.f32 %v3657_v61 }
 0x8bb   :  { %v9572_v26 = vpop.eup %9571 }
 0x8bc   :  { %v3669_v21 = vadd.f32 1.0, %v9572_v26 }
 0x8bf   :  { %v9574_v59 = vpop.eup %9573 }
 0x8c0   :  { %v3670_v16 = vadd.f32 1.0, %v9574_v59 }
 0x8c2   :  { %9579 = vrcp.f32 %v3670_v16 }
 0x8c3   :  { %9581 = vrcp.f32 %v3669_v21  ;;  %v9576_v7 = vpop.eup %9575 }
 0x8c4   :  { %v3676_v46 = vsel %vm3675_vm2, %v9576_v7, -inf }
 0x8c7   :  { %v9578_v24 = vpop.eup %9577 }
 0x8c8   :  { %v3677_v5 = vmax.f32 %v9578_v24, %v3676_v46  ;;  %v12683_v46 = vld [vmem:[%s14099_s16] ss:$0 sm:$0xff] }
 0x8ca   :  { %v3678_v29 = vrot.slane %v3677_v5, 4 }
 0x8cc   :  { %v3679_v27 = vmax.f32 %v3677_v5, %v3678_v29 }
 0x8ce   :  { %v3680_v32 = vrot.slane %v3679_v27, 2 }
 0x8cf   :  { %v9580_v53 = vpop.eup %9579 }
 0x8d0   :  { %v9582_v25 = vpop.eup %9581  ;;  %v3681_v34 = vmax.f32 %v3679_v27, %v3680_v32  ;;  %v3701_v51 = vsel %vm3675_vm2, %v9580_v53, -inf }
 0x8d1   :  { %v3702_v58 = vmax.f32 %v9582_v25, %v3701_v51 }
 0x8d2   :  { %v3682_v4 = vrot.slane %v3681_v34, 1 }
 0x8d3   :  { %v3703_v50 = vrot.slane %v3702_v58, 4 }
 0x8d4   :  { %v3683_v54 = vmax.f32 %v3681_v34, %v3682_v4 }
 0x8d5   :  { %v3704_v13 = vmax.f32 %v3702_v58, %v3703_v50 }
 0x8d6   :  { %v3684_v42 = vsub.f32 %v9578_v24, %v3683_v54  ;;  %v3685_v10 = vsub.f32 %v9576_v7, %v3683_v54  ;;  %v8942_v7 = vpop.f32.mrf.mxu1 }
 0x8d7   :  { %v3705_v23 = vrot.slane %v3704_v13, 2  ;;  %v3619_v34 = vadd.f32 %v8942_v7, %v12683_v46  ;;  %v3318_v7 = vsel %vm1566_vm6, %v10538_v38, 0.0 }
 0x8d8   :  { %v3686_v30 = vmul.f32 1.442695, %v3684_v42  ;;  %v3688_v40 = vmul.f32 1.442695, %v3685_v10  ;;  %v3613_v5 = vpop.f32.mrf.mxu1 }
 0x8d9   :  { %v3706_v14 = vmax.f32 %v3704_v13, %v3705_v23  ;;  %v3614_v51 = vadd.f32 %v12683_v46, %v3613_v5 }
 0x8da   :  { %9583 = vpow2.f32 %v3686_v30 }
 0x8db   :  { %9585 = vpow2.f32 %v3688_v40  ;;  %v3707_v11 = vrot.slane %v3706_v14, 1 }
 0x8dd   :  { %v3708_v33 = vmax.f32 %v3706_v14, %v3707_v11 }
 0x8df   :  { %v3709_v12 = vsub.f32 %v9582_v25, %v3708_v33  ;;  %v3710_v18 = vsub.f32 %v9580_v53, %v3708_v33 }
 0x8e1   :  { %v3711_v47 = vmul.f32 1.442695, %v3709_v12  ;;  %v3713_v19 = vmul.f32 1.442695, %v3710_v18  ;;  %v9634_v12 = vld [vmem:[%s14098_s15 + $0x50] sm:$0xff]  ;;  %v9635_v18 = vld [vmem:[%s14098_s15 + $0x48] sm:$0xff] }
 0x8e3   :  { %9587 = vpow2.f32 %v3711_v47  ;;  %v9636_v47 = vld [vmem:[%s14098_s15 + $0x40] sm:$0xff] }
 0x8e4   :  { %9589 = vpow2.f32 %v3713_v19  ;;  %v9637_v19 = vld [vmem:[%s14098_s15 + $0x38] sm:$0xff] }
 0x8e7   :  { %v9584_v55 = vpop.eup %9583 }
 0x8e8   :  { %v9586_v56 = vpop.eup %9585 }
 0x8e9   :  { %v3690_v39 = vsel %vm3675_vm2, %v9586_v56, 0.0 }
 0x8ea   :  { %v3691_v57 = vadd.f32 %v9584_v55, %v3690_v39  ;;  %v3296_v39 = vsel %vm1566_vm6, %v10382_v36, inf }
 0x8ec   :  { %v3692_v41 = vrot.slane %v3691_v57, 4 }
 0x8ee   :  { %v3693_v63 = vadd.f32 %v3692_v41, %v3691_v57  ;;  %v3300_v57 = vsel %vm1566_vm6, %v10538_v38, inf  ;;  %v3314_v41 = vsel %vm1566_vm6, %v10570_v15, 0.0 }
 0x8f0   :  { %v9588_v37 = vpop.eup %9587  ;;  %v3694_v1 = vrot.slane %v3693_v63, 2 }
 0x8f1   :  { %v9590_v9 = vpop.eup %9589 }
 0x8f2   :  { %v3715_v52 = vsel %vm3675_vm2, %v9590_v9, 0.0  ;;  %v3695_v49 = vadd.f32 %v3694_v1, %v3693_v63  ;;  %v9639_v63 = vld [vmem:[%s14098_s15 + $0x28] sm:$0xff] }
 0x8f3   :  { %v3716_v6 = vadd.f32 %v9588_v37, %v3715_v52  ;;  %v3297_v52 = vsel %vm1566_vm6, %v10480_v31, inf }
 0x8f4   :  { %v3696_v45 = vrot.slane %v3695_v49, 1 }
 0x8f5   :  { %v3717_v48 = vrot.slane %v3716_v6, 4 }
 0x8f6   :  { %v3697_v26 = vadd.f32 %v3696_v45, %v3695_v49  ;;  %v3298_v49 = vsel %vm1566_vm6, %v10570_v15, inf  ;;  %v9641_v45 = vld [vmem:[%s14098_s15 + $0x18] sm:$0xff] }
 0x8f7   :  { %v3718_v43 = vadd.f32 %v3717_v48, %v3716_v6  ;;  %v3299_v6 = vsel %vm1566_vm6, %v10525_v62, inf  ;;  %v3316_v48 = vsel %vm1566_vm6, %v10525_v62, 0.0 }
 0x8f8   :  { %9591 = vrcp.f32 %v3697_v26  ;;  %v3303_v26 = vmin.f32 %v3298_v49, %v3299_v6  ;;  %v12807_v49 = vpack.c.bf16 %v11706_v17, %v11706_v17 }
 0x8f9   :  { %v3719_v61 = vrot.slane %v3718_v43, 2 }
 0x8fb   :  { %v3720_v59 = vadd.f32 %v3719_v61, %v3718_v43 }
 0x8fd   :  { %v3721_v21 = vrot.slane %v3720_v59, 1 }
 0x8ff   :  { %v3722_v16 = vadd.f32 %v3721_v21, %v3720_v59  ;;  %v9642_v21 = vld [vmem:[%s14098_s15 + $0x10] sm:$0xff] }
 0x901   :  { %9593 = vrcp.f32 %v3722_v16 }
 0x905   :  { %v9592_v24 = vpop.eup %9591 }
 0x906   :  { %v3699_v27 = vmul.f32 %v9592_v24, %v9584_v55  ;;  %v3700_v32 = vmul.f32 %v9592_v24, %v9586_v56  ;;  %v9638_v56 = vld [vmem:[%s14098_s15 + $0x30] sm:$0xff] }
 0x90e   :  { %v9594_v29 = vpop.eup %9593 }
 0x90f   :  { %v3724_v53 = vmul.f32 %v9594_v29, %v9588_v37  ;;  %v3725_v25 = vmul.f32 %v9594_v29, %v9590_v9  ;;  %v3301_v37 = vmin.f32 %v3296_v39, %v3300_v57  ;;  %v9640_v9 = vld [vmem:[%s14098_s15 + $0x20] sm:$0xff]  ;;  %v9643_v29 = vld [vmem:[%s14098_s15 + $0x8] sm:$0xff] }
 0x911   :  { %v3726_v58 = vsel %vm3427_vm13, %v3699_v27, %v3724_v53  ;;  %v3727_v4 = vsel %vm3427_vm13, %v3700_v32, %v3725_v25  ;;  %v3302_v61 = vmin.f32 %v3301_v37, %v3297_v52  ;;  %v9095_v32 = vld [vmem:[%s14102_s19 + $0xa4] ss:$16 sps:$4 sm:$0xff]   ;;  %v9093_v53 = vld [vmem:[%s14102_s19 + $0xa0] ss:$16 sps:$4 sm:$0xff]  }
 0x912   :  { %v3728_v50 = vmul.f32 %v3726_v58, %v3614_v51  ;;  %v3729_v54 = vmul.f32 %v3727_v4, %v3619_v34  ;;  %v9644_v58 = vld [vmem:[%s14098_s15] sm:$0xff] }
 0x913   :  { %v3304_v25 = vmin.f32 %v3302_v61, %v3303_v26  ;;  %v9114_v61 = vld [vmem:[%s14102_s19 + $0x140] ss:$16 sps:$4 sm:$0xff]   ;;  %v9119_v26 = vld [vmem:[%s14102_s19 + $0x124] ss:$16 sps:$4 sm:$0xff]  }
 0x914   :  { %v3730_v13 = vsel %vm3351_vm7, %v3728_v50, 0.0  ;;  %v3731_v42 = vsel %vm3635_vm11, %v3729_v54, 0.0  ;;  %v9098_v50 = vld [vmem:[%s14102_s19 + $0x84] ss:$16 sps:$4 sm:$0xff]  }
 0x915   :  { %v3732_v10 = vadd.f32 %v3731_v42, %v3730_v13  ;;  %v9096_v13 = vld [vmem:[%s14102_s19 + $0x80] ss:$16 sps:$4 sm:$0xff]  }
 0x917   :  { %v3733_v23 = vrot.slane %v3732_v10, 4 }
 0x919   :  { %v3734_v30 = vadd.f32 %v3733_v23, %v3732_v10  ;;  %v3305_v10 = vrot.slane %v3304_v25, 4 }
 0x91b   :  { %v3735_v40 = vrot.slane %v3734_v30, 2 }
 0x91d   :  { %v3736_v14 = vadd.f32 %v3735_v40, %v3734_v30  ;;  %v9671_v40 = vmov 0  }
 0x91f   :  { %v3737_v11 = vrot.slane %v3736_v14, 1 }
 0x921   :  { %v3738_v33 = vadd.f32 %v3737_v11, %v3736_v14 }
 0x923   :  { %8968 = vmatmul.mubr.msk.f32.vlgmr.msra.gmra.mxu0 %vm3351_vm7, %v3738_v33  ;;  %v9099_v33 = vld [vmem:[%s14102_s19 + $0x60] ss:$16 sps:$4 sm:$0xff]  }
 0x924   :  { %8998 = vmatpush3.msra.mxu0 %v12673_v35  ;;  %9021 = vmatprep.mubr.msk.f32.mxu0 %vm3351_vm7, %v12600_v28  ;;  %v3311_v28 = vsel %vm1566_vm6, %v10382_v36, 0.0  ;;  %v3312_v35 = vsel %vm1566_vm6, %v10480_v31, 0.0 }
 0x925   :  { %8999 = vmatprep.subr.mxu0 %v9634_v12  ;;  %v3313_v55 = vadd.f32 %v3312_v35, %v3311_v28  ;;  %v9102_v28 = vld [vmem:[%s14102_s19 + $0x40] ss:$16 sps:$4 sm:$0xff]  }
 0x926   :  { %9000 = vmatpush3.msra.mxu0 %v9634_v12  ;;  %v3306_v12 = vmin.f32 %v3304_v25, %v3305_v10 }
 0x927   :  { %9001 = vmatprep.subr.mxu0 %v9635_v18  ;;  %v3315_v1 = vadd.f32 %v3314_v41, %v3313_v55  ;;  %v9107_v55 = vld [vmem:[%s14102_s19 + $0x24] ss:$16 sps:$4 sm:$0xff]  }
 0x928   :  { %9002 = vmatpush3.msra.mxu0 %v9635_v18  ;;  %v3307_v35 = vrot.slane %v3306_v12, 2  ;;  %v9110_v41 = vld [vmem:[%s14102_s19 + $0x4] ss:$16 sps:$4 sm:$0xff]  }
 0x929   :  { %9003 = vmatprep.subr.mxu0 %v9636_v47  ;;  %v3317_v59 = vadd.f32 %v3316_v48, %v3315_v1  ;;  %v9113_v48 = vld [vmem:[%s14102_s19 + $0x164] ss:$16 sps:$4 sm:$0xff]  }
 0x92a   :  { %9004 = vmatpush3.msra.mxu0 %v9636_v47  ;;  %v9104_v47 = vld [vmem:[%s14102_s19 + $0x44] ss:$16 sps:$4 sm:$0xff]   ;;  %v3308_v39 = vmin.f32 %v3306_v12, %v3307_v35  ;;  %v12856_v12 = vld [vmem:[%s14101_s18] sm:$0x1] }
 0x92b   :  { %9005 = vmatprep.subr.mxu0 %v9637_v19  ;;  %v3319_v34 = vadd.f32 %v3318_v7, %v3317_v59  ;;  %v9117_v59 = vld [vmem:[%s14102_s19 + $0x120] ss:$16 sps:$4 sm:$0xff]   ;;  %v9125_v7 = vld [vmem:[%s14102_s19 + $0xe4] ss:$16 sps:$4 sm:$0xff]  }
 0x92c   :  { %9006 = vmatpush3.msra.mxu0 %v9637_v19  ;;  %v3309_v37 = vrot.slane %v3308_v39, 1 }
 0x92d   :  { %9007 = vmatprep.subr.mxu0 %v9638_v56  ;;  %v3320_v23 = vrot.slane %v3319_v34, 4 }
 0x92e   :  { %9008 = vmatpush3.msra.mxu0 %v9638_v56  ;;  %v9105_v56 = vld [vmem:[%s14102_s19 + $0x20] ss:$16 sps:$4 sm:$0xff]  }
 0x92f   :  { %9009 = vmatprep.subr.mxu0 %v9639_v63  ;;  %v3321_v18 = vadd.f32 %v3320_v23, %v3319_v34 }
 0x930   :  { %9010 = vmatpush3.msra.mxu0 %v9639_v63  ;;  %v9108_v63 = vld [vmem:[%s14102_s19] ss:$16 sps:$4 sm:$0xff]  }
 0x931   :  { %9011 = vmatprep.subr.mxu0 %v9640_v9  ;;  %v3322_v19 = vrot.slane %v3321_v18, 2 }
 0x932   :  { %9012 = vmatpush3.msra.mxu0 %v9640_v9  ;;  %v3310_v9 = vmin.f32 %v3308_v39, %v3309_v37 }
 0x933   :  { %9013 = vmatprep.subr.mxu0 %v9641_v45  ;;  %v3323_v57 = vadd.f32 %v3322_v19, %v3321_v18 }
 0x934   :  { %9014 = vmatpush3.msra.mxu0 %v9641_v45  ;;  %v8996_v43 = vpop.f32.mrf.mxu1  ;;  %v9111_v45 = vld [vmem:[%s14102_s19 + $0x160] ss:$16 sps:$4 sm:$0xff]  }
 0x935   :  { %9015 = vmatprep.subr.mxu0 %v9642_v21  ;;  %v3903_v16 = vadd.f32 %v8996_v43, %v12573_v22  ;;  %v3324_v1 = vrot.slane %v3323_v57, 1  ;;  %v9116_v43 = vld [vmem:[%s14102_s19 + $0x144] ss:$16 sps:$4 sm:$0xff]  }
 0x936   :  { %9016 = vmatpush3.msra.mxu0 %v9642_v21  ;;  %v3897_v24 = vpop.f32.mrf.mxu1  ;;  %v9122_v21 = vld [vmem:[%s14102_s19 + $0x104] ss:$16 sps:$4 sm:$0xff]  }
 0x937   :  { %v3982_v5 = vmul.f32 %v3903_v16, %v12576_v0  ;;  %9017 = vmatprep.subr.mxu0 %v9643_v29  ;;  %v3898_v27 = vadd.f32 %v12573_v22, %v3897_v24  ;;  %v3325_v52 = vadd.f32 %v3324_v1, %v3323_v57  ;;  %v9120_v16 = vld [vmem:[%s14102_s19 + $0x100] ss:$16 sps:$4 sm:$0xff]  }
 0x938   :  { %9018 = vmatpush3.msra.mxu0 %v9643_v29  ;;  %v9123_v24 = vld [vmem:[%s14102_s19 + $0xe0] ss:$16 sps:$4 sm:$0xff]  }
 0x939   :  { %v3981_v51 = vmul.f32 %v3898_v27, %v12576_v0  ;;  %9019 = vmatprep.subr.mxu0 %v9644_v58  ;;  %v3994_v22 = vsel %vm3427_vm13, 0.0, %v3982_v5  ;;  %v3984_v4 = vsel %vm3427_vm13, %v3982_v5, 0.0  ;;  %v3327_v6 = vmul.f32 0.025, %v3325_v52  ;;  %v9128_v5 = vld [vmem:[%s14102_s19 + $0xc4] ss:$16 sps:$4 sm:$0xff]  }
 0x93a   :  { %9020 = vmatpush3.msra.mxu0 %v9644_v58  ;;  %v3998_v54 = vsel %vm3635_vm11, %v3994_v22, 0.0  ;;  %v3988_v0 = vsel %vm3635_vm11, %v3984_v4, 0.0  ;;  %v9126_v29 = vld [vmem:[%s14102_s19 + $0xc0] ss:$16 sps:$4 sm:$0xff]   ;;  %v9131_v27 = vld [vmem:[%s14102_s19 + $0xac] ss:$16 sps:$4 sm:$0xff]  }
 0x93b   :  { %9022 = vmatmul.mubr.msk.f32.vlgmr.msra.gmra.mxu0 %vm3351_vm7, %v12606_v8  ;;  %4332 = vmatprep.subr.bf16.mxu0 %v9095_v32  ;;  %v3993_v42 = vsel %vm3427_vm13, 0.0, %v3981_v51  ;;  %v3983_v30 = vsel %vm3427_vm13, %v3981_v51, 0.0  ;;  %v9101_v8 = vld [vmem:[%s14102_s19 + $0x64] ss:$16 sps:$4 sm:$0xff]  }
 0x93c   :  { %4333 = vmatpush1.bf16.msra.mxu0 %v9093_v53  ;;  %3999 = vadd.xlane.f32.xlu0 %v3998_v54  ;;  %v3995_v14 = vsel %vm3351_vm7, %v3993_v42, 0.0  ;;  %v3985_v11 = vsel %vm3351_vm7, %v3983_v30, 0.0 }
 0x93d   :  { %3989 = vadd.xlane.f32.xlu1 %v3988_v0  ;;  %4334 = vmatprep.subr.bf16.mxu0 %v9098_v50 }
 0x93e   :  { %4360 = vmatprep.mubr.bf16.mxu0 %v9671_v40  ;;  %4373 = vmatprep.subr.bf16.mxu1 %v9131_v27 }
 0x940   :  { %4335 = vmatpush1.bf16.msra.mxu0 %v9096_v13  ;;  %3996 = vadd.xlane.f32.xlu0 %v3995_v14 }
 0x941   :  { %3986 = vadd.xlane.f32.xlu1 %v3985_v11  ;;  %4336 = vmatprep.subr.bf16.mxu0 %v9101_v8 }
 0x944   :  { %4337 = vmatpush1.bf16.msra.mxu0 %v9099_v33 }
 0x945   :  { %4338 = vmatprep.subr.bf16.mxu0 %v9104_v47 }
 0x948   :  { %4339 = vmatpush1.bf16.msra.mxu0 %v9102_v28 }
 0x949   :  { %4340 = vmatprep.subr.bf16.mxu0 %v9107_v55 }
 0x94c   :  { %4341 = vmatpush1.bf16.msra.mxu0 %v9105_v56 }
 0x94d   :  { %4342 = vmatprep.subr.bf16.mxu0 %v9110_v41 }
 0x950   :  { %4343 = vmatpush1.bf16.msra.mxu0 %v9108_v63 }
 0x951   :  { %4593 = vmatprep.subr.bf16.mxu0 %v9113_v48 }
 0x952   :  { %3329 = vrot.lane.b32.xlu1 %v3310_v9, %s9669_s6 }
 0x953   :  { %7731 = vmatmul.mubr.msk.bf16.vlgmr.msra.gmra.mxu0 %vm3351_vm7, %v12807_v49 }
 0x954   :  { %4621 = vmatprep.mubr.bf16.mxu0 %v9671_v40  ;;  %4594 = vmatpush1.bf16.msra.mxu0 %v9111_v45 }
 0x955   :  { %4595 = vmatprep.subr.bf16.mxu0 %v9116_v43 }
 0x956   :  { %3333 = vrot.lane.b32.xlu0 %v3327_v6, %s9670_s26 }
 0x958   :  { %4596 = vmatpush1.bf16.msra.mxu0 %v9114_v61 }
 0x959   :  { %4597 = vmatprep.subr.bf16.mxu0 %v9119_v26 }
 0x95c   :  { %4598 = vmatpush1.bf16.msra.mxu0 %v9117_v59 }
 0x95d   :  { %4599 = vmatprep.subr.bf16.mxu0 %v9122_v21 }
 0x960   :  { %4600 = vmatpush1.bf16.msra.mxu0 %v9120_v16 }
 0x961   :  { %4601 = vmatprep.subr.bf16.mxu0 %v9125_v7 }
 0x964   :  { %4602 = vmatpush1.bf16.msra.mxu0 %v9123_v24 }
 0x965   :  { %4603 = vmatprep.subr.bf16.mxu0 %v9128_v5 }
 0x968   :  { %4604 = vmatpush1.bf16.msra.mxu0 %v9126_v29 }
 0x9c5   :  { %v4000_v32 = vpop.xlane.xlu0 %3999 }
 0x9c6   :  { %v7705_v53 = vmul.f32 -0.14433756, %v4000_v32  ;;  %v3990_v25 = vpop.xlane.xlu1 %3989 }
 0x9c7   :  { %v7703_v34 = vmul.f32 -0.14433756, %v3990_v25 }
 0x9c8   :  { %v4019_v51 = vmul.f32 1.442695, %v7705_v53 }
 0x9c9   :  { %v4007_v58 = vmul.f32 1.442695, %v7703_v34  ;;  %v3997_v22 = vpop.xlane.xlu0 %3996 }
 0x9ca   :  { %9595 = vpow2.f32 %v4019_v51  ;;  %v7704_v4 = vmul.f32 -0.14433756, %v3997_v22  ;;  %v3987_v50 = vpop.xlane.xlu1 %3986 }
 0x9cb   :  { %9597 = vpow2.f32 %v4007_v58  ;;  %v7702_v54 = vmul.f32 -0.14433756, %v3987_v50 }
 0x9cc   :  { %v4017_v0 = vmul.f32 1.442695, %v7704_v4  ;;  %v9672_v4 = vmov 1966171168  }
 0x9cd   :  { %v4005_v13 = vmul.f32 1.442695, %v7702_v54  ;;  %v4417_v50 = vunpack.c.l.s4 %v9672_v4 }
 0x9ce   :  { %9599 = vpow2.f32 %v4017_v0 }
 0x9cf   :  { %9601 = vpow2.f32 %v4005_v13 }
 0x9d7   :  { %v9596_v42 = vpop.eup %9595 }
 0x9d8   :  { %v9598_v10 = vpop.eup %9597  ;;  %v4022_v23 = vadd.f32 1.0, %v9596_v42 }
 0x9d9   :  { %v4010_v30 = vadd.f32 1.0, %v9598_v10 }
 0x9da   :  { %9603 = vrcp.f32 %v4022_v23 }
 0x9db   :  { %v9600_v8 = vpop.eup %9599  ;;  %9605 = vrcp.f32 %v4010_v30  ;;  %v4418_v30 = vunpack.c.0.s8 %v4417_v50 }
 0x9dc   :  { %v9602_v14 = vpop.eup %9601  ;;  %v4021_v11 = vadd.f32 1.0, %v9600_v8 }
 0x9dd   :  { %v4009_v33 = vadd.f32 1.0, %v9602_v14 }
 0x9de   :  { %9607 = vrcp.f32 %v4021_v11 }
 0x9df   :  { %9609 = vrcp.f32 %v4009_v33 }
 0x9e3   :  { %v3821_v18 = vpop.f32.mrf.mxu0 }
 0x9e4   :  { %v12859_v47 = vadd.f32 %v3821_v18, %v12856_v12 }
 0x9e5   :  { %v8969_v28 = vpop.f32.mrf.mxu0 }
 0x9e6   :  { %v12863_v35 = vpack.c.bf16 %v12859_v47, %v12859_v47 }
 0x9e7   :  { %v9604_v19 = vpop.eup %9603 }
 0x9e8   :  { %v9606_v55 = vpop.eup %9605  ;;  %7781 = vmatmul.mubr.msk.bf16.vlgmr.msra.gmra.mxu0 %vm3351_vm7, %v12863_v35  ;;  %v4030_v56 = vsub.f32 1.0, %v9604_v19  ;;  %v12873_v19 = vsub.s32 %v4418_v30, %v14235_v60  ;;  %v9191_v30 = vld [vmem:[%s14102_s19 + $0x1a4] ss:$16 sps:$4 sm:$0xff]  }
 0x9e9   :  { %4882 = vmatprep.mubr.bf16.mxu0 %v9671_v40  ;;  %v4028_v39 = vsub.f32 1.0, %v9606_v55 }
 0x9ea   :  { %v4056_v37 = vsel %vm3675_vm2, %v4030_v56, -inf }
 0x9eb   :  { %v9608_v57 = vpop.eup %9607  ;;  %v4031_v9 = vsel %vm3675_vm2, %v4028_v39, -inf }
 0x9ec   :  { %v9610_v41 = vpop.eup %9609  ;;  %v4029_v63 = vsub.f32 1.0, %v9608_v57 }
 0x9ed   :  { %v4027_v1 = vsub.f32 1.0, %v9610_v41 }
 0x9ee   :  { %v4057_v52 = vmax.f32 %v4029_v63, %v4056_v37 }
 0x9ef   :  { %v4032_v6 = vmax.f32 %v4027_v1, %v4031_v9 }
 0x9f0   :  { %v4058_v48 = vrot.slane %v4057_v52, 4 }
 0x9f1   :  { %v4033_v45 = vrot.slane %v4032_v6, 4 }
 0x9f2   :  { %v4059_v43 = vmax.f32 %v4057_v52, %v4058_v48 }
 0x9f3   :  { %v4034_v61 = vmax.f32 %v4032_v6, %v4033_v45 }
 0x9f4   :  { %v4060_v26 = vrot.slane %v4059_v43, 2 }
 0x9f5   :  { %v4035_v59 = vrot.slane %v4034_v61, 2 }
 0x9f6   :  { %v4061_v21 = vmax.f32 %v4059_v43, %v4060_v26 }
 0x9f7   :  { %v4036_v16 = vmax.f32 %v4034_v61, %v4035_v59 }
 0x9f8   :  { %v4062_v7 = vrot.slane %v4061_v21, 1 }
 0x9f9   :  { %v4037_v24 = vrot.slane %v4036_v16, 1 }
 0x9fa   :  { %v4063_v5 = vmax.f32 %v4061_v21, %v4062_v7 }
 0x9fb   :  { %v4038_v29 = vmax.f32 %v4036_v16, %v4037_v24  ;;  %v9023_v0 = vpop.f32.mrf.mxu0 }
 0x9fc   :  { %v4064_v27 = vsub.f32 %v4029_v63, %v4063_v5  ;;  %v4065_v32 = vsub.f32 %v4030_v56, %v4063_v5  ;;  %v9165_v5 = vld [vmem:[%s14102_s19 + $0x220] ss:$16 sps:$4 sm:$0xff]  }
 0x9fd   :  { %v4039_v53 = vsub.f32 %v4027_v1, %v4038_v29  ;;  %v4040_v25 = vsub.f32 %v4028_v39, %v4038_v29  ;;  %v3972_v11 = vpop.f32.mrf.mxu0  ;;  %v9167_v29 = vld [vmem:[%s14102_s19 + $0x224] ss:$16 sps:$4 sm:$0xff]  }
 0x9fe   :  { %v4066_v34 = vmul.f32 1.442695, %v4064_v27  ;;  %v4068_v51 = vmul.f32 1.442695, %v4065_v32  ;;  %v3978_v27 = vadd.f32 %v9023_v0, %v12683_v46  ;;  %v3973_v32 = vadd.f32 %v12683_v46, %v3972_v11  ;;  %4854 = vmatprep.subr.bf16.mxu0 %v9167_v29  ;;  %v9179_v46 = vld [vmem:[%s14102_s19 + $0x1e4] ss:$16 sps:$4 sm:$0xff]  }
 0x9ff   :  { %v4041_v58 = vmul.f32 1.442695, %v4039_v53  ;;  %v4043_v22 = vmul.f32 1.442695, %v4040_v25  ;;  %v9173_v53 = vld [vmem:[%s14102_s19 + $0x204] ss:$16 sps:$4 sm:$0xff]   ;;  %4855 = vmatpush1.bf16.msra.mxu0 %v9165_v5 }
 0xa00   :  { %9611 = vpow2.f32 %v4066_v34  ;;  %4856 = vmatprep.subr.bf16.mxu0 %v9173_v53  ;;  %v9168_v5 = vld [vmem:[%s14102_s19 + $0x228] ss:$16 sps:$4 sm:$0xff]   ;;  %v9176_v29 = vld [vmem:[%s14102_s19 + $0x20c] ss:$16 sps:$4 sm:$0xff]  }
 0xa01   :  { %9613 = vpow2.f32 %v4068_v51  ;;  %v9180_v53 = vld [vmem:[%s14102_s19 + $0x1e8] ss:$16 sps:$4 sm:$0xff]  }
 0xa02   :  { %9615 = vpow2.f32 %v4041_v58 }
 0xa03   :  { %9617 = vpow2.f32 %v4043_v22  ;;  %v9171_v22 = vld [vmem:[%s14102_s19 + $0x200] ss:$16 sps:$4 sm:$0xff]  }
 0xa04   :  { %4857 = vmatpush1.bf16.msra.mxu0 %v9171_v22  ;;  %v9197_v22 = vld [vmem:[%s14102_s19 + $0x184] ss:$16 sps:$4 sm:$0xff]  }
 0xa05   :  { %4858 = vmatprep.subr.bf16.mxu0 %v9179_v46  ;;  %v9198_v46 = vld [vmem:[%s14102_s19 + $0x188] ss:$16 sps:$4 sm:$0xff]  }
 0xa08   :  { %4859 = vmatpush1.bf16.msra.mxu0 %v9177_v20 }
 0xa0d   :  { %v9612_v54 = vpop.eup %9611 }
 0xa0e   :  { %v9614_v13 = vpop.eup %9613 }
 0xa0f   :  { %v9616_v42 = vpop.eup %9615  ;;  %v4070_v10 = vsel %vm3675_vm2, %v9614_v13, 0.0 }
 0xa10   :  { %v9618_v23 = vpop.eup %9617  ;;  %v4071_v8 = vadd.f32 %v9612_v54, %v4070_v10  ;;  %v9183_v10 = vld [vmem:[%s14102_s19 + $0x1c0] ss:$16 sps:$4 sm:$0xff]  }
 0xa11   :  { %v4045_v14 = vsel %vm3675_vm2, %v9618_v23, 0.0 }
 0xa12   :  { %v4072_v33 = vrot.slane %v4071_v8, 4  ;;  %v4046_v18 = vadd.f32 %v9616_v42, %v4045_v14  ;;  %v9189_v14 = vld [vmem:[%s14102_s19 + $0x1a0] ss:$16 sps:$4 sm:$0xff]  }
 0xa13   :  { %v4362_v28 = vpop.f32.mrf.mxu0 }
 0xa14   :  { %v4047_v55 = vrot.slane %v4046_v18, 4  ;;  %v4073_v56 = vadd.f32 %v4072_v33, %v4071_v8  ;;  %v9129_v33 = vld [vmem:[%s14102_s19 + $0xa8] ss:$16 sps:$4 sm:$0xff]  }
 0xa15   :  { %v4364_v39 = vpop.f32.mrf.mxu0 }
 0xa16   :  { %v4048_v57 = vadd.f32 %v4047_v55, %v4046_v18  ;;  %v4074_v41 = vrot.slane %v4073_v56, 2  ;;  %v4414_v63 = vcombine.low %v4362_v28, %v4364_v39  ;;  %v9134_v28 = vld [vmem:[%s14102_s19 + $0x8c] ss:$16 sps:$4 sm:$0xff]   ;;  %v9132_v55 = vld [vmem:[%s14102_s19 + $0x88] ss:$16 sps:$4 sm:$0xff]  }
 0xa17   :  { %v4366_v37 = vpop.f32.mrf.mxu0  ;;  %v9135_v39 = vld [vmem:[%s14102_s19 + $0x68] ss:$16 sps:$4 sm:$0xff]  }
 0xa18   :  { %v4049_v1 = vrot.slane %v4048_v57, 2  ;;  %v4075_v9 = vadd.f32 %v4074_v41, %v4073_v56  ;;  %v12876_v52 = vrot.slane %v4414_v63, %v12873_v19  ;;  %v9137_v56 = vld [vmem:[%s14102_s19 + $0x6c] ss:$16 sps:$4 sm:$0xff]   ;;  %v9138_v41 = vld [vmem:[%s14102_s19 + $0x48] ss:$16 sps:$4 sm:$0xff]  }
 0xa19   :  { %v4367_v6 = vpop.f32.mrf.mxu0  ;;  %v9143_v63 = vld [vmem:[%s14102_s19 + $0x2c] ss:$16 sps:$4 sm:$0xff]   ;;  %v9141_v37 = vld [vmem:[%s14102_s19 + $0x28] ss:$16 sps:$4 sm:$0xff]  }
 0xa1a   :  { %v4050_v48 = vadd.f32 %v4049_v1, %v4048_v57  ;;  %v4076_v45 = vrot.slane %v4075_v9, 1  ;;  %v9140_v57 = vld [vmem:[%s14102_s19 + $0x4c] ss:$16 sps:$4 sm:$0xff]  }
 0xa1b   :  { %v9146_v1 = vld [vmem:[%s14102_s19 + $0xc] ss:$16 sps:$4 sm:$0xff]  }
 0xa1c   :  { %v4051_v43 = vrot.slane %v4050_v48, 1  ;;  %v4077_v61 = vadd.f32 %v4076_v45, %v4075_v9  ;;  %v9144_v9 = vld [vmem:[%s14102_s19 + $0x8] ss:$16 sps:$4 sm:$0xff]   ;;  %v9149_v6 = vld [vmem:[%s14102_s19 + $0x16c] ss:$16 sps:$4 sm:$0xff]  }
 0xa1d   :  { %v9152_v45 = vld [vmem:[%s14102_s19 + $0x14c] ss:$16 sps:$4 sm:$0xff]  }
 0xa1e   :  { %v4052_v26 = vadd.f32 %v4051_v43, %v4050_v48  ;;  %9619 = vrcp.f32 %v4077_v61  ;;  %v9147_v48 = vld [vmem:[%s14102_s19 + $0x168] ss:$16 sps:$4 sm:$0xff]   ;;  %v9155_v61 = vld [vmem:[%s14102_s19 + $0x12c] ss:$16 sps:$4 sm:$0xff]  }
 0xa1f   :  { %v9150_v43 = vld [vmem:[%s14102_s19 + $0x148] ss:$16 sps:$4 sm:$0xff]  }
 0xa20   :  { %9621 = vrcp.f32 %v4052_v26  ;;  %v9153_v26 = vld [vmem:[%s14102_s19 + $0x128] ss:$16 sps:$4 sm:$0xff]  }
 0xa2b   :  { %v9620_v60 = vpop.eup %9619 }
 0xa2c   :  { %v4080_v59 = vmul.f32 %v9620_v60, %v9614_v13  ;;  %v4079_v21 = vmul.f32 %v9620_v60, %v9612_v54  ;;  %v9185_v13 = vld [vmem:[%s14102_s19 + $0x1c4] ss:$16 sps:$4 sm:$0xff]   ;;  %v9156_v60 = vld [vmem:[%s14102_s19 + $0x108] ss:$16 sps:$4 sm:$0xff]  }
 0xa2d   :  { %v9622_v16 = vpop.eup %9621  ;;  %4860 = vmatprep.subr.bf16.mxu0 %v9185_v13 }
 0xa2e   :  { %v4055_v7 = vmul.f32 %v9622_v16, %v9618_v23  ;;  %v4054_v24 = vmul.f32 %v9622_v16, %v9616_v42  ;;  %4861 = vmatpush1.bf16.msra.mxu0 %v9183_v10  ;;  %v9164_v16 = vld [vmem:[%s14102_s19 + $0xcc] ss:$16 sps:$4 sm:$0xff]  }
 0xa2f   :  { %4862 = vmatprep.subr.bf16.mxu0 %v9191_v30  ;;  %v3281_v30 = vsel %vm1566_vm6, %v10382_v36, -inf }
 0xa30   :  { %v4082_v25 = vsel %vm3427_vm13, %v4055_v7, %v4080_v59  ;;  %v4081_v34 = vsel %vm3427_vm13, %v4054_v24, %v4079_v21  ;;  %v9161_v59 = vld [vmem:[%s14102_s19 + $0xec] ss:$16 sps:$4 sm:$0xff]   ;;  %v9159_v21 = vld [vmem:[%s14102_s19 + $0xe8] ss:$16 sps:$4 sm:$0xff]  }
 0xa31   :  { %v4084_v51 = vmul.f32 %v4082_v25, %v3978_v27  ;;  %v4083_v58 = vmul.f32 %v4081_v34, %v3973_v32  ;;  %v9162_v7 = vld [vmem:[%s14102_s19 + $0xc8] ss:$16 sps:$4 sm:$0xff]   ;;  %v9170_v24 = vld [vmem:[%s14102_s19 + $0x22c] ss:$16 sps:$4 sm:$0xff]  }
 0xa32   :  { %4863 = vmatpush1.bf16.msra.mxu0 %v9189_v14  ;;  %v9174_v27 = vld [vmem:[%s14102_s19 + $0x208] ss:$16 sps:$4 sm:$0xff]   ;;  %v9182_v32 = vld [vmem:[%s14102_s19 + $0x1ec] ss:$16 sps:$4 sm:$0xff]  }
 0xa33   :  { %v4086_v4 = vsel %vm3635_vm11, %v4084_v51, 0.0  ;;  %v4085_v50 = vsel %vm3351_vm7, %v4083_v58, 0.0  ;;  %v9186_v25 = vld [vmem:[%s14102_s19 + $0x1c8] ss:$16 sps:$4 sm:$0xff]   ;;  %v9194_v34 = vld [vmem:[%s14102_s19 + $0x1ac] ss:$16 sps:$4 sm:$0xff]   ;;  %4864 = vmatprep.subr.bf16.mxu0 %v9197_v22 }
 0xa34   :  { %v4087_v54 = vadd.f32 %v4086_v4, %v4085_v50  ;;  %v9192_v51 = vld [vmem:[%s14102_s19 + $0x1a8] ss:$16 sps:$4 sm:$0xff]   ;;  %v9195_v58 = vld [vmem:[%s14102_s19 + $0x180] ss:$16 sps:$4 sm:$0xff]   ;;  %v9200_v4 = vld [vmem:[%s14102_s19 + $0x18c] ss:$16 sps:$4 sm:$0xff]  }
 0xa35   :  { %v9203_v50 = vld [vmem:[%s14102_s19 + $0x2e4] ss:$16 sps:$4 sm:$0xff]   ;;  %v9242_v22 = vld [vmem:[%s14102_s19 + $0x3ac] ss:$16 sps:$4 sm:$0xff]  }
 0xa36   :  { %v4088_v0 = vrot.slane %v4087_v54, 4  ;;  %4865 = vmatpush1.bf16.msra.mxu0 %v9195_v58  ;;  %v9239_v58 = vld [vmem:[%s14102_s19 + $0x3a4] ss:$16 sps:$4 sm:$0xff]  }
 0xa37   :  { %5115 = vmatprep.subr.bf16.mxu0 %v9203_v50 }
 0xa38   :  { %v4089_v42 = vadd.f32 %v4088_v0, %v4087_v54  ;;  %v9206_v54 = vld [vmem:[%s14102_s19 + $0x2ec] ss:$16 sps:$4 sm:$0xff]  }
 0xa3a   :  { %v4090_v23 = vrot.slane %v4089_v42, 2 }
 0xa3c   :  { %v4091_v8 = vadd.f32 %v4090_v23, %v4089_v42 }
 0xa3e   :  { %v4092_v11 = vrot.slane %v4091_v8, 1 }
 0xa40   :  { %v4093_v18 = vadd.f32 %v4092_v11, %v4091_v8  ;;  %v3285_v8 = vsel %vm1566_vm6, %v10538_v38, -inf  ;;  %v3282_v11 = vsel %vm1566_vm6, %v10480_v31, -inf  ;;  %v9201_v38 = vld [vmem:[%s14102_s19 + $0x2e0] ss:$16 sps:$4 sm:$0xff]   ;;  %v9204_v31 = vld [vmem:[%s14102_s19 + $0x2e8] ss:$16 sps:$4 sm:$0xff]  }
 0xa41   :  { %v3286_v14 = vmax.f32 %v3281_v30, %v3285_v8 }
 0xa42   :  { %9049 = vmatmul.mubr.msk.f32.vlgmr.msra.gmra.mxu1 %vm3351_vm7, %v4093_v18  ;;  %v3284_v18 = vsel %vm1566_vm6, %v10525_v62, -inf }
 0xa43   :  { %4374 = vmatpush1.bf16.msra.mxu1 %v9129_v33  ;;  %4401 = vmatprep.mubr.bf16.mxu1 %v9671_v40  ;;  %v3283_v33 = vsel %vm1566_vm6, %v10570_v15, -inf }
 0xa44   :  { %4375 = vmatprep.subr.bf16.mxu1 %v9134_v28  ;;  %v3287_v28 = vmax.f32 %v3286_v14, %v3282_v11  ;;  %v9243_v11 = vld [vmem:[%s14102_s19 + $0x380] ss:$16 sps:$4 sm:$0xff]  }
 0xa47   :  { %4376 = vmatpush1.bf16.msra.mxu1 %v9132_v55  ;;  %v3288_v55 = vmax.f32 %v3283_v33, %v3284_v18  ;;  %v9246_v33 = vld [vmem:[%s14102_s19 + $0x388] ss:$16 sps:$4 sm:$0xff]  }
 0xa48   :  { %4377 = vmatprep.subr.bf16.mxu1 %v9137_v56 }
 0xa49   :  { %v3289_v56 = vmax.f32 %v3287_v28, %v3288_v55  ;;  %v9251_v28 = vld [vmem:[%s14102_s19 + $0x364] ss:$16 sps:$4 sm:$0xff]   ;;  %v9254_v55 = vld [vmem:[%s14102_s19 + $0x36c] ss:$16 sps:$4 sm:$0xff]  }
 0xa4b   :  { %4378 = vmatpush1.bf16.msra.mxu1 %v9135_v39  ;;  %v3290_v39 = vrot.slane %v3289_v56, 4 }
 0xa4c   :  { %4379 = vmatprep.subr.bf16.mxu1 %v9140_v57 }
 0xa4d   :  { %v3291_v15 = vmax.f32 %v3289_v56, %v3290_v39  ;;  %v9252_v39 = vld [vmem:[%s14102_s19 + $0x368] ss:$16 sps:$4 sm:$0xff]  }
 0xa4f   :  { %4380 = vmatpush1.bf16.msra.mxu1 %v9138_v41 }
 0xa50   :  { %4381 = vmatprep.subr.bf16.mxu1 %v9143_v63  ;;  %v9209_v63 = vld [vmem:[%s14102_s19 + $0x2c4] ss:$16 sps:$4 sm:$0xff]  }
 0xa53   :  { %4382 = vmatpush1.bf16.msra.mxu1 %v9141_v37  ;;  %v9207_v37 = vld [vmem:[%s14102_s19 + $0x2c0] ss:$16 sps:$4 sm:$0xff]  }
 0xa54   :  { %4383 = vmatprep.subr.bf16.mxu1 %v9146_v1  ;;  %v9210_v1 = vld [vmem:[%s14102_s19 + $0x2c8] ss:$16 sps:$4 sm:$0xff]  }
 0xa57   :  { %4384 = vmatpush1.bf16.msra.mxu1 %v9144_v9  ;;  %v3292_v9 = vrot.slane %v3291_v15, 2 }
 0xa58   :  { %4634 = vmatprep.subr.bf16.mxu1 %v9149_v6  ;;  %v9215_v6 = vld [vmem:[%s14102_s19 + $0x2a4] ss:$16 sps:$4 sm:$0xff]  }
 0xa5a   :  { %7732 = vmatmul.mubr.msk.bf16.vlgmr.msra.gmra.mxu1 %vm3351_vm7, %v12807_v49  ;;  %v9158_v49 = vld [vmem:[%s14102_s19 + $0x10c] ss:$16 sps:$4 sm:$0xff]  }
 0xa5b   :  { %4635 = vmatpush1.bf16.msra.mxu1 %v9147_v48  ;;  %4662 = vmatprep.mubr.bf16.mxu1 %v9671_v40  ;;  %v9218_v48 = vld [vmem:[%s14102_s19 + $0x2ac] ss:$16 sps:$4 sm:$0xff]  }
 0xa5c   :  { %4636 = vmatprep.subr.bf16.mxu1 %v9152_v45  ;;  %v9213_v45 = vld [vmem:[%s14102_s19 + $0x2a0] ss:$16 sps:$4 sm:$0xff]  }
 0xa5f   :  { %4637 = vmatpush1.bf16.msra.mxu1 %v9150_v43  ;;  %v9216_v43 = vld [vmem:[%s14102_s19 + $0x2a8] ss:$16 sps:$4 sm:$0xff]  }
 0xa60   :  { %4638 = vmatprep.subr.bf16.mxu1 %v9155_v61  ;;  %v3293_v61 = vmax.f32 %v3291_v15, %v3292_v9  ;;  %v9263_v15 = vld [vmem:[%s14102_s19 + $0x324] ss:$16 sps:$4 sm:$0xff]   ;;  %v9267_v9 = vld [vmem:[%s14102_s19 + $0x300] ss:$16 sps:$4 sm:$0xff]  }
 0xa63   :  { %4639 = vmatpush1.bf16.msra.mxu1 %v9153_v26  ;;  %v9221_v26 = vld [vmem:[%s14102_s19 + $0x284] ss:$16 sps:$4 sm:$0xff]  }
 0xa64   :  { %4640 = vmatprep.subr.bf16.mxu1 %v9158_v49  ;;  %v9224_v49 = vld [vmem:[%s14102_s19 + $0x28c] ss:$16 sps:$4 sm:$0xff]  }
 0xa67   :  { %4641 = vmatpush1.bf16.msra.mxu1 %v9156_v60  ;;  %v9219_v60 = vld [vmem:[%s14102_s19 + $0x280] ss:$16 sps:$4 sm:$0xff]  }
 0xa68   :  { %4642 = vmatprep.subr.bf16.mxu1 %v9161_v59  ;;  %v9222_v59 = vld [vmem:[%s14102_s19 + $0x288] ss:$16 sps:$4 sm:$0xff]  }
 0xa6b   :  { %4643 = vmatpush1.bf16.msra.mxu1 %v9159_v21  ;;  %v3294_v21 = vrot.slane %v3293_v61, 1 }
 0xa6c   :  { %4644 = vmatprep.subr.bf16.mxu1 %v9164_v16  ;;  %v9227_v16 = vld [vmem:[%s14102_s19 + $0x264] ss:$16 sps:$4 sm:$0xff]  }
 0xa6f   :  { %4645 = vmatpush1.bf16.msra.mxu1 %v9162_v7  ;;  %v9230_v7 = vld [vmem:[%s14102_s19 + $0x26c] ss:$16 sps:$4 sm:$0xff]  }
 0xa70   :  { %4895 = vmatprep.subr.bf16.mxu1 %v9170_v24  ;;  %v3330_v24 = vpop.permute.xlu1 %3329 }
 0xa72   :  { %7782 = vmatmul.mubr.msk.bf16.vlgmr.msra.gmra.mxu1 %vm3351_vm7, %v12863_v35  ;;  %v9188_v35 = vld [vmem:[%s14102_s19 + $0x1cc] ss:$16 sps:$4 sm:$0xff]  }
 0xa73   :  { %4896 = vmatpush1.bf16.msra.mxu1 %v9168_v5  ;;  %4923 = vmatprep.mubr.bf16.mxu1 %v9671_v40  ;;  %v9225_v5 = vld [vmem:[%s14102_s19 + $0x260] ss:$16 sps:$4 sm:$0xff]  }
 0xa74   :  { %4897 = vmatprep.subr.bf16.mxu1 %v9176_v29  ;;  %v9228_v29 = vld [vmem:[%s14102_s19 + $0x268] ss:$16 sps:$4 sm:$0xff]  }
 0xa77   :  { %4898 = vmatpush1.bf16.msra.mxu1 %v9174_v27  ;;  %v3295_v27 = vmax.f32 %v3293_v61, %v3294_v21 }
 0xa78   :  { %4899 = vmatprep.subr.bf16.mxu1 %v9182_v32  ;;  %v9233_v32 = vld [vmem:[%s14102_s19 + $0x244] ss:$16 sps:$4 sm:$0xff]  }
 0xa7b   :  { %4900 = vmatpush1.bf16.msra.mxu1 %v9180_v53  ;;  %v9236_v53 = vld [vmem:[%s14102_s19 + $0x24c] ss:$16 sps:$4 sm:$0xff]  }
 0xa7c   :  { %4901 = vmatprep.subr.bf16.mxu1 %v9188_v35  ;;  %v3334_v35 = vpop.permute.xlu0 %3333 }
 0xa7f   :  { %4902 = vmatpush1.bf16.msra.mxu1 %v9186_v25  ;;  %v3336_v25 = vsel %vm1566_vm6, %v3295_v27, %v3330_v24  ;;  %vm14262_vm6 = vmmov %vm14261_vm0 }
 0xa80   :  { %4903 = vmatprep.subr.bf16.mxu1 %v9194_v34  ;;  %v9231_v34 = vld [vmem:[%s14102_s19 + $0x240] ss:$16 sps:$4 sm:$0xff]  }
 0xa83   :  { %4904 = vmatpush1.bf16.msra.mxu1 %v9192_v51  ;;  %v9234_v51 = vld [vmem:[%s14102_s19 + $0x248] ss:$16 sps:$4 sm:$0xff]  }
 0xa84   :  { %4905 = vmatprep.subr.bf16.mxu1 %v9200_v4 }
 0xa87   :  { %4906 = vmatpush1.bf16.msra.mxu1 %v9198_v46  ;;  %v13137_v46 = vsel %vm14262_vm6, %v3336_v25, %v3334_v35  ;;  %v9287_v25 = vld [vmem:[%s14102_s19 + $0x424] ss:$16 sps:$4 sm:$0xff]  }
 0xa88   :  { %5156 = vmatprep.subr.bf16.mxu1 %v9206_v54  ;;  %v9237_v54 = vld [vmem:[%s14102_s19 + $0x3a0] ss:$16 sps:$4 sm:$0xff]  }
 0xaa8   :  { %v4623_v20 = vpop.f32.mrf.mxu0 }
 0xaaa   :  { %v4625_v0 = vpop.f32.mrf.mxu0 }
 0xaab   :  { %v4675_v13 = vcombine.low %v4623_v20, %v4625_v0  ;;  %v9240_v20 = vld [vmem:[%s14102_s19 + $0x3a8] ss:$16 sps:$4 sm:$0xff]   ;;  %v4962_v0 = vpack.c.bf16 %v13137_v46, %v13137_v46 }
 0xaac   :  { %v4627_v42 = vpop.f32.mrf.mxu0 }
 0xaad   :  { %v13042_v10 = vrot.slane %v4675_v13, %v12873_v19  ;;  %v9245_v42 = vld [vmem:[%s14102_s19 + $0x384] ss:$16 sps:$4 sm:$0xff]  }
 0xaae   :  { %v4628_v23 = vpop.f32.mrf.mxu0 }
 0xaaf   :  { %v9248_v23 = vld [vmem:[%s14102_s19 + $0x38c] ss:$16 sps:$4 sm:$0xff]  }
 0xb02   :  { %v4163_v57 = vpop.f32.mrf.mxu1 }
 0xb03   :  { %v13055_v36 = vadd.f32 %v4163_v57, %v12856_v12  ;;  %v9212_v12 = vld [vmem:[%s14102_s19 + $0x2cc] ss:$16 sps:$4 sm:$0xff]   ;;  %v9257_v57 = vld [vmem:[%s14102_s19 + $0x344] ss:$16 sps:$4 sm:$0xff]  }
 0xb04   :  { %v9050_v41 = vpop.f32.mrf.mxu1 }
 0xb05   :  { %v4701_v62 = vpack.c.bf16 %v13055_v36, %v13055_v36  ;;  %v9260_v41 = vld [vmem:[%s14102_s19 + $0x34c] ss:$16 sps:$4 sm:$0xff]  }
 0xb07   :  { %7831 = vmatmul.mubr.msk.bf16.vlgmr.msra.gmra.mxu0 %vm3351_vm7, %v4701_v62  ;;  %7832 = vmatmul.mubr.msk.bf16.vlgmr.msra.gmra.mxu1 %vm3351_vm7, %v4701_v62  ;;  %v9266_v62 = vld [vmem:[%s14102_s19 + $0x32c] ss:$16 sps:$4 sm:$0xff]  }
 0xb08   :  { %5116 = vmatpush1.bf16.msra.mxu0 %v9201_v38  ;;  %5157 = vmatpush1.bf16.msra.mxu1 %v9204_v31  ;;  %v9255_v38 = vld [vmem:[%s14102_s19 + $0x340] ss:$16 sps:$4 sm:$0xff]   ;;  %v9258_v31 = vld [vmem:[%s14102_s19 + $0x348] ss:$16 sps:$4 sm:$0xff]  }
 0xb09   :  { %5117 = vmatprep.subr.bf16.mxu0 %v9209_v63  ;;  %5158 = vmatprep.subr.bf16.mxu1 %v9212_v12  ;;  %v9261_v63 = vld [vmem:[%s14102_s19 + $0x320] ss:$16 sps:$4 sm:$0xff]   ;;  %v9264_v12 = vld [vmem:[%s14102_s19 + $0x328] ss:$16 sps:$4 sm:$0xff]  }
 0xb0a   :  { %5143 = vmatprep.mubr.bf16.mxu0 %v9671_v40  ;;  %5184 = vmatprep.mubr.bf16.mxu1 %v9671_v40 }
 0xb0c   :  { %5118 = vmatpush1.bf16.msra.mxu0 %v9207_v37  ;;  %5159 = vmatpush1.bf16.msra.mxu1 %v9210_v1  ;;  %v9269_v37 = vld [vmem:[%s14102_s19 + $0x304] ss:$16 sps:$4 sm:$0xff]   ;;  %v9272_v1 = vld [vmem:[%s14102_s19 + $0x30c] ss:$16 sps:$4 sm:$0xff]  }
 0xb0d   :  { %5119 = vmatprep.subr.bf16.mxu0 %v9215_v6  ;;  %5160 = vmatprep.subr.bf16.mxu1 %v9218_v48  ;;  %v9270_v6 = vld [vmem:[%s14102_s19 + $0x308] ss:$16 sps:$4 sm:$0xff]   ;;  %v4167_v48 = vmul.f32 %v12859_v47, %v11706_v17 }
 0xb0f   :  { %v5223_v21 = vpack.c.bf16 %v4167_v48, %v4167_v48  ;;  %v9330_v48 = vld [vmem:[%s14102_s19 + $0x4c8] ss:$16 sps:$4 sm:$0xff]  }
 0xb10   :  { %5120 = vmatpush1.bf16.msra.mxu0 %v9213_v45  ;;  %5161 = vmatpush1.bf16.msra.mxu1 %v9216_v43  ;;  %v9275_v45 = vld [vmem:[%s14102_s19 + $0x464] ss:$16 sps:$4 sm:$0xff]   ;;  %v9278_v43 = vld [vmem:[%s14102_s19 + $0x46c] ss:$16 sps:$4 sm:$0xff]  }
 0xb11   :  { %5121 = vmatprep.subr.bf16.mxu0 %v9221_v26  ;;  %5162 = vmatprep.subr.bf16.mxu1 %v9224_v49  ;;  %v9273_v49 = vld [vmem:[%s14102_s19 + $0x460] ss:$16 sps:$4 sm:$0xff]  }
 0xb14   :  { %5122 = vmatpush1.bf16.msra.mxu0 %v9219_v60  ;;  %5163 = vmatpush1.bf16.msra.mxu1 %v9222_v59  ;;  %v9276_v60 = vld [vmem:[%s14102_s19 + $0x468] ss:$16 sps:$4 sm:$0xff]  }
 0xb15   :  { %5123 = vmatprep.subr.bf16.mxu0 %v9227_v16  ;;  %5164 = vmatprep.subr.bf16.mxu1 %v9230_v7  ;;  %v9281_v16 = vld [vmem:[%s14102_s19 + $0x444] ss:$16 sps:$4 sm:$0xff]   ;;  %v9284_v7 = vld [vmem:[%s14102_s19 + $0x44c] ss:$16 sps:$4 sm:$0xff]  }
 0xb18   :  { %5124 = vmatpush1.bf16.msra.mxu0 %v9225_v5  ;;  %5165 = vmatpush1.bf16.msra.mxu1 %v9228_v29  ;;  %v4179_v29 = vld [vmem:[%s14103_s20] sm:$0xf] }
 0xb19   :  { %5125 = vmatprep.subr.bf16.mxu0 %v9233_v32  ;;  %5166 = vmatprep.subr.bf16.mxu1 %v9236_v53  ;;  %v9279_v32 = vld [vmem:[%s14102_s19 + $0x440] ss:$16 sps:$4 sm:$0xff]   ;;  %v9282_v53 = vld [vmem:[%s14102_s19 + $0x448] ss:$16 sps:$4 sm:$0xff]  }
 0xb1a   :  { %v4403_v4 = vpop.f32.mrf.mxu1 }
 0xb1c   :  { %v4405_v50 = vpop.f32.mrf.mxu1  ;;  %5126 = vmatpush1.bf16.msra.mxu0 %v9231_v34  ;;  %5167 = vmatpush1.bf16.msra.mxu1 %v9234_v51  ;;  %v9290_v34 = vld [vmem:[%s14102_s19 + $0x42c] ss:$16 sps:$4 sm:$0xff]  }
 0xb1d   :  { %v4415_v13 = vcombine.low %v4403_v4, %v4405_v50  ;;  %5376 = vmatprep.subr.bf16.mxu0 %v9239_v58  ;;  %5417 = vmatprep.subr.bf16.mxu1 %v9242_v22  ;;  %v9288_v22 = vld [vmem:[%s14102_s19 + $0x428] ss:$16 sps:$4 sm:$0xff]   ;;  %v9293_v50 = vld [vmem:[%s14102_s19 + $0x404] ss:$16 sps:$4 sm:$0xff]  }
 0xb1e   :  { %v4407_v30 = vpop.f32.mrf.mxu1 }
 0xb1f   :  { %v4429_v8 = vrot.slane %v4415_v13, %v12873_v19  ;;  %7881 = vmatmul.mubr.msk.bf16.vlgmr.msra.gmra.mxu0 %vm3351_vm7, %v4962_v0  ;;  %7882 = vmatmul.mubr.msk.bf16.vlgmr.msra.gmra.mxu1 %vm3351_vm7, %v4962_v0  ;;  %v9294_v0 = vld [vmem:[%s14102_s19 + $0x408] ss:$16 sps:$4 sm:$0xff]   ;;  %v9299_v13 = vld [vmem:[%s14102_s19 + $0x3e4] ss:$16 sps:$4 sm:$0xff]  }
 0xb20   :  { %v4408_v14 = vpop.f32.mrf.mxu1  ;;  %5377 = vmatpush1.bf16.msra.mxu0 %v9237_v54  ;;  %5418 = vmatpush1.bf16.msra.mxu1 %v9240_v20  ;;  %v9296_v54 = vld [vmem:[%s14102_s19 + $0x40c] ss:$16 sps:$4 sm:$0xff]   ;;  %v9291_v20 = vld [vmem:[%s14102_s19 + $0x400] ss:$16 sps:$4 sm:$0xff]   ;;  %v9300_v30 = vld [vmem:[%s14102_s19 + $0x3e8] ss:$16 sps:$4 sm:$0xff]  }
 0xb21   :  { %v4430_v18 = vcombine.low %v12876_v52, %v4429_v8  ;;  %5378 = vmatprep.subr.bf16.mxu0 %v9245_v42  ;;  %5419 = vmatprep.subr.bf16.mxu1 %v9248_v23  ;;  %v9249_v52 = vld [vmem:[%s14102_s19 + $0x360] ss:$16 sps:$4 sm:$0xff]   ;;  %v9302_v42 = vld [vmem:[%s14102_s19 + $0x3ec] ss:$16 sps:$4 sm:$0xff]   ;;  %v9305_v8 = vld [vmem:[%s14102_s19 + $0x3c4] ss:$16 sps:$4 sm:$0xff]  }
 0xb22   :  { %5404 = vmatprep.mubr.bf16.mxu0 %v9671_v40  ;;  %5445 = vmatprep.mubr.bf16.mxu1 %v9671_v40  ;;  %v9297_v23 = vld [vmem:[%s14102_s19 + $0x3e0] ss:$16 sps:$4 sm:$0xff]   ;;  %v9308_v14 = vld [vmem:[%s14102_s19 + $0x3cc] ss:$16 sps:$4 sm:$0xff]  }
 0xb23   :  { %v13172_v56 = vrot.slane %v4430_v18, %v12873_v19  ;;  %v9306_v18 = vld [vmem:[%s14102_s19 + $0x3c8] ss:$16 sps:$4 sm:$0xff]  }
 0xb24   :  { %5379 = vmatpush1.bf16.msra.mxu0 %v9243_v11  ;;  %5420 = vmatpush1.bf16.msra.mxu1 %v9246_v33  ;;  %v4168_v11 = vadd.f32 %v12859_v47, %v11706_v17  ;;  %v9303_v33 = vld [vmem:[%s14102_s19 + $0x3c0] ss:$16 sps:$4 sm:$0xff]  }
 0xb25   :  { %5380 = vmatprep.subr.bf16.mxu0 %v9251_v28  ;;  %5421 = vmatprep.subr.bf16.mxu1 %v9254_v55  ;;  %v4439_v51 = vadd.f32 %v13172_v56, %v4179_v29  ;;  %v9311_v55 = vld [vmem:[%s14102_s19 + $0x524] ss:$16 sps:$4 sm:$0xff]   ;;  %v9314_v56 = vld [vmem:[%s14102_s19 + $0x52c] ss:$16 sps:$4 sm:$0xff]   ;;  %v9348_v29 = vld [vmem:[%s14102_s19 + $0x5e8] ss:$16 sps:$4 sm:$0xff]  }
 0xb26   :  { %v4169_v28 = vand.u32 2147483647, %v4168_v11  ;;  %v9375_v11 = vld [vmem:[%s14102_s19 + $0x540] ss:$16 sps:$4 sm:$0xff]  }
 0xb28   :  { %5381 = vmatpush1.bf16.msra.mxu0 %v9249_v52  ;;  %5422 = vmatpush1.bf16.msra.mxu1 %v9252_v39  ;;  %v9309_v52 = vld [vmem:[%s14102_s19 + $0x520] ss:$16 sps:$4 sm:$0xff]   ;;  %v9312_v39 = vld [vmem:[%s14102_s19 + $0x528] ss:$16 sps:$4 sm:$0xff]  }
 0xb29   :  { %5382 = vmatprep.subr.bf16.mxu0 %v9257_v57  ;;  %5423 = vmatprep.subr.bf16.mxu1 %v9260_v41  ;;  %v5484_v57 = vpack.c.bf16 %v4169_v28, %v4169_v28  ;;  %v9317_v41 = vld [vmem:[%s14102_s19 + $0x504] ss:$16 sps:$4 sm:$0xff]   ;;  %v9386_v28 = vld [vmem:[%s14102_s19 + $0x6ac] ss:$16 sps:$4 sm:$0xff]  }
 0xb2c   :  { %5383 = vmatpush1.bf16.msra.mxu0 %v9255_v38  ;;  %5424 = vmatpush1.bf16.msra.mxu1 %v9258_v31  ;;  %v9320_v38 = vld [vmem:[%s14102_s19 + $0x50c] ss:$16 sps:$4 sm:$0xff]   ;;  %v9315_v31 = vld [vmem:[%s14102_s19 + $0x500] ss:$16 sps:$4 sm:$0xff]  }
 0xb2d   :  { %5384 = vmatprep.subr.bf16.mxu0 %v9263_v15  ;;  %5425 = vmatprep.subr.bf16.mxu1 %v9266_v62  ;;  %v9318_v15 = vld [vmem:[%s14102_s19 + $0x508] ss:$16 sps:$4 sm:$0xff]   ;;  %v9323_v62 = vld [vmem:[%s14102_s19 + $0x4e4] ss:$16 sps:$4 sm:$0xff]  }
 0xb30   :  { %5385 = vmatpush1.bf16.msra.mxu0 %v9261_v63  ;;  %5426 = vmatpush1.bf16.msra.mxu1 %v9264_v12  ;;  %v9326_v63 = vld [vmem:[%s14102_s19 + $0x4ec] ss:$16 sps:$4 sm:$0xff]   ;;  %v9321_v12 = vld [vmem:[%s14102_s19 + $0x4e0] ss:$16 sps:$4 sm:$0xff]  }
 0xb31   :  { %5386 = vmatprep.subr.bf16.mxu0 %v9269_v37  ;;  %5427 = vmatprep.subr.bf16.mxu1 %v9272_v1  ;;  %v9324_v37 = vld [vmem:[%s14102_s19 + $0x4e8] ss:$16 sps:$4 sm:$0xff]   ;;  %v9329_v1 = vld [vmem:[%s14102_s19 + $0x4c4] ss:$16 sps:$4 sm:$0xff]  }
 0xb32   :  { %v4664_v61 = vpop.f32.mrf.mxu1 }
 0xb34   :  { %v4666_v26 = vpop.f32.mrf.mxu1  ;;  %5387 = vmatpush1.bf16.msra.mxu0 %v9267_v9  ;;  %5428 = vmatpush1.bf16.msra.mxu1 %v9270_v6  ;;  %v9332_v9 = vld [vmem:[%s14102_s19 + $0x4cc] ss:$16 sps:$4 sm:$0xff]   ;;  %v9327_v6 = vld [vmem:[%s14102_s19 + $0x4c0] ss:$16 sps:$4 sm:$0xff]  }
 0xb35   :  { %v4676_v59 = vcombine.low %v4664_v61, %v4666_v26  ;;  %5637 = vmatprep.subr.bf16.mxu0 %v9275_v45  ;;  %5678 = vmatprep.subr.bf16.mxu1 %v9278_v43  ;;  %v9335_v45 = vld [vmem:[%s14102_s19 + $0x4a4] ss:$16 sps:$4 sm:$0xff]   ;;  %v9338_v43 = vld [vmem:[%s14102_s19 + $0x4ac] ss:$16 sps:$4 sm:$0xff]   ;;  %v9333_v61 = vld [vmem:[%s14102_s19 + $0x4a0] ss:$16 sps:$4 sm:$0xff]  }
 0xb36   :  { %v4668_v24 = vpop.f32.mrf.mxu1  ;;  %v9336_v26 = vld [vmem:[%s14102_s19 + $0x4a8] ss:$16 sps:$4 sm:$0xff]  }
 0xb37   :  { %v4690_v5 = vrot.slane %v4676_v59, %v12873_v19  ;;  %7931 = vmatmul.mubr.msk.bf16.vlgmr.msra.gmra.mxu0 %vm3351_vm7, %v5223_v21  ;;  %7932 = vmatmul.mubr.msk.bf16.vlgmr.msra.gmra.mxu1 %vm3351_vm7, %v5223_v21  ;;  %v9339_v59 = vld [vmem:[%s14102_s19 + $0x480] ss:$16 sps:$4 sm:$0xff]   ;;  %v9342_v21 = vld [vmem:[%s14102_s19 + $0x488] ss:$16 sps:$4 sm:$0xff]   ;;  %v9350_v24 = vld [vmem:[%s14102_s19 + $0x5ec] ss:$16 sps:$4 sm:$0xff]  }
 0xb38   :  { %v4669_v27 = vpop.f32.mrf.mxu1  ;;  %5638 = vmatpush1.bf16.msra.mxu0 %v9273_v49  ;;  %5679 = vmatpush1.bf16.msra.mxu1 %v9276_v60  ;;  %v9341_v49 = vld [vmem:[%s14102_s19 + $0x484] ss:$16 sps:$4 sm:$0xff]   ;;  %v9344_v60 = vld [vmem:[%s14102_s19 + $0x48c] ss:$16 sps:$4 sm:$0xff]  }
 0xb39   :  { %v4691_v35 = vcombine.low %v13042_v10, %v4690_v5  ;;  %5639 = vmatprep.subr.bf16.mxu0 %v9281_v16  ;;  %5680 = vmatprep.subr.bf16.mxu1 %v9284_v7  ;;  %v9285_v10 = vld [vmem:[%s14102_s19 + $0x420] ss:$16 sps:$4 sm:$0xff]   ;;  %v4170_v16 = vmul.f32 %v13137_v46, %v11706_v17  ;;  %v9347_v7 = vld [vmem:[%s14102_s19 + $0x5e4] ss:$16 sps:$4 sm:$0xff]  }
 0xb3a   :  { %5665 = vmatprep.mubr.bf16.mxu0 %v9671_v40  ;;  %5706 = vmatprep.mubr.bf16.mxu1 %v9671_v40  ;;  %v9345_v5 = vld [vmem:[%s14102_s19 + $0x5e0] ss:$16 sps:$4 sm:$0xff]  }
 0xb3b   :  { %v4698_v58 = vrot.slane %v4691_v35, %v12873_v19  ;;  %v5745_v27 = vpack.c.bf16 %v4170_v16, %v4170_v16  ;;  %v9351_v35 = vld [vmem:[%s14102_s19 + $0x5c0] ss:$16 sps:$4 sm:$0xff]   ;;  %v9422_v16 = vld [vmem:[%s14102_s19 + $0x76c] ss:$16 sps:$4 sm:$0xff]  }
 0xb3c   :  { %5640 = vmatpush1.bf16.msra.mxu0 %v9279_v32  ;;  %5681 = vmatpush1.bf16.msra.mxu1 %v9282_v53  ;;  %v9353_v32 = vld [vmem:[%s14102_s19 + $0x5c4] ss:$16 sps:$4 sm:$0xff]   ;;  %v9356_v53 = vld [vmem:[%s14102_s19 + $0x5cc] ss:$16 sps:$4 sm:$0xff]  }
 0xb3d   :  { %v13265_v4 = vadd.f32 %v4698_v58, %v4439_v51  ;;  %5641 = vmatprep.subr.bf16.mxu0 %v9287_v25  ;;  %5682 = vmatprep.subr.bf16.mxu1 %v9290_v34  ;;  %v9354_v25 = vld [vmem:[%s14102_s19 + $0x5c8] ss:$16 sps:$4 sm:$0xff]   ;;  %v9359_v34 = vld [vmem:[%s14102_s19 + $0x5a4] ss:$16 sps:$4 sm:$0xff]   ;;  %v9362_v51 = vld [vmem:[%s14102_s19 + $0x5ac] ss:$16 sps:$4 sm:$0xff]  }
 0xb3e   :  { %v9357_v58 = vld [vmem:[%s14102_s19 + $0x5a0] ss:$16 sps:$4 sm:$0xff]  }
 0xb40   :  { %5642 = vmatpush1.bf16.msra.mxu0 %v9285_v10  ;;  %5683 = vmatpush1.bf16.msra.mxu1 %v9288_v22  ;;  %v9360_v10 = vld [vmem:[%s14102_s19 + $0x5a8] ss:$16 sps:$4 sm:$0xff]   ;;  %v9365_v22 = vld [vmem:[%s14102_s19 + $0x584] ss:$16 sps:$4 sm:$0xff]  }
 0xb41   :  { %5643 = vmatprep.subr.bf16.mxu0 %v9293_v50  ;;  %5684 = vmatprep.subr.bf16.mxu1 %v9296_v54  ;;  %v9368_v50 = vld [vmem:[%s14102_s19 + $0x58c] ss:$16 sps:$4 sm:$0xff]   ;;  %v9363_v54 = vld [vmem:[%s14102_s19 + $0x580] ss:$16 sps:$4 sm:$0xff]  }
 0xb44   :  { %5644 = vmatpush1.bf16.msra.mxu0 %v9291_v20  ;;  %5685 = vmatpush1.bf16.msra.mxu1 %v9294_v0  ;;  %v9366_v20 = vld [vmem:[%s14102_s19 + $0x588] ss:$16 sps:$4 sm:$0xff]   ;;  %v9371_v0 = vld [vmem:[%s14102_s19 + $0x564] ss:$16 sps:$4 sm:$0xff]  }
 0xb45   :  { %5645 = vmatprep.subr.bf16.mxu0 %v9299_v13  ;;  %5686 = vmatprep.subr.bf16.mxu1 %v9302_v42  ;;  %v9374_v13 = vld [vmem:[%s14102_s19 + $0x56c] ss:$16 sps:$4 sm:$0xff]   ;;  %v9369_v42 = vld [vmem:[%s14102_s19 + $0x560] ss:$16 sps:$4 sm:$0xff]  }
 0xb48   :  { %5646 = vmatpush1.bf16.msra.mxu0 %v9297_v23  ;;  %5687 = vmatpush1.bf16.msra.mxu1 %v9300_v30  ;;  %v9372_v23 = vld [vmem:[%s14102_s19 + $0x568] ss:$16 sps:$4 sm:$0xff]   ;;  %v4171_v30 = vadd.f32 %v13137_v46, %v11706_v17 }
 0xb49   :  { %5647 = vmatprep.subr.bf16.mxu0 %v9305_v8  ;;  %5688 = vmatprep.subr.bf16.mxu1 %v9308_v14  ;;  %v9377_v8 = vld [vmem:[%s14102_s19 + $0x544] ss:$16 sps:$4 sm:$0xff]   ;;  %v9380_v14 = vld [vmem:[%s14102_s19 + $0x54c] ss:$16 sps:$4 sm:$0xff]   ;;  %v9378_v46 = vld [vmem:[%s14102_s19 + $0x548] ss:$16 sps:$4 sm:$0xff]  }
 0xb4c   :  { %5648 = vmatpush1.bf16.msra.mxu0 %v9303_v33  ;;  %5689 = vmatpush1.bf16.msra.mxu1 %v9306_v18  ;;  %v4172_v33 = vand.u32 2147483647, %v4171_v30  ;;  %v9383_v18 = vld [vmem:[%s14102_s19 + $0x6a4] ss:$16 sps:$4 sm:$0xff]   ;;  %v4174_v30 = vadd.f32 %v13055_v36, %v11706_v17 }
 0xb4d   :  { %5898 = vmatprep.subr.bf16.mxu0 %v9311_v55  ;;  %5939 = vmatprep.subr.bf16.mxu1 %v9314_v56  ;;  %v9381_v55 = vld [vmem:[%s14102_s19 + $0x6a0] ss:$16 sps:$4 sm:$0xff]   ;;  %v9384_v56 = vld [vmem:[%s14102_s19 + $0x6a8] ss:$16 sps:$4 sm:$0xff]  }
 0xb4f   :  { %7981 = vmatmul.mubr.msk.bf16.vlgmr.msra.gmra.mxu0 %vm3351_vm7, %v5484_v57  ;;  %7982 = vmatmul.mubr.msk.bf16.vlgmr.msra.gmra.mxu1 %vm3351_vm7, %v5484_v57  ;;  %v9392_v57 = vld [vmem:[%s14102_s19 + $0x68c] ss:$16 sps:$4 sm:$0xff]  }
 0xb50   :  { %5899 = vmatpush1.bf16.msra.mxu0 %v9309_v52  ;;  %5940 = vmatpush1.bf16.msra.mxu1 %v9312_v39  ;;  %v6006_v52 = vpack.c.bf16 %v4172_v33, %v4172_v33  ;;  %v9389_v39 = vld [vmem:[%s14102_s19 + $0x684] ss:$16 sps:$4 sm:$0xff]   ;;  %v9453_v33 = vld [vmem:[%s14102_s19 + $0x820] ss:$16 sps:$4 sm:$0xff]  }
 0xb51   :  { %5900 = vmatprep.subr.bf16.mxu0 %v9317_v41  ;;  %5941 = vmatprep.subr.bf16.mxu1 %v9320_v38  ;;  %v9387_v41 = vld [vmem:[%s14102_s19 + $0x680] ss:$16 sps:$4 sm:$0xff]   ;;  %v9390_v38 = vld [vmem:[%s14102_s19 + $0x688] ss:$16 sps:$4 sm:$0xff]  }
 0xb52   :  { %5926 = vmatprep.mubr.bf16.mxu0 %v9671_v40  ;;  %5967 = vmatprep.mubr.bf16.mxu1 %v9671_v40 }
 0xb54   :  { %5901 = vmatpush1.bf16.msra.mxu0 %v9315_v31  ;;  %5942 = vmatpush1.bf16.msra.mxu1 %v9318_v15  ;;  %v9395_v31 = vld [vmem:[%s14102_s19 + $0x664] ss:$16 sps:$4 sm:$0xff]   ;;  %v9398_v15 = vld [vmem:[%s14102_s19 + $0x66c] ss:$16 sps:$4 sm:$0xff]  }
 0xb55   :  { %5902 = vmatprep.subr.bf16.mxu0 %v9323_v62  ;;  %5943 = vmatprep.subr.bf16.mxu1 %v9326_v63  ;;  %v9393_v62 = vld [vmem:[%s14102_s19 + $0x660] ss:$16 sps:$4 sm:$0xff]   ;;  %v9396_v63 = vld [vmem:[%s14102_s19 + $0x668] ss:$16 sps:$4 sm:$0xff]  }
 0xb58   :  { %5903 = vmatpush1.bf16.msra.mxu0 %v9321_v12  ;;  %5944 = vmatpush1.bf16.msra.mxu1 %v9324_v37  ;;  %v9401_v12 = vld [vmem:[%s14102_s19 + $0x644] ss:$16 sps:$4 sm:$0xff]   ;;  %v9404_v37 = vld [vmem:[%s14102_s19 + $0x64c] ss:$16 sps:$4 sm:$0xff]  }
 0xb59   :  { %5904 = vmatprep.subr.bf16.mxu0 %v9329_v1  ;;  %5945 = vmatprep.subr.bf16.mxu1 %v9332_v9  ;;  %v9399_v1 = vld [vmem:[%s14102_s19 + $0x640] ss:$16 sps:$4 sm:$0xff]   ;;  %v9402_v9 = vld [vmem:[%s14102_s19 + $0x648] ss:$16 sps:$4 sm:$0xff]  }
 0xb5c   :  { %5905 = vmatpush1.bf16.msra.mxu0 %v9327_v6  ;;  %5946 = vmatpush1.bf16.msra.mxu1 %v9330_v48  ;;  %v9407_v6 = vld [vmem:[%s14102_s19 + $0x624] ss:$16 sps:$4 sm:$0xff]   ;;  %v9410_v48 = vld [vmem:[%s14102_s19 + $0x62c] ss:$16 sps:$4 sm:$0xff]  }
 0xb5d   :  { %5906 = vmatprep.subr.bf16.mxu0 %v9335_v45  ;;  %5947 = vmatprep.subr.bf16.mxu1 %v9338_v43  ;;  %v9405_v45 = vld [vmem:[%s14102_s19 + $0x620] ss:$16 sps:$4 sm:$0xff]   ;;  %v9408_v43 = vld [vmem:[%s14102_s19 + $0x628] ss:$16 sps:$4 sm:$0xff]  }
 0xb60   :  { %5907 = vmatpush1.bf16.msra.mxu0 %v9333_v61  ;;  %5948 = vmatpush1.bf16.msra.mxu1 %v9336_v26  ;;  %v9413_v61 = vld [vmem:[%s14102_s19 + $0x604] ss:$16 sps:$4 sm:$0xff]   ;;  %v9416_v26 = vld [vmem:[%s14102_s19 + $0x60c] ss:$16 sps:$4 sm:$0xff]  }
 0xb61   :  { %5908 = vmatprep.subr.bf16.mxu0 %v9341_v49  ;;  %5949 = vmatprep.subr.bf16.mxu1 %v9344_v60  ;;  %v9411_v49 = vld [vmem:[%s14102_s19 + $0x600] ss:$16 sps:$4 sm:$0xff]   ;;  %v9414_v60 = vld [vmem:[%s14102_s19 + $0x608] ss:$16 sps:$4 sm:$0xff]  }
 0xb64   :  { %5909 = vmatpush1.bf16.msra.mxu0 %v9339_v59  ;;  %5950 = vmatpush1.bf16.msra.mxu1 %v9342_v21  ;;  %v4173_v59 = vmul.f32 %v13055_v36, %v11706_v17  ;;  %v9419_v21 = vld [vmem:[%s14102_s19 + $0x764] ss:$16 sps:$4 sm:$0xff]   ;;  %v9458_v17 = vld [vmem:[%s14102_s19 + $0x82c] ss:$16 sps:$4 sm:$0xff]  }
 0xb65   :  { %6159 = vmatprep.subr.bf16.mxu0 %v9347_v7  ;;  %6200 = vmatprep.subr.bf16.mxu1 %v9350_v24  ;;  %v9417_v7 = vld [vmem:[%s14102_s19 + $0x760] ss:$16 sps:$4 sm:$0xff]   ;;  %v9420_v24 = vld [vmem:[%s14102_s19 + $0x768] ss:$16 sps:$4 sm:$0xff]  }
 0xb67   :  { %8031 = vmatmul.mubr.msk.bf16.vlgmr.msra.gmra.mxu0 %vm3351_vm7, %v5745_v27  ;;  %8032 = vmatmul.mubr.msk.bf16.vlgmr.msra.gmra.mxu1 %vm3351_vm7, %v5745_v27  ;;  %v9428_v27 = vld [vmem:[%s14102_s19 + $0x74c] ss:$16 sps:$4 sm:$0xff]  }
 0xb68   :  { %6160 = vmatpush1.bf16.msra.mxu0 %v9345_v5  ;;  %6201 = vmatpush1.bf16.msra.mxu1 %v9348_v29  ;;  %v6267_v5 = vpack.c.bf16 %v4173_v59, %v4173_v59  ;;  %v9425_v29 = vld [vmem:[%s14102_s19 + $0x744] ss:$16 sps:$4 sm:$0xff]   ;;  %v9489_v59 = vld [vmem:[%s14102_s19 + $0x8e0] ss:$16 sps:$4 sm:$0xff]  }
 0xb69   :  { %6161 = vmatprep.subr.bf16.mxu0 %v9353_v32  ;;  %6202 = vmatprep.subr.bf16.mxu1 %v9356_v53  ;;  %v9423_v32 = vld [vmem:[%s14102_s19 + $0x740] ss:$16 sps:$4 sm:$0xff]   ;;  %v9426_v53 = vld [vmem:[%s14102_s19 + $0x748] ss:$16 sps:$4 sm:$0xff]  }
 0xb6a   :  { %6187 = vmatprep.mubr.bf16.mxu0 %v9671_v40  ;;  %6228 = vmatprep.mubr.bf16.mxu1 %v9671_v40 }
 0xb6c   :  { %6162 = vmatpush1.bf16.msra.mxu0 %v9351_v35  ;;  %6203 = vmatpush1.bf16.msra.mxu1 %v9354_v25  ;;  %v9431_v35 = vld [vmem:[%s14102_s19 + $0x724] ss:$16 sps:$4 sm:$0xff]   ;;  %v9434_v25 = vld [vmem:[%s14102_s19 + $0x72c] ss:$16 sps:$4 sm:$0xff]  }
 0xb6d   :  { %6163 = vmatprep.subr.bf16.mxu0 %v9359_v34  ;;  %6204 = vmatprep.subr.bf16.mxu1 %v9362_v51  ;;  %v9429_v34 = vld [vmem:[%s14102_s19 + $0x720] ss:$16 sps:$4 sm:$0xff]   ;;  %v9432_v51 = vld [vmem:[%s14102_s19 + $0x728] ss:$16 sps:$4 sm:$0xff]  }
 0xb70   :  { %6164 = vmatpush1.bf16.msra.mxu0 %v9357_v58  ;;  %6205 = vmatpush1.bf16.msra.mxu1 %v9360_v10  ;;  %v9437_v58 = vld [vmem:[%s14102_s19 + $0x704] ss:$16 sps:$4 sm:$0xff]   ;;  %v9440_v10 = vld [vmem:[%s14102_s19 + $0x70c] ss:$16 sps:$4 sm:$0xff]  }
 0xb71   :  { %6165 = vmatprep.subr.bf16.mxu0 %v9365_v22  ;;  %6206 = vmatprep.subr.bf16.mxu1 %v9368_v50  ;;  %v9435_v22 = vld [vmem:[%s14102_s19 + $0x700] ss:$16 sps:$4 sm:$0xff]   ;;  %v9438_v50 = vld [vmem:[%s14102_s19 + $0x708] ss:$16 sps:$4 sm:$0xff]  }
 0xb74   :  { %6166 = vmatpush1.bf16.msra.mxu0 %v9363_v54  ;;  %6207 = vmatpush1.bf16.msra.mxu1 %v9366_v20  ;;  %v9443_v54 = vld [vmem:[%s14102_s19 + $0x6e4] ss:$16 sps:$4 sm:$0xff]   ;;  %v9446_v20 = vld [vmem:[%s14102_s19 + $0x6ec] ss:$16 sps:$4 sm:$0xff]  }
 0xb75   :  { %6167 = vmatprep.subr.bf16.mxu0 %v9371_v0  ;;  %6208 = vmatprep.subr.bf16.mxu1 %v9374_v13  ;;  %v9441_v0 = vld [vmem:[%s14102_s19 + $0x6e0] ss:$16 sps:$4 sm:$0xff]   ;;  %v9444_v13 = vld [vmem:[%s14102_s19 + $0x6e8] ss:$16 sps:$4 sm:$0xff]  }
 0xb78   :  { %6168 = vmatpush1.bf16.msra.mxu0 %v9369_v42  ;;  %6209 = vmatpush1.bf16.msra.mxu1 %v9372_v23  ;;  %v9449_v42 = vld [vmem:[%s14102_s19 + $0x6c4] ss:$16 sps:$4 sm:$0xff]   ;;  %v9452_v23 = vld [vmem:[%s14102_s19 + $0x6cc] ss:$16 sps:$4 sm:$0xff]  }
 0xb79   :  { %6169 = vmatprep.subr.bf16.mxu0 %v9377_v8  ;;  %6210 = vmatprep.subr.bf16.mxu1 %v9380_v14  ;;  %v9447_v8 = vld [vmem:[%s14102_s19 + $0x6c0] ss:$16 sps:$4 sm:$0xff]   ;;  %v9450_v14 = vld [vmem:[%s14102_s19 + $0x6c8] ss:$16 sps:$4 sm:$0xff]  }
 0xb7c   :  { %6170 = vmatpush1.bf16.msra.mxu0 %v9375_v11  ;;  %6211 = vmatpush1.bf16.msra.mxu1 %v9378_v46  ;;  %v4175_v11 = vand.u32 2147483647, %v4174_v30  ;;  %v9455_v46 = vld [vmem:[%s14102_s19 + $0x824] ss:$16 sps:$4 sm:$0xff]  }
 0xb7d   :  { %6420 = vmatprep.subr.bf16.mxu0 %v9383_v18  ;;  %6461 = vmatprep.subr.bf16.mxu1 %v9386_v28  ;;  %v9456_v18 = vld [vmem:[%s14102_s19 + $0x828] ss:$16 sps:$4 sm:$0xff]  }
 0xb7e   :  { %v6528_v28 = vpack.c.bf16 %v4175_v11, %v4175_v11  ;;  %v9510_v11 = vld [vmem:[%s14102_s19 + $0x888] ss:$16 sps:$4 sm:$0xff]  }
 0xb7f   :  { %8081 = vmatmul.mubr.msk.bf16.vlgmr.msra.gmra.mxu0 %vm3351_vm7, %v6006_v52  ;;  %8082 = vmatmul.mubr.msk.bf16.vlgmr.msra.gmra.mxu1 %vm3351_vm7, %v6006_v52  ;;  %v9459_v52 = vld [vmem:[%s14102_s19 + $0x800] ss:$16 sps:$4 sm:$0xff]  }
 0xb80   :  { %6421 = vmatpush1.bf16.msra.mxu0 %v9381_v55  ;;  %6462 = vmatpush1.bf16.msra.mxu1 %v9384_v56  ;;  %v9461_v55 = vld [vmem:[%s14102_s19 + $0x804] ss:$16 sps:$4 sm:$0xff]   ;;  %v9464_v56 = vld [vmem:[%s14102_s19 + $0x80c] ss:$16 sps:$4 sm:$0xff]  }
 0xb81   :  { %6422 = vmatprep.subr.bf16.mxu0 %v9389_v39  ;;  %6463 = vmatprep.subr.bf16.mxu1 %v9392_v57  ;;  %v9462_v39 = vld [vmem:[%s14102_s19 + $0x808] ss:$16 sps:$4 sm:$0xff]   ;;  %v9467_v57 = vld [vmem:[%s14102_s19 + $0x7e4] ss:$16 sps:$4 sm:$0xff]  }
 0xb82   :  { %6448 = vmatprep.mubr.bf16.mxu0 %v9671_v40  ;;  %6489 = vmatprep.mubr.bf16.mxu1 %v9671_v40 }
 0xb84   :  { %6423 = vmatpush1.bf16.msra.mxu0 %v9387_v41  ;;  %6464 = vmatpush1.bf16.msra.mxu1 %v9390_v38  ;;  %v9470_v41 = vld [vmem:[%s14102_s19 + $0x7ec] ss:$16 sps:$4 sm:$0xff]   ;;  %v9465_v38 = vld [vmem:[%s14102_s19 + $0x7e0] ss:$16 sps:$4 sm:$0xff]  }
 0xb85   :  { %6424 = vmatprep.subr.bf16.mxu0 %v9395_v31  ;;  %6465 = vmatprep.subr.bf16.mxu1 %v9398_v15  ;;  %v9468_v31 = vld [vmem:[%s14102_s19 + $0x7e8] ss:$16 sps:$4 sm:$0xff]   ;;  %v9473_v15 = vld [vmem:[%s14102_s19 + $0x7c4] ss:$16 sps:$4 sm:$0xff]  }
 0xb88   :  { %6425 = vmatpush1.bf16.msra.mxu0 %v9393_v62  ;;  %6466 = vmatpush1.bf16.msra.mxu1 %v9396_v63  ;;  %v9476_v62 = vld [vmem:[%s14102_s19 + $0x7cc] ss:$16 sps:$4 sm:$0xff]   ;;  %v9471_v63 = vld [vmem:[%s14102_s19 + $0x7c0] ss:$16 sps:$4 sm:$0xff]  }
 0xb89   :  { %6426 = vmatprep.subr.bf16.mxu0 %v9401_v12  ;;  %6467 = vmatprep.subr.bf16.mxu1 %v9404_v37  ;;  %v9474_v12 = vld [vmem:[%s14102_s19 + $0x7c8] ss:$16 sps:$4 sm:$0xff]   ;;  %v9479_v37 = vld [vmem:[%s14102_s19 + $0x7a4] ss:$16 sps:$4 sm:$0xff]  }
 0xb8c   :  { %6427 = vmatpush1.bf16.msra.mxu0 %v9399_v1  ;;  %6468 = vmatpush1.bf16.msra.mxu1 %v9402_v9  ;;  %v9482_v1 = vld [vmem:[%s14102_s19 + $0x7ac] ss:$16 sps:$4 sm:$0xff]   ;;  %v9477_v9 = vld [vmem:[%s14102_s19 + $0x7a0] ss:$16 sps:$4 sm:$0xff]  }
 0xb8d   :  { %6428 = vmatprep.subr.bf16.mxu0 %v9407_v6  ;;  %6469 = vmatprep.subr.bf16.mxu1 %v9410_v48  ;;  %v9480_v6 = vld [vmem:[%s14102_s19 + $0x7a8] ss:$16 sps:$4 sm:$0xff]   ;;  %v9485_v48 = vld [vmem:[%s14102_s19 + $0x784] ss:$16 sps:$4 sm:$0xff]  }
 0xb90   :  { %6429 = vmatpush1.bf16.msra.mxu0 %v9405_v45  ;;  %6470 = vmatpush1.bf16.msra.mxu1 %v9408_v43  ;;  %v9488_v45 = vld [vmem:[%s14102_s19 + $0x78c] ss:$16 sps:$4 sm:$0xff]   ;;  %v9483_v43 = vld [vmem:[%s14102_s19 + $0x780] ss:$16 sps:$4 sm:$0xff]  }
 0xb91   :  { %6430 = vmatprep.subr.bf16.mxu0 %v9413_v61  ;;  %6471 = vmatprep.subr.bf16.mxu1 %v9416_v26  ;;  %v9486_v61 = vld [vmem:[%s14102_s19 + $0x788] ss:$16 sps:$4 sm:$0xff]   ;;  %v4176_v26 = vmul.f32 %v13055_v36, %v12859_v47 }
 0xb94   :  { %6431 = vmatpush1.bf16.msra.mxu0 %v9411_v49  ;;  %6472 = vmatpush1.bf16.msra.mxu1 %v9414_v60  ;;  %v9491_v49 = vld [vmem:[%s14102_s19 + $0x8e4] ss:$16 sps:$4 sm:$0xff]   ;;  %v9494_v60 = vld [vmem:[%s14102_s19 + $0x8ec] ss:$16 sps:$4 sm:$0xff]  }
 0xb95   :  { %6681 = vmatprep.subr.bf16.mxu0 %v9419_v21  ;;  %6722 = vmatprep.subr.bf16.mxu1 %v9422_v16  ;;  %v9492_v21 = vld [vmem:[%s14102_s19 + $0x8e8] ss:$16 sps:$4 sm:$0xff]   ;;  %v6789_v16 = vpack.c.bf16 %v4176_v26, %v4176_v26 }
 0xb97   :  { %8131 = vmatmul.mubr.msk.bf16.vlgmr.msra.gmra.mxu0 %vm3351_vm7, %v6267_v5  ;;  %8132 = vmatmul.mubr.msk.bf16.vlgmr.msra.gmra.mxu1 %vm3351_vm7, %v6267_v5 }
 0xb98   :  { %6682 = vmatpush1.bf16.msra.mxu0 %v9417_v7  ;;  %6723 = vmatpush1.bf16.msra.mxu1 %v9420_v24  ;;  %v9497_v7 = vld [vmem:[%s14102_s19 + $0x8c4] ss:$16 sps:$4 sm:$0xff]   ;;  %v9500_v24 = vld [vmem:[%s14102_s19 + $0x8cc] ss:$16 sps:$4 sm:$0xff]  }
 0xb99   :  { %6683 = vmatprep.subr.bf16.mxu0 %v9425_v29  ;;  %6724 = vmatprep.subr.bf16.mxu1 %v9428_v27  ;;  %v9495_v27 = vld [vmem:[%s14102_s19 + $0x8c0] ss:$16 sps:$4 sm:$0xff]  }
 0xb9a   :  { %6709 = vmatprep.mubr.bf16.mxu0 %v9671_v40  ;;  %6750 = vmatprep.mubr.bf16.mxu1 %v9671_v40 }
 0xb9c   :  { %6684 = vmatpush1.bf16.msra.mxu0 %v9423_v32  ;;  %6725 = vmatpush1.bf16.msra.mxu1 %v9426_v53  ;;  %v9498_v32 = vld [vmem:[%s14102_s19 + $0x8c8] ss:$16 sps:$4 sm:$0xff]  }
 0xb9d   :  { %6685 = vmatprep.subr.bf16.mxu0 %v9431_v35  ;;  %6726 = vmatprep.subr.bf16.mxu1 %v9434_v25  ;;  %v9503_v25 = vld [vmem:[%s14102_s19 + $0x8a4] ss:$16 sps:$4 sm:$0xff]  }
 0xba0   :  { %6686 = vmatpush1.bf16.msra.mxu0 %v9429_v34  ;;  %6727 = vmatpush1.bf16.msra.mxu1 %v9432_v51  ;;  %v9506_v34 = vld [vmem:[%s14102_s19 + $0x8ac] ss:$16 sps:$4 sm:$0xff]  }
 0xba1   :  { %6687 = vmatprep.subr.bf16.mxu0 %v9437_v58  ;;  %6728 = vmatprep.subr.bf16.mxu1 %v9440_v10 }
 0xba4   :  { %6688 = vmatpush1.bf16.msra.mxu0 %v9435_v22  ;;  %6729 = vmatpush1.bf16.msra.mxu1 %v9438_v50 }
 0xba5   :  { %6689 = vmatprep.subr.bf16.mxu0 %v9443_v54  ;;  %6730 = vmatprep.subr.bf16.mxu1 %v9446_v20  ;;  %v9501_v20 = vld [vmem:[%s14102_s19 + $0x8a0] ss:$16 sps:$4 sm:$0xff]  }
 0xba8   :  { %6690 = vmatpush1.bf16.msra.mxu0 %v9441_v0  ;;  %6731 = vmatpush1.bf16.msra.mxu1 %v9444_v13  ;;  %v9504_v0 = vld [vmem:[%s14102_s19 + $0x8a8] ss:$16 sps:$4 sm:$0xff]  }
 0xba9   :  { %6691 = vmatprep.subr.bf16.mxu0 %v9449_v42  ;;  %6732 = vmatprep.subr.bf16.mxu1 %v9452_v23  ;;  %v9512_v23 = vld [vmem:[%s14102_s19 + $0x88c] ss:$16 sps:$4 sm:$0xff]  }
 0xbac   :  { %6692 = vmatpush1.bf16.msra.mxu0 %v9447_v8  ;;  %6733 = vmatpush1.bf16.msra.mxu1 %v9450_v14  ;;  %v9507_v14 = vld [vmem:[%s14102_s19 + $0x880] ss:$16 sps:$4 sm:$0xff]  }
 0xbad   :  { %6942 = vmatprep.subr.bf16.mxu0 %v9455_v46  ;;  %6983 = vmatprep.subr.bf16.mxu1 %v9458_v17  ;;  %v9515_v46 = vld [vmem:[%s14102_s19 + $0x864] ss:$16 sps:$4 sm:$0xff]   ;;  %v9518_v17 = vld [vmem:[%s14102_s19 + $0x86c] ss:$16 sps:$4 sm:$0xff]  }
 0xbaf   :  { %8181 = vmatmul.mubr.msk.bf16.vlgmr.msra.gmra.mxu0 %vm3351_vm7, %v6528_v28  ;;  %8182 = vmatmul.mubr.msk.bf16.vlgmr.msra.gmra.mxu1 %vm3351_vm7, %v6528_v28  ;;  %v9516_v28 = vld [vmem:[%s14102_s19 + $0x868] ss:$16 sps:$4 sm:$0xff]  }
 0xbb0   :  { %6943 = vmatpush1.bf16.msra.mxu0 %v9453_v33  ;;  %6984 = vmatpush1.bf16.msra.mxu1 %v9456_v18  ;;  %v9513_v18 = vld [vmem:[%s14102_s19 + $0x860] ss:$16 sps:$4 sm:$0xff]  }
 0xbb1   :  { %6944 = vmatprep.subr.bf16.mxu0 %v9461_v55  ;;  %6985 = vmatprep.subr.bf16.mxu1 %v9464_v56  ;;  %v9521_v55 = vld [vmem:[%s14102_s19 + $0x844] ss:$16 sps:$4 sm:$0xff]   ;;  %v4177_v56 = vadd.f32 %v13055_v36, %v12859_v47 }
 0xbb2   :  { %6970 = vmatprep.mubr.bf16.mxu0 %v9671_v40  ;;  %7011 = vmatprep.mubr.bf16.mxu1 %v9671_v40 }
 0xbb4   :  { %6945 = vmatpush1.bf16.msra.mxu0 %v9459_v52  ;;  %6986 = vmatpush1.bf16.msra.mxu1 %v9462_v39  ;;  %v9519_v52 = vld [vmem:[%s14102_s19 + $0x840] ss:$16 sps:$4 sm:$0xff]   ;;  %v9522_v39 = vld [vmem:[%s14102_s19 + $0x848] ss:$16 sps:$4 sm:$0xff]  }
 0xbb5   :  { %6946 = vmatprep.subr.bf16.mxu0 %v9467_v57  ;;  %6987 = vmatprep.subr.bf16.mxu1 %v9470_v41  ;;  %v4178_v57 = vand.u32 2147483647, %v4177_v56 }
 0xbb7   :  { %v7050_v41 = vpack.c.bf16 %v4178_v57, %v4178_v57 }
 0xbb8   :  { %6947 = vmatpush1.bf16.msra.mxu0 %v9465_v38  ;;  %6988 = vmatpush1.bf16.msra.mxu1 %v9468_v31 }
 0xbb9   :  { %6948 = vmatprep.subr.bf16.mxu0 %v9473_v15  ;;  %6989 = vmatprep.subr.bf16.mxu1 %v9476_v62 }
 0xbbc   :  { %6949 = vmatpush1.bf16.msra.mxu0 %v9471_v63  ;;  %6990 = vmatpush1.bf16.msra.mxu1 %v9474_v12 }
 0xbbd   :  { %6950 = vmatprep.subr.bf16.mxu0 %v9479_v37  ;;  %6991 = vmatprep.subr.bf16.mxu1 %v9482_v1 }
 0xbc0   :  { %6951 = vmatpush1.bf16.msra.mxu0 %v9477_v9  ;;  %6992 = vmatpush1.bf16.msra.mxu1 %v9480_v6 }
 0xbc1   :  { %6952 = vmatprep.subr.bf16.mxu0 %v9485_v48  ;;  %6993 = vmatprep.subr.bf16.mxu1 %v9488_v45 }
 0xbc4   :  { %6953 = vmatpush1.bf16.msra.mxu0 %v9483_v43  ;;  %6994 = vmatpush1.bf16.msra.mxu1 %v9486_v61 }
 0xbc5   :  { %7203 = vmatprep.subr.bf16.mxu0 %v9491_v49  ;;  %7244 = vmatprep.subr.bf16.mxu1 %v9494_v60 }
 0xbc7   :  { %8231 = vmatmul.mubr.msk.bf16.vlgmr.msra.gmra.mxu0 %vm3351_vm7, %v6789_v16  ;;  %8232 = vmatmul.mubr.msk.bf16.vlgmr.msra.gmra.mxu1 %vm3351_vm7, %v6789_v16  ;;  %v4884_v5 = vpop.f32.mrf.mxu0  ;;  %v4925_v29 = vpop.f32.mrf.mxu1 }
 0xbc8   :  { %7204 = vmatpush1.bf16.msra.mxu0 %v9489_v59  ;;  %7245 = vmatpush1.bf16.msra.mxu1 %v9492_v21 }
 0xbc9   :  { %v4886_v53 = vpop.f32.mrf.mxu0  ;;  %v4927_v35 = vpop.f32.mrf.mxu1  ;;  %7205 = vmatprep.subr.bf16.mxu0 %v9497_v7  ;;  %7246 = vmatprep.subr.bf16.mxu1 %v9500_v24 }
 0xbca   :  { %v4936_v51 = vcombine.low %v4884_v5, %v4886_v53  ;;  %v4937_v58 = vcombine.low %v4925_v29, %v4927_v35  ;;  %7231 = vmatprep.mubr.bf16.mxu0 %v9671_v40  ;;  %7272 = vmatprep.mubr.bf16.mxu1 %v9671_v40  ;;  %v9509_v40 = vld [vmem:[%s14102_s19 + $0x884] ss:$16 sps:$4 sm:$0xff]  }
 0xbcb   :  { %v4888_v10 = vpop.f32.mrf.mxu0  ;;  %v4929_v22 = vpop.f32.mrf.mxu1 }
 0xbcc   :  { %v4944_v50 = vrot.slane %v4936_v51, %v12873_v19  ;;  %v4951_v54 = vrot.slane %v4937_v58, %v12873_v19  ;;  %7206 = vmatpush1.bf16.msra.mxu0 %v9495_v27  ;;  %7247 = vmatpush1.bf16.msra.mxu1 %v9498_v32 }
 0xbcd   :  { %v4889_v13 = vpop.f32.mrf.mxu0  ;;  %v4930_v42 = vpop.f32.mrf.mxu1  ;;  %7207 = vmatprep.subr.bf16.mxu0 %v9503_v25  ;;  %7248 = vmatprep.subr.bf16.mxu1 %v9506_v34 }
 0xbce   :  { %v4952_v30 = vcombine.low %v4944_v50, %v4951_v54 }
 0xbd0   :  { %v4959_v8 = vrot.slane %v4952_v30, %v12873_v19  ;;  %7208 = vmatpush1.bf16.msra.mxu0 %v9501_v20  ;;  %7249 = vmatpush1.bf16.msra.mxu1 %v9504_v0 }
 0xbd1   :  { %7209 = vmatprep.subr.bf16.mxu0 %v9509_v40  ;;  %7250 = vmatprep.subr.bf16.mxu1 %v9512_v23 }
 0xbd2   :  { %v4961_v33 = vadd.f32 %v4959_v8, %v13265_v4  ;;  %v9524_v4 = vld [vmem:[%s14102_s19 + $0x84c] ss:$16 sps:$4 sm:$0xff]  }
 0xbd4   :  { %7210 = vmatpush1.bf16.msra.mxu0 %v9507_v14  ;;  %7251 = vmatpush1.bf16.msra.mxu1 %v9510_v11 }
 0xbd5   :  { %7211 = vmatprep.subr.bf16.mxu0 %v9515_v46  ;;  %7252 = vmatprep.subr.bf16.mxu1 %v9518_v17 }
 0xbd8   :  { %7212 = vmatpush1.bf16.msra.mxu0 %v9513_v18  ;;  %7253 = vmatpush1.bf16.msra.mxu1 %v9516_v28 }
 0xbd9   :  { %7213 = vmatprep.subr.bf16.mxu0 %v9521_v55  ;;  %7254 = vmatprep.subr.bf16.mxu1 %v9524_v4 }
 0xbdc   :  { %7214 = vmatpush1.bf16.msra.mxu0 %v9519_v52  ;;  %7255 = vmatpush1.bf16.msra.mxu1 %v9522_v39 }
 0xbdf   :  { %v5145_v38 = vpop.f32.mrf.mxu0  ;;  %v5186_v31 = vpop.f32.mrf.mxu1  ;;  %8281 = vmatmul.mubr.msk.bf16.vlgmr.msra.gmra.mxu0 %vm3351_vm7, %v7050_v41  ;;  %8282 = vmatmul.mubr.msk.bf16.vlgmr.msra.gmra.mxu1 %vm3351_vm7, %v7050_v41 }
 0xbe1   :  { %v5147_v47 = vpop.f32.mrf.mxu0  ;;  %v5188_v36 = vpop.f32.mrf.mxu1 }
 0xbe2   :  { %v5197_v15 = vcombine.low %v5145_v38, %v5147_v47  ;;  %v5198_v62 = vcombine.low %v5186_v31, %v5188_v36  ;;  %v7348_v38 = vld [vmem:[%s14104_s21 + $0xf8] sm:$0xff] }
 0xbe3   :  { %v5149_v63 = vpop.f32.mrf.mxu0  ;;  %v5190_v12 = vpop.f32.mrf.mxu1  ;;  %v7380_v31 = vld [vmem:[%s14104_s21 + $0x1f8] sm:$0xff]  ;;  %8501 = vmatprep.subr.mxu0 %v7348_v38  ;;  %v7369_v38 = vld [vmem:[%s14104_s21 + $0x1a0] sm:$0xff] }
 0xbe4   :  { %v5205_v37 = vrot.slane %v5197_v15, %v12873_v19  ;;  %v5212_v1 = vrot.slane %v5198_v62, %v12873_v19  ;;  %v7332_v47 = vld [vmem:[%s14104_s21 + $0x78] sm:$0xff]  ;;  %8536 = vmatprep.subr.mxu1 %v7380_v31  ;;  %v7347_v63 = vld [vmem:[%s14104_s21 + $0xf0] sm:$0xff]  ;;  %v7321_v31 = vld [vmem:[%s14104_s21 + $0x20] sm:$0xff] }
 0xbe5   :  { %v5150_v9 = vpop.f32.mrf.mxu0  ;;  %v5191_v6 = vpop.f32.mrf.mxu1  ;;  %v7364_v62 = vld [vmem:[%s14104_s21 + $0x178] sm:$0xff]  ;;  %v7379_v12 = vld [vmem:[%s14104_s21 + $0x1f0] sm:$0xff]  ;;  %8502 = vmatpush3.msra.mxu0 %v7332_v47  ;;  %v7353_v47 = vld [vmem:[%s14104_s21 + $0x120] sm:$0xff] }
 0xbe6   :  { %v5213_v48 = vcombine.low %v5205_v37, %v5212_v1  ;;  %8537 = vmatpush3.msra.mxu1 %v7364_v62  ;;  %v7331_v37 = vld [vmem:[%s14104_s21 + $0x70] sm:$0xff]  ;;  %v7346_v9 = vld [vmem:[%s14104_s21 + $0xe8] sm:$0xff]  ;;  %8503 = vmatprep.subr.mxu0 %v7347_v63  ;;  %v7320_v62 = vld [vmem:[%s14104_s21 + $0x18] sm:$0xff] }
 0xbe7   :  { %v7363_v1 = vld [vmem:[%s14104_s21 + $0x170] sm:$0xff]  ;;  %8538 = vmatprep.subr.mxu1 %v7379_v12  ;;  %8504 = vmatpush3.msra.mxu0 %v7331_v37  ;;  %v7352_v63 = vld [vmem:[%s14104_s21 + $0x118] sm:$0xff] }
 0xbe8   :  { %v5220_v45 = vrot.slane %v5213_v48, %v12873_v19  ;;  %8539 = vmatpush3.msra.mxu1 %v7363_v1  ;;  %8505 = vmatprep.subr.mxu0 %v7346_v9  ;;  %v7335_v12 = vld [vmem:[%s14104_s21 + $0x90] sm:$0xff] }
 0xbe9   :  { %v7367_v37 = vld [vmem:[%s14104_s21 + $0x190] sm:$0xff] }
 0xbea   :  { %v5222_v43 = vadd.f32 %v5220_v45, %v4961_v33  ;;  %v7378_v45 = vld [vmem:[%s14104_s21 + $0x1e8] sm:$0xff] }
 0xbeb   :  { %8540 = vmatprep.subr.mxu1 %v7378_v45  ;;  %v7334_v45 = vld [vmem:[%s14104_s21 + $0x88] sm:$0xff] }
 0xbf7   :  { %v5406_v61 = vpop.f32.mrf.mxu0  ;;  %v5447_v26 = vpop.f32.mrf.mxu1 }
 0xbf9   :  { %v5408_v49 = vpop.f32.mrf.mxu0  ;;  %v5449_v60 = vpop.f32.mrf.mxu1 }
 0xbfa   :  { %v5458_v59 = vcombine.low %v5406_v61, %v5408_v49  ;;  %v5459_v21 = vcombine.low %v5447_v26, %v5449_v60  ;;  %v7362_v61 = vld [vmem:[%s14104_s21 + $0x168] sm:$0xff]  ;;  %v7345_v60 = vld [vmem:[%s14104_s21 + $0xe0] sm:$0xff] }
 0xbfb   :  { %v5410_v16 = vpop.f32.mrf.mxu0  ;;  %v5451_v7 = vpop.f32.mrf.mxu1  ;;  %8541 = vmatpush3.msra.mxu1 %v7362_v61 }
 0xbfc   :  { %v5466_v24 = vrot.slane %v5458_v59, %v12873_v19  ;;  %v5473_v5 = vrot.slane %v5459_v21, %v12873_v19  ;;  %v7377_v59 = vld [vmem:[%s14104_s21 + $0x1e0] sm:$0xff] }
 0xbfd   :  { %v5411_v29 = vpop.f32.mrf.mxu0  ;;  %v5452_v27 = vpop.f32.mrf.mxu1  ;;  %v7329_v7 = vld [vmem:[%s14104_s21 + $0x60] sm:$0xff]  ;;  %8542 = vmatprep.subr.mxu1 %v7377_v59 }
 0xbfe   :  { %v5474_v32 = vcombine.low %v5466_v24, %v5473_v5  ;;  %v7361_v24 = vld [vmem:[%s14104_s21 + $0x160] sm:$0xff]  ;;  %v7344_v27 = vld [vmem:[%s14104_s21 + $0xd8] sm:$0xff] }
 0xbff   :  { %8543 = vmatpush3.msra.mxu1 %v7361_v24 }
 0xc00   :  { %v5481_v53 = vrot.slane %v5474_v32, %v12873_v19  ;;  %v7376_v32 = vld [vmem:[%s14104_s21 + $0x1d8] sm:$0xff] }
 0xc01   :  { %8544 = vmatprep.subr.mxu1 %v7376_v32 }
 0xc02   :  { %v5483_v35 = vadd.f32 %v5481_v53, %v5222_v43  ;;  %v7330_v43 = vld [vmem:[%s14104_s21 + $0x68] sm:$0xff] }
 0xc03   :  { %8506 = vmatpush3.msra.mxu0 %v7330_v43  ;;  %v7366_v43 = vld [vmem:[%s14104_s21 + $0x188] sm:$0xff] }
 0xc04   :  { %8507 = vmatprep.subr.mxu0 %v7345_v60  ;;  %v7350_v60 = vld [vmem:[%s14104_s21 + $0x108] sm:$0xff] }
 0xc05   :  { %8508 = vmatpush3.msra.mxu0 %v7329_v7  ;;  %v7365_v7 = vld [vmem:[%s14104_s21 + $0x180] sm:$0xff] }
 0xc06   :  { %8509 = vmatprep.subr.mxu0 %v7344_v27  ;;  %v7349_v27 = vld [vmem:[%s14104_s21 + $0x100] sm:$0xff] }
 0xc0f   :  { %v5667_v25 = vpop.f32.mrf.mxu0  ;;  %v5708_v34 = vpop.f32.mrf.mxu1 }
 0xc11   :  { %v5669_v51 = vpop.f32.mrf.mxu0  ;;  %v5710_v58 = vpop.f32.mrf.mxu1 }
 0xc12   :  { %v5719_v10 = vcombine.low %v5667_v25, %v5669_v51  ;;  %v5720_v22 = vcombine.low %v5708_v34, %v5710_v58  ;;  %v7328_v25 = vld [vmem:[%s14104_s21 + $0x58] sm:$0xff]  ;;  %v7343_v58 = vld [vmem:[%s14104_s21 + $0xd0] sm:$0xff] }
 0xc13   :  { %v5671_v50 = vpop.f32.mrf.mxu0  ;;  %v5712_v54 = vpop.f32.mrf.mxu1  ;;  %v7360_v34 = vld [vmem:[%s14104_s21 + $0x158] sm:$0xff]  ;;  %8510 = vmatpush3.msra.mxu0 %v7328_v25 }
 0xc14   :  { %v5727_v20 = vrot.slane %v5719_v10, %v12873_v19  ;;  %v5734_v0 = vrot.slane %v5720_v22, %v12873_v19  ;;  %v7375_v10 = vld [vmem:[%s14104_s21 + $0x1d0] sm:$0xff]  ;;  %8545 = vmatpush3.msra.mxu1 %v7360_v34  ;;  %8511 = vmatprep.subr.mxu0 %v7343_v58 }
 0xc15   :  { %v5672_v13 = vpop.f32.mrf.mxu0  ;;  %v5713_v42 = vpop.f32.mrf.mxu1  ;;  %v7327_v22 = vld [vmem:[%s14104_s21 + $0x50] sm:$0xff]  ;;  %8546 = vmatprep.subr.mxu1 %v7375_v10 }
 0xc16   :  { %v5735_v40 = vcombine.low %v5727_v20, %v5734_v0  ;;  %v7359_v50 = vld [vmem:[%s14104_s21 + $0x150] sm:$0xff]  ;;  %v7342_v20 = vld [vmem:[%s14104_s21 + $0xc8] sm:$0xff]  ;;  %8512 = vmatpush3.msra.mxu0 %v7327_v22 }
 0xc17   :  { %v7374_v0 = vld [vmem:[%s14104_s21 + $0x1c8] sm:$0xff]  ;;  %8547 = vmatpush3.msra.mxu1 %v7359_v50  ;;  %8513 = vmatprep.subr.mxu0 %v7342_v20 }
 0xc18   :  { %v5742_v23 = vrot.slane %v5735_v40, %v12873_v19  ;;  %v7326_v13 = vld [vmem:[%s14104_s21 + $0x48] sm:$0xff]  ;;  %8548 = vmatprep.subr.mxu1 %v7374_v0 }
 0xc19   :  { %v7358_v42 = vld [vmem:[%s14104_s21 + $0x148] sm:$0xff]  ;;  %8514 = vmatpush3.msra.mxu0 %v7326_v13 }
 0xc1a   :  { %v5744_v30 = vadd.f32 %v5742_v23, %v5483_v35  ;;  %v7341_v23 = vld [vmem:[%s14104_s21 + $0xc0] sm:$0xff]  ;;  %8549 = vmatpush3.msra.mxu1 %v7358_v42 }
 0xc1b   :  { %8515 = vmatprep.subr.mxu0 %v7341_v23 }
 0xc27   :  { %v5928_v8 = vpop.f32.mrf.mxu0  ;;  %v5969_v14 = vpop.f32.mrf.mxu1 }
 0xc29   :  { %v5930_v11 = vpop.f32.mrf.mxu0  ;;  %v5971_v46 = vpop.f32.mrf.mxu1 }
 0xc2a   :  { %v5980_v17 = vcombine.low %v5928_v8, %v5930_v11  ;;  %v5981_v33 = vcombine.low %v5969_v14, %v5971_v46  ;;  %v7325_v8 = vld [vmem:[%s14104_s21 + $0x40] sm:$0xff]  ;;  %v7340_v11 = vld [vmem:[%s14104_s21 + $0xb8] sm:$0xff] }
 0xc2b   :  { %v5932_v18 = vpop.f32.mrf.mxu0  ;;  %v5973_v28 = vpop.f32.mrf.mxu1  ;;  %v7357_v14 = vld [vmem:[%s14104_s21 + $0x140] sm:$0xff]  ;;  %v7372_v46 = vld [vmem:[%s14104_s21 + $0x1b8] sm:$0xff]  ;;  %8516 = vmatpush3.msra.mxu0 %v7325_v8 }
 0xc2c   :  { %v5988_v55 = vrot.slane %v5980_v17, %v12873_v19  ;;  %v5995_v4 = vrot.slane %v5981_v33, %v12873_v19  ;;  %v7324_v17 = vld [vmem:[%s14104_s21 + $0x38] sm:$0xff]  ;;  %v7339_v18 = vld [vmem:[%s14104_s21 + $0xb0] sm:$0xff]  ;;  %8517 = vmatprep.subr.mxu0 %v7340_v11 }
 0xc2d   :  { %v5933_v56 = vpop.f32.mrf.mxu0  ;;  %v5974_v52 = vpop.f32.mrf.mxu1  ;;  %v7356_v33 = vld [vmem:[%s14104_s21 + $0x138] sm:$0xff]  ;;  %v7371_v28 = vld [vmem:[%s14104_s21 + $0x1b0] sm:$0xff]  ;;  %8518 = vmatpush3.msra.mxu0 %v7324_v17 }
 0xc2e   :  { %v5996_v39 = vcombine.low %v5988_v55, %v5995_v4  ;;  %v7323_v55 = vld [vmem:[%s14104_s21 + $0x30] sm:$0xff]  ;;  %v7338_v56 = vld [vmem:[%s14104_s21 + $0xa8] sm:$0xff]  ;;  %8519 = vmatprep.subr.mxu0 %v7339_v18 }
 0xc2f   :  { %v7355_v4 = vld [vmem:[%s14104_s21 + $0x130] sm:$0xff]  ;;  %v7370_v52 = vld [vmem:[%s14104_s21 + $0x1a8] sm:$0xff]  ;;  %8520 = vmatpush3.msra.mxu0 %v7323_v55 }
 0xc30   :  { %v6003_v57 = vrot.slane %v5996_v39, %v12873_v19  ;;  %v7322_v39 = vld [vmem:[%s14104_s21 + $0x28] sm:$0xff]  ;;  %8521 = vmatprep.subr.mxu0 %v7338_v56 }
 0xc31   :  { %8522 = vmatpush3.msra.mxu0 %v7322_v39 }
 0xc32   :  { %v13791_v41 = vadd.f32 %v6003_v57, %v5744_v30  ;;  %v7373_v30 = vld [vmem:[%s14104_s21 + $0x1c0] sm:$0xff]  ;;  %v7354_v57 = vld [vmem:[%s14104_s21 + $0x128] sm:$0xff] }
 0xc33   :  { %8550 = vmatprep.subr.mxu1 %v7373_v30 }
 0xc34   :  { %8551 = vmatpush3.msra.mxu1 %v7357_v14 }
 0xc35   :  { %8552 = vmatprep.subr.mxu1 %v7372_v46 }
 0xc36   :  { %8553 = vmatpush3.msra.mxu1 %v7356_v33 }
 0xc37   :  { %8554 = vmatprep.subr.mxu1 %v7371_v28 }
 0xc38   :  { %8555 = vmatpush3.msra.mxu1 %v7355_v4 }
 0xc39   :  { %8556 = vmatprep.subr.mxu1 %v7370_v52 }
 0xc3a   :  { %8557 = vmatpush3.msra.mxu1 %v7354_v57 }
 0xc3b   :  { %8558 = vmatprep.subr.mxu1 %v7369_v38 }
 0xc3c   :  { %8559 = vmatpush3.msra.mxu1 %v7353_v47 }
 0xc3f   :  { %v6189_v36 = vpop.f32.mrf.mxu0  ;;  %v6230_v15 = vpop.f32.mrf.mxu1 }
 0xc41   :  { %v6191_v6 = vpop.f32.mrf.mxu0  ;;  %v6232_v48 = vpop.f32.mrf.mxu1 }
 0xc42   :  { %v6241_v26 = vcombine.low %v6189_v36, %v6191_v6  ;;  %v6242_v49 = vcombine.low %v6230_v15, %v6232_v48  ;;  %v7336_v36 = vld [vmem:[%s14104_s21 + $0x98] sm:$0xff]  ;;  %v7319_v6 = vld [vmem:[%s14104_s21 + $0x10] sm:$0xff] }
 0xc43   :  { %v6193_v21 = vpop.f32.mrf.mxu0  ;;  %v6234_v16 = vpop.f32.mrf.mxu1  ;;  %v7368_v15 = vld [vmem:[%s14104_s21 + $0x198] sm:$0xff]  ;;  %v7351_v48 = vld [vmem:[%s14104_s21 + $0x110] sm:$0xff] }
 0xc44   :  { %v6249_v5 = vrot.slane %v6241_v26, %v12873_v19  ;;  %v6256_v29 = vrot.slane %v6242_v49, %v12873_v19  ;;  %8560 = vmatprep.subr.mxu1 %v7368_v15  ;;  %v7318_v49 = vld [vmem:[%s14104_s21 + $0x8] sm:$0xff]  ;;  %v7333_v16 = vld [vmem:[%s14104_s21 + $0x80] sm:$0xff] }
 0xc45   :  { %v6194_v53 = vpop.f32.mrf.mxu0  ;;  %v6235_v35 = vpop.f32.mrf.mxu1  ;;  %8561 = vmatpush3.msra.mxu1 %v7352_v63 }
 0xc46   :  { %v6257_v51 = vcombine.low %v6249_v5, %v6256_v29  ;;  %8562 = vmatprep.subr.mxu1 %v7367_v37  ;;  %v7317_v29 = vld [vmem:[%s14104_s21] sm:$0xff] }
 0xc47   :  { %8563 = vmatpush3.msra.mxu1 %v7351_v48 }
 0xc48   :  { %v6264_v54 = vrot.slane %v6257_v51, %v12873_v19  ;;  %8564 = vmatprep.subr.mxu1 %v7366_v43 }
 0xc49   :  { %8565 = vmatpush3.msra.mxu1 %v7350_v60 }
 0xc4a   :  { %v13881_v40 = vadd.f32 %v6264_v54, %v13791_v41  ;;  %v7337_v41 = vld [vmem:[%s14104_s21 + $0xa0] sm:$0xff]  ;;  %8566 = vmatprep.subr.mxu1 %v7365_v7 }
 0xc4b   :  { %8523 = vmatprep.subr.mxu0 %v7337_v41  ;;  %8567 = vmatpush3.msra.mxu1 %v7349_v27 }
 0xc4c   :  { %8524 = vmatpush3.msra.mxu0 %v7321_v31 }
 0xc4d   :  { %8525 = vmatprep.subr.mxu0 %v7336_v36 }
 0xc4e   :  { %8526 = vmatpush3.msra.mxu0 %v7320_v62 }
 0xc4f   :  { %8527 = vmatprep.subr.mxu0 %v7335_v12 }
 0xc50   :  { %8528 = vmatpush3.msra.mxu0 %v7319_v6 }
 0xc51   :  { %8529 = vmatprep.subr.mxu0 %v7334_v45 }
 0xc52   :  { %8530 = vmatpush3.msra.mxu0 %v7318_v49 }
 0xc53   :  { %8531 = vmatprep.subr.mxu0 %v7333_v16 }
 0xc54   :  { %8532 = vmatpush3.msra.mxu0 %v7317_v29 }
 0xc55   :  { %9051 = vmatprep.subr.mxu0 %v14227_v3 }
 0xc57   :  { %v6450_v1 = vpop.f32.mrf.mxu0  ;;  %v6491_v9 = vpop.f32.mrf.mxu1 }
 0xc59   :  { %v6452_v61 = vpop.f32.mrf.mxu0  ;;  %v6493_v26 = vpop.f32.mrf.mxu1 }
 0xc5a   :  { %v6502_v59 = vcombine.low %v6450_v1, %v6452_v61  ;;  %v6503_v21 = vcombine.low %v6491_v9, %v6493_v26 }
 0xc5b   :  { %v6454_v24 = vpop.f32.mrf.mxu0  ;;  %v6495_v5 = vpop.f32.mrf.mxu1 }
 0xc5c   :  { %v6510_v32 = vrot.slane %v6502_v59, %v12873_v19  ;;  %v6517_v53 = vrot.slane %v6503_v21, %v12873_v19  ;;  %v14263_v5 = vld [vmem:[#allocation9_spill] sm:$0xff] }
 0xc5d   :  { %v6455_v35 = vpop.f32.mrf.mxu0  ;;  %v6496_v25 = vpop.f32.mrf.mxu1 }
 0xc5e   :  { %v6518_v34 = vcombine.low %v6510_v32, %v6517_v53  ;;  %v14264_v32 = vld [vmem:[#allocation8_spill] sm:$0xff] }
 0xc5f   :  { %v7561_v35 = vld [vmem:[%s14106_s23 + $0x60] sm:$0xff]  ;;  %v7560_v25 = vld [vmem:[%s14106_s23 + $0x58] sm:$0xff] }
 0xc60   :  { %v6525_v51 = vrot.slane %v6518_v34, %v12873_v19  ;;  %v7559_v34 = vld [vmem:[%s14106_s23 + $0x50] sm:$0xff] }
 0xc62   :  { %v6527_v58 = vadd.f32 %v6525_v51, %v13881_v40  ;;  %v7558_v51 = vld [vmem:[%s14106_s23 + $0x48] sm:$0xff] }
 0xc6f   :  { %v6711_v10 = vpop.f32.mrf.mxu0  ;;  %v6752_v22 = vpop.f32.mrf.mxu1 }
 0xc71   :  { %v6713_v50 = vpop.f32.mrf.mxu0  ;;  %v6754_v54 = vpop.f32.mrf.mxu1 }
 0xc72   :  { %v6763_v20 = vcombine.low %v6711_v10, %v6713_v50  ;;  %v6764_v0 = vcombine.low %v6752_v22, %v6754_v54  ;;  %v7556_v10 = vld [vmem:[%s14106_s23 + $0x38] sm:$0xff]  ;;  %v7555_v22 = vld [vmem:[%s14106_s23 + $0x30] sm:$0xff]  ;;  %v7554_v50 = vld [vmem:[%s14106_s23 + $0x28] sm:$0xff] }
 0xc73   :  { %v6715_v13 = vpop.f32.mrf.mxu0  ;;  %v6756_v42 = vpop.f32.mrf.mxu1  ;;  %v7553_v54 = vld [vmem:[%s14106_s23 + $0x20] sm:$0xff] }
 0xc74   :  { %v6771_v23 = vrot.slane %v6763_v20, %v12873_v19  ;;  %v6778_v30 = vrot.slane %v6764_v0, %v12873_v19  ;;  %v7552_v20 = vld [vmem:[%s14106_s23 + $0x18] sm:$0xff]  ;;  %v7551_v0 = vld [vmem:[%s14106_s23 + $0x10] sm:$0xff]  ;;  %v7550_v13 = vld [vmem:[%s14106_s23 + $0x8] sm:$0xff] }
 0xc75   :  { %v6716_v8 = vpop.f32.mrf.mxu0  ;;  %v6757_v14 = vpop.f32.mrf.mxu1  ;;  %v7549_v42 = vld [vmem:[%s14106_s23] sm:$0xff] }
 0xc76   :  { %v6779_v11 = vcombine.low %v6771_v23, %v6778_v30  ;;  %v7381_v8 = vld [vmem:[%s14105_s22] sm:$0x1]  ;;  %s9645_s22 = scalar_lea.vmem %s7645_s10, 16 }
 0xc77   :  { %p9646_p0 = scmp.ne.s32.totalorder %s7645_s10, %s9645_s22  ;;  %p9651_p2 = scmp.lt.s32.totalorder %s9649_s2, %s9645_s22 }
 0xc78   :  { %v6786_v46 = vrot.slane %v6779_v11, %v12873_v19 }
 0xc79   :  { %p9652_p3 = por %p9651_p2, %p9650_p1 }
 0xc7a   :  { %v6788_v17 = vadd.f32 %v6786_v46, %v6527_v58  ;;  %v7557_v58 = vld [vmem:[%s14106_s23 + $0x40] sm:$0xff] }
 0xc7b   :  { %p9653_p4 = pnand %p9652_p3, %p9646_p0 }
 0xc87   :  { %v6972_v33 = vpop.f32.mrf.mxu0  ;;  %v7013_v40 = vpop.f32.mrf.mxu1 }
 0xc89   :  { %v6974_v18 = vpop.f32.mrf.mxu0  ;;  %v7015_v28 = vpop.f32.mrf.mxu1 }
 0xc8a   :  { %v7024_v55 = vcombine.low %v6972_v33, %v6974_v18  ;;  %v7025_v4 = vcombine.low %v7013_v40, %v7015_v28 }
 0xc8b   :  { %v6976_v56 = vpop.f32.mrf.mxu0  ;;  %v7017_v52 = vpop.f32.mrf.mxu1 }
 0xc8c   :  { %v7032_v39 = vrot.slane %v7024_v55, %v12873_v19  ;;  %v7039_v57 = vrot.slane %v7025_v4, %v12873_v19 }
 0xc8d   :  { %v6977_v41 = vpop.f32.mrf.mxu0  ;;  %v7018_v38 = vpop.f32.mrf.mxu1 }
 0xc8e   :  { %v7040_v31 = vcombine.low %v7032_v39, %v7039_v57 }
 0xc90   :  { %v7047_v47 = vrot.slane %v7040_v31, %v12873_v19 }
 0xc92   :  { %v7049_v36 = vadd.f32 %v7047_v47, %v6788_v17 }
 0xc9f   :  { %v7233_v15 = vpop.f32.mrf.mxu0  ;;  %v7274_v62 = vpop.f32.mrf.mxu1 }
 0xca1   :  { %v7235_v63 = vpop.f32.mrf.mxu0  ;;  %v7276_v12 = vpop.f32.mrf.mxu1 }
 0xca2   :  { %v7285_v37 = vcombine.low %v7233_v15, %v7235_v63  ;;  %v7286_v1 = vcombine.low %v7274_v62, %v7276_v12 }
 0xca3   :  { %v7237_v9 = vpop.f32.mrf.mxu0  ;;  %v7278_v6 = vpop.f32.mrf.mxu1 }
 0xca4   :  { %v7293_v48 = vrot.slane %v7285_v37, %v12873_v19  ;;  %v7300_v45 = vrot.slane %v7286_v1, %v12873_v19 }
 0xca5   :  { %v7238_v43 = vpop.f32.mrf.mxu0  ;;  %v7279_v61 = vpop.f32.mrf.mxu1 }
 0xca6   :  { %v7301_v26 = vcombine.low %v7293_v48, %v7300_v45 }
 0xca8   :  { %v7308_v49 = vrot.slane %v7301_v26, %v12873_v19  ;;  %v7564_v19 = vld [vmem:[%s14106_s23 + $0x78] sm:$0xff] }
 0xcaa   :  { %v7310_v60 = vadd.f32 %v7308_v49, %v7049_v36 }
 0xcac   :  { %v8283_v59 = vmul.f32 -1.442695, %v7310_v60 }
 0xcae   :  { %9623 = vpow2.f32 %v8283_v59 }
 0xcbb   :  { %v9624_v21 = vpop.eup %9623 }
 0xcbc   :  { %v7314_v16 = vadd.f32 1.0, %v9624_v21 }
 0xcbe   :  { %9625 = vrcp.f32 %v7314_v16 }
 0xccb   :  { %v9626_v7 = vpop.eup %9625 }
 0xccc   :  { %v7390_v24 = vrot.slane %v9626_v7, %v14240_v2  ;;  %v7398_v29 = vrot.slane %v9626_v7, %v14263_v5  ;;  %v7386_v27 = vrot.slane %v9626_v7, %v14239_v44  ;;  %v7394_v53 = vrot.slane %v9626_v7, %v14264_v32  ;;  %v7563_v2 = vld [vmem:[%s14106_s23 + $0x70] sm:$0xff]  ;;  %v7562_v44 = vld [vmem:[%s14106_s23 + $0x68] sm:$0xff] }
 0xcce   :  { %7467 = vmatprep.mubr.f32.mxu0 %v7390_v24  ;;  %7537 = vmatprep.mubr.f32.mxu1 %v7398_v29 }
 0xccf   :  { %7468 = vmatmul.mubr.f32.vlgmr.msra.gmra.mxu0 %v7386_v27  ;;  %7538 = vmatmul.mubr.f32.vlgmr.msra.gmra.mxu1 %v7394_v53 }
 0xcd0   :  { %9083 = vmatprep.mubr.msk.f32.mxu0 %vm14192_vm15, %v14227_v3  ;;  %9052 = vmatpush3.msra.mxu0 %v7564_v19  ;;  %vm7636_vm15 = vcmask 8192  }
 0xcd1   :  { %9053 = vmatprep.subr.mxu0 %v14227_v3 }
 0xcd2   :  { %9054 = vmatpush3.msra.mxu0 %v7563_v2 }
 0xcd3   :  { %9055 = vmatprep.subr.mxu0 %v14227_v3 }
 0xcd4   :  { %9056 = vmatpush3.msra.mxu0 %v7562_v44 }
 0xcd5   :  { %9057 = vmatprep.subr.mxu0 %v14227_v3 }
 0xcd6   :  { %9058 = vmatpush3.msra.mxu0 %v7561_v35 }
 0xcd7   :  { %9059 = vmatprep.subr.mxu0 %v14227_v3 }
 0xcd8   :  { %9060 = vmatpush3.msra.mxu0 %v7560_v25 }
 0xcd9   :  { %9061 = vmatprep.subr.mxu0 %v14227_v3 }
 0xcda   :  { %9062 = vmatpush3.msra.mxu0 %v7559_v34 }
 0xcdb   :  { %9063 = vmatprep.subr.mxu0 %v14227_v3 }
 0xcdc   :  { %9064 = vmatpush3.msra.mxu0 %v7558_v51 }
 0xcdd   :  { %9065 = vmatprep.subr.mxu0 %v14227_v3 }
 0xcde   :  { %9066 = vmatpush3.msra.mxu0 %v7557_v58 }
 0xcdf   :  { %9067 = vmatprep.subr.mxu0 %v14227_v3 }
 0xce0   :  { %9068 = vmatpush3.msra.mxu0 %v7556_v10 }
 0xce1   :  { %9069 = vmatprep.subr.mxu0 %v14227_v3 }
 0xce2   :  { %9070 = vmatpush3.msra.mxu0 %v7555_v22 }
 0xce3   :  { %9071 = vmatprep.subr.mxu0 %v14227_v3 }
 0xce4   :  { %9072 = vmatpush3.msra.mxu0 %v7554_v50 }
 0xce5   :  { %9073 = vmatprep.subr.mxu0 %v14227_v3 }
 0xce6   :  { %9074 = vmatpush3.msra.mxu0 %v7553_v54 }
 0xce7   :  { %9075 = vmatprep.subr.mxu0 %v14227_v3 }
 0xce8   :  { %9076 = vmatpush3.msra.mxu0 %v7552_v20 }
 0xce9   :  { %9077 = vmatprep.subr.mxu0 %v14227_v3 }
 0xcea   :  { %9078 = vmatpush3.msra.mxu0 %v7551_v0 }
 0xceb   :  { %9079 = vmatprep.subr.mxu0 %v14227_v3 }
 0xcec   :  { %9080 = vmatpush3.msra.mxu0 %v7550_v13 }
 0xced   :  { %9081 = vmatprep.subr.mxu0 %v14227_v3  ;;  %v7565_v3 = vld [vmem:[%s14107_s24] sm:$0x1] }
 0xcee   :  { %9082 = vmatpush3.msra.mxu0 %v7549_v42 }
 0xd8f   :  { %v8533_v23 = vpop.f32.mrf.mxu0  ;;  %v8568_v30 = vpop.f32.mrf.mxu1 }
 0xd91   :  { %v8534_v14 = vpop.f32.mrf.mxu0  ;;  %v8569_v11 = vpop.f32.mrf.mxu1 }
 0xd92   :  { %v8535_v46 = vadd.f32 %v8534_v14, %v8533_v23  ;;  %v8570_v33 = vadd.f32 %v8569_v11, %v8568_v30 }
 0xd94   :  { %v7470_v17 = vadd.f32 %v8535_v46, %v7381_v8 }
 0xd96   :  { %v7540_v40 = vadd.f32 %v8570_v33, %v7470_v17 }
 0xd98   :  { %v8284_v18 = vmul.f32 -1.442695, %v7540_v40 }
 0xd9a   :  { %9627 = vpow2.f32 %v8284_v18 }
 0xda7   :  { %v9628_v28 = vpop.eup %9627 }
 0xda8   :  { %v7546_v55 = vadd.f32 1.0, %v9628_v28 }
 0xdaa   :  { %9629 = vrcp.f32 %v7546_v55 }
 0xdb7   :  { %v9630_v4 = vpop.eup %9629 }
 0xdb8   :  { %9084 = vmatmul.mubr.f32.vlgmr.msra.gmra.mxu0 %v9630_v4 }
 0xe78   :  { %v7632_v56 = vpop.f32.mrf.mxu0 }
 0xe79   :  { %v7633_v52 = vadd.f32 %v7632_v56, %v7565_v3 }
 0xe7a   :  { %v9085_v39 = vpop.f32.mrf.mxu0 }
 0xe7b   :  { %7637 = vst.msk [vmem:[#allocation2] sm:$0x1] %vm7636_vm15, %v7633_v52 }
 0xe7c   :  { %9656 = shalt.err (!%p9653_p4)
}
 0xe7d   :  { %7647 = dma.vmem_to_hbm [thread:$0]  %s7645_s10, 16, %s14108_s25, [#allocation3]  }
 0xe7e   :  { %9665 = dma.done.wait [#allocation3], 16  }
 0xe7f   :  { %9666 = vsyncadd [#allocation3], 4294967280 }
 0xe80   :  { %7651 = vsyncpa [#allocation3], 1 }

</bundles_post_ra>
